<compile_context>
chip_gen: v5e
topology: v5e:2x2
jax: 0.10.0
libtpu: 0.0.40
codegen_flags: <defaults>
</compile_context>

<pallas_src>
import functools

import numpy as np
import jax
import jax.numpy as jnp
from jax import lax
from jax.experimental import pallas as pl
from jax.experimental.pallas import tpu as pltpu

VMEM = pltpu.MemorySpace.VMEM


def _vspec():
    # Whole-array block resident in VMEM (all operands here are tiny).
    return pl.BlockSpec(memory_space=VMEM)


def _attn_indicators(Skv, H, D):
    """One-hot matrices so the MXU does all segmented head reduces/broadcasts."""
    Dh = D // H
    rows = np.arange(Skv * D)
    tgt = (rows // D) * H + (rows % D) // Dh            # (j, h) score lane for lane (j,h,d)
    g_red = np.zeros((Skv * D, Skv * H), np.float32)
    g_red[rows, tgt] = 1.0                              # reduce per (j, h) head group
    g_exp = np.ascontiguousarray(g_red.T)               # broadcast (j, h) -> (j, h, d) lanes
    sc = np.arange(Skv * H)
    g_sum = np.zeros((Skv * H, H), np.float32)
    g_sum[sc, sc % H] = 1.0                             # sum over j per head (softmax denom)
    g_sumT = np.ascontiguousarray(g_sum.T)              # broadcast per-head denom over j
    r_red = np.tile(np.eye(D, dtype=np.float32), (Skv, 1))   # sum over j per output lane
    return tuple(jnp.asarray(a) for a in (g_red, g_exp, g_sum, g_sumT, r_red))


# ------------------------------ fused kernel ------------------------------

def _fused_kernel(*refs, n_enc, n_dec, H, S, T, N, D, Vpad):
    (src_ids, tgt_ids, emb, pos,
     e_w_in, e_b_in, e_w_out, e_b_out, e_w1, e_b1, e_w2, e_b2,
     e_g1, e_be1, e_g2, e_be2,
     d_w_in, d_b_in, d_w_out, d_b_out,
     d_wq, d_bq, d_wkv, d_bkv, d_wco, d_bco,
     d_w1, d_b1, d_w2, d_b2,
     d_g1, d_be1, d_g2, d_be2, d_g3, d_be3,
     en_g, en_b, de_g, de_b, fc_w, fc_b,
     ln_red, g_red, g_exp, g_sum, g_sumT, r_red,
     out_ref) = refs

    f32 = jnp.float32
    bf16 = jnp.bfloat16

    # tiny constant matrices, loaded once
    LNR = ln_red[...]
    GR, GE, GS, GST, RR = g_red[...], g_exp[...], g_sum[...], g_sumT[...], r_red[...]
    EMB = emb[...]                      # (Vpad, D) f32 padded embedding table
    POS = pos[...][:N, :]               # (N, D) positional slab

    def linear(x, w, b):
        # w pre-transposed (K, N) + pre-cast bf16 (MXU-native); f32 accumulate; f32 bias.
        return jnp.dot(x.astype(bf16), w, preferred_element_type=f32) + b

    def layernorm(x, g, b, eps=1e-5):
        # One fused MXU reduction for [mean, mean(x^2)] instead of two XLU lane reduces.
        stats = jnp.dot(jnp.concatenate([x, x * x], axis=1), LNR,
                        preferred_element_type=f32)               # (rows, 2)
        mu = stats[:, 0:1]
        var = stats[:, 1:2] - mu * mu
        return (x - mu) * lax.rsqrt(var + eps) * g + b

    def embed(ids_ref, rows, reps):
        # Fused embedding gather (one-hot matmul on MXU) + positional-encoding add.
        ids = ids_ref[...]                                        # (rows, 1) int32
        cols = lax.broadcasted_iota(jnp.int32, (rows, Vpad), 1)
        onehot = (cols == ids).astype(f32)
        x = jnp.dot(onehot, EMB, preferred_element_type=f32)      # exact gather
        return x + jnp.concatenate([POS] * reps, axis=0)

    def attention(q2, kv2, Sq, Skv):
        # q2: (Sq*N, D) scaled queries; kv2: (Skv*N, 2D) = [K|V]; rows ordered (s, n).
        # Skv == S == T == B always (nn.Transformer batch-dim constraint), so the
        # indicator matrices GR/GE/GS/GST/RR (sized for Skv=B) apply to every call.
        K = kv2[:, :D]
        V = kv2[:, D:]
        # permute (j, n)-ordered rows into a lane-major (n, j*D+c) slab, then tile over s
        K_perm = jnp.concatenate([K[j * N:(j + 1) * N, :] for j in range(Skv)], axis=1)
        V_perm = jnp.concatenate([V[j * N:(j + 1) * N, :] for j in range(Skv)], axis=1)
        K_full = jnp.concatenate([K_perm] * Sq, axis=0)           # (Sq*N, Skv*D)
        V_full = jnp.concatenate([V_perm] * Sq, axis=0)           # (Sq*N, Skv*D)
        Q_full = jnp.concatenate([q2] * Skv, axis=1)              # (Sq*N, Skv*D)

        # scores for all (key j, head h) pairs: full-width VPU multiply + MXU segmented reduce
        s = jnp.dot(Q_full * K_full, GR, preferred_element_type=f32)   # (Sq*N, Skv*H)
        m = jnp.max(s, axis=-1, keepdims=True)     # per-row max over all heads (softmax-invariant)
        p = jnp.exp(s - m)
        denom = jnp.dot(p, GS, preferred_element_type=f32)             # (Sq*N, H)
        inv = pl.reciprocal(denom, approx=True)                        # EUP
        pn = p * jnp.dot(inv, GST, preferred_element_type=f32)         # normalized weights
        P_full = jnp.dot(pn, GE, preferred_element_type=f32)           # (Sq*N, Skv*D)
        return jnp.dot(P_full * V_full, RR, preferred_element_type=f32)  # (Sq*N, D)

    # ---------------- encoder stack ----------------
    x = embed(src_ids, S * N, S)                                   # (S*N, D)
    for l in range(n_enc):
        qkv = linear(x, e_w_in[l], e_b_in[l])                      # one QKV matmul
        a = attention(qkv[:, :D], qkv[:, D:], S, S)
        a = linear(a, e_w_out[l], e_b_out[l])
        x = layernorm(x + a, e_g1[l], e_be1[l])
        ff = jnp.maximum(linear(x, e_w1[l], e_b1[l]), 0.0)
        ff = linear(ff, e_w2[l], e_b2[l])
        x = layernorm(x + ff, e_g2[l], e_be2[l])
    mem = layernorm(x, en_g[...], en_b[...])                       # encoder final norm

    # ---------------- decoder stack ----------------
    y = embed(tgt_ids, T * N, T)                                   # (T*N, D)
    for l in range(n_dec):
        qkv = linear(y, d_w_in[l], d_b_in[l])
        a = attention(qkv[:, :D], qkv[:, D:], T, T)
        a = linear(a, d_w_out[l], d_b_out[l])
        y = layernorm(y + a, d_g1[l], d_be1[l])

        q = linear(y, d_wq[l], d_bq[l])                            # cross-attn Q (scaled)
        kv = linear(mem, d_wkv[l], d_bkv[l])                       # cross-attn K|V
        c = attention(q, kv, T, S)
        c = linear(c, d_wco[l], d_bco[l])
        y = layernorm(y + c, d_g2[l], d_be2[l])

        ff = jnp.maximum(linear(y, d_w1[l], d_b1[l]), 0.0)
        ff = linear(ff, d_w2[l], d_b2[l])
        y = layernorm(y + ff, d_g3[l], d_be3[l])
    y = layernorm(y, de_g[...], de_b[...])                         # decoder final norm

    # lane-dense (padded to 128) output projection
    out_ref[...] = linear(y, fc_w[...], fc_b[...]).astype(out_ref.dtype)


# ------------------------------ parameter prep ------------------------------

def init_params(key, vocab_size, d_model, nhead, n_enc, n_dec, dff, max_len):
    """Parameters in PyTorch layouts (Linear weight = (out, in))."""
    keys = iter(jax.random.split(key, 128))

    def w(shape, scale=0.02):
        return (scale * jax.random.normal(next(keys), shape)).astype(jnp.float32)

    def zeros(shape):
        return jnp.zeros(shape, jnp.float32)

    def ones(shape):
        return jnp.ones(shape, jnp.float32)

    def attn_params():
        return dict(in_proj_w=w((3 * d_model, d_model)),
                    in_proj_b=zeros((3 * d_model,)),
                    out_proj_w=w((d_model, d_model)),
                    out_proj_b=zeros((d_model,)))

    def enc_layer_params():
        return dict(self_attn=attn_params(),
                    lin1_w=w((dff, d_model)), lin1_b=zeros((dff,)),
                    lin2_w=w((d_model, dff)), lin2_b=zeros((d_model,)),
                    norm1_g=ones((d_model,)), norm1_b=zeros((d_model,)),
                    norm2_g=ones((d_model,)), norm2_b=zeros((d_model,)))

    def dec_layer_params():
        return dict(self_attn=attn_params(),
                    cross_attn=attn_params(),
                    lin1_w=w((dff, d_model)), lin1_b=zeros((dff,)),
                    lin2_w=w((d_model, dff)), lin2_b=zeros((d_model,)),
                    norm1_g=ones((d_model,)), norm1_b=zeros((d_model,)),
                    norm2_g=ones((d_model,)), norm2_b=zeros((d_model,)),
                    norm3_g=ones((d_model,)), norm3_b=zeros((d_model,)))

    return dict(
        embedding=w((vocab_size, d_model), scale=1.0),
        pos=zeros((1, max_len, d_model)),          # torch.zeros init
        enc_layers=[enc_layer_params() for _ in range(n_enc)],
        dec_layers=[dec_layer_params() for _ in range(n_dec)],
        enc_norm_g=ones((d_model,)), enc_norm_b=zeros((d_model,)),
        dec_norm_g=ones((d_model,)), dec_norm_b=zeros((d_model,)),
        fc_out_w=w((vocab_size, d_model)), fc_out_b=zeros((vocab_size,)),
    )


def prepare_params(p, *, nhead, vocab_pad=128):
    """Transpose / scale / pad / bf16-cast / stack params into kernel layout."""
    D = p["embedding"].shape[1]
    Dh = D // nhead
    scale = jnp.float32(1.0 / (Dh ** 0.5))
    bf16 = jnp.bfloat16

    def qkv_scaled(a):
        w = a["in_proj_w"].T                                     # (D, 3D)
        b = a["in_proj_b"].reshape(1, 3 * D)
        sc = jnp.concatenate([jnp.full((1, D), scale, jnp.float32),
                              jnp.ones((1, 2 * D), jnp.float32)], axis=1)
        return (w * sc).astype(bf16), b * sc                     # fold 1/sqrt(Dh) into Q

    def enc_fields(lp):
        w_in, b_in = qkv_scaled(lp["self_attn"])
        return (w_in, b_in,
                lp["self_attn"]["out_proj_w"].T.astype(bf16),
                lp["self_attn"]["out_proj_b"].reshape(1, D),
                lp["lin1_w"].T.astype(bf16), lp["lin1_b"].reshape(1, -1),
                lp["lin2_w"].T.astype(bf16), lp["lin2_b"].reshape(1, D),
                lp["norm1_g"].reshape(1, D), lp["norm1_b"].reshape(1, D),
                lp["norm2_g"].reshape(1, D), lp["norm2_b"].reshape(1, D))

    def dec_fields(lp):
        sw_in, sb_in = qkv_scaled(lp["self_attn"])
        cw = lp["cross_attn"]["in_proj_w"].T                     # (D, 3D)
        cb = lp["cross_attn"]["in_proj_b"].reshape(1, 3 * D)
        return (sw_in, sb_in,
                lp["self_attn"]["out_proj_w"].T.astype(bf16),
                lp["self_attn"]["out_proj_b"].reshape(1, D),
                (cw[:, :D] * scale).astype(bf16), cb[:, :D] * scale,   # cross Q (scaled)
                cw[:, D:].astype(bf16), cb[:, D:],                     # cross K|V
                lp["cross_attn"]["out_proj_w"].T.astype(bf16),
                lp["cross_attn"]["out_proj_b"].reshape(1, D),
                lp["lin1_w"].T.astype(bf16), lp["lin1_b"].reshape(1, -1),
                lp["lin2_w"].T.astype(bf16), lp["lin2_b"].reshape(1, D),
                lp["norm1_g"].reshape(1, D), lp["norm1_b"].reshape(1, D),
                lp["norm2_g"].reshape(1, D), lp["norm2_b"].reshape(1, D),
                lp["norm3_g"].reshape(1, D), lp["norm3_b"].reshape(1, D))

    enc_stacked = [jnp.stack(f) for f in zip(*[enc_fields(lp) for lp in p["enc_layers"]])]
    dec_stacked = [jnp.stack(f) for f in zip(*[dec_fields(lp) for lp in p["dec_layers"]])]

    V = p["fc_out_w"].shape[0]
    fc_w = jnp.pad(p["fc_out_w"].T, ((0, 0), (0, vocab_pad - V))).astype(bf16)   # (D, 128)
    fc_b = jnp.pad(p["fc_out_b"], (0, vocab_pad - V)).reshape(1, vocab_pad)
    emb_pad = jnp.pad(p["embedding"], ((0, vocab_pad - V), (0, 0)))              # (128, D)

    weights = tuple(enc_stacked) + tuple(dec_stacked) + (
        p["enc_norm_g"].reshape(1, D), p["enc_norm_b"].reshape(1, D),
        p["dec_norm_g"].reshape(1, D), p["dec_norm_b"].reshape(1, D),
        fc_w, fc_b)

    return {"emb_pad": emb_pad, "pos": p["pos"][0], "weights": weights}


# ------------------------------ cost estimate ------------------------------

def _cost_estimate(args, out_shape, *, S, T, N, D, H, dff, n_enc, n_dec, Vpad):
    rs, rt = S * N, T * N
    mm = lambda m, k, n: 2 * m * k * n
    attn = lambda rq: (mm(rq, S * D, S * H) + mm(rq, S * H, H) + mm(rq, H, S * H)
                       + mm(rq, S * H, S * D) + mm(rq, S * D, D) + 3 * rq * S * D)
    ln = lambda r: mm(r, 2 * D, 2) + 6 * r * D
    enc = (mm(rs, D, 3 * D) + attn(rs) + mm(rs, D, D)
           + mm(rs, D, dff) + mm(rs, dff, D) + 2 * ln(rs))
    dec = (mm(rt, D, 3 * D) + attn(rt) + 2 * mm(rt, D, D) + mm(rt, D, D)
           + mm(rs, D, 2 * D) + attn(rt)
           + mm(rt, D, dff) + mm(rt, dff, D) + 3 * ln(rt))
    flops = (mm(rs, Vpad, D) + mm(rt, Vpad, D) + n_enc * enc + n_dec * dec
             + ln(rs) + ln(rt) + mm(rt, D, Vpad))
    transcendentals = (n_enc * rs + 2 * n_dec * rt) * S * H + (2 * n_enc + 3 * n_dec + 2) * rt
    bytes_accessed = sum(int(a.size) * a.dtype.itemsize for a in args)
    bytes_accessed += int(np.prod(out_shape.shape)) * out_shape.dtype.itemsize
    return pl.CostEstimate(flops=int(flops), transcendentals=int(transcendentals),
                           bytes_accessed=int(bytes_accessed))


# ------------------------------ forward wrapper ------------------------------

def transformer_forward(prep, src, tgt, *, nhead, vocab):
    emb, pos, weights = prep["emb_pad"], prep["pos"], prep["weights"]
    Vpad, D = emb.shape
    B, Ls = src.shape
    _, Lt = tgt.shape
    if Ls != Lt:
        raise ValueError("nn.Transformer requires matching batch dims (L_src == L_tgt)")

    # batch_first=False: (B, L, D) is interpreted as (S=B, N=L, E=D)
    S, T, N, H = B, B, Ls, nhead
    n_enc = weights[0].shape[0]
    n_dec = weights[12].shape[0]
    dff = weights[4].shape[2]

    # tiny compile-time constant matrices (segmented reduce/broadcast on the MXU)
    ln_red = np.zeros((2 * D, 2), np.float32)
    ln_red[:D, 0] = 1.0 / D
    ln_red[D:, 1] = 1.0 / D
    g_red, g_exp, g_sum, g_sumT, r_red = _attn_indicators(S, H, D)

    src_ids = src.reshape(S * N, 1).astype(jnp.int32)
    tgt_ids = tgt.reshape(T * N, 1).astype(jnp.int32)

    args = (src_ids, tgt_ids, emb, pos) + tuple(weights) + (
        jnp.asarray(ln_red), g_red, g_exp, g_sum, g_sumT, r_red)

    out_shape = jax.ShapeDtypeStruct((T * N, Vpad), jnp.float32)
    kernel = functools.partial(_fused_kernel, n_enc=n_enc, n_dec=n_dec,
                               H=H, S=S, T=T, N=N, D=D, Vpad=Vpad)
    logits = pl.pallas_call(
        kernel,
        out_shape=out_shape,
        in_specs=[_vspec()] * len(args),
        out_specs=_vspec(),
        cost_estimate=_cost_estimate(args, out_shape, S=S, T=T, N=N, D=D, H=H,
                                     dff=dff, n_enc=n_enc, n_dec=n_dec, Vpad=Vpad),
    )(*args)

    # un-pad + restore (B, L, vocab)
    return logits.reshape(T, N, Vpad)[:, :, :vocab]


# ------------------------------------ main ------------------------------------

if __name__ == "__main__":
    vocab_size, d_model, nhead = 50, 32, 4
    num_encoder_layers, num_decoder_layers = 2, 2
    dim_feedforward, max_seq_length = 64, 16
    B, L = 4, 8   # L_src == L_tgt (required by nn.Transformer batch-dim check)

    root = jax.random.PRNGKey(0)
    pkey, skey, tkey = jax.random.split(root, 3)
    params = init_params(pkey, vocab_size, d_model, nhead,
                         num_encoder_layers, num_decoder_layers,
                         dim_feedforward, max_seq_length)
    prep = prepare_params(params, nhead=nhead, vocab_pad=128)

    src = jax.random.randint(skey, (B, L), 0, vocab_size, dtype=jnp.int32)
    tgt = jax.random.randint(tkey, (B, L), 0, vocab_size, dtype=jnp.int32)

    fwd = jax.jit(functools.partial(transformer_forward, nhead=nhead, vocab=vocab_size))
    out = jax.block_until_ready(fwd(prep, src, tgt))

    assert out.shape == (B, L, vocab_size), out.shape
    assert bool(jnp.all(jnp.isfinite(out)))
    print("KERNEL_OK")
</pallas_src>

<mosaic_0001>
module attributes {stable_mosaic.version = 11 : i64} {
  func.func @_fused_kernel(%arg0: memref<32x1xi32, #tpu.memory_space<vmem>>, %arg1: memref<32x1xi32, #tpu.memory_space<vmem>>, %arg2: memref<128x32xf32, #tpu.memory_space<vmem>>, %arg3: memref<16x32xf32, #tpu.memory_space<vmem>>, %arg4: memref<2x32x96xbf16, #tpu.memory_space<vmem>>, %arg5: memref<2x1x96xf32, #tpu.memory_space<vmem>>, %arg6: memref<2x32x32xbf16, #tpu.memory_space<vmem>>, %arg7: memref<2x1x32xf32, #tpu.memory_space<vmem>>, %arg8: memref<2x32x64xbf16, #tpu.memory_space<vmem>>, %arg9: memref<2x1x64xf32, #tpu.memory_space<vmem>>, %arg10: memref<2x64x32xbf16, #tpu.memory_space<vmem>>, %arg11: memref<2x1x32xf32, #tpu.memory_space<vmem>>, %arg12: memref<2x1x32xf32, #tpu.memory_space<vmem>>, %arg13: memref<2x1x32xf32, #tpu.memory_space<vmem>>, %arg14: memref<2x1x32xf32, #tpu.memory_space<vmem>>, %arg15: memref<2x1x32xf32, #tpu.memory_space<vmem>>, %arg16: memref<2x32x96xbf16, #tpu.memory_space<vmem>>, %arg17: memref<2x1x96xf32, #tpu.memory_space<vmem>>, %arg18: memref<2x32x32xbf16, #tpu.memory_space<vmem>>, %arg19: memref<2x1x32xf32, #tpu.memory_space<vmem>>, %arg20: memref<2x32x32xbf16, #tpu.memory_space<vmem>>, %arg21: memref<2x1x32xf32, #tpu.memory_space<vmem>>, %arg22: memref<2x32x64xbf16, #tpu.memory_space<vmem>>, %arg23: memref<2x1x64xf32, #tpu.memory_space<vmem>>, %arg24: memref<2x32x32xbf16, #tpu.memory_space<vmem>>, %arg25: memref<2x1x32xf32, #tpu.memory_space<vmem>>, %arg26: memref<2x32x64xbf16, #tpu.memory_space<vmem>>, %arg27: memref<2x1x64xf32, #tpu.memory_space<vmem>>, %arg28: memref<2x64x32xbf16, #tpu.memory_space<vmem>>, %arg29: memref<2x1x32xf32, #tpu.memory_space<vmem>>, %arg30: memref<2x1x32xf32, #tpu.memory_space<vmem>>, %arg31: memref<2x1x32xf32, #tpu.memory_space<vmem>>, %arg32: memref<2x1x32xf32, #tpu.memory_space<vmem>>, %arg33: memref<2x1x32xf32, #tpu.memory_space<vmem>>, %arg34: memref<2x1x32xf32, #tpu.memory_space<vmem>>, %arg35: memref<2x1x32xf32, #tpu.memory_space<vmem>>, %arg36: memref<1x32xf32, #tpu.memory_space<vmem>>, %arg37: memref<1x32xf32, #tpu.memory_space<vmem>>, %arg38: memref<1x32xf32, #tpu.memory_space<vmem>>, %arg39: memref<1x32xf32, #tpu.memory_space<vmem>>, %arg40: memref<32x128xbf16, #tpu.memory_space<vmem>>, %arg41: memref<1x128xf32, #tpu.memory_space<vmem>>, %arg42: memref<64x2xf32, #tpu.memory_space<vmem>>, %arg43: memref<128x16xf32, #tpu.memory_space<vmem>>, %arg44: memref<16x128xf32, #tpu.memory_space<vmem>>, %arg45: memref<16x4xf32, #tpu.memory_space<vmem>>, %arg46: memref<4x16xf32, #tpu.memory_space<vmem>>, %arg47: memref<128x32xf32, #tpu.memory_space<vmem>>, %arg48: memref<32x128xf32, #tpu.memory_space<vmem>>) attributes {dimension_semantics = [], scalar_prefetch = 0 : i64, scratch_operands = 0 : i64, tpu.core_type = #tpu.core_type<tc>} {
    %c0 = arith.constant 0 : index
    %c0_0 = arith.constant 0 : index
    %0 = vector.load %arg42[%c0, %c0_0] : memref<64x2xf32, #tpu.memory_space<vmem>>, vector<64x2xf32>
    %c0_1 = arith.constant 0 : index
    %c0_2 = arith.constant 0 : index
    %1 = vector.load %arg43[%c0_1, %c0_2] : memref<128x16xf32, #tpu.memory_space<vmem>>, vector<128x16xf32>
    %c0_3 = arith.constant 0 : index
    %c0_4 = arith.constant 0 : index
    %2 = vector.load %arg44[%c0_3, %c0_4] : memref<16x128xf32, #tpu.memory_space<vmem>>, vector<16x128xf32>
    %c0_5 = arith.constant 0 : index
    %c0_6 = arith.constant 0 : index
    %3 = vector.load %arg45[%c0_5, %c0_6] : memref<16x4xf32, #tpu.memory_space<vmem>>, vector<16x4xf32>
    %c0_7 = arith.constant 0 : index
    %c0_8 = arith.constant 0 : index
    %4 = vector.load %arg46[%c0_7, %c0_8] : memref<4x16xf32, #tpu.memory_space<vmem>>, vector<4x16xf32>
    %c0_9 = arith.constant 0 : index
    %c0_10 = arith.constant 0 : index
    %5 = vector.load %arg47[%c0_9, %c0_10] : memref<128x32xf32, #tpu.memory_space<vmem>>, vector<128x32xf32>
    %c0_11 = arith.constant 0 : index
    %c0_12 = arith.constant 0 : index
    %6 = vector.load %arg2[%c0_11, %c0_12] : memref<128x32xf32, #tpu.memory_space<vmem>>, vector<128x32xf32>
    %c0_13 = arith.constant 0 : index
    %c0_14 = arith.constant 0 : index
    %7 = vector.load %arg3[%c0_13, %c0_14] : memref<16x32xf32, #tpu.memory_space<vmem>>, vector<16x32xf32>
    %8 = vector.extract_strided_slice %7 {offsets = [0, 0], sizes = [8, 32], strides = [1, 1]} : vector<16x32xf32> to vector<8x32xf32>
    %c0_15 = arith.constant 0 : index
    %c0_16 = arith.constant 0 : index
    %9 = vector.load %arg0[%c0_15, %c0_16] : memref<32x1xi32, #tpu.memory_space<vmem>>, vector<32x1xi32>
    %10 = tpu.iota {dimensions = array<i32: 1>} : vector<32x128xi32>
    %11 = vector.broadcast %9 : vector<32x1xi32> to vector<32x128xi32>
    %12 = arith.cmpi eq, %10, %11 : vector<32x128xi32>
    %13 = arith.extui %12 : vector<32x128xi1> to vector<32x128xi32>
    %14 = arith.sitofp %13 : vector<32x128xi32> to vector<32x128xf32>
    %cst = arith.constant dense<0.000000e+00> : vector<32x32xf32>
    %15 = tpu.matmul %14, %6, %cst {dimension_numbers = #tpu.dot_dimension_numbers<[1], [0], [0], [1], [0, 0, 1, 1], [], []>} : vector<32x128xf32>, vector<128x32xf32>, vector<32x32xf32> -> vector<32x32xf32>
    %16 = tpu.concatenate %8, %8, %8, %8 in 0 : vector<8x32xf32>, vector<8x32xf32>, vector<8x32xf32>, vector<8x32xf32> -> vector<32x32xf32>
    %17 = arith.addf %15, %16 : vector<32x32xf32>
    %c0_17 = arith.constant 0 : index
    %c0_18 = arith.constant 0 : index
    %c0_19 = arith.constant 0 : index
    %18 = vector.load %arg4[%c0_17, %c0_18, %c0_19] : memref<2x32x96xbf16, #tpu.memory_space<vmem>>, vector<1x32x96xbf16>
    %19 = vector.shape_cast %18 : vector<1x32x96xbf16> to vector<32x96xbf16>
    %c0_20 = arith.constant 0 : index
    %c0_21 = arith.constant 0 : index
    %c0_22 = arith.constant 0 : index
    %20 = vector.load %arg5[%c0_20, %c0_21, %c0_22] : memref<2x1x96xf32, #tpu.memory_space<vmem>>, vector<1x1x96xf32>
    %21 = vector.shape_cast %20 : vector<1x1x96xf32> to vector<1x96xf32>
    %22 = arith.truncf %17 : vector<32x32xf32> to vector<32x32xbf16>
    %cst_23 = arith.constant dense<0.000000e+00> : vector<32x96xf32>
    %23 = tpu.matmul %22, %19, %cst_23 {dimension_numbers = #tpu.dot_dimension_numbers<[1], [0], [0], [1], [0, 0, 1, 1], [], []>} : vector<32x32xbf16>, vector<32x96xbf16>, vector<32x96xf32> -> vector<32x96xf32>
    %24 = vector.broadcast %21 : vector<1x96xf32> to vector<32x96xf32>
    %25 = arith.addf %23, %24 : vector<32x96xf32>
    %26 = vector.extract_strided_slice %25 {offsets = [0, 0], sizes = [32, 32], strides = [1, 1]} : vector<32x96xf32> to vector<32x32xf32>
    %27 = vector.extract_strided_slice %25 {offsets = [0, 32], sizes = [32, 64], strides = [1, 1]} : vector<32x96xf32> to vector<32x64xf32>
    %28 = vector.extract_strided_slice %27 {offsets = [0, 0], sizes = [32, 32], strides = [1, 1]} : vector<32x64xf32> to vector<32x32xf32>
    %29 = vector.extract_strided_slice %27 {offsets = [0, 32], sizes = [32, 32], strides = [1, 1]} : vector<32x64xf32> to vector<32x32xf32>
    %30 = vector.extract_strided_slice %28 {offsets = [0, 0], sizes = [8, 32], strides = [1, 1]} : vector<32x32xf32> to vector<8x32xf32>
    %31 = vector.extract_strided_slice %28 {offsets = [8, 0], sizes = [8, 32], strides = [1, 1]} : vector<32x32xf32> to vector<8x32xf32>
    %32 = vector.extract_strided_slice %28 {offsets = [16, 0], sizes = [8, 32], strides = [1, 1]} : vector<32x32xf32> to vector<8x32xf32>
    %33 = vector.extract_strided_slice %28 {offsets = [24, 0], sizes = [8, 32], strides = [1, 1]} : vector<32x32xf32> to vector<8x32xf32>
    %34 = tpu.concatenate %30, %31, %32, %33 in 1 : vector<8x32xf32>, vector<8x32xf32>, vector<8x32xf32>, vector<8x32xf32> -> vector<8x128xf32>
    %35 = vector.extract_strided_slice %29 {offsets = [0, 0], sizes = [8, 32], strides = [1, 1]} : vector<32x32xf32> to vector<8x32xf32>
    %36 = vector.extract_strided_slice %29 {offsets = [8, 0], sizes = [8, 32], strides = [1, 1]} : vector<32x32xf32> to vector<8x32xf32>
    %37 = vector.extract_strided_slice %29 {offsets = [16, 0], sizes = [8, 32], strides = [1, 1]} : vector<32x32xf32> to vector<8x32xf32>
    %38 = vector.extract_strided_slice %29 {offsets = [24, 0], sizes = [8, 32], strides = [1, 1]} : vector<32x32xf32> to vector<8x32xf32>
    %39 = tpu.concatenate %35, %36, %37, %38 in 1 : vector<8x32xf32>, vector<8x32xf32>, vector<8x32xf32>, vector<8x32xf32> -> vector<8x128xf32>
    %40 = tpu.concatenate %34, %34, %34, %34 in 0 : vector<8x128xf32>, vector<8x128xf32>, vector<8x128xf32>, vector<8x128xf32> -> vector<32x128xf32>
    %41 = tpu.concatenate %39, %39, %39, %39 in 0 : vector<8x128xf32>, vector<8x128xf32>, vector<8x128xf32>, vector<8x128xf32> -> vector<32x128xf32>
    %42 = tpu.concatenate %26, %26, %26, %26 in 1 : vector<32x32xf32>, vector<32x32xf32>, vector<32x32xf32>, vector<32x32xf32> -> vector<32x128xf32>
    %43 = arith.mulf %42, %40 : vector<32x128xf32>
    %cst_24 = arith.constant dense<0.000000e+00> : vector<32x16xf32>
    %44 = tpu.matmul %43, %1, %cst_24 {dimension_numbers = #tpu.dot_dimension_numbers<[1], [0], [0], [1], [0, 0, 1, 1], [], []>} : vector<32x128xf32>, vector<128x16xf32>, vector<32x16xf32> -> vector<32x16xf32>
    %cst_25 = arith.constant dense<0xFF800000> : vector<32xf32>
    %45 = vector.multi_reduction <maximumf>, %44, %cst_25 [1] : vector<32x16xf32> to vector<32xf32>
    %46 = vector.shape_cast %45 : vector<32xf32> to vector<32x1xf32>
    %47 = vector.broadcast %46 : vector<32x1xf32> to vector<32x16xf32>
    %48 = arith.subf %44, %47 : vector<32x16xf32>
    %49 = math.exp %48 : vector<32x16xf32>
    %cst_26 = arith.constant dense<0.000000e+00> : vector<32x4xf32>
    %50 = tpu.matmul %49, %3, %cst_26 {dimension_numbers = #tpu.dot_dimension_numbers<[1], [0], [0], [1], [0, 0, 1, 1], [], []>} : vector<32x16xf32>, vector<16x4xf32>, vector<32x4xf32> -> vector<32x4xf32>
    %51 = tpu.reciprocal %50 {approx = true} : vector<32x4xf32> -> vector<32x4xf32>
    %cst_27 = arith.constant dense<0.000000e+00> : vector<32x16xf32>
    %52 = tpu.matmul %51, %4, %cst_27 {dimension_numbers = #tpu.dot_dimension_numbers<[1], [0], [0], [1], [0, 0, 1, 1], [], []>} : vector<32x4xf32>, vector<4x16xf32>, vector<32x16xf32> -> vector<32x16xf32>
    %53 = arith.mulf %49, %52 : vector<32x16xf32>
    %cst_28 = arith.constant dense<0.000000e+00> : vector<32x128xf32>
    %54 = tpu.matmul %53, %2, %cst_28 {dimension_numbers = #tpu.dot_dimension_numbers<[1], [0], [0], [1], [0, 0, 1, 1], [], []>} : vector<32x16xf32>, vector<16x128xf32>, vector<32x128xf32> -> vector<32x128xf32>
    %55 = arith.mulf %54, %41 : vector<32x128xf32>
    %cst_29 = arith.constant dense<0.000000e+00> : vector<32x32xf32>
    %56 = tpu.matmul %55, %5, %cst_29 {dimension_numbers = #tpu.dot_dimension_numbers<[1], [0], [0], [1], [0, 0, 1, 1], [], []>} : vector<32x128xf32>, vector<128x32xf32>, vector<32x32xf32> -> vector<32x32xf32>
    %c0_30 = arith.constant 0 : index
    %c0_31 = arith.constant 0 : index
    %c0_32 = arith.constant 0 : index
    %57 = vector.load %arg6[%c0_30, %c0_31, %c0_32] : memref<2x32x32xbf16, #tpu.memory_space<vmem>>, vector<1x32x32xbf16>
    %58 = vector.shape_cast %57 : vector<1x32x32xbf16> to vector<32x32xbf16>
    %c0_33 = arith.constant 0 : index
    %c0_34 = arith.constant 0 : index
    %c0_35 = arith.constant 0 : index
    %59 = vector.load %arg7[%c0_33, %c0_34, %c0_35] : memref<2x1x32xf32, #tpu.memory_space<vmem>>, vector<1x1x32xf32>
    %60 = vector.shape_cast %59 : vector<1x1x32xf32> to vector<1x32xf32>
    %61 = arith.truncf %56 : vector<32x32xf32> to vector<32x32xbf16>
    %cst_36 = arith.constant dense<0.000000e+00> : vector<32x32xf32>
    %62 = tpu.matmul %61, %58, %cst_36 {dimension_numbers = #tpu.dot_dimension_numbers<[1], [0], [0], [1], [0, 0, 1, 1], [], []>} : vector<32x32xbf16>, vector<32x32xbf16>, vector<32x32xf32> -> vector<32x32xf32>
    %63 = vector.broadcast %60 : vector<1x32xf32> to vector<32x32xf32>
    %64 = arith.addf %62, %63 : vector<32x32xf32>
    %65 = arith.addf %17, %64 : vector<32x32xf32>
    %c0_37 = arith.constant 0 : index
    %c0_38 = arith.constant 0 : index
    %c0_39 = arith.constant 0 : index
    %66 = vector.load %arg12[%c0_37, %c0_38, %c0_39] : memref<2x1x32xf32, #tpu.memory_space<vmem>>, vector<1x1x32xf32>
    %67 = vector.shape_cast %66 : vector<1x1x32xf32> to vector<1x32xf32>
    %c0_40 = arith.constant 0 : index
    %c0_41 = arith.constant 0 : index
    %c0_42 = arith.constant 0 : index
    %68 = vector.load %arg13[%c0_40, %c0_41, %c0_42] : memref<2x1x32xf32, #tpu.memory_space<vmem>>, vector<1x1x32xf32>
    %69 = vector.shape_cast %68 : vector<1x1x32xf32> to vector<1x32xf32>
    %70 = arith.mulf %65, %65 : vector<32x32xf32>
    %71 = tpu.concatenate %65, %70 in 1 : vector<32x32xf32>, vector<32x32xf32> -> vector<32x64xf32>
    %cst_43 = arith.constant dense<0.000000e+00> : vector<32x2xf32>
    %72 = tpu.matmul %71, %0, %cst_43 {dimension_numbers = #tpu.dot_dimension_numbers<[1], [0], [0], [1], [0, 0, 1, 1], [], []>} : vector<32x64xf32>, vector<64x2xf32>, vector<32x2xf32> -> vector<32x2xf32>
    %73 = vector.extract_strided_slice %72 {offsets = [0, 0], sizes = [32, 1], strides = [1, 1]} : vector<32x2xf32> to vector<32x1xf32>
    %74 = vector.extract_strided_slice %72 {offsets = [0, 1], sizes = [32, 1], strides = [1, 1]} : vector<32x2xf32> to vector<32x1xf32>
    %75 = arith.mulf %73, %73 : vector<32x1xf32>
    %76 = arith.subf %74, %75 : vector<32x1xf32>
    %77 = vector.broadcast %73 : vector<32x1xf32> to vector<32x32xf32>
    %78 = arith.subf %65, %77 : vector<32x32xf32>
    %cst_44 = arith.constant 9.99999974E-6 : f32
    %79 = vector.broadcast %cst_44 : f32 to vector<32x1xf32>
    %80 = arith.addf %76, %79 : vector<32x1xf32>
    %81 = math.rsqrt %80 : vector<32x1xf32>
    %82 = vector.broadcast %81 : vector<32x1xf32> to vector<32x32xf32>
    %83 = arith.mulf %78, %82 : vector<32x32xf32>
    %84 = vector.broadcast %67 : vector<1x32xf32> to vector<32x32xf32>
    %85 = arith.mulf %83, %84 : vector<32x32xf32>
    %86 = vector.broadcast %69 : vector<1x32xf32> to vector<32x32xf32>
    %87 = arith.addf %85, %86 : vector<32x32xf32>
    %c0_45 = arith.constant 0 : index
    %c0_46 = arith.constant 0 : index
    %c0_47 = arith.constant 0 : index
    %88 = vector.load %arg8[%c0_45, %c0_46, %c0_47] : memref<2x32x64xbf16, #tpu.memory_space<vmem>>, vector<1x32x64xbf16>
    %89 = vector.shape_cast %88 : vector<1x32x64xbf16> to vector<32x64xbf16>
    %c0_48 = arith.constant 0 : index
    %c0_49 = arith.constant 0 : index
    %c0_50 = arith.constant 0 : index
    %90 = vector.load %arg9[%c0_48, %c0_49, %c0_50] : memref<2x1x64xf32, #tpu.memory_space<vmem>>, vector<1x1x64xf32>
    %91 = vector.shape_cast %90 : vector<1x1x64xf32> to vector<1x64xf32>
    %92 = arith.truncf %87 : vector<32x32xf32> to vector<32x32xbf16>
    %cst_51 = arith.constant dense<0.000000e+00> : vector<32x64xf32>
    %93 = tpu.matmul %92, %89, %cst_51 {dimension_numbers = #tpu.dot_dimension_numbers<[1], [0], [0], [1], [0, 0, 1, 1], [], []>} : vector<32x32xbf16>, vector<32x64xbf16>, vector<32x64xf32> -> vector<32x64xf32>
    %94 = vector.broadcast %91 : vector<1x64xf32> to vector<32x64xf32>
    %95 = arith.addf %93, %94 : vector<32x64xf32>
    %cst_52 = arith.constant 0.000000e+00 : f32
    %96 = vector.broadcast %cst_52 : f32 to vector<32x64xf32>
    %97 = arith.maximumf %95, %96 : vector<32x64xf32>
    %c0_53 = arith.constant 0 : index
    %c0_54 = arith.constant 0 : index
    %c0_55 = arith.constant 0 : index
    %98 = vector.load %arg10[%c0_53, %c0_54, %c0_55] : memref<2x64x32xbf16, #tpu.memory_space<vmem>>, vector<1x64x32xbf16>
    %99 = vector.shape_cast %98 : vector<1x64x32xbf16> to vector<64x32xbf16>
    %c0_56 = arith.constant 0 : index
    %c0_57 = arith.constant 0 : index
    %c0_58 = arith.constant 0 : index
    %100 = vector.load %arg11[%c0_56, %c0_57, %c0_58] : memref<2x1x32xf32, #tpu.memory_space<vmem>>, vector<1x1x32xf32>
    %101 = vector.shape_cast %100 : vector<1x1x32xf32> to vector<1x32xf32>
    %102 = arith.truncf %97 : vector<32x64xf32> to vector<32x64xbf16>
    %cst_59 = arith.constant dense<0.000000e+00> : vector<32x32xf32>
    %103 = tpu.matmul %102, %99, %cst_59 {dimension_numbers = #tpu.dot_dimension_numbers<[1], [0], [0], [1], [0, 0, 1, 1], [], []>} : vector<32x64xbf16>, vector<64x32xbf16>, vector<32x32xf32> -> vector<32x32xf32>
    %104 = vector.broadcast %101 : vector<1x32xf32> to vector<32x32xf32>
    %105 = arith.addf %103, %104 : vector<32x32xf32>
    %106 = arith.addf %87, %105 : vector<32x32xf32>
    %c0_60 = arith.constant 0 : index
    %c0_61 = arith.constant 0 : index
    %c0_62 = arith.constant 0 : index
    %107 = vector.load %arg14[%c0_60, %c0_61, %c0_62] : memref<2x1x32xf32, #tpu.memory_space<vmem>>, vector<1x1x32xf32>
    %108 = vector.shape_cast %107 : vector<1x1x32xf32> to vector<1x32xf32>
    %c0_63 = arith.constant 0 : index
    %c0_64 = arith.constant 0 : index
    %c0_65 = arith.constant 0 : index
    %109 = vector.load %arg15[%c0_63, %c0_64, %c0_65] : memref<2x1x32xf32, #tpu.memory_space<vmem>>, vector<1x1x32xf32>
    %110 = vector.shape_cast %109 : vector<1x1x32xf32> to vector<1x32xf32>
    %111 = arith.mulf %106, %106 : vector<32x32xf32>
    %112 = tpu.concatenate %106, %111 in 1 : vector<32x32xf32>, vector<32x32xf32> -> vector<32x64xf32>
    %cst_66 = arith.constant dense<0.000000e+00> : vector<32x2xf32>
    %113 = tpu.matmul %112, %0, %cst_66 {dimension_numbers = #tpu.dot_dimension_numbers<[1], [0], [0], [1], [0, 0, 1, 1], [], []>} : vector<32x64xf32>, vector<64x2xf32>, vector<32x2xf32> -> vector<32x2xf32>
    %114 = vector.extract_strided_slice %113 {offsets = [0, 0], sizes = [32, 1], strides = [1, 1]} : vector<32x2xf32> to vector<32x1xf32>
    %115 = vector.extract_strided_slice %113 {offsets = [0, 1], sizes = [32, 1], strides = [1, 1]} : vector<32x2xf32> to vector<32x1xf32>
    %116 = arith.mulf %114, %114 : vector<32x1xf32>
    %117 = arith.subf %115, %116 : vector<32x1xf32>
    %118 = vector.broadcast %114 : vector<32x1xf32> to vector<32x32xf32>
    %119 = arith.subf %106, %118 : vector<32x32xf32>
    %cst_67 = arith.constant 9.99999974E-6 : f32
    %120 = vector.broadcast %cst_67 : f32 to vector<32x1xf32>
    %121 = arith.addf %117, %120 : vector<32x1xf32>
    %122 = math.rsqrt %121 : vector<32x1xf32>
    %123 = vector.broadcast %122 : vector<32x1xf32> to vector<32x32xf32>
    %124 = arith.mulf %119, %123 : vector<32x32xf32>
    %125 = vector.broadcast %108 : vector<1x32xf32> to vector<32x32xf32>
    %126 = arith.mulf %124, %125 : vector<32x32xf32>
    %127 = vector.broadcast %110 : vector<1x32xf32> to vector<32x32xf32>
    %128 = arith.addf %126, %127 : vector<32x32xf32>
    %c1 = arith.constant 1 : index
    %c0_68 = arith.constant 0 : index
    %c0_69 = arith.constant 0 : index
    %129 = vector.load %arg4[%c1, %c0_68, %c0_69] : memref<2x32x96xbf16, #tpu.memory_space<vmem>>, vector<1x32x96xbf16>
    %130 = vector.shape_cast %129 : vector<1x32x96xbf16> to vector<32x96xbf16>
    %c1_70 = arith.constant 1 : index
    %c0_71 = arith.constant 0 : index
    %c0_72 = arith.constant 0 : index
    %131 = vector.load %arg5[%c1_70, %c0_71, %c0_72] : memref<2x1x96xf32, #tpu.memory_space<vmem>>, vector<1x1x96xf32>
    %132 = vector.shape_cast %131 : vector<1x1x96xf32> to vector<1x96xf32>
    %133 = arith.truncf %128 : vector<32x32xf32> to vector<32x32xbf16>
    %cst_73 = arith.constant dense<0.000000e+00> : vector<32x96xf32>
    %134 = tpu.matmul %133, %130, %cst_73 {dimension_numbers = #tpu.dot_dimension_numbers<[1], [0], [0], [1], [0, 0, 1, 1], [], []>} : vector<32x32xbf16>, vector<32x96xbf16>, vector<32x96xf32> -> vector<32x96xf32>
    %135 = vector.broadcast %132 : vector<1x96xf32> to vector<32x96xf32>
    %136 = arith.addf %134, %135 : vector<32x96xf32>
    %137 = vector.extract_strided_slice %136 {offsets = [0, 0], sizes = [32, 32], strides = [1, 1]} : vector<32x96xf32> to vector<32x32xf32>
    %138 = vector.extract_strided_slice %136 {offsets = [0, 32], sizes = [32, 64], strides = [1, 1]} : vector<32x96xf32> to vector<32x64xf32>
    %139 = vector.extract_strided_slice %138 {offsets = [0, 0], sizes = [32, 32], strides = [1, 1]} : vector<32x64xf32> to vector<32x32xf32>
    %140 = vector.extract_strided_slice %138 {offsets = [0, 32], sizes = [32, 32], strides = [1, 1]} : vector<32x64xf32> to vector<32x32xf32>
    %141 = vector.extract_strided_slice %139 {offsets = [0, 0], sizes = [8, 32], strides = [1, 1]} : vector<32x32xf32> to vector<8x32xf32>
    %142 = vector.extract_strided_slice %139 {offsets = [8, 0], sizes = [8, 32], strides = [1, 1]} : vector<32x32xf32> to vector<8x32xf32>
    %143 = vector.extract_strided_slice %139 {offsets = [16, 0], sizes = [8, 32], strides = [1, 1]} : vector<32x32xf32> to vector<8x32xf32>
    %144 = vector.extract_strided_slice %139 {offsets = [24, 0], sizes = [8, 32], strides = [1, 1]} : vector<32x32xf32> to vector<8x32xf32>
    %145 = tpu.concatenate %141, %142, %143, %144 in 1 : vector<8x32xf32>, vector<8x32xf32>, vector<8x32xf32>, vector<8x32xf32> -> vector<8x128xf32>
    %146 = vector.extract_strided_slice %140 {offsets = [0, 0], sizes = [8, 32], strides = [1, 1]} : vector<32x32xf32> to vector<8x32xf32>
    %147 = vector.extract_strided_slice %140 {offsets = [8, 0], sizes = [8, 32], strides = [1, 1]} : vector<32x32xf32> to vector<8x32xf32>
    %148 = vector.extract_strided_slice %140 {offsets = [16, 0], sizes = [8, 32], strides = [1, 1]} : vector<32x32xf32> to vector<8x32xf32>
    %149 = vector.extract_strided_slice %140 {offsets = [24, 0], sizes = [8, 32], strides = [1, 1]} : vector<32x32xf32> to vector<8x32xf32>
    %150 = tpu.concatenate %146, %147, %148, %149 in 1 : vector<8x32xf32>, vector<8x32xf32>, vector<8x32xf32>, vector<8x32xf32> -> vector<8x128xf32>
    %151 = tpu.concatenate %145, %145, %145, %145 in 0 : vector<8x128xf32>, vector<8x128xf32>, vector<8x128xf32>, vector<8x128xf32> -> vector<32x128xf32>
    %152 = tpu.concatenate %150, %150, %150, %150 in 0 : vector<8x128xf32>, vector<8x128xf32>, vector<8x128xf32>, vector<8x128xf32> -> vector<32x128xf32>
    %153 = tpu.concatenate %137, %137, %137, %137 in 1 : vector<32x32xf32>, vector<32x32xf32>, vector<32x32xf32>, vector<32x32xf32> -> vector<32x128xf32>
    %154 = arith.mulf %153, %151 : vector<32x128xf32>
    %cst_74 = arith.constant dense<0.000000e+00> : vector<32x16xf32>
    %155 = tpu.matmul %154, %1, %cst_74 {dimension_numbers = #tpu.dot_dimension_numbers<[1], [0], [0], [1], [0, 0, 1, 1], [], []>} : vector<32x128xf32>, vector<128x16xf32>, vector<32x16xf32> -> vector<32x16xf32>
    %cst_75 = arith.constant dense<0xFF800000> : vector<32xf32>
    %156 = vector.multi_reduction <maximumf>, %155, %cst_75 [1] : vector<32x16xf32> to vector<32xf32>
    %157 = vector.shape_cast %156 : vector<32xf32> to vector<32x1xf32>
    %158 = vector.broadcast %157 : vector<32x1xf32> to vector<32x16xf32>
    %159 = arith.subf %155, %158 : vector<32x16xf32>
    %160 = math.exp %159 : vector<32x16xf32>
    %cst_76 = arith.constant dense<0.000000e+00> : vector<32x4xf32>
    %161 = tpu.matmul %160, %3, %cst_76 {dimension_numbers = #tpu.dot_dimension_numbers<[1], [0], [0], [1], [0, 0, 1, 1], [], []>} : vector<32x16xf32>, vector<16x4xf32>, vector<32x4xf32> -> vector<32x4xf32>
    %162 = tpu.reciprocal %161 {approx = true} : vector<32x4xf32> -> vector<32x4xf32>
    %cst_77 = arith.constant dense<0.000000e+00> : vector<32x16xf32>
    %163 = tpu.matmul %162, %4, %cst_77 {dimension_numbers = #tpu.dot_dimension_numbers<[1], [0], [0], [1], [0, 0, 1, 1], [], []>} : vector<32x4xf32>, vector<4x16xf32>, vector<32x16xf32> -> vector<32x16xf32>
    %164 = arith.mulf %160, %163 : vector<32x16xf32>
    %cst_78 = arith.constant dense<0.000000e+00> : vector<32x128xf32>
    %165 = tpu.matmul %164, %2, %cst_78 {dimension_numbers = #tpu.dot_dimension_numbers<[1], [0], [0], [1], [0, 0, 1, 1], [], []>} : vector<32x16xf32>, vector<16x128xf32>, vector<32x128xf32> -> vector<32x128xf32>
    %166 = arith.mulf %165, %152 : vector<32x128xf32>
    %cst_79 = arith.constant dense<0.000000e+00> : vector<32x32xf32>
    %167 = tpu.matmul %166, %5, %cst_79 {dimension_numbers = #tpu.dot_dimension_numbers<[1], [0], [0], [1], [0, 0, 1, 1], [], []>} : vector<32x128xf32>, vector<128x32xf32>, vector<32x32xf32> -> vector<32x32xf32>
    %c1_80 = arith.constant 1 : index
    %c0_81 = arith.constant 0 : index
    %c0_82 = arith.constant 0 : index
    %168 = vector.load %arg6[%c1_80, %c0_81, %c0_82] : memref<2x32x32xbf16, #tpu.memory_space<vmem>>, vector<1x32x32xbf16>
    %169 = vector.shape_cast %168 : vector<1x32x32xbf16> to vector<32x32xbf16>
    %c1_83 = arith.constant 1 : index
    %c0_84 = arith.constant 0 : index
    %c0_85 = arith.constant 0 : index
    %170 = vector.load %arg7[%c1_83, %c0_84, %c0_85] : memref<2x1x32xf32, #tpu.memory_space<vmem>>, vector<1x1x32xf32>
    %171 = vector.shape_cast %170 : vector<1x1x32xf32> to vector<1x32xf32>
    %172 = arith.truncf %167 : vector<32x32xf32> to vector<32x32xbf16>
    %cst_86 = arith.constant dense<0.000000e+00> : vector<32x32xf32>
    %173 = tpu.matmul %172, %169, %cst_86 {dimension_numbers = #tpu.dot_dimension_numbers<[1], [0], [0], [1], [0, 0, 1, 1], [], []>} : vector<32x32xbf16>, vector<32x32xbf16>, vector<32x32xf32> -> vector<32x32xf32>
    %174 = vector.broadcast %171 : vector<1x32xf32> to vector<32x32xf32>
    %175 = arith.addf %173, %174 : vector<32x32xf32>
    %176 = arith.addf %128, %175 : vector<32x32xf32>
    %c1_87 = arith.constant 1 : index
    %c0_88 = arith.constant 0 : index
    %c0_89 = arith.constant 0 : index
    %177 = vector.load %arg12[%c1_87, %c0_88, %c0_89] : memref<2x1x32xf32, #tpu.memory_space<vmem>>, vector<1x1x32xf32>
    %178 = vector.shape_cast %177 : vector<1x1x32xf32> to vector<1x32xf32>
    %c1_90 = arith.constant 1 : index
    %c0_91 = arith.constant 0 : index
    %c0_92 = arith.constant 0 : index
    %179 = vector.load %arg13[%c1_90, %c0_91, %c0_92] : memref<2x1x32xf32, #tpu.memory_space<vmem>>, vector<1x1x32xf32>
    %180 = vector.shape_cast %179 : vector<1x1x32xf32> to vector<1x32xf32>
    %181 = arith.mulf %176, %176 : vector<32x32xf32>
    %182 = tpu.concatenate %176, %181 in 1 : vector<32x32xf32>, vector<32x32xf32> -> vector<32x64xf32>
    %cst_93 = arith.constant dense<0.000000e+00> : vector<32x2xf32>
    %183 = tpu.matmul %182, %0, %cst_93 {dimension_numbers = #tpu.dot_dimension_numbers<[1], [0], [0], [1], [0, 0, 1, 1], [], []>} : vector<32x64xf32>, vector<64x2xf32>, vector<32x2xf32> -> vector<32x2xf32>
    %184 = vector.extract_strided_slice %183 {offsets = [0, 0], sizes = [32, 1], strides = [1, 1]} : vector<32x2xf32> to vector<32x1xf32>
    %185 = vector.extract_strided_slice %183 {offsets = [0, 1], sizes = [32, 1], strides = [1, 1]} : vector<32x2xf32> to vector<32x1xf32>
    %186 = arith.mulf %184, %184 : vector<32x1xf32>
    %187 = arith.subf %185, %186 : vector<32x1xf32>
    %188 = vector.broadcast %184 : vector<32x1xf32> to vector<32x32xf32>
    %189 = arith.subf %176, %188 : vector<32x32xf32>
    %cst_94 = arith.constant 9.99999974E-6 : f32
    %190 = vector.broadcast %cst_94 : f32 to vector<32x1xf32>
    %191 = arith.addf %187, %190 : vector<32x1xf32>
    %192 = math.rsqrt %191 : vector<32x1xf32>
    %193 = vector.broadcast %192 : vector<32x1xf32> to vector<32x32xf32>
    %194 = arith.mulf %189, %193 : vector<32x32xf32>
    %195 = vector.broadcast %178 : vector<1x32xf32> to vector<32x32xf32>
    %196 = arith.mulf %194, %195 : vector<32x32xf32>
    %197 = vector.broadcast %180 : vector<1x32xf32> to vector<32x32xf32>
    %198 = arith.addf %196, %197 : vector<32x32xf32>
    %c1_95 = arith.constant 1 : index
    %c0_96 = arith.constant 0 : index
    %c0_97 = arith.constant 0 : index
    %199 = vector.load %arg8[%c1_95, %c0_96, %c0_97] : memref<2x32x64xbf16, #tpu.memory_space<vmem>>, vector<1x32x64xbf16>
    %200 = vector.shape_cast %199 : vector<1x32x64xbf16> to vector<32x64xbf16>
    %c1_98 = arith.constant 1 : index
    %c0_99 = arith.constant 0 : index
    %c0_100 = arith.constant 0 : index
    %201 = vector.load %arg9[%c1_98, %c0_99, %c0_100] : memref<2x1x64xf32, #tpu.memory_space<vmem>>, vector<1x1x64xf32>
    %202 = vector.shape_cast %201 : vector<1x1x64xf32> to vector<1x64xf32>
    %203 = arith.truncf %198 : vector<32x32xf32> to vector<32x32xbf16>
    %cst_101 = arith.constant dense<0.000000e+00> : vector<32x64xf32>
    %204 = tpu.matmul %203, %200, %cst_101 {dimension_numbers = #tpu.dot_dimension_numbers<[1], [0], [0], [1], [0, 0, 1, 1], [], []>} : vector<32x32xbf16>, vector<32x64xbf16>, vector<32x64xf32> -> vector<32x64xf32>
    %205 = vector.broadcast %202 : vector<1x64xf32> to vector<32x64xf32>
    %206 = arith.addf %204, %205 : vector<32x64xf32>
    %cst_102 = arith.constant 0.000000e+00 : f32
    %207 = vector.broadcast %cst_102 : f32 to vector<32x64xf32>
    %208 = arith.maximumf %206, %207 : vector<32x64xf32>
    %c1_103 = arith.constant 1 : index
    %c0_104 = arith.constant 0 : index
    %c0_105 = arith.constant 0 : index
    %209 = vector.load %arg10[%c1_103, %c0_104, %c0_105] : memref<2x64x32xbf16, #tpu.memory_space<vmem>>, vector<1x64x32xbf16>
    %210 = vector.shape_cast %209 : vector<1x64x32xbf16> to vector<64x32xbf16>
    %c1_106 = arith.constant 1 : index
    %c0_107 = arith.constant 0 : index
    %c0_108 = arith.constant 0 : index
    %211 = vector.load %arg11[%c1_106, %c0_107, %c0_108] : memref<2x1x32xf32, #tpu.memory_space<vmem>>, vector<1x1x32xf32>
    %212 = vector.shape_cast %211 : vector<1x1x32xf32> to vector<1x32xf32>
    %213 = arith.truncf %208 : vector<32x64xf32> to vector<32x64xbf16>
    %cst_109 = arith.constant dense<0.000000e+00> : vector<32x32xf32>
    %214 = tpu.matmul %213, %210, %cst_109 {dimension_numbers = #tpu.dot_dimension_numbers<[1], [0], [0], [1], [0, 0, 1, 1], [], []>} : vector<32x64xbf16>, vector<64x32xbf16>, vector<32x32xf32> -> vector<32x32xf32>
    %215 = vector.broadcast %212 : vector<1x32xf32> to vector<32x32xf32>
    %216 = arith.addf %214, %215 : vector<32x32xf32>
    %217 = arith.addf %198, %216 : vector<32x32xf32>
    %c1_110 = arith.constant 1 : index
    %c0_111 = arith.constant 0 : index
    %c0_112 = arith.constant 0 : index
    %218 = vector.load %arg14[%c1_110, %c0_111, %c0_112] : memref<2x1x32xf32, #tpu.memory_space<vmem>>, vector<1x1x32xf32>
    %219 = vector.shape_cast %218 : vector<1x1x32xf32> to vector<1x32xf32>
    %c1_113 = arith.constant 1 : index
    %c0_114 = arith.constant 0 : index
    %c0_115 = arith.constant 0 : index
    %220 = vector.load %arg15[%c1_113, %c0_114, %c0_115] : memref<2x1x32xf32, #tpu.memory_space<vmem>>, vector<1x1x32xf32>
    %221 = vector.shape_cast %220 : vector<1x1x32xf32> to vector<1x32xf32>
    %222 = arith.mulf %217, %217 : vector<32x32xf32>
    %223 = tpu.concatenate %217, %222 in 1 : vector<32x32xf32>, vector<32x32xf32> -> vector<32x64xf32>
    %cst_116 = arith.constant dense<0.000000e+00> : vector<32x2xf32>
    %224 = tpu.matmul %223, %0, %cst_116 {dimension_numbers = #tpu.dot_dimension_numbers<[1], [0], [0], [1], [0, 0, 1, 1], [], []>} : vector<32x64xf32>, vector<64x2xf32>, vector<32x2xf32> -> vector<32x2xf32>
    %225 = vector.extract_strided_slice %224 {offsets = [0, 0], sizes = [32, 1], strides = [1, 1]} : vector<32x2xf32> to vector<32x1xf32>
    %226 = vector.extract_strided_slice %224 {offsets = [0, 1], sizes = [32, 1], strides = [1, 1]} : vector<32x2xf32> to vector<32x1xf32>
    %227 = arith.mulf %225, %225 : vector<32x1xf32>
    %228 = arith.subf %226, %227 : vector<32x1xf32>
    %229 = vector.broadcast %225 : vector<32x1xf32> to vector<32x32xf32>
    %230 = arith.subf %217, %229 : vector<32x32xf32>
    %cst_117 = arith.constant 9.99999974E-6 : f32
    %231 = vector.broadcast %cst_117 : f32 to vector<32x1xf32>
    %232 = arith.addf %228, %231 : vector<32x1xf32>
    %233 = math.rsqrt %232 : vector<32x1xf32>
    %234 = vector.broadcast %233 : vector<32x1xf32> to vector<32x32xf32>
    %235 = arith.mulf %230, %234 : vector<32x32xf32>
    %236 = vector.broadcast %219 : vector<1x32xf32> to vector<32x32xf32>
    %237 = arith.mulf %235, %236 : vector<32x32xf32>
    %238 = vector.broadcast %221 : vector<1x32xf32> to vector<32x32xf32>
    %239 = arith.addf %237, %238 : vector<32x32xf32>
    %c0_118 = arith.constant 0 : index
    %c0_119 = arith.constant 0 : index
    %240 = vector.load %arg36[%c0_118, %c0_119] : memref<1x32xf32, #tpu.memory_space<vmem>>, vector<1x32xf32>
    %c0_120 = arith.constant 0 : index
    %c0_121 = arith.constant 0 : index
    %241 = vector.load %arg37[%c0_120, %c0_121] : memref<1x32xf32, #tpu.memory_space<vmem>>, vector<1x32xf32>
    %242 = arith.mulf %239, %239 : vector<32x32xf32>
    %243 = tpu.concatenate %239, %242 in 1 : vector<32x32xf32>, vector<32x32xf32> -> vector<32x64xf32>
    %cst_122 = arith.constant dense<0.000000e+00> : vector<32x2xf32>
    %244 = tpu.matmul %243, %0, %cst_122 {dimension_numbers = #tpu.dot_dimension_numbers<[1], [0], [0], [1], [0, 0, 1, 1], [], []>} : vector<32x64xf32>, vector<64x2xf32>, vector<32x2xf32> -> vector<32x2xf32>
    %245 = vector.extract_strided_slice %244 {offsets = [0, 0], sizes = [32, 1], strides = [1, 1]} : vector<32x2xf32> to vector<32x1xf32>
    %246 = vector.extract_strided_slice %244 {offsets = [0, 1], sizes = [32, 1], strides = [1, 1]} : vector<32x2xf32> to vector<32x1xf32>
    %247 = arith.mulf %245, %245 : vector<32x1xf32>
    %248 = arith.subf %246, %247 : vector<32x1xf32>
    %249 = vector.broadcast %245 : vector<32x1xf32> to vector<32x32xf32>
    %250 = arith.subf %239, %249 : vector<32x32xf32>
    %cst_123 = arith.constant 9.99999974E-6 : f32
    %251 = vector.broadcast %cst_123 : f32 to vector<32x1xf32>
    %252 = arith.addf %248, %251 : vector<32x1xf32>
    %253 = math.rsqrt %252 : vector<32x1xf32>
    %254 = vector.broadcast %253 : vector<32x1xf32> to vector<32x32xf32>
    %255 = arith.mulf %250, %254 : vector<32x32xf32>
    %256 = vector.broadcast %240 : vector<1x32xf32> to vector<32x32xf32>
    %257 = arith.mulf %255, %256 : vector<32x32xf32>
    %258 = vector.broadcast %241 : vector<1x32xf32> to vector<32x32xf32>
    %259 = arith.addf %257, %258 : vector<32x32xf32>
    %c0_124 = arith.constant 0 : index
    %c0_125 = arith.constant 0 : index
    %260 = vector.load %arg1[%c0_124, %c0_125] : memref<32x1xi32, #tpu.memory_space<vmem>>, vector<32x1xi32>
    %261 = tpu.iota {dimensions = array<i32: 1>} : vector<32x128xi32>
    %262 = vector.broadcast %260 : vector<32x1xi32> to vector<32x128xi32>
    %263 = arith.cmpi eq, %261, %262 : vector<32x128xi32>
    %264 = arith.extui %263 : vector<32x128xi1> to vector<32x128xi32>
    %265 = arith.sitofp %264 : vector<32x128xi32> to vector<32x128xf32>
    %cst_126 = arith.constant dense<0.000000e+00> : vector<32x32xf32>
    %266 = tpu.matmul %265, %6, %cst_126 {dimension_numbers = #tpu.dot_dimension_numbers<[1], [0], [0], [1], [0, 0, 1, 1], [], []>} : vector<32x128xf32>, vector<128x32xf32>, vector<32x32xf32> -> vector<32x32xf32>
    %267 = tpu.concatenate %8, %8, %8, %8 in 0 : vector<8x32xf32>, vector<8x32xf32>, vector<8x32xf32>, vector<8x32xf32> -> vector<32x32xf32>
    %268 = arith.addf %266, %267 : vector<32x32xf32>
    %c0_127 = arith.constant 0 : index
    %c0_128 = arith.constant 0 : index
    %c0_129 = arith.constant 0 : index
    %269 = vector.load %arg16[%c0_127, %c0_128, %c0_129] : memref<2x32x96xbf16, #tpu.memory_space<vmem>>, vector<1x32x96xbf16>
    %270 = vector.shape_cast %269 : vector<1x32x96xbf16> to vector<32x96xbf16>
    %c0_130 = arith.constant 0 : index
    %c0_131 = arith.constant 0 : index
    %c0_132 = arith.constant 0 : index
    %271 = vector.load %arg17[%c0_130, %c0_131, %c0_132] : memref<2x1x96xf32, #tpu.memory_space<vmem>>, vector<1x1x96xf32>
    %272 = vector.shape_cast %271 : vector<1x1x96xf32> to vector<1x96xf32>
    %273 = arith.truncf %268 : vector<32x32xf32> to vector<32x32xbf16>
    %cst_133 = arith.constant dense<0.000000e+00> : vector<32x96xf32>
    %274 = tpu.matmul %273, %270, %cst_133 {dimension_numbers = #tpu.dot_dimension_numbers<[1], [0], [0], [1], [0, 0, 1, 1], [], []>} : vector<32x32xbf16>, vector<32x96xbf16>, vector<32x96xf32> -> vector<32x96xf32>
    %275 = vector.broadcast %272 : vector<1x96xf32> to vector<32x96xf32>
    %276 = arith.addf %274, %275 : vector<32x96xf32>
    %277 = vector.extract_strided_slice %276 {offsets = [0, 0], sizes = [32, 32], strides = [1, 1]} : vector<32x96xf32> to vector<32x32xf32>
    %278 = vector.extract_strided_slice %276 {offsets = [0, 32], sizes = [32, 64], strides = [1, 1]} : vector<32x96xf32> to vector<32x64xf32>
    %279 = vector.extract_strided_slice %278 {offsets = [0, 0], sizes = [32, 32], strides = [1, 1]} : vector<32x64xf32> to vector<32x32xf32>
    %280 = vector.extract_strided_slice %278 {offsets = [0, 32], sizes = [32, 32], strides = [1, 1]} : vector<32x64xf32> to vector<32x32xf32>
    %281 = vector.extract_strided_slice %279 {offsets = [0, 0], sizes = [8, 32], strides = [1, 1]} : vector<32x32xf32> to vector<8x32xf32>
    %282 = vector.extract_strided_slice %279 {offsets = [8, 0], sizes = [8, 32], strides = [1, 1]} : vector<32x32xf32> to vector<8x32xf32>
    %283 = vector.extract_strided_slice %279 {offsets = [16, 0], sizes = [8, 32], strides = [1, 1]} : vector<32x32xf32> to vector<8x32xf32>
    %284 = vector.extract_strided_slice %279 {offsets = [24, 0], sizes = [8, 32], strides = [1, 1]} : vector<32x32xf32> to vector<8x32xf32>
    %285 = tpu.concatenate %281, %282, %283, %284 in 1 : vector<8x32xf32>, vector<8x32xf32>, vector<8x32xf32>, vector<8x32xf32> -> vector<8x128xf32>
    %286 = vector.extract_strided_slice %280 {offsets = [0, 0], sizes = [8, 32], strides = [1, 1]} : vector<32x32xf32> to vector<8x32xf32>
    %287 = vector.extract_strided_slice %280 {offsets = [8, 0], sizes = [8, 32], strides = [1, 1]} : vector<32x32xf32> to vector<8x32xf32>
    %288 = vector.extract_strided_slice %280 {offsets = [16, 0], sizes = [8, 32], strides = [1, 1]} : vector<32x32xf32> to vector<8x32xf32>
    %289 = vector.extract_strided_slice %280 {offsets = [24, 0], sizes = [8, 32], strides = [1, 1]} : vector<32x32xf32> to vector<8x32xf32>
    %290 = tpu.concatenate %286, %287, %288, %289 in 1 : vector<8x32xf32>, vector<8x32xf32>, vector<8x32xf32>, vector<8x32xf32> -> vector<8x128xf32>
    %291 = tpu.concatenate %285, %285, %285, %285 in 0 : vector<8x128xf32>, vector<8x128xf32>, vector<8x128xf32>, vector<8x128xf32> -> vector<32x128xf32>
    %292 = tpu.concatenate %290, %290, %290, %290 in 0 : vector<8x128xf32>, vector<8x128xf32>, vector<8x128xf32>, vector<8x128xf32> -> vector<32x128xf32>
    %293 = tpu.concatenate %277, %277, %277, %277 in 1 : vector<32x32xf32>, vector<32x32xf32>, vector<32x32xf32>, vector<32x32xf32> -> vector<32x128xf32>
    %294 = arith.mulf %293, %291 : vector<32x128xf32>
    %cst_134 = arith.constant dense<0.000000e+00> : vector<32x16xf32>
    %295 = tpu.matmul %294, %1, %cst_134 {dimension_numbers = #tpu.dot_dimension_numbers<[1], [0], [0], [1], [0, 0, 1, 1], [], []>} : vector<32x128xf32>, vector<128x16xf32>, vector<32x16xf32> -> vector<32x16xf32>
    %cst_135 = arith.constant dense<0xFF800000> : vector<32xf32>
    %296 = vector.multi_reduction <maximumf>, %295, %cst_135 [1] : vector<32x16xf32> to vector<32xf32>
    %297 = vector.shape_cast %296 : vector<32xf32> to vector<32x1xf32>
    %298 = vector.broadcast %297 : vector<32x1xf32> to vector<32x16xf32>
    %299 = arith.subf %295, %298 : vector<32x16xf32>
    %300 = math.exp %299 : vector<32x16xf32>
    %cst_136 = arith.constant dense<0.000000e+00> : vector<32x4xf32>
    %301 = tpu.matmul %300, %3, %cst_136 {dimension_numbers = #tpu.dot_dimension_numbers<[1], [0], [0], [1], [0, 0, 1, 1], [], []>} : vector<32x16xf32>, vector<16x4xf32>, vector<32x4xf32> -> vector<32x4xf32>
    %302 = tpu.reciprocal %301 {approx = true} : vector<32x4xf32> -> vector<32x4xf32>
    %cst_137 = arith.constant dense<0.000000e+00> : vector<32x16xf32>
    %303 = tpu.matmul %302, %4, %cst_137 {dimension_numbers = #tpu.dot_dimension_numbers<[1], [0], [0], [1], [0, 0, 1, 1], [], []>} : vector<32x4xf32>, vector<4x16xf32>, vector<32x16xf32> -> vector<32x16xf32>
    %304 = arith.mulf %300, %303 : vector<32x16xf32>
    %cst_138 = arith.constant dense<0.000000e+00> : vector<32x128xf32>
    %305 = tpu.matmul %304, %2, %cst_138 {dimension_numbers = #tpu.dot_dimension_numbers<[1], [0], [0], [1], [0, 0, 1, 1], [], []>} : vector<32x16xf32>, vector<16x128xf32>, vector<32x128xf32> -> vector<32x128xf32>
    %306 = arith.mulf %305, %292 : vector<32x128xf32>
    %cst_139 = arith.constant dense<0.000000e+00> : vector<32x32xf32>
    %307 = tpu.matmul %306, %5, %cst_139 {dimension_numbers = #tpu.dot_dimension_numbers<[1], [0], [0], [1], [0, 0, 1, 1], [], []>} : vector<32x128xf32>, vector<128x32xf32>, vector<32x32xf32> -> vector<32x32xf32>
    %c0_140 = arith.constant 0 : index
    %c0_141 = arith.constant 0 : index
    %c0_142 = arith.constant 0 : index
    %308 = vector.load %arg18[%c0_140, %c0_141, %c0_142] : memref<2x32x32xbf16, #tpu.memory_space<vmem>>, vector<1x32x32xbf16>
    %309 = vector.shape_cast %308 : vector<1x32x32xbf16> to vector<32x32xbf16>
    %c0_143 = arith.constant 0 : index
    %c0_144 = arith.constant 0 : index
    %c0_145 = arith.constant 0 : index
    %310 = vector.load %arg19[%c0_143, %c0_144, %c0_145] : memref<2x1x32xf32, #tpu.memory_space<vmem>>, vector<1x1x32xf32>
    %311 = vector.shape_cast %310 : vector<1x1x32xf32> to vector<1x32xf32>
    %312 = arith.truncf %307 : vector<32x32xf32> to vector<32x32xbf16>
    %cst_146 = arith.constant dense<0.000000e+00> : vector<32x32xf32>
    %313 = tpu.matmul %312, %309, %cst_146 {dimension_numbers = #tpu.dot_dimension_numbers<[1], [0], [0], [1], [0, 0, 1, 1], [], []>} : vector<32x32xbf16>, vector<32x32xbf16>, vector<32x32xf32> -> vector<32x32xf32>
    %314 = vector.broadcast %311 : vector<1x32xf32> to vector<32x32xf32>
    %315 = arith.addf %313, %314 : vector<32x32xf32>
    %316 = arith.addf %268, %315 : vector<32x32xf32>
    %c0_147 = arith.constant 0 : index
    %c0_148 = arith.constant 0 : index
    %c0_149 = arith.constant 0 : index
    %317 = vector.load %arg30[%c0_147, %c0_148, %c0_149] : memref<2x1x32xf32, #tpu.memory_space<vmem>>, vector<1x1x32xf32>
    %318 = vector.shape_cast %317 : vector<1x1x32xf32> to vector<1x32xf32>
    %c0_150 = arith.constant 0 : index
    %c0_151 = arith.constant 0 : index
    %c0_152 = arith.constant 0 : index
    %319 = vector.load %arg31[%c0_150, %c0_151, %c0_152] : memref<2x1x32xf32, #tpu.memory_space<vmem>>, vector<1x1x32xf32>
    %320 = vector.shape_cast %319 : vector<1x1x32xf32> to vector<1x32xf32>
    %321 = arith.mulf %316, %316 : vector<32x32xf32>
    %322 = tpu.concatenate %316, %321 in 1 : vector<32x32xf32>, vector<32x32xf32> -> vector<32x64xf32>
    %cst_153 = arith.constant dense<0.000000e+00> : vector<32x2xf32>
    %323 = tpu.matmul %322, %0, %cst_153 {dimension_numbers = #tpu.dot_dimension_numbers<[1], [0], [0], [1], [0, 0, 1, 1], [], []>} : vector<32x64xf32>, vector<64x2xf32>, vector<32x2xf32> -> vector<32x2xf32>
    %324 = vector.extract_strided_slice %323 {offsets = [0, 0], sizes = [32, 1], strides = [1, 1]} : vector<32x2xf32> to vector<32x1xf32>
    %325 = vector.extract_strided_slice %323 {offsets = [0, 1], sizes = [32, 1], strides = [1, 1]} : vector<32x2xf32> to vector<32x1xf32>
    %326 = arith.mulf %324, %324 : vector<32x1xf32>
    %327 = arith.subf %325, %326 : vector<32x1xf32>
    %328 = vector.broadcast %324 : vector<32x1xf32> to vector<32x32xf32>
    %329 = arith.subf %316, %328 : vector<32x32xf32>
    %cst_154 = arith.constant 9.99999974E-6 : f32
    %330 = vector.broadcast %cst_154 : f32 to vector<32x1xf32>
    %331 = arith.addf %327, %330 : vector<32x1xf32>
    %332 = math.rsqrt %331 : vector<32x1xf32>
    %333 = vector.broadcast %332 : vector<32x1xf32> to vector<32x32xf32>
    %334 = arith.mulf %329, %333 : vector<32x32xf32>
    %335 = vector.broadcast %318 : vector<1x32xf32> to vector<32x32xf32>
    %336 = arith.mulf %334, %335 : vector<32x32xf32>
    %337 = vector.broadcast %320 : vector<1x32xf32> to vector<32x32xf32>
    %338 = arith.addf %336, %337 : vector<32x32xf32>
    %c0_155 = arith.constant 0 : index
    %c0_156 = arith.constant 0 : index
    %c0_157 = arith.constant 0 : index
    %339 = vector.load %arg20[%c0_155, %c0_156, %c0_157] : memref<2x32x32xbf16, #tpu.memory_space<vmem>>, vector<1x32x32xbf16>
    %340 = vector.shape_cast %339 : vector<1x32x32xbf16> to vector<32x32xbf16>
    %c0_158 = arith.constant 0 : index
    %c0_159 = arith.constant 0 : index
    %c0_160 = arith.constant 0 : index
    %341 = vector.load %arg21[%c0_158, %c0_159, %c0_160] : memref<2x1x32xf32, #tpu.memory_space<vmem>>, vector<1x1x32xf32>
    %342 = vector.shape_cast %341 : vector<1x1x32xf32> to vector<1x32xf32>
    %343 = arith.truncf %338 : vector<32x32xf32> to vector<32x32xbf16>
    %cst_161 = arith.constant dense<0.000000e+00> : vector<32x32xf32>
    %344 = tpu.matmul %343, %340, %cst_161 {dimension_numbers = #tpu.dot_dimension_numbers<[1], [0], [0], [1], [0, 0, 1, 1], [], []>} : vector<32x32xbf16>, vector<32x32xbf16>, vector<32x32xf32> -> vector<32x32xf32>
    %345 = vector.broadcast %342 : vector<1x32xf32> to vector<32x32xf32>
    %346 = arith.addf %344, %345 : vector<32x32xf32>
    %c0_162 = arith.constant 0 : index
    %c0_163 = arith.constant 0 : index
    %c0_164 = arith.constant 0 : index
    %347 = vector.load %arg22[%c0_162, %c0_163, %c0_164] : memref<2x32x64xbf16, #tpu.memory_space<vmem>>, vector<1x32x64xbf16>
    %348 = vector.shape_cast %347 : vector<1x32x64xbf16> to vector<32x64xbf16>
    %c0_165 = arith.constant 0 : index
    %c0_166 = arith.constant 0 : index
    %c0_167 = arith.constant 0 : index
    %349 = vector.load %arg23[%c0_165, %c0_166, %c0_167] : memref<2x1x64xf32, #tpu.memory_space<vmem>>, vector<1x1x64xf32>
    %350 = vector.shape_cast %349 : vector<1x1x64xf32> to vector<1x64xf32>
    %351 = arith.truncf %259 : vector<32x32xf32> to vector<32x32xbf16>
    %cst_168 = arith.constant dense<0.000000e+00> : vector<32x64xf32>
    %352 = tpu.matmul %351, %348, %cst_168 {dimension_numbers = #tpu.dot_dimension_numbers<[1], [0], [0], [1], [0, 0, 1, 1], [], []>} : vector<32x32xbf16>, vector<32x64xbf16>, vector<32x64xf32> -> vector<32x64xf32>
    %353 = vector.broadcast %350 : vector<1x64xf32> to vector<32x64xf32>
    %354 = arith.addf %352, %353 : vector<32x64xf32>
    %355 = vector.extract_strided_slice %354 {offsets = [0, 0], sizes = [32, 32], strides = [1, 1]} : vector<32x64xf32> to vector<32x32xf32>
    %356 = vector.extract_strided_slice %354 {offsets = [0, 32], sizes = [32, 32], strides = [1, 1]} : vector<32x64xf32> to vector<32x32xf32>
    %357 = vector.extract_strided_slice %355 {offsets = [0, 0], sizes = [8, 32], strides = [1, 1]} : vector<32x32xf32> to vector<8x32xf32>
    %358 = vector.extract_strided_slice %355 {offsets = [8, 0], sizes = [8, 32], strides = [1, 1]} : vector<32x32xf32> to vector<8x32xf32>
    %359 = vector.extract_strided_slice %355 {offsets = [16, 0], sizes = [8, 32], strides = [1, 1]} : vector<32x32xf32> to vector<8x32xf32>
    %360 = vector.extract_strided_slice %355 {offsets = [24, 0], sizes = [8, 32], strides = [1, 1]} : vector<32x32xf32> to vector<8x32xf32>
    %361 = tpu.concatenate %357, %358, %359, %360 in 1 : vector<8x32xf32>, vector<8x32xf32>, vector<8x32xf32>, vector<8x32xf32> -> vector<8x128xf32>
    %362 = vector.extract_strided_slice %356 {offsets = [0, 0], sizes = [8, 32], strides = [1, 1]} : vector<32x32xf32> to vector<8x32xf32>
    %363 = vector.extract_strided_slice %356 {offsets = [8, 0], sizes = [8, 32], strides = [1, 1]} : vector<32x32xf32> to vector<8x32xf32>
    %364 = vector.extract_strided_slice %356 {offsets = [16, 0], sizes = [8, 32], strides = [1, 1]} : vector<32x32xf32> to vector<8x32xf32>
    %365 = vector.extract_strided_slice %356 {offsets = [24, 0], sizes = [8, 32], strides = [1, 1]} : vector<32x32xf32> to vector<8x32xf32>
    %366 = tpu.concatenate %362, %363, %364, %365 in 1 : vector<8x32xf32>, vector<8x32xf32>, vector<8x32xf32>, vector<8x32xf32> -> vector<8x128xf32>
    %367 = tpu.concatenate %361, %361, %361, %361 in 0 : vector<8x128xf32>, vector<8x128xf32>, vector<8x128xf32>, vector<8x128xf32> -> vector<32x128xf32>
    %368 = tpu.concatenate %366, %366, %366, %366 in 0 : vector<8x128xf32>, vector<8x128xf32>, vector<8x128xf32>, vector<8x128xf32> -> vector<32x128xf32>
    %369 = tpu.concatenate %346, %346, %346, %346 in 1 : vector<32x32xf32>, vector<32x32xf32>, vector<32x32xf32>, vector<32x32xf32> -> vector<32x128xf32>
    %370 = arith.mulf %369, %367 : vector<32x128xf32>
    %cst_169 = arith.constant dense<0.000000e+00> : vector<32x16xf32>
    %371 = tpu.matmul %370, %1, %cst_169 {dimension_numbers = #tpu.dot_dimension_numbers<[1], [0], [0], [1], [0, 0, 1, 1], [], []>} : vector<32x128xf32>, vector<128x16xf32>, vector<32x16xf32> -> vector<32x16xf32>
    %cst_170 = arith.constant dense<0xFF800000> : vector<32xf32>
    %372 = vector.multi_reduction <maximumf>, %371, %cst_170 [1] : vector<32x16xf32> to vector<32xf32>
    %373 = vector.shape_cast %372 : vector<32xf32> to vector<32x1xf32>
    %374 = vector.broadcast %373 : vector<32x1xf32> to vector<32x16xf32>
    %375 = arith.subf %371, %374 : vector<32x16xf32>
    %376 = math.exp %375 : vector<32x16xf32>
    %cst_171 = arith.constant dense<0.000000e+00> : vector<32x4xf32>
    %377 = tpu.matmul %376, %3, %cst_171 {dimension_numbers = #tpu.dot_dimension_numbers<[1], [0], [0], [1], [0, 0, 1, 1], [], []>} : vector<32x16xf32>, vector<16x4xf32>, vector<32x4xf32> -> vector<32x4xf32>
    %378 = tpu.reciprocal %377 {approx = true} : vector<32x4xf32> -> vector<32x4xf32>
    %cst_172 = arith.constant dense<0.000000e+00> : vector<32x16xf32>
    %379 = tpu.matmul %378, %4, %cst_172 {dimension_numbers = #tpu.dot_dimension_numbers<[1], [0], [0], [1], [0, 0, 1, 1], [], []>} : vector<32x4xf32>, vector<4x16xf32>, vector<32x16xf32> -> vector<32x16xf32>
    %380 = arith.mulf %376, %379 : vector<32x16xf32>
    %cst_173 = arith.constant dense<0.000000e+00> : vector<32x128xf32>
    %381 = tpu.matmul %380, %2, %cst_173 {dimension_numbers = #tpu.dot_dimension_numbers<[1], [0], [0], [1], [0, 0, 1, 1], [], []>} : vector<32x16xf32>, vector<16x128xf32>, vector<32x128xf32> -> vector<32x128xf32>
    %382 = arith.mulf %381, %368 : vector<32x128xf32>
    %cst_174 = arith.constant dense<0.000000e+00> : vector<32x32xf32>
    %383 = tpu.matmul %382, %5, %cst_174 {dimension_numbers = #tpu.dot_dimension_numbers<[1], [0], [0], [1], [0, 0, 1, 1], [], []>} : vector<32x128xf32>, vector<128x32xf32>, vector<32x32xf32> -> vector<32x32xf32>
    %c0_175 = arith.constant 0 : index
    %c0_176 = arith.constant 0 : index
    %c0_177 = arith.constant 0 : index
    %384 = vector.load %arg24[%c0_175, %c0_176, %c0_177] : memref<2x32x32xbf16, #tpu.memory_space<vmem>>, vector<1x32x32xbf16>
    %385 = vector.shape_cast %384 : vector<1x32x32xbf16> to vector<32x32xbf16>
    %c0_178 = arith.constant 0 : index
    %c0_179 = arith.constant 0 : index
    %c0_180 = arith.constant 0 : index
    %386 = vector.load %arg25[%c0_178, %c0_179, %c0_180] : memref<2x1x32xf32, #tpu.memory_space<vmem>>, vector<1x1x32xf32>
    %387 = vector.shape_cast %386 : vector<1x1x32xf32> to vector<1x32xf32>
    %388 = arith.truncf %383 : vector<32x32xf32> to vector<32x32xbf16>
    %cst_181 = arith.constant dense<0.000000e+00> : vector<32x32xf32>
    %389 = tpu.matmul %388, %385, %cst_181 {dimension_numbers = #tpu.dot_dimension_numbers<[1], [0], [0], [1], [0, 0, 1, 1], [], []>} : vector<32x32xbf16>, vector<32x32xbf16>, vector<32x32xf32> -> vector<32x32xf32>
    %390 = vector.broadcast %387 : vector<1x32xf32> to vector<32x32xf32>
    %391 = arith.addf %389, %390 : vector<32x32xf32>
    %392 = arith.addf %338, %391 : vector<32x32xf32>
    %c0_182 = arith.constant 0 : index
    %c0_183 = arith.constant 0 : index
    %c0_184 = arith.constant 0 : index
    %393 = vector.load %arg32[%c0_182, %c0_183, %c0_184] : memref<2x1x32xf32, #tpu.memory_space<vmem>>, vector<1x1x32xf32>
    %394 = vector.shape_cast %393 : vector<1x1x32xf32> to vector<1x32xf32>
    %c0_185 = arith.constant 0 : index
    %c0_186 = arith.constant 0 : index
    %c0_187 = arith.constant 0 : index
    %395 = vector.load %arg33[%c0_185, %c0_186, %c0_187] : memref<2x1x32xf32, #tpu.memory_space<vmem>>, vector<1x1x32xf32>
    %396 = vector.shape_cast %395 : vector<1x1x32xf32> to vector<1x32xf32>
    %397 = arith.mulf %392, %392 : vector<32x32xf32>
    %398 = tpu.concatenate %392, %397 in 1 : vector<32x32xf32>, vector<32x32xf32> -> vector<32x64xf32>
    %cst_188 = arith.constant dense<0.000000e+00> : vector<32x2xf32>
    %399 = tpu.matmul %398, %0, %cst_188 {dimension_numbers = #tpu.dot_dimension_numbers<[1], [0], [0], [1], [0, 0, 1, 1], [], []>} : vector<32x64xf32>, vector<64x2xf32>, vector<32x2xf32> -> vector<32x2xf32>
    %400 = vector.extract_strided_slice %399 {offsets = [0, 0], sizes = [32, 1], strides = [1, 1]} : vector<32x2xf32> to vector<32x1xf32>
    %401 = vector.extract_strided_slice %399 {offsets = [0, 1], sizes = [32, 1], strides = [1, 1]} : vector<32x2xf32> to vector<32x1xf32>
    %402 = arith.mulf %400, %400 : vector<32x1xf32>
    %403 = arith.subf %401, %402 : vector<32x1xf32>
    %404 = vector.broadcast %400 : vector<32x1xf32> to vector<32x32xf32>
    %405 = arith.subf %392, %404 : vector<32x32xf32>
    %cst_189 = arith.constant 9.99999974E-6 : f32
    %406 = vector.broadcast %cst_189 : f32 to vector<32x1xf32>
    %407 = arith.addf %403, %406 : vector<32x1xf32>
    %408 = math.rsqrt %407 : vector<32x1xf32>
    %409 = vector.broadcast %408 : vector<32x1xf32> to vector<32x32xf32>
    %410 = arith.mulf %405, %409 : vector<32x32xf32>
    %411 = vector.broadcast %394 : vector<1x32xf32> to vector<32x32xf32>
    %412 = arith.mulf %410, %411 : vector<32x32xf32>
    %413 = vector.broadcast %396 : vector<1x32xf32> to vector<32x32xf32>
    %414 = arith.addf %412, %413 : vector<32x32xf32>
    %c0_190 = arith.constant 0 : index
    %c0_191 = arith.constant 0 : index
    %c0_192 = arith.constant 0 : index
    %415 = vector.load %arg26[%c0_190, %c0_191, %c0_192] : memref<2x32x64xbf16, #tpu.memory_space<vmem>>, vector<1x32x64xbf16>
    %416 = vector.shape_cast %415 : vector<1x32x64xbf16> to vector<32x64xbf16>
    %c0_193 = arith.constant 0 : index
    %c0_194 = arith.constant 0 : index
    %c0_195 = arith.constant 0 : index
    %417 = vector.load %arg27[%c0_193, %c0_194, %c0_195] : memref<2x1x64xf32, #tpu.memory_space<vmem>>, vector<1x1x64xf32>
    %418 = vector.shape_cast %417 : vector<1x1x64xf32> to vector<1x64xf32>
    %419 = arith.truncf %414 : vector<32x32xf32> to vector<32x32xbf16>
    %cst_196 = arith.constant dense<0.000000e+00> : vector<32x64xf32>
    %420 = tpu.matmul %419, %416, %cst_196 {dimension_numbers = #tpu.dot_dimension_numbers<[1], [0], [0], [1], [0, 0, 1, 1], [], []>} : vector<32x32xbf16>, vector<32x64xbf16>, vector<32x64xf32> -> vector<32x64xf32>
    %421 = vector.broadcast %418 : vector<1x64xf32> to vector<32x64xf32>
    %422 = arith.addf %420, %421 : vector<32x64xf32>
    %cst_197 = arith.constant 0.000000e+00 : f32
    %423 = vector.broadcast %cst_197 : f32 to vector<32x64xf32>
    %424 = arith.maximumf %422, %423 : vector<32x64xf32>
    %c0_198 = arith.constant 0 : index
    %c0_199 = arith.constant 0 : index
    %c0_200 = arith.constant 0 : index
    %425 = vector.load %arg28[%c0_198, %c0_199, %c0_200] : memref<2x64x32xbf16, #tpu.memory_space<vmem>>, vector<1x64x32xbf16>
    %426 = vector.shape_cast %425 : vector<1x64x32xbf16> to vector<64x32xbf16>
    %c0_201 = arith.constant 0 : index
    %c0_202 = arith.constant 0 : index
    %c0_203 = arith.constant 0 : index
    %427 = vector.load %arg29[%c0_201, %c0_202, %c0_203] : memref<2x1x32xf32, #tpu.memory_space<vmem>>, vector<1x1x32xf32>
    %428 = vector.shape_cast %427 : vector<1x1x32xf32> to vector<1x32xf32>
    %429 = arith.truncf %424 : vector<32x64xf32> to vector<32x64xbf16>
    %cst_204 = arith.constant dense<0.000000e+00> : vector<32x32xf32>
    %430 = tpu.matmul %429, %426, %cst_204 {dimension_numbers = #tpu.dot_dimension_numbers<[1], [0], [0], [1], [0, 0, 1, 1], [], []>} : vector<32x64xbf16>, vector<64x32xbf16>, vector<32x32xf32> -> vector<32x32xf32>
    %431 = vector.broadcast %428 : vector<1x32xf32> to vector<32x32xf32>
    %432 = arith.addf %430, %431 : vector<32x32xf32>
    %433 = arith.addf %414, %432 : vector<32x32xf32>
    %c0_205 = arith.constant 0 : index
    %c0_206 = arith.constant 0 : index
    %c0_207 = arith.constant 0 : index
    %434 = vector.load %arg34[%c0_205, %c0_206, %c0_207] : memref<2x1x32xf32, #tpu.memory_space<vmem>>, vector<1x1x32xf32>
    %435 = vector.shape_cast %434 : vector<1x1x32xf32> to vector<1x32xf32>
    %c0_208 = arith.constant 0 : index
    %c0_209 = arith.constant 0 : index
    %c0_210 = arith.constant 0 : index
    %436 = vector.load %arg35[%c0_208, %c0_209, %c0_210] : memref<2x1x32xf32, #tpu.memory_space<vmem>>, vector<1x1x32xf32>
    %437 = vector.shape_cast %436 : vector<1x1x32xf32> to vector<1x32xf32>
    %438 = arith.mulf %433, %433 : vector<32x32xf32>
    %439 = tpu.concatenate %433, %438 in 1 : vector<32x32xf32>, vector<32x32xf32> -> vector<32x64xf32>
    %cst_211 = arith.constant dense<0.000000e+00> : vector<32x2xf32>
    %440 = tpu.matmul %439, %0, %cst_211 {dimension_numbers = #tpu.dot_dimension_numbers<[1], [0], [0], [1], [0, 0, 1, 1], [], []>} : vector<32x64xf32>, vector<64x2xf32>, vector<32x2xf32> -> vector<32x2xf32>
    %441 = vector.extract_strided_slice %440 {offsets = [0, 0], sizes = [32, 1], strides = [1, 1]} : vector<32x2xf32> to vector<32x1xf32>
    %442 = vector.extract_strided_slice %440 {offsets = [0, 1], sizes = [32, 1], strides = [1, 1]} : vector<32x2xf32> to vector<32x1xf32>
    %443 = arith.mulf %441, %441 : vector<32x1xf32>
    %444 = arith.subf %442, %443 : vector<32x1xf32>
    %445 = vector.broadcast %441 : vector<32x1xf32> to vector<32x32xf32>
    %446 = arith.subf %433, %445 : vector<32x32xf32>
    %cst_212 = arith.constant 9.99999974E-6 : f32
    %447 = vector.broadcast %cst_212 : f32 to vector<32x1xf32>
    %448 = arith.addf %444, %447 : vector<32x1xf32>
    %449 = math.rsqrt %448 : vector<32x1xf32>
    %450 = vector.broadcast %449 : vector<32x1xf32> to vector<32x32xf32>
    %451 = arith.mulf %446, %450 : vector<32x32xf32>
    %452 = vector.broadcast %435 : vector<1x32xf32> to vector<32x32xf32>
    %453 = arith.mulf %451, %452 : vector<32x32xf32>
    %454 = vector.broadcast %437 : vector<1x32xf32> to vector<32x32xf32>
    %455 = arith.addf %453, %454 : vector<32x32xf32>
    %c1_213 = arith.constant 1 : index
    %c0_214 = arith.constant 0 : index
    %c0_215 = arith.constant 0 : index
    %456 = vector.load %arg16[%c1_213, %c0_214, %c0_215] : memref<2x32x96xbf16, #tpu.memory_space<vmem>>, vector<1x32x96xbf16>
    %457 = vector.shape_cast %456 : vector<1x32x96xbf16> to vector<32x96xbf16>
    %c1_216 = arith.constant 1 : index
    %c0_217 = arith.constant 0 : index
    %c0_218 = arith.constant 0 : index
    %458 = vector.load %arg17[%c1_216, %c0_217, %c0_218] : memref<2x1x96xf32, #tpu.memory_space<vmem>>, vector<1x1x96xf32>
    %459 = vector.shape_cast %458 : vector<1x1x96xf32> to vector<1x96xf32>
    %460 = arith.truncf %455 : vector<32x32xf32> to vector<32x32xbf16>
    %cst_219 = arith.constant dense<0.000000e+00> : vector<32x96xf32>
    %461 = tpu.matmul %460, %457, %cst_219 {dimension_numbers = #tpu.dot_dimension_numbers<[1], [0], [0], [1], [0, 0, 1, 1], [], []>} : vector<32x32xbf16>, vector<32x96xbf16>, vector<32x96xf32> -> vector<32x96xf32>
    %462 = vector.broadcast %459 : vector<1x96xf32> to vector<32x96xf32>
    %463 = arith.addf %461, %462 : vector<32x96xf32>
    %464 = vector.extract_strided_slice %463 {offsets = [0, 0], sizes = [32, 32], strides = [1, 1]} : vector<32x96xf32> to vector<32x32xf32>
    %465 = vector.extract_strided_slice %463 {offsets = [0, 32], sizes = [32, 64], strides = [1, 1]} : vector<32x96xf32> to vector<32x64xf32>
    %466 = vector.extract_strided_slice %465 {offsets = [0, 0], sizes = [32, 32], strides = [1, 1]} : vector<32x64xf32> to vector<32x32xf32>
    %467 = vector.extract_strided_slice %465 {offsets = [0, 32], sizes = [32, 32], strides = [1, 1]} : vector<32x64xf32> to vector<32x32xf32>
    %468 = vector.extract_strided_slice %466 {offsets = [0, 0], sizes = [8, 32], strides = [1, 1]} : vector<32x32xf32> to vector<8x32xf32>
    %469 = vector.extract_strided_slice %466 {offsets = [8, 0], sizes = [8, 32], strides = [1, 1]} : vector<32x32xf32> to vector<8x32xf32>
    %470 = vector.extract_strided_slice %466 {offsets = [16, 0], sizes = [8, 32], strides = [1, 1]} : vector<32x32xf32> to vector<8x32xf32>
    %471 = vector.extract_strided_slice %466 {offsets = [24, 0], sizes = [8, 32], strides = [1, 1]} : vector<32x32xf32> to vector<8x32xf32>
    %472 = tpu.concatenate %468, %469, %470, %471 in 1 : vector<8x32xf32>, vector<8x32xf32>, vector<8x32xf32>, vector<8x32xf32> -> vector<8x128xf32>
    %473 = vector.extract_strided_slice %467 {offsets = [0, 0], sizes = [8, 32], strides = [1, 1]} : vector<32x32xf32> to vector<8x32xf32>
    %474 = vector.extract_strided_slice %467 {offsets = [8, 0], sizes = [8, 32], strides = [1, 1]} : vector<32x32xf32> to vector<8x32xf32>
    %475 = vector.extract_strided_slice %467 {offsets = [16, 0], sizes = [8, 32], strides = [1, 1]} : vector<32x32xf32> to vector<8x32xf32>
    %476 = vector.extract_strided_slice %467 {offsets = [24, 0], sizes = [8, 32], strides = [1, 1]} : vector<32x32xf32> to vector<8x32xf32>
    %477 = tpu.concatenate %473, %474, %475, %476 in 1 : vector<8x32xf32>, vector<8x32xf32>, vector<8x32xf32>, vector<8x32xf32> -> vector<8x128xf32>
    %478 = tpu.concatenate %472, %472, %472, %472 in 0 : vector<8x128xf32>, vector<8x128xf32>, vector<8x128xf32>, vector<8x128xf32> -> vector<32x128xf32>
    %479 = tpu.concatenate %477, %477, %477, %477 in 0 : vector<8x128xf32>, vector<8x128xf32>, vector<8x128xf32>, vector<8x128xf32> -> vector<32x128xf32>
    %480 = tpu.concatenate %464, %464, %464, %464 in 1 : vector<32x32xf32>, vector<32x32xf32>, vector<32x32xf32>, vector<32x32xf32> -> vector<32x128xf32>
    %481 = arith.mulf %480, %478 : vector<32x128xf32>
    %cst_220 = arith.constant dense<0.000000e+00> : vector<32x16xf32>
    %482 = tpu.matmul %481, %1, %cst_220 {dimension_numbers = #tpu.dot_dimension_numbers<[1], [0], [0], [1], [0, 0, 1, 1], [], []>} : vector<32x128xf32>, vector<128x16xf32>, vector<32x16xf32> -> vector<32x16xf32>
    %cst_221 = arith.constant dense<0xFF800000> : vector<32xf32>
    %483 = vector.multi_reduction <maximumf>, %482, %cst_221 [1] : vector<32x16xf32> to vector<32xf32>
    %484 = vector.shape_cast %483 : vector<32xf32> to vector<32x1xf32>
    %485 = vector.broadcast %484 : vector<32x1xf32> to vector<32x16xf32>
    %486 = arith.subf %482, %485 : vector<32x16xf32>
    %487 = math.exp %486 : vector<32x16xf32>
    %cst_222 = arith.constant dense<0.000000e+00> : vector<32x4xf32>
    %488 = tpu.matmul %487, %3, %cst_222 {dimension_numbers = #tpu.dot_dimension_numbers<[1], [0], [0], [1], [0, 0, 1, 1], [], []>} : vector<32x16xf32>, vector<16x4xf32>, vector<32x4xf32> -> vector<32x4xf32>
    %489 = tpu.reciprocal %488 {approx = true} : vector<32x4xf32> -> vector<32x4xf32>
    %cst_223 = arith.constant dense<0.000000e+00> : vector<32x16xf32>
    %490 = tpu.matmul %489, %4, %cst_223 {dimension_numbers = #tpu.dot_dimension_numbers<[1], [0], [0], [1], [0, 0, 1, 1], [], []>} : vector<32x4xf32>, vector<4x16xf32>, vector<32x16xf32> -> vector<32x16xf32>
    %491 = arith.mulf %487, %490 : vector<32x16xf32>
    %cst_224 = arith.constant dense<0.000000e+00> : vector<32x128xf32>
    %492 = tpu.matmul %491, %2, %cst_224 {dimension_numbers = #tpu.dot_dimension_numbers<[1], [0], [0], [1], [0, 0, 1, 1], [], []>} : vector<32x16xf32>, vector<16x128xf32>, vector<32x128xf32> -> vector<32x128xf32>
    %493 = arith.mulf %492, %479 : vector<32x128xf32>
    %cst_225 = arith.constant dense<0.000000e+00> : vector<32x32xf32>
    %494 = tpu.matmul %493, %5, %cst_225 {dimension_numbers = #tpu.dot_dimension_numbers<[1], [0], [0], [1], [0, 0, 1, 1], [], []>} : vector<32x128xf32>, vector<128x32xf32>, vector<32x32xf32> -> vector<32x32xf32>
    %c1_226 = arith.constant 1 : index
    %c0_227 = arith.constant 0 : index
    %c0_228 = arith.constant 0 : index
    %495 = vector.load %arg18[%c1_226, %c0_227, %c0_228] : memref<2x32x32xbf16, #tpu.memory_space<vmem>>, vector<1x32x32xbf16>
    %496 = vector.shape_cast %495 : vector<1x32x32xbf16> to vector<32x32xbf16>
    %c1_229 = arith.constant 1 : index
    %c0_230 = arith.constant 0 : index
    %c0_231 = arith.constant 0 : index
    %497 = vector.load %arg19[%c1_229, %c0_230, %c0_231] : memref<2x1x32xf32, #tpu.memory_space<vmem>>, vector<1x1x32xf32>
    %498 = vector.shape_cast %497 : vector<1x1x32xf32> to vector<1x32xf32>
    %499 = arith.truncf %494 : vector<32x32xf32> to vector<32x32xbf16>
    %cst_232 = arith.constant dense<0.000000e+00> : vector<32x32xf32>
    %500 = tpu.matmul %499, %496, %cst_232 {dimension_numbers = #tpu.dot_dimension_numbers<[1], [0], [0], [1], [0, 0, 1, 1], [], []>} : vector<32x32xbf16>, vector<32x32xbf16>, vector<32x32xf32> -> vector<32x32xf32>
    %501 = vector.broadcast %498 : vector<1x32xf32> to vector<32x32xf32>
    %502 = arith.addf %500, %501 : vector<32x32xf32>
    %503 = arith.addf %455, %502 : vector<32x32xf32>
    %c1_233 = arith.constant 1 : index
    %c0_234 = arith.constant 0 : index
    %c0_235 = arith.constant 0 : index
    %504 = vector.load %arg30[%c1_233, %c0_234, %c0_235] : memref<2x1x32xf32, #tpu.memory_space<vmem>>, vector<1x1x32xf32>
    %505 = vector.shape_cast %504 : vector<1x1x32xf32> to vector<1x32xf32>
    %c1_236 = arith.constant 1 : index
    %c0_237 = arith.constant 0 : index
    %c0_238 = arith.constant 0 : index
    %506 = vector.load %arg31[%c1_236, %c0_237, %c0_238] : memref<2x1x32xf32, #tpu.memory_space<vmem>>, vector<1x1x32xf32>
    %507 = vector.shape_cast %506 : vector<1x1x32xf32> to vector<1x32xf32>
    %508 = arith.mulf %503, %503 : vector<32x32xf32>
    %509 = tpu.concatenate %503, %508 in 1 : vector<32x32xf32>, vector<32x32xf32> -> vector<32x64xf32>
    %cst_239 = arith.constant dense<0.000000e+00> : vector<32x2xf32>
    %510 = tpu.matmul %509, %0, %cst_239 {dimension_numbers = #tpu.dot_dimension_numbers<[1], [0], [0], [1], [0, 0, 1, 1], [], []>} : vector<32x64xf32>, vector<64x2xf32>, vector<32x2xf32> -> vector<32x2xf32>
    %511 = vector.extract_strided_slice %510 {offsets = [0, 0], sizes = [32, 1], strides = [1, 1]} : vector<32x2xf32> to vector<32x1xf32>
    %512 = vector.extract_strided_slice %510 {offsets = [0, 1], sizes = [32, 1], strides = [1, 1]} : vector<32x2xf32> to vector<32x1xf32>
    %513 = arith.mulf %511, %511 : vector<32x1xf32>
    %514 = arith.subf %512, %513 : vector<32x1xf32>
    %515 = vector.broadcast %511 : vector<32x1xf32> to vector<32x32xf32>
    %516 = arith.subf %503, %515 : vector<32x32xf32>
    %cst_240 = arith.constant 9.99999974E-6 : f32
    %517 = vector.broadcast %cst_240 : f32 to vector<32x1xf32>
    %518 = arith.addf %514, %517 : vector<32x1xf32>
    %519 = math.rsqrt %518 : vector<32x1xf32>
    %520 = vector.broadcast %519 : vector<32x1xf32> to vector<32x32xf32>
    %521 = arith.mulf %516, %520 : vector<32x32xf32>
    %522 = vector.broadcast %505 : vector<1x32xf32> to vector<32x32xf32>
    %523 = arith.mulf %521, %522 : vector<32x32xf32>
    %524 = vector.broadcast %507 : vector<1x32xf32> to vector<32x32xf32>
    %525 = arith.addf %523, %524 : vector<32x32xf32>
    %c1_241 = arith.constant 1 : index
    %c0_242 = arith.constant 0 : index
    %c0_243 = arith.constant 0 : index
    %526 = vector.load %arg20[%c1_241, %c0_242, %c0_243] : memref<2x32x32xbf16, #tpu.memory_space<vmem>>, vector<1x32x32xbf16>
    %527 = vector.shape_cast %526 : vector<1x32x32xbf16> to vector<32x32xbf16>
    %c1_244 = arith.constant 1 : index
    %c0_245 = arith.constant 0 : index
    %c0_246 = arith.constant 0 : index
    %528 = vector.load %arg21[%c1_244, %c0_245, %c0_246] : memref<2x1x32xf32, #tpu.memory_space<vmem>>, vector<1x1x32xf32>
    %529 = vector.shape_cast %528 : vector<1x1x32xf32> to vector<1x32xf32>
    %530 = arith.truncf %525 : vector<32x32xf32> to vector<32x32xbf16>
    %cst_247 = arith.constant dense<0.000000e+00> : vector<32x32xf32>
    %531 = tpu.matmul %530, %527, %cst_247 {dimension_numbers = #tpu.dot_dimension_numbers<[1], [0], [0], [1], [0, 0, 1, 1], [], []>} : vector<32x32xbf16>, vector<32x32xbf16>, vector<32x32xf32> -> vector<32x32xf32>
    %532 = vector.broadcast %529 : vector<1x32xf32> to vector<32x32xf32>
    %533 = arith.addf %531, %532 : vector<32x32xf32>
    %c1_248 = arith.constant 1 : index
    %c0_249 = arith.constant 0 : index
    %c0_250 = arith.constant 0 : index
    %534 = vector.load %arg22[%c1_248, %c0_249, %c0_250] : memref<2x32x64xbf16, #tpu.memory_space<vmem>>, vector<1x32x64xbf16>
    %535 = vector.shape_cast %534 : vector<1x32x64xbf16> to vector<32x64xbf16>
    %c1_251 = arith.constant 1 : index
    %c0_252 = arith.constant 0 : index
    %c0_253 = arith.constant 0 : index
    %536 = vector.load %arg23[%c1_251, %c0_252, %c0_253] : memref<2x1x64xf32, #tpu.memory_space<vmem>>, vector<1x1x64xf32>
    %537 = vector.shape_cast %536 : vector<1x1x64xf32> to vector<1x64xf32>
    %538 = arith.truncf %259 : vector<32x32xf32> to vector<32x32xbf16>
    %cst_254 = arith.constant dense<0.000000e+00> : vector<32x64xf32>
    %539 = tpu.matmul %538, %535, %cst_254 {dimension_numbers = #tpu.dot_dimension_numbers<[1], [0], [0], [1], [0, 0, 1, 1], [], []>} : vector<32x32xbf16>, vector<32x64xbf16>, vector<32x64xf32> -> vector<32x64xf32>
    %540 = vector.broadcast %537 : vector<1x64xf32> to vector<32x64xf32>
    %541 = arith.addf %539, %540 : vector<32x64xf32>
    %542 = vector.extract_strided_slice %541 {offsets = [0, 0], sizes = [32, 32], strides = [1, 1]} : vector<32x64xf32> to vector<32x32xf32>
    %543 = vector.extract_strided_slice %541 {offsets = [0, 32], sizes = [32, 32], strides = [1, 1]} : vector<32x64xf32> to vector<32x32xf32>
    %544 = vector.extract_strided_slice %542 {offsets = [0, 0], sizes = [8, 32], strides = [1, 1]} : vector<32x32xf32> to vector<8x32xf32>
    %545 = vector.extract_strided_slice %542 {offsets = [8, 0], sizes = [8, 32], strides = [1, 1]} : vector<32x32xf32> to vector<8x32xf32>
    %546 = vector.extract_strided_slice %542 {offsets = [16, 0], sizes = [8, 32], strides = [1, 1]} : vector<32x32xf32> to vector<8x32xf32>
    %547 = vector.extract_strided_slice %542 {offsets = [24, 0], sizes = [8, 32], strides = [1, 1]} : vector<32x32xf32> to vector<8x32xf32>
    %548 = tpu.concatenate %544, %545, %546, %547 in 1 : vector<8x32xf32>, vector<8x32xf32>, vector<8x32xf32>, vector<8x32xf32> -> vector<8x128xf32>
    %549 = vector.extract_strided_slice %543 {offsets = [0, 0], sizes = [8, 32], strides = [1, 1]} : vector<32x32xf32> to vector<8x32xf32>
    %550 = vector.extract_strided_slice %543 {offsets = [8, 0], sizes = [8, 32], strides = [1, 1]} : vector<32x32xf32> to vector<8x32xf32>
    %551 = vector.extract_strided_slice %543 {offsets = [16, 0], sizes = [8, 32], strides = [1, 1]} : vector<32x32xf32> to vector<8x32xf32>
    %552 = vector.extract_strided_slice %543 {offsets = [24, 0], sizes = [8, 32], strides = [1, 1]} : vector<32x32xf32> to vector<8x32xf32>
    %553 = tpu.concatenate %549, %550, %551, %552 in 1 : vector<8x32xf32>, vector<8x32xf32>, vector<8x32xf32>, vector<8x32xf32> -> vector<8x128xf32>
    %554 = tpu.concatenate %548, %548, %548, %548 in 0 : vector<8x128xf32>, vector<8x128xf32>, vector<8x128xf32>, vector<8x128xf32> -> vector<32x128xf32>
    %555 = tpu.concatenate %553, %553, %553, %553 in 0 : vector<8x128xf32>, vector<8x128xf32>, vector<8x128xf32>, vector<8x128xf32> -> vector<32x128xf32>
    %556 = tpu.concatenate %533, %533, %533, %533 in 1 : vector<32x32xf32>, vector<32x32xf32>, vector<32x32xf32>, vector<32x32xf32> -> vector<32x128xf32>
    %557 = arith.mulf %556, %554 : vector<32x128xf32>
    %cst_255 = arith.constant dense<0.000000e+00> : vector<32x16xf32>
    %558 = tpu.matmul %557, %1, %cst_255 {dimension_numbers = #tpu.dot_dimension_numbers<[1], [0], [0], [1], [0, 0, 1, 1], [], []>} : vector<32x128xf32>, vector<128x16xf32>, vector<32x16xf32> -> vector<32x16xf32>
    %cst_256 = arith.constant dense<0xFF800000> : vector<32xf32>
    %559 = vector.multi_reduction <maximumf>, %558, %cst_256 [1] : vector<32x16xf32> to vector<32xf32>
    %560 = vector.shape_cast %559 : vector<32xf32> to vector<32x1xf32>
    %561 = vector.broadcast %560 : vector<32x1xf32> to vector<32x16xf32>
    %562 = arith.subf %558, %561 : vector<32x16xf32>
    %563 = math.exp %562 : vector<32x16xf32>
    %cst_257 = arith.constant dense<0.000000e+00> : vector<32x4xf32>
    %564 = tpu.matmul %563, %3, %cst_257 {dimension_numbers = #tpu.dot_dimension_numbers<[1], [0], [0], [1], [0, 0, 1, 1], [], []>} : vector<32x16xf32>, vector<16x4xf32>, vector<32x4xf32> -> vector<32x4xf32>
    %565 = tpu.reciprocal %564 {approx = true} : vector<32x4xf32> -> vector<32x4xf32>
    %cst_258 = arith.constant dense<0.000000e+00> : vector<32x16xf32>
    %566 = tpu.matmul %565, %4, %cst_258 {dimension_numbers = #tpu.dot_dimension_numbers<[1], [0], [0], [1], [0, 0, 1, 1], [], []>} : vector<32x4xf32>, vector<4x16xf32>, vector<32x16xf32> -> vector<32x16xf32>
    %567 = arith.mulf %563, %566 : vector<32x16xf32>
    %cst_259 = arith.constant dense<0.000000e+00> : vector<32x128xf32>
    %568 = tpu.matmul %567, %2, %cst_259 {dimension_numbers = #tpu.dot_dimension_numbers<[1], [0], [0], [1], [0, 0, 1, 1], [], []>} : vector<32x16xf32>, vector<16x128xf32>, vector<32x128xf32> -> vector<32x128xf32>
    %569 = arith.mulf %568, %555 : vector<32x128xf32>
    %cst_260 = arith.constant dense<0.000000e+00> : vector<32x32xf32>
    %570 = tpu.matmul %569, %5, %cst_260 {dimension_numbers = #tpu.dot_dimension_numbers<[1], [0], [0], [1], [0, 0, 1, 1], [], []>} : vector<32x128xf32>, vector<128x32xf32>, vector<32x32xf32> -> vector<32x32xf32>
    %c1_261 = arith.constant 1 : index
    %c0_262 = arith.constant 0 : index
    %c0_263 = arith.constant 0 : index
    %571 = vector.load %arg24[%c1_261, %c0_262, %c0_263] : memref<2x32x32xbf16, #tpu.memory_space<vmem>>, vector<1x32x32xbf16>
    %572 = vector.shape_cast %571 : vector<1x32x32xbf16> to vector<32x32xbf16>
    %c1_264 = arith.constant 1 : index
    %c0_265 = arith.constant 0 : index
    %c0_266 = arith.constant 0 : index
    %573 = vector.load %arg25[%c1_264, %c0_265, %c0_266] : memref<2x1x32xf32, #tpu.memory_space<vmem>>, vector<1x1x32xf32>
    %574 = vector.shape_cast %573 : vector<1x1x32xf32> to vector<1x32xf32>
    %575 = arith.truncf %570 : vector<32x32xf32> to vector<32x32xbf16>
    %cst_267 = arith.constant dense<0.000000e+00> : vector<32x32xf32>
    %576 = tpu.matmul %575, %572, %cst_267 {dimension_numbers = #tpu.dot_dimension_numbers<[1], [0], [0], [1], [0, 0, 1, 1], [], []>} : vector<32x32xbf16>, vector<32x32xbf16>, vector<32x32xf32> -> vector<32x32xf32>
    %577 = vector.broadcast %574 : vector<1x32xf32> to vector<32x32xf32>
    %578 = arith.addf %576, %577 : vector<32x32xf32>
    %579 = arith.addf %525, %578 : vector<32x32xf32>
    %c1_268 = arith.constant 1 : index
    %c0_269 = arith.constant 0 : index
    %c0_270 = arith.constant 0 : index
    %580 = vector.load %arg32[%c1_268, %c0_269, %c0_270] : memref<2x1x32xf32, #tpu.memory_space<vmem>>, vector<1x1x32xf32>
    %581 = vector.shape_cast %580 : vector<1x1x32xf32> to vector<1x32xf32>
    %c1_271 = arith.constant 1 : index
    %c0_272 = arith.constant 0 : index
    %c0_273 = arith.constant 0 : index
    %582 = vector.load %arg33[%c1_271, %c0_272, %c0_273] : memref<2x1x32xf32, #tpu.memory_space<vmem>>, vector<1x1x32xf32>
    %583 = vector.shape_cast %582 : vector<1x1x32xf32> to vector<1x32xf32>
    %584 = arith.mulf %579, %579 : vector<32x32xf32>
    %585 = tpu.concatenate %579, %584 in 1 : vector<32x32xf32>, vector<32x32xf32> -> vector<32x64xf32>
    %cst_274 = arith.constant dense<0.000000e+00> : vector<32x2xf32>
    %586 = tpu.matmul %585, %0, %cst_274 {dimension_numbers = #tpu.dot_dimension_numbers<[1], [0], [0], [1], [0, 0, 1, 1], [], []>} : vector<32x64xf32>, vector<64x2xf32>, vector<32x2xf32> -> vector<32x2xf32>
    %587 = vector.extract_strided_slice %586 {offsets = [0, 0], sizes = [32, 1], strides = [1, 1]} : vector<32x2xf32> to vector<32x1xf32>
    %588 = vector.extract_strided_slice %586 {offsets = [0, 1], sizes = [32, 1], strides = [1, 1]} : vector<32x2xf32> to vector<32x1xf32>
    %589 = arith.mulf %587, %587 : vector<32x1xf32>
    %590 = arith.subf %588, %589 : vector<32x1xf32>
    %591 = vector.broadcast %587 : vector<32x1xf32> to vector<32x32xf32>
    %592 = arith.subf %579, %591 : vector<32x32xf32>
    %cst_275 = arith.constant 9.99999974E-6 : f32
    %593 = vector.broadcast %cst_275 : f32 to vector<32x1xf32>
    %594 = arith.addf %590, %593 : vector<32x1xf32>
    %595 = math.rsqrt %594 : vector<32x1xf32>
    %596 = vector.broadcast %595 : vector<32x1xf32> to vector<32x32xf32>
    %597 = arith.mulf %592, %596 : vector<32x32xf32>
    %598 = vector.broadcast %581 : vector<1x32xf32> to vector<32x32xf32>
    %599 = arith.mulf %597, %598 : vector<32x32xf32>
    %600 = vector.broadcast %583 : vector<1x32xf32> to vector<32x32xf32>
    %601 = arith.addf %599, %600 : vector<32x32xf32>
    %c1_276 = arith.constant 1 : index
    %c0_277 = arith.constant 0 : index
    %c0_278 = arith.constant 0 : index
    %602 = vector.load %arg26[%c1_276, %c0_277, %c0_278] : memref<2x32x64xbf16, #tpu.memory_space<vmem>>, vector<1x32x64xbf16>
    %603 = vector.shape_cast %602 : vector<1x32x64xbf16> to vector<32x64xbf16>
    %c1_279 = arith.constant 1 : index
    %c0_280 = arith.constant 0 : index
    %c0_281 = arith.constant 0 : index
    %604 = vector.load %arg27[%c1_279, %c0_280, %c0_281] : memref<2x1x64xf32, #tpu.memory_space<vmem>>, vector<1x1x64xf32>
    %605 = vector.shape_cast %604 : vector<1x1x64xf32> to vector<1x64xf32>
    %606 = arith.truncf %601 : vector<32x32xf32> to vector<32x32xbf16>
    %cst_282 = arith.constant dense<0.000000e+00> : vector<32x64xf32>
    %607 = tpu.matmul %606, %603, %cst_282 {dimension_numbers = #tpu.dot_dimension_numbers<[1], [0], [0], [1], [0, 0, 1, 1], [], []>} : vector<32x32xbf16>, vector<32x64xbf16>, vector<32x64xf32> -> vector<32x64xf32>
    %608 = vector.broadcast %605 : vector<1x64xf32> to vector<32x64xf32>
    %609 = arith.addf %607, %608 : vector<32x64xf32>
    %cst_283 = arith.constant 0.000000e+00 : f32
    %610 = vector.broadcast %cst_283 : f32 to vector<32x64xf32>
    %611 = arith.maximumf %609, %610 : vector<32x64xf32>
    %c1_284 = arith.constant 1 : index
    %c0_285 = arith.constant 0 : index
    %c0_286 = arith.constant 0 : index
    %612 = vector.load %arg28[%c1_284, %c0_285, %c0_286] : memref<2x64x32xbf16, #tpu.memory_space<vmem>>, vector<1x64x32xbf16>
    %613 = vector.shape_cast %612 : vector<1x64x32xbf16> to vector<64x32xbf16>
    %c1_287 = arith.constant 1 : index
    %c0_288 = arith.constant 0 : index
    %c0_289 = arith.constant 0 : index
    %614 = vector.load %arg29[%c1_287, %c0_288, %c0_289] : memref<2x1x32xf32, #tpu.memory_space<vmem>>, vector<1x1x32xf32>
    %615 = vector.shape_cast %614 : vector<1x1x32xf32> to vector<1x32xf32>
    %616 = arith.truncf %611 : vector<32x64xf32> to vector<32x64xbf16>
    %cst_290 = arith.constant dense<0.000000e+00> : vector<32x32xf32>
    %617 = tpu.matmul %616, %613, %cst_290 {dimension_numbers = #tpu.dot_dimension_numbers<[1], [0], [0], [1], [0, 0, 1, 1], [], []>} : vector<32x64xbf16>, vector<64x32xbf16>, vector<32x32xf32> -> vector<32x32xf32>
    %618 = vector.broadcast %615 : vector<1x32xf32> to vector<32x32xf32>
    %619 = arith.addf %617, %618 : vector<32x32xf32>
    %620 = arith.addf %601, %619 : vector<32x32xf32>
    %c1_291 = arith.constant 1 : index
    %c0_292 = arith.constant 0 : index
    %c0_293 = arith.constant 0 : index
    %621 = vector.load %arg34[%c1_291, %c0_292, %c0_293] : memref<2x1x32xf32, #tpu.memory_space<vmem>>, vector<1x1x32xf32>
    %622 = vector.shape_cast %621 : vector<1x1x32xf32> to vector<1x32xf32>
    %c1_294 = arith.constant 1 : index
    %c0_295 = arith.constant 0 : index
    %c0_296 = arith.constant 0 : index
    %623 = vector.load %arg35[%c1_294, %c0_295, %c0_296] : memref<2x1x32xf32, #tpu.memory_space<vmem>>, vector<1x1x32xf32>
    %624 = vector.shape_cast %623 : vector<1x1x32xf32> to vector<1x32xf32>
    %625 = arith.mulf %620, %620 : vector<32x32xf32>
    %626 = tpu.concatenate %620, %625 in 1 : vector<32x32xf32>, vector<32x32xf32> -> vector<32x64xf32>
    %cst_297 = arith.constant dense<0.000000e+00> : vector<32x2xf32>
    %627 = tpu.matmul %626, %0, %cst_297 {dimension_numbers = #tpu.dot_dimension_numbers<[1], [0], [0], [1], [0, 0, 1, 1], [], []>} : vector<32x64xf32>, vector<64x2xf32>, vector<32x2xf32> -> vector<32x2xf32>
    %628 = vector.extract_strided_slice %627 {offsets = [0, 0], sizes = [32, 1], strides = [1, 1]} : vector<32x2xf32> to vector<32x1xf32>
    %629 = vector.extract_strided_slice %627 {offsets = [0, 1], sizes = [32, 1], strides = [1, 1]} : vector<32x2xf32> to vector<32x1xf32>
    %630 = arith.mulf %628, %628 : vector<32x1xf32>
    %631 = arith.subf %629, %630 : vector<32x1xf32>
    %632 = vector.broadcast %628 : vector<32x1xf32> to vector<32x32xf32>
    %633 = arith.subf %620, %632 : vector<32x32xf32>
    %cst_298 = arith.constant 9.99999974E-6 : f32
    %634 = vector.broadcast %cst_298 : f32 to vector<32x1xf32>
    %635 = arith.addf %631, %634 : vector<32x1xf32>
    %636 = math.rsqrt %635 : vector<32x1xf32>
    %637 = vector.broadcast %636 : vector<32x1xf32> to vector<32x32xf32>
    %638 = arith.mulf %633, %637 : vector<32x32xf32>
    %639 = vector.broadcast %622 : vector<1x32xf32> to vector<32x32xf32>
    %640 = arith.mulf %638, %639 : vector<32x32xf32>
    %641 = vector.broadcast %624 : vector<1x32xf32> to vector<32x32xf32>
    %642 = arith.addf %640, %641 : vector<32x32xf32>
    %c0_299 = arith.constant 0 : index
    %c0_300 = arith.constant 0 : index
    %643 = vector.load %arg38[%c0_299, %c0_300] : memref<1x32xf32, #tpu.memory_space<vmem>>, vector<1x32xf32>
    %c0_301 = arith.constant 0 : index
    %c0_302 = arith.constant 0 : index
    %644 = vector.load %arg39[%c0_301, %c0_302] : memref<1x32xf32, #tpu.memory_space<vmem>>, vector<1x32xf32>
    %645 = arith.mulf %642, %642 : vector<32x32xf32>
    %646 = tpu.concatenate %642, %645 in 1 : vector<32x32xf32>, vector<32x32xf32> -> vector<32x64xf32>
    %cst_303 = arith.constant dense<0.000000e+00> : vector<32x2xf32>
    %647 = tpu.matmul %646, %0, %cst_303 {dimension_numbers = #tpu.dot_dimension_numbers<[1], [0], [0], [1], [0, 0, 1, 1], [], []>} : vector<32x64xf32>, vector<64x2xf32>, vector<32x2xf32> -> vector<32x2xf32>
    %648 = vector.extract_strided_slice %647 {offsets = [0, 0], sizes = [32, 1], strides = [1, 1]} : vector<32x2xf32> to vector<32x1xf32>
    %649 = vector.extract_strided_slice %647 {offsets = [0, 1], sizes = [32, 1], strides = [1, 1]} : vector<32x2xf32> to vector<32x1xf32>
    %650 = arith.mulf %648, %648 : vector<32x1xf32>
    %651 = arith.subf %649, %650 : vector<32x1xf32>
    %652 = vector.broadcast %648 : vector<32x1xf32> to vector<32x32xf32>
    %653 = arith.subf %642, %652 : vector<32x32xf32>
    %cst_304 = arith.constant 9.99999974E-6 : f32
    %654 = vector.broadcast %cst_304 : f32 to vector<32x1xf32>
    %655 = arith.addf %651, %654 : vector<32x1xf32>
    %656 = math.rsqrt %655 : vector<32x1xf32>
    %657 = vector.broadcast %656 : vector<32x1xf32> to vector<32x32xf32>
    %658 = arith.mulf %653, %657 : vector<32x32xf32>
    %659 = vector.broadcast %643 : vector<1x32xf32> to vector<32x32xf32>
    %660 = arith.mulf %658, %659 : vector<32x32xf32>
    %661 = vector.broadcast %644 : vector<1x32xf32> to vector<32x32xf32>
    %662 = arith.addf %660, %661 : vector<32x32xf32>
    %c0_305 = arith.constant 0 : index
    %c0_306 = arith.constant 0 : index
    %663 = vector.load %arg40[%c0_305, %c0_306] : memref<32x128xbf16, #tpu.memory_space<vmem>>, vector<32x128xbf16>
    %c0_307 = arith.constant 0 : index
    %c0_308 = arith.constant 0 : index
    %664 = vector.load %arg41[%c0_307, %c0_308] : memref<1x128xf32, #tpu.memory_space<vmem>>, vector<1x128xf32>
    %665 = arith.truncf %662 : vector<32x32xf32> to vector<32x32xbf16>
    %cst_309 = arith.constant dense<0.000000e+00> : vector<32x128xf32>
    %666 = tpu.matmul %665, %663, %cst_309 {dimension_numbers = #tpu.dot_dimension_numbers<[1], [0], [0], [1], [0, 0, 1, 1], [], []>} : vector<32x32xbf16>, vector<32x128xbf16>, vector<32x128xf32> -> vector<32x128xf32>
    %667 = vector.broadcast %664 : vector<1x128xf32> to vector<32x128xf32>
    %668 = arith.addf %666, %667 : vector<32x128xf32>
    %c0_310 = arith.constant 0 : index
    %c0_311 = arith.constant 0 : index
    %669 = vector.load %arg48[%c0_310, %c0_311] : memref<32x128xf32, #tpu.memory_space<vmem>>, vector<32x128xf32>
    tpu.vector_store %arg48[%c0_310, %c0_311], %668 {strides = array<i32>} : memref<32x128xf32, #tpu.memory_space<vmem>>, vector<32x128xf32>,
    return
  }
}

</mosaic_0001>

<bundles_post_ra>
// kernel: transformer_forward.1
= control target key start
LH: loop header
LB: loop body
LE: loop exit
PB: predicated region body
PF: predicated region fallthrough
CT: control target
= control target key end

     0   :  { %s8248_s6 = smov 1   ;;  %s8249_s10 = smov 2   ;;  %s10903_s0 = inlined_call_operand.smem [shape: u32[49], index: -1, kind: input, shape index: {}] }
   0x1   :  { %s8351_s5 = sld [smem:[%s10903_s0]]   ;;  %s8250_s14 = smov 3  }
   0x2   :  { %s8356_s9 = sld [smem:[%s10903_s0 + %s8248_s6]]   ;;  %s8251_s18 = smov 4  }
   0x3   :  { %s8361_s13 = sld [smem:[%s10903_s0 + %s8249_s10]]   ;;  %s8252_s22 = smov 5  }
   0x4   :  { %s8366_s17 = sld [smem:[%s10903_s0 + %s8250_s14]]   ;;  %s8253_s26 = smov 6  }
   0x5   :  { %s8371_s21 = sld [smem:[%s10903_s0 + %s8251_s18]]   ;;  %s8254_s30 = smov 7  }
   0x6   :  { %s8376_s25 = sld [smem:[%s10903_s0 + %s8252_s22]]   ;;  %s8255_s4 = smov 8  }
   0x7   :  { %10953 = sst [smem:[#allocation76_spill]] %s8351_s5  ;;  %s8256_s10 = smov 9  }
   0x8   :  { %10954 = sst [smem:[#allocation77_spill]] %s8356_s9  ;;  %s8257_s15 = smov 10  }
   0x9   :  { %10955 = sst [smem:[#allocation78_spill]] %s8361_s13  ;;  %s8258_s20 = smov 11  }
   0xa   :  { %10956 = sst [smem:[#allocation79_spill]] %s8366_s17  ;;  %s8260_s1 = smov 13  }
   0xb   :  { %10957 = sst [smem:[#allocation80_spill]] %s8371_s21  ;;  %s8261_s7 = smov 14  }
   0xc   :  { %s8381_s29 = sld [smem:[%s10903_s0 + %s8253_s26]]   ;;  %s8259_s26 = smov 12  }
   0xd   :  { %s8386_s3 = sld [smem:[%s10903_s0 + %s8254_s30]]   ;;  %s8263_s22 = smov 16  }
   0xe   :  { %s8391_s8 = sld [smem:[%s10903_s0 + %s8255_s4]]   ;;  %s8264_s28 = smov 17  }
   0xf   :  { %s8396_s14 = sld [smem:[%s10903_s0 + %s8256_s10]]  }
  0x10   :  { %s8401_s19 = sld [smem:[%s10903_s0 + %s8257_s15]]   ;;  %s8262_s15 = smov 15  }
  0x11   :  { %s8406_s24 = sld [smem:[%s10903_s0 + %s8258_s20]]  }
  0x12   :  { %10958 = sst [smem:[#allocation81_spill]] %s8381_s29 }
  0x13   :  { %10959 = sst [smem:[#allocation82_spill]] %s8386_s3 }
  0x14   :  { %s8411_s30 = sld [smem:[%s10903_s0 + %s8259_s26]]  }
  0x15   :  { %10960 = sst [smem:[#allocation83_spill]] %s8396_s14 }
  0x16   :  { %10961 = sst [smem:[#allocation84_spill]] %s8401_s19 }
  0x17   :  { %s8416_s6 = sld [smem:[%s10903_s0 + %s8260_s1]]  }
  0x18   :  { %s8421_s12 = sld [smem:[%s10903_s0 + %s8261_s7]]   ;;  %s8265_s7 = smov 18  }
  0x19   :  { %s8426_s20 = sld [smem:[%s10903_s0 + %s8262_s15]]   ;;  %s8266_s15 = smov 19  }
  0x1a   :  { %10962 = sst [smem:[#allocation85_spill]] %s8411_s30 }
  0x1b   :  { %s8431_s27 = sld [smem:[%s10903_s0 + %s8263_s22]]   ;;  %s8267_s22 = smov 20  }
  0x1c   :  { %s8436_s4 = sld [smem:[%s10903_s0 + %s8264_s28]]   ;;  %s8268_s28 = smov 21  }
  0x1d   :  { %s8441_s9 = sld [smem:[%s10903_s0 + %s8265_s7]]   ;;  %s8269_s7 = smov 22  }
  0x1e   :  { %10963 = sst [smem:[#allocation86_spill]] %s8421_s12 }
  0x1f   :  { %s8446_s19 = sld [smem:[%s10903_s0 + %s8266_s15]]   ;;  %s8270_s15 = smov 23  }
  0x20   :  { %s8451_s29 = sld [smem:[%s10903_s0 + %s8267_s22]]   ;;  %s8271_s22 = smov 24  }
  0x21   :  { %10964 = sst [smem:[#allocation87_spill]] %s8431_s27 }
  0x22   :  { %s8456_s21 = sld [smem:[%s10903_s0 + %s8268_s28]]   ;;  %s8272_s28 = smov 25  }
  0x23   :  { %10965 = sst [smem:[#allocation88_spill]] %s8441_s9 }
  0x24   :  { %s8461_s13 = sld [smem:[%s10903_s0 + %s8269_s7]]   ;;  %s8273_s7 = smov 26  }
  0x25   :  { %s8466_s5 = sld [smem:[%s10903_s0 + %s8270_s15]]   ;;  %s8274_s15 = smov 27  }
  0x26   :  { %10966 = sst [smem:[#allocation89_spill]] %s8451_s29 }
  0x27   :  { %s8471_s29 = sld [smem:[%s10903_s0 + %s8271_s22]]   ;;  %s8275_s22 = smov 28  }
  0x28   :  { %s8476_s9 = sld [smem:[%s10903_s0 + %s8272_s28]]   ;;  %s8276_s28 = smov 29  }
  0x29   :  { %s8486_s27 = sld [smem:[%s10903_s0 + %s8274_s15]]   ;;  %s8278_s15 = smov 31  }
  0x2a   :  { %10967 = sst [smem:[#allocation90_spill]] %s8461_s13 }
  0x2b   :  { %s8481_s13 = sld [smem:[%s10903_s0 + %s8273_s7]]   ;;  %s8277_s7 = smov 30  }
  0x2c   :  { %s8496_s12 = sld [smem:[%s10903_s0 + %s8276_s28]]   ;;  %s8280_s28 = smov 33  }
  0x2d   :  { %10968 = sst [smem:[#allocation91_spill]] %s8471_s29 }
  0x2e   :  { %s8491_s29 = sld [smem:[%s10903_s0 + %s8275_s22]]   ;;  %s8279_s22 = smov 32  }
  0x2f   :  { %s8506_s30 = sld [smem:[%s10903_s0 + %s8278_s15]]   ;;  %s8282_s15 = smov 35  }
  0x31   :  { %10969 = sst [smem:[#allocation92_spill]] %s8481_s13 }
  0x32   :  { %10971 = sst [smem:[#allocation94_spill]] %s8496_s12 }
  0x33   :  { %s8501_s13 = sld [smem:[%s10903_s0 + %s8277_s7]]   ;;  %s8281_s7 = smov 34  }
  0x34   :  { %10970 = sst [smem:[#allocation93_spill]] %s8491_s29 }
  0x35   :  { %10972 = sst [smem:[#allocation95_spill]] %s8506_s30 }
  0x36   :  { %s8511_s29 = sld [smem:[%s10903_s0 + %s8279_s22]]   ;;  %s8283_s22 = smov 36  }
  0x37   :  { %s8516_s12 = sld [smem:[%s10903_s0 + %s8280_s28]]   ;;  %s8284_s28 = smov 37  }
  0x38   :  { %s8521_s14 = sld [smem:[%s10903_s0 + %s8281_s7]]   ;;  %s8285_s7 = smov 38  }
  0x39   :  { %s8526_s30 = sld [smem:[%s10903_s0 + %s8282_s15]]   ;;  %s8286_s15 = smov 39  }
  0x3a   :  { %s8531_s3 = sld [smem:[%s10903_s0 + %s8283_s22]]   ;;  %s8287_s22 = smov 40  }
  0x3b   :  { %s8541_s17 = sld [smem:[%s10903_s0 + %s8285_s7]]   ;;  %s8289_s7 = smov 42  }
  0x3d   :  { %10973 = sst [smem:[#allocation96_spill]] %s8516_s12 }
  0x3e   :  { %s8536_s12 = sld [smem:[%s10903_s0 + %s8284_s28]]   ;;  %s8288_s28 = smov 41  }
  0x3f   :  { %10974 = sst [smem:[#allocation97_spill]] %s8526_s30 }
  0x40   :  { %10975 = sst [smem:[#allocation98_spill]] %s8531_s3 }
  0x41   :  { %10977 = sst [smem:[#allocation100_spill]] %s8541_s17 }
  0x42   :  { %s8546_s30 = sld [smem:[%s10903_s0 + %s8286_s15]]   ;;  %s8290_s15 = smov 43  }
  0x43   :  { %s8551_s3 = sld [smem:[%s10903_s0 + %s8287_s22]]   ;;  %s8291_s22 = smov 44  }
  0x44   :  { %10976 = sst [smem:[#allocation99_spill]] %s8536_s12 }
  0x45   :  { %s8556_s12 = sld [smem:[%s10903_s0 + %s8288_s28]]   ;;  %s8292_s28 = smov 45  }
  0x46   :  { %s8561_s17 = sld [smem:[%s10903_s0 + %s8289_s7]]   ;;  %s8293_s7 = smov 46  }
  0x48   :  { %10978 = sst [smem:[#allocation101_spill]] %s8546_s30 }
  0x49   :  { %10979 = sst [smem:[#allocation102_spill]] %s8551_s3 }
  0x4a   :  { %s8566_s30 = sld [smem:[%s10903_s0 + %s8290_s15]]   ;;  %s8294_s15 = smov 47  }
  0x4b   :  { %10980 = sst [smem:[#allocation103_spill]] %s8556_s12 }
  0x4c   :  { %10981 = sst [smem:[#allocation104_spill]] %s8561_s17 }
  0x4d   :  { %s8571_s3 = sld [smem:[%s10903_s0 + %s8291_s22]]   ;;  %s8295_s22 = smov 48  }
  0x4e   :  { %s8576_s12 = sld [smem:[%s10903_s0 + %s8292_s28]]  }
  0x4f   :  { %s8581_s17 = sld [smem:[%s10903_s0 + %s8293_s7]]  }
  0x50   :  { %10982 = sst [smem:[#allocation105_spill]] %s8566_s30 }
  0x51   :  { %s8586_s30 = sld [smem:[%s10903_s0 + %s8294_s15]]  }
  0x53   :  { %10983 = sst [smem:[#allocation106_spill]] %s8571_s3 }
  0x54   :  { %s8591_s3 = sld [smem:[%s10903_s0 + %s8295_s22]]  }
  0x55   :  { %102 = vsyncpa [#allocation3], 0 }
  0x56   :  { %103 = vsyncpa [#allocation6], 0 }
  0x57   :  { %104 = vsyncpa [#allocation9], 0 }
  0x58   :  { %105 = vsyncpa [#allocation12], 0 }
  0x59   :  { %106 = vsyncpa [#allocation15], 0 }
  0x5a   :  { %107 = vsyncpa [#allocation18], 0 }
  0x5b   :  { %108 = vsyncpa [#allocation21], 0 }
  0x5c   :  { %109 = vsyncpa [#allocation24], 0 }
  0x5d   :  { %110 = vsyncpa [#allocation27], 0 }
  0x5e   :  { %111 = vsyncpa [#allocation30], 0 }
  0x5f   :  { %112 = vsyncpa [#allocation33], 0 }
  0x60   :  { %113 = vsyncpa [#allocation36], 0 }
  0x61   :  { %114 = vsyncpa [#allocation39], 0 }
  0x62   :  { %115 = vsyncpa [#allocation42], 0 }
  0x63   :  { %116 = vsyncpa [#allocation45], 0 }
  0x64   :  { %117 = vsyncpa [#allocation48], 0 }
  0x65   :  { %118 = vsyncpa [#allocation51], 0 }
  0x66   :  { %119 = vsyncpa [#allocation54], 0  ;;  %s146_s0 = sshll.u32 %s8376_s25, 4  ;;  %s147_s0 = int_to_ptr.hbm [resolvable:$true] %s146_s0 }
  0x67   :  { %120 = vsyncpa [#allocation4], 0  ;;  %s8296_s28 = smov [#allocation5]   ;;  %s174_s2 = sshll.u32 %s8391_s8, 4  ;;  %s175_s2 = int_to_ptr.hbm [resolvable:$true] %s174_s2 }
  0x68   :  { %s148_s1 = sshll.u32 %s8296_s28, 4  ;;  %s7346_s7 = sshra.s32 %s147_s0, 4  ;;  %s149_s1 = int_to_ptr.vmem [resolvable:$true] %s148_s1  ;;  %s7347_s7 = int_to_ptr.hbm [resolvable:$true] %s7346_s7 }
  0x69   :  { %s7348_s10 = scalar_lea.hbm %s7347_s7, 2  ;;  %s7350_s11 = scalar_lea.hbm %s8376_s25, 2 }
  0x6a   :  { %p7349_p0 = scmp.ne.s32.totalorder %s7347_s7, %s7348_s10  ;;  %p7351_p1 = scmp.lt.s32.totalorder %s7347_s7, %s8376_s25 }
  0x6b   :  { %p7352_p2 = scmp.lt.s32.totalorder %s7350_s11, %s7348_s10 }
  0x6d   :  { %p7353_p3 = por %p7352_p2, %p7351_p1 }
  0x6f   :  { %p7354_p4 = pnand %p7353_p3, %p7349_p0 }
  0x71   :  { %7357 = shalt.err (!%p7354_p4)
}
  0x72   :  { %s8297_s15 = smov 16   ;;  %s8298_s16 = smov 1  }
  0x73   :  { %154 = dma.hbm_to_vmem [thread:$0]  %s147_s0, 32, %s149_s1, [#allocation6], %s8297_s15, %s8297_s15, %s8298_s16  }
  0x74   :  { %s8299_s18 = smov [#allocation8]   ;;  %s7370_s23 = sshra.s32 %s175_s2, 4  ;;  %s7371_s23 = int_to_ptr.hbm [resolvable:$true] %s7370_s23 }
  0x75   :  { %s176_s22 = sshll.u32 %s8299_s18, 4  ;;  %s7372_s26 = scalar_lea.hbm %s7371_s23, 32  ;;  %s177_s22 = int_to_ptr.vmem [resolvable:$true] %s176_s22 }
  0x76   :  { %p7373_p5 = scmp.ne.s32.totalorder %s7371_s23, %s7372_s26  ;;  %s7374_s25 = scalar_lea.hbm %s8391_s8, 32 }
  0x77   :  { %p7375_p6 = scmp.lt.s32.totalorder %s7371_s23, %s8391_s8  ;;  %p7376_p7 = scmp.lt.s32.totalorder %s7374_s25, %s7372_s26 }
  0x79   :  { %p7377_p8 = por %p7376_p7, %p7375_p6 }
  0x7b   :  { %p7378_p9 = pnand %p7377_p8, %p7373_p5 }
  0x7d   :  { %7381 = shalt.err (!%p7378_p9)
}
  0x7e   :  { %s8300_s28 = smov 64   ;;  %s8301_s0 = smov 4  }
  0x7f   :  { %182 = dma.hbm_to_vmem [thread:$0]  %s175_s2, 512, %s177_s22, [#allocation9], %s8300_s28, %s8300_s28, %s8301_s0  }
  0x80   :  { %s202_s1 = sshll.u32 %s8406_s24, 4  ;;  %s8302_s7 = smov [#allocation11]   ;;  %s203_s1 = int_to_ptr.hbm [resolvable:$true] %s202_s1 }
  0x81   :  { %s204_s10 = sshll.u32 %s8302_s7, 4  ;;  %s228_s8 = sshll.u32 %s8416_s6, 4  ;;  %s205_s10 = int_to_ptr.vmem [resolvable:$true] %s204_s10  ;;  %s229_s8 = int_to_ptr.hbm [resolvable:$true] %s228_s8 }
  0x82   :  { %s7394_s11 = sshra.s32 %s203_s1, 4  ;;  %s7398_s23 = scalar_lea.hbm %s8406_s24, 2  ;;  %s7395_s11 = int_to_ptr.hbm [resolvable:$true] %s7394_s11 }
  0x83   :  { %s7396_s18 = scalar_lea.hbm %s7395_s11, 2  ;;  %p7399_p11 = scmp.lt.s32.totalorder %s7395_s11, %s8406_s24 }
  0x84   :  { %p7397_p10 = scmp.ne.s32.totalorder %s7395_s11, %s7396_s18  ;;  %p7400_p12 = scmp.lt.s32.totalorder %s7398_s23, %s7396_s18 }
  0x86   :  { %p7401_p13 = por %p7400_p12, %p7399_p11 }
  0x88   :  { %p7402_p0 = pnand %p7401_p13, %p7397_p10 }
  0x8a   :  { %7405 = shalt.err (!%p7402_p0)
}
  0x8b   :  { %210 = dma.hbm_to_vmem [thread:$0]  %s203_s1, 32, %s205_s10, [#allocation12], %s8297_s15, %s8297_s15, %s8298_s16  }
  0x8c   :  { %s8303_s2 = smov [#allocation14]   ;;  %s254_s26 = sshll.u32 %s8426_s20, 4  ;;  %s8613_s26 = int_to_ptr.hbm [resolvable:$true] %s254_s26 }
  0x8d   :  { %s230_s22 = sshll.u32 %s8303_s2, 4  ;;  %s7418_s25 = sshra.s32 %s229_s8, 4  ;;  %s231_s22 = int_to_ptr.vmem [resolvable:$true] %s230_s22  ;;  %s7419_s25 = int_to_ptr.hbm [resolvable:$true] %s7418_s25 }
  0x8e   :  { %s7420_s24 = scalar_lea.hbm %s7419_s25, 2  ;;  %s7422_s7 = scalar_lea.hbm %s8416_s6, 2 }
  0x8f   :  { %p7421_p1 = scmp.ne.s32.totalorder %s7419_s25, %s7420_s24  ;;  %p7423_p2 = scmp.lt.s32.totalorder %s7419_s25, %s8416_s6 }
  0x90   :  { %p7424_p3 = scmp.lt.s32.totalorder %s7422_s7, %s7420_s24 }
  0x92   :  { %p7425_p4 = por %p7424_p3, %p7423_p2 }
  0x94   :  { %p7426_p5 = pnand %p7425_p4, %p7421_p1 }
  0x96   :  { %7429 = shalt.err (!%p7426_p5)
}
  0x97   :  { %236 = dma.hbm_to_vmem [thread:$0]  %s229_s8, 32, %s231_s22, [#allocation15], %s8297_s15, %s8297_s15, %s8298_s16  }
  0x98   :  { %s280_s1 = sshll.u32 %s8436_s4, 4  ;;  %s8304_s10 = smov [#allocation17]   ;;  %s8621_s1 = int_to_ptr.hbm [resolvable:$true] %s280_s1 }
  0x99   :  { %s256_s11 = sshll.u32 %s8304_s10, 4  ;;  %s7442_s18 = sshra.s32 %s8613_s26, 4  ;;  %s257_s11 = int_to_ptr.vmem [resolvable:$true] %s256_s11  ;;  %s7443_s18 = int_to_ptr.hbm [resolvable:$true] %s7442_s18 }
  0x9a   :  { %s7444_s6 = scalar_lea.hbm %s7443_s18, 2  ;;  %s7446_s23 = scalar_lea.hbm %s8426_s20, 2 }
  0x9b   :  { %p7445_p6 = scmp.ne.s32.totalorder %s7443_s18, %s7444_s6  ;;  %p7447_p7 = scmp.lt.s32.totalorder %s7443_s18, %s8426_s20 }
  0x9c   :  { %p7448_p8 = scmp.lt.s32.totalorder %s7446_s23, %s7444_s6 }
  0x9e   :  { %p7449_p9 = por %p7448_p8, %p7447_p7 }
  0xa0   :  { %p7450_p10 = pnand %p7449_p9, %p7445_p6 }
  0xa2   :  { %7453 = shalt.err (!%p7450_p10)
}
  0xa3   :  { %262 = dma.hbm_to_vmem [thread:$0]  %s8613_s26, 32, %s257_s11, [#allocation18], %s8297_s15, %s8297_s15, %s8298_s16  }
  0xa4   :  { %s8305_s8 = smov [#allocation20]   ;;  %s306_s22 = sshll.u32 %s8446_s19, 4  ;;  %s8631_s22 = int_to_ptr.hbm [resolvable:$true] %s306_s22 }
  0xa5   :  { %s282_s2 = sshll.u32 %s8305_s8, 4  ;;  %s7466_s20 = sshra.s32 %s8621_s1, 4  ;;  %s283_s2 = int_to_ptr.vmem [resolvable:$true] %s282_s2  ;;  %s7467_s20 = int_to_ptr.hbm [resolvable:$true] %s7466_s20 }
  0xa6   :  { %s7468_s25 = scalar_lea.hbm %s7467_s20, 2  ;;  %s7470_s24 = scalar_lea.hbm %s8436_s4, 2 }
  0xa7   :  { %p7469_p11 = scmp.ne.s32.totalorder %s7467_s20, %s7468_s25  ;;  %p7471_p12 = scmp.lt.s32.totalorder %s7467_s20, %s8436_s4 }
  0xa8   :  { %p7472_p13 = scmp.lt.s32.totalorder %s7470_s24, %s7468_s25 }
  0xaa   :  { %p7473_p0 = por %p7472_p13, %p7471_p12 }
  0xac   :  { %p7474_p1 = pnand %p7473_p0, %p7469_p11 }
  0xae   :  { %7477 = shalt.err (!%p7474_p1)
}
  0xaf   :  { %288 = dma.hbm_to_vmem [thread:$0]  %s8621_s1, 32, %s283_s2, [#allocation21], %s8297_s15, %s8297_s15, %s8298_s16  }
  0xb0   :  { %s332_s26 = sshll.u32 %s8456_s21, 4  ;;  %s8306_s7 = smov [#allocation23]   ;;  %s8641_s26 = int_to_ptr.hbm [resolvable:$true] %s332_s26 }
  0xb1   :  { %s308_s10 = sshll.u32 %s8306_s7, 4  ;;  %s7490_s4 = sshra.s32 %s8631_s22, 4  ;;  %s309_s10 = int_to_ptr.vmem [resolvable:$true] %s308_s10  ;;  %s7491_s4 = int_to_ptr.hbm [resolvable:$true] %s7490_s4 }
  0xb2   :  { %s7492_s11 = scalar_lea.hbm %s7491_s4, 2  ;;  %s7494_s18 = scalar_lea.hbm %s8446_s19, 2 }
  0xb3   :  { %p7493_p2 = scmp.ne.s32.totalorder %s7491_s4, %s7492_s11  ;;  %p7495_p3 = scmp.lt.s32.totalorder %s7491_s4, %s8446_s19 }
  0xb4   :  { %p7496_p4 = scmp.lt.s32.totalorder %s7494_s18, %s7492_s11 }
  0xb6   :  { %p7497_p5 = por %p7496_p4, %p7495_p3 }
  0xb8   :  { %p7498_p6 = pnand %p7497_p5, %p7493_p2 }
  0xba   :  { %7501 = shalt.err (!%p7498_p6)
}
  0xbb   :  { %314 = dma.hbm_to_vmem [thread:$0]  %s8631_s22, 32, %s309_s10, [#allocation24], %s8297_s15, %s8297_s15, %s8298_s16  }
  0xbc   :  { %s8307_s1 = smov [#allocation26]   ;;  %s358_s23 = sshll.u32 %s8466_s5, 4  ;;  %s8651_s23 = int_to_ptr.hbm [resolvable:$true] %s358_s23 }
  0xbd   :  { %s334_s6 = sshll.u32 %s8307_s1, 4  ;;  %s7514_s19 = sshra.s32 %s8641_s26, 4  ;;  %s335_s6 = int_to_ptr.vmem [resolvable:$true] %s334_s6  ;;  %s7515_s19 = int_to_ptr.hbm [resolvable:$true] %s7514_s19 }
  0xbe   :  { %s7516_s8 = scalar_lea.hbm %s7515_s19, 2  ;;  %s7518_s2 = scalar_lea.hbm %s8456_s21, 2 }
  0xbf   :  { %p7517_p7 = scmp.ne.s32.totalorder %s7515_s19, %s7516_s8  ;;  %p7519_p8 = scmp.lt.s32.totalorder %s7515_s19, %s8456_s21 }
  0xc0   :  { %p7520_p9 = scmp.lt.s32.totalorder %s7518_s2, %s7516_s8 }
  0xc2   :  { %p7521_p10 = por %p7520_p9, %p7519_p8 }
  0xc4   :  { %p7522_p11 = pnand %p7521_p10, %p7517_p7 }
  0xc6   :  { %7525 = shalt.err (!%p7522_p11)
}
  0xc7   :  { %340 = dma.hbm_to_vmem [thread:$0]  %s8641_s26, 32, %s335_s6, [#allocation27], %s8297_s15, %s8297_s15, %s8298_s16  }
  0xc8   :  { %s384_s22 = sshll.u32 %s8476_s9, 4  ;;  %s8308_s20 = smov [#allocation29]   ;;  %s8661_s22 = int_to_ptr.hbm [resolvable:$true] %s384_s22 }
  0xc9   :  { %s360_s25 = sshll.u32 %s8308_s20, 4  ;;  %s7538_s21 = sshra.s32 %s8651_s23, 4  ;;  %s361_s25 = int_to_ptr.vmem [resolvable:$true] %s360_s25  ;;  %s7539_s21 = int_to_ptr.hbm [resolvable:$true] %s7538_s21 }
  0xca   :  { %s7540_s24 = scalar_lea.hbm %s7539_s21, 2  ;;  %s7542_s7 = scalar_lea.hbm %s8466_s5, 2 }
  0xcb   :  { %p7541_p12 = scmp.ne.s32.totalorder %s7539_s21, %s7540_s24  ;;  %p7543_p13 = scmp.lt.s32.totalorder %s7539_s21, %s8466_s5 }
  0xcc   :  { %p7544_p0 = scmp.lt.s32.totalorder %s7542_s7, %s7540_s24 }
  0xce   :  { %p7545_p1 = por %p7544_p0, %p7543_p13 }
  0xd0   :  { %p7546_p2 = pnand %p7545_p1, %p7541_p12 }
  0xd2   :  { %7549 = shalt.err (!%p7546_p2)
}
  0xd3   :  { %366 = dma.hbm_to_vmem [thread:$0]  %s8651_s23, 32, %s361_s25, [#allocation30], %s8297_s15, %s8297_s15, %s8298_s16  }
  0xd4   :  { %s8309_s26 = smov [#allocation32]   ;;  %s410_s4 = sshll.u32 %s8486_s27, 4  ;;  %s8671_s4 = int_to_ptr.hbm [resolvable:$true] %s410_s4 }
  0xd5   :  { %s386_s10 = sshll.u32 %s8309_s26, 4  ;;  %s7562_s5 = sshra.s32 %s8661_s22, 4  ;;  %s387_s10 = int_to_ptr.vmem [resolvable:$true] %s386_s10  ;;  %s7563_s5 = int_to_ptr.hbm [resolvable:$true] %s7562_s5 }
  0xd6   :  { %s7564_s11 = scalar_lea.hbm %s7563_s5, 2  ;;  %s7566_s18 = scalar_lea.hbm %s8476_s9, 2 }
  0xd7   :  { %p7565_p3 = scmp.ne.s32.totalorder %s7563_s5, %s7564_s11  ;;  %p7567_p4 = scmp.lt.s32.totalorder %s7563_s5, %s8476_s9 }
  0xd8   :  { %p7568_p5 = scmp.lt.s32.totalorder %s7566_s18, %s7564_s11 }
  0xda   :  { %p7569_p6 = por %p7568_p5, %p7567_p4 }
  0xdc   :  { %p7570_p7 = pnand %p7569_p6, %p7565_p3 }
  0xde   :  { %7573 = shalt.err (!%p7570_p7)
}
  0xdf   :  { %392 = dma.hbm_to_vmem [thread:$0]  %s8661_s22, 32, %s387_s10, [#allocation33], %s8297_s15, %s8297_s15, %s8298_s16  }
  0xe0   :  { %s438_s1 = sshll.u32 %s8501_s13, 4  ;;  %s8310_s6 = smov [#allocation35]   ;;  %s8681_s1 = int_to_ptr.hbm [resolvable:$true] %s438_s1 }
  0xe1   :  { %s412_s23 = sshll.u32 %s8310_s6, 4  ;;  %s7586_s9 = sshra.s32 %s8671_s4, 4  ;;  %s413_s23 = int_to_ptr.vmem [resolvable:$true] %s412_s23  ;;  %s7587_s9 = int_to_ptr.hbm [resolvable:$true] %s7586_s9 }
  0xe2   :  { %s7588_s19 = scalar_lea.hbm %s7587_s9, 2  ;;  %s7590_s8 = scalar_lea.hbm %s8486_s27, 2 }
  0xe3   :  { %p7589_p8 = scmp.ne.s32.totalorder %s7587_s9, %s7588_s19  ;;  %p7591_p9 = scmp.lt.s32.totalorder %s7587_s9, %s8486_s27 }
  0xe4   :  { %p7592_p10 = scmp.lt.s32.totalorder %s7590_s8, %s7588_s19 }
  0xe6   :  { %p7593_p11 = por %p7592_p10, %p7591_p9 }
  0xe8   :  { %p7594_p12 = pnand %p7593_p11, %p7589_p8 }
  0xea   :  { %7597 = shalt.err (!%p7594_p12)
}
  0xeb   :  { %418 = dma.hbm_to_vmem [thread:$0]  %s8671_s4, 32, %s413_s23, [#allocation36], %s8297_s15, %s8297_s15, %s8298_s16  }
  0xec   :  { %s8311_s2 = smov [#allocation38]   ;;  %s464_s20 = sshll.u32 %s8511_s29, 4  ;;  %s8691_s20 = int_to_ptr.hbm [resolvable:$true] %s464_s20 }
  0xed   :  { %s440_s22 = sshll.u32 %s8311_s2, 4  ;;  %s7610_s27 = sshra.s32 %s8681_s1, 4  ;;  %s441_s22 = int_to_ptr.vmem [resolvable:$true] %s440_s22  ;;  %s7611_s27 = int_to_ptr.hbm [resolvable:$true] %s7610_s27 }
  0xee   :  { %s7612_s25 = scalar_lea.hbm %s7611_s27, 2  ;;  %s7614_s21 = scalar_lea.hbm %s8501_s13, 2 }
  0xef   :  { %p7613_p13 = scmp.ne.s32.totalorder %s7611_s27, %s7612_s25  ;;  %p7615_p0 = scmp.lt.s32.totalorder %s7611_s27, %s8501_s13 }
  0xf0   :  { %p7616_p1 = scmp.lt.s32.totalorder %s7614_s21, %s7612_s25 }
  0xf2   :  { %p7617_p2 = por %p7616_p1, %p7615_p0 }
  0xf4   :  { %p7618_p3 = pnand %p7617_p2, %p7613_p13 }
  0xf6   :  { %7621 = shalt.err (!%p7618_p3)
}
  0xf7   :  { %446 = dma.hbm_to_vmem [thread:$0]  %s8681_s1, 32, %s441_s22, [#allocation39], %s8297_s15, %s8297_s15, %s8298_s16  }
  0xf8   :  { %s490_s24 = sshll.u32 %s8521_s14, 4  ;;  %s8312_s7 = smov [#allocation41]   ;;  %s8701_s24 = int_to_ptr.hbm [resolvable:$true] %s490_s24 }
  0xf9   :  { %s466_s26 = sshll.u32 %s8312_s7, 4  ;;  %s7634_s13 = sshra.s32 %s8691_s20, 4  ;;  %s467_s26 = int_to_ptr.vmem [resolvable:$true] %s466_s26  ;;  %s7635_s13 = int_to_ptr.hbm [resolvable:$true] %s7634_s13 }
  0xfa   :  { %s7636_s10 = scalar_lea.hbm %s7635_s13, 2  ;;  %s7638_s4 = scalar_lea.hbm %s8511_s29, 2 }
  0xfb   :  { %p7637_p4 = scmp.ne.s32.totalorder %s7635_s13, %s7636_s10  ;;  %p7639_p5 = scmp.lt.s32.totalorder %s7635_s13, %s8511_s29 }
  0xfc   :  { %p7640_p6 = scmp.lt.s32.totalorder %s7638_s4, %s7636_s10 }
  0xfe   :  { %p7641_p7 = por %p7640_p6, %p7639_p5 }
 0x100   :  { %p7642_p8 = pnand %p7641_p7, %p7637_p4 }
 0x102   :  { %7645 = shalt.err (!%p7642_p8)
}
 0x103   :  { %s10984_s5 = sld [smem:[#allocation98_spill]]  ;;  %s8313_s11 = smov [#allocation44]  }
 0x104   :  { %472 = dma.hbm_to_vmem [thread:$0]  %s8691_s20, 32, %s467_s26, [#allocation42], %s8297_s15, %s8297_s15, %s8298_s16  }
 0x105   :  { %s492_s18 = sshll.u32 %s8313_s11, 4  ;;  %s7658_s6 = sshra.s32 %s8701_s24, 4  ;;  %s493_s18 = int_to_ptr.vmem [resolvable:$true] %s492_s18  ;;  %s7659_s6 = int_to_ptr.hbm [resolvable:$true] %s7658_s6 }
 0x106   :  { %s7660_s29 = scalar_lea.hbm %s7659_s6, 2  ;;  %s7662_s23 = scalar_lea.hbm %s8521_s14, 2 }
 0x107   :  { %p7661_p9 = scmp.ne.s32.totalorder %s7659_s6, %s7660_s29  ;;  %p7663_p10 = scmp.lt.s32.totalorder %s7659_s6, %s8521_s14 }
 0x108   :  { %p7664_p11 = scmp.lt.s32.totalorder %s7662_s23, %s7660_s29 }
 0x109   :  { %s517_s1 = sshll.u32 %s10984_s5, 4  ;;  %s518_s1 = int_to_ptr.hbm [resolvable:$true] %s517_s1 }
 0x10a   :  { %p7665_p12 = por %p7664_p11, %p7663_p10 }
 0x10c   :  { %p7666_p13 = pnand %p7665_p12, %p7661_p9 }
 0x10e   :  { %7669 = shalt.err (!%p7666_p13)
}
 0x10f   :  { %s10985_s9 = sld [smem:[#allocation100_spill]]  ;;  %s8314_s8 = smov [#allocation47]  }
 0x110   :  { %498 = dma.hbm_to_vmem [thread:$0]  %s8701_s24, 32, %s493_s18, [#allocation45], %s8297_s15, %s8297_s15, %s8298_s16  }
 0x111   :  { %s519_s2 = sshll.u32 %s8314_s8, 4  ;;  %s7682_s22 = sshra.s32 %s518_s1, 4  ;;  %s520_s2 = int_to_ptr.vmem [resolvable:$true] %s519_s2  ;;  %s7683_s22 = int_to_ptr.hbm [resolvable:$true] %s7682_s22 }
 0x112   :  { %s7684_s14 = scalar_lea.hbm %s7683_s22, 1  ;;  %s7686_s20 = scalar_lea.hbm %s10984_s5, 1 }
 0x113   :  { %p7685_p0 = scmp.ne.s32.totalorder %s7683_s22, %s7684_s14  ;;  %p7687_p1 = scmp.lt.s32.totalorder %s7683_s22, %s10984_s5 }
 0x114   :  { %p7688_p2 = scmp.lt.s32.totalorder %s7686_s20, %s7684_s14 }
 0x115   :  { %s539_s19 = sshll.u32 %s10985_s9, 4  ;;  %s540_s19 = int_to_ptr.hbm [resolvable:$true] %s539_s19 }
 0x116   :  { %p7689_p3 = por %p7688_p2, %p7687_p1 }
 0x118   :  { %p7690_p4 = pnand %p7689_p3, %p7685_p0 }
 0x11a   :  { %7693 = shalt.err (!%p7690_p4)
}
 0x11b   :  { %522 = dma.hbm_to_vmem [thread:$0]  %s518_s1, 16, %s520_s2, [#allocation48]  }
 0x11c   :  { %s10986_s27 = sld [smem:[#allocation103_spill]]  ;;  %s8315_s25 = smov [#allocation50]  }
 0x11d   :  { %s541_s21 = sshll.u32 %s8315_s25, 4  ;;  %s7706_s7 = sshra.s32 %s540_s19, 4  ;;  %s542_s21 = int_to_ptr.vmem [resolvable:$true] %s541_s21  ;;  %s7707_s7 = int_to_ptr.hbm [resolvable:$true] %s7706_s7 }
 0x11e   :  { %s7708_s26 = scalar_lea.hbm %s7707_s7, 1  ;;  %s7710_s13 = scalar_lea.hbm %s10985_s9, 1 }
 0x11f   :  { %p7709_p5 = scmp.ne.s32.totalorder %s7707_s7, %s7708_s26  ;;  %p7711_p6 = scmp.lt.s32.totalorder %s7707_s7, %s10985_s9 }
 0x120   :  { %p7712_p7 = scmp.lt.s32.totalorder %s7710_s13, %s7708_s26 }
 0x122   :  { %s563_s24 = sshll.u32 %s10986_s27, 4  ;;  %p7713_p8 = por %p7712_p7, %p7711_p6  ;;  %s564_s24 = int_to_ptr.hbm [resolvable:$true] %s563_s24 }
 0x124   :  { %p7714_p9 = pnand %p7713_p8, %p7709_p5 }
 0x126   :  { %7717 = shalt.err (!%p7714_p9)
}
 0x127   :  { %544 = dma.hbm_to_vmem [thread:$0]  %s540_s19, 16, %s542_s21, [#allocation51]  }
 0x128   :  { %s10987_s10 = sld [smem:[#allocation79_spill]]  ;;  %s8316_s5 = smov [#allocation53]  }
 0x129   :  { %s565_s11 = sshll.u32 %s8316_s5, 4  ;;  %s7730_s18 = sshra.s32 %s564_s24, 4  ;;  %s566_s11 = int_to_ptr.vmem [resolvable:$true] %s565_s11  ;;  %s7731_s18 = int_to_ptr.hbm [resolvable:$true] %s7730_s18 }
 0x12a   :  { %s7732_s1 = scalar_lea.hbm %s7731_s18, 1  ;;  %s7734_s6 = scalar_lea.hbm %s10986_s27, 1 }
 0x12b   :  { %p7733_p10 = scmp.ne.s32.totalorder %s7731_s18, %s7732_s1  ;;  %p7735_p11 = scmp.lt.s32.totalorder %s7731_s18, %s10986_s27 }
 0x12c   :  { %p7736_p12 = scmp.lt.s32.totalorder %s7734_s6, %s7732_s1 }
 0x12e   :  { %s131_s4 = sshll.u32 %s10987_s10, 4  ;;  %p7737_p13 = por %p7736_p12, %p7735_p11  ;;  %s8725_s4 = int_to_ptr.hbm [resolvable:$true] %s131_s4 }
 0x130   :  { %p7738_p0 = pnand %p7737_p13, %p7733_p10 }
 0x132   :  { %7741 = shalt.err (!%p7738_p0)
}
 0x133   :  { %568 = dma.hbm_to_vmem [thread:$0]  %s564_s24, 16, %s566_s11, [#allocation54]  }
 0x134   :  { %s8317_s29 = smov [#allocation2]   ;;  %s7754_s9 = sshra.s32 %s8725_s4, 4  ;;  %s7755_s9 = int_to_ptr.hbm [resolvable:$true] %s7754_s9 }
 0x135   :  { %s133_s23 = sshll.u32 %s8317_s29, 4  ;;  %s7756_s19 = scalar_lea.hbm %s7755_s9, 16  ;;  %s134_s23 = int_to_ptr.vmem [resolvable:$true] %s133_s23 }
 0x136   :  { %p7757_p1 = scmp.ne.s32.totalorder %s7755_s9, %s7756_s19  ;;  %s7758_s8 = scalar_lea.hbm %s10987_s10, 16 }
 0x137   :  { %p7759_p2 = scmp.lt.s32.totalorder %s7755_s9, %s10987_s10  ;;  %p7760_p3 = scmp.lt.s32.totalorder %s7758_s8, %s7756_s19 }
 0x139   :  { %p7761_p4 = por %p7760_p3, %p7759_p2 }
 0x13b   :  { %p7762_p5 = pnand %p7761_p4, %p7757_p1 }
 0x13d   :  { %7765 = shalt.err (!%p7762_p5)
}
 0x13e   :  { %s8318_s2 = smov 128   ;;  %s10988_s22 = sld [smem:[#allocation82_spill]] }
 0x13f   :  { %s10989_s14 = sld [smem:[#allocation83_spill]]  ;;  %s8319_s20 = smov 8  }
 0x140   :  { %139 = dma.hbm_to_vmem [thread:$0]  %s8725_s4, 256, %s134_s23, [#allocation3], %s8318_s2, %s8318_s2, %s8319_s20  }
 0x141   :  { %s8320_s25 = smov [#allocation7]  }
 0x142   :  { %s163_s21 = sshll.u32 %s8320_s25, 4  ;;  %s164_s21 = int_to_ptr.vmem [resolvable:$true] %s163_s21 }
 0x144   :  { %s161_s27 = sshll.u32 %s10988_s22, 4  ;;  %s7782_s13 = scalar_lea.hbm %s10988_s22, 2  ;;  %s162_s27 = int_to_ptr.hbm [resolvable:$true] %s161_s27 }
 0x145   :  { %s187_s24 = sshll.u32 %s10989_s14, 4  ;;  %s7778_s7 = sshra.s32 %s162_s27, 4  ;;  %s7779_s7 = int_to_ptr.hbm [resolvable:$true] %s7778_s7  ;;  %s188_s24 = int_to_ptr.hbm [resolvable:$true] %s187_s24 }
 0x146   :  { %s7780_s26 = scalar_lea.hbm %s7779_s7, 2  ;;  %p7783_p7 = scmp.lt.s32.totalorder %s7779_s7, %s10988_s22 }
 0x147   :  { %p7781_p6 = scmp.ne.s32.totalorder %s7779_s7, %s7780_s26  ;;  %p7784_p8 = scmp.lt.s32.totalorder %s7782_s13, %s7780_s26 }
 0x149   :  { %p7785_p9 = por %p7784_p8, %p7783_p7 }
 0x14b   :  { %p7786_p10 = pnand %p7785_p9, %p7781_p6 }
 0x14d   :  { %7789 = shalt.err (!%p7786_p10)
}
 0x14e   :  { %s10990_s10 = sld [smem:[#allocation85_spill]]  ;;  %s8321_s4 = smov [#allocation10]  }
 0x14f   :  { %169 = dma.hbm_to_vmem [thread:$0]  %s162_s27, 32, %s164_s21, [#allocation6], %s8297_s15, %s8297_s15, %s8298_s16  }
 0x150   :  { %s189_s5 = sshll.u32 %s8321_s4, 4  ;;  %s7802_s18 = sshra.s32 %s188_s24, 4  ;;  %s190_s5 = int_to_ptr.vmem [resolvable:$true] %s189_s5  ;;  %s7803_s18 = int_to_ptr.hbm [resolvable:$true] %s7802_s18 }
 0x151   :  { %s7804_s1 = scalar_lea.hbm %s7803_s18, 2  ;;  %s7806_s6 = scalar_lea.hbm %s10989_s14, 2 }
 0x152   :  { %p7805_p11 = scmp.ne.s32.totalorder %s7803_s18, %s7804_s1  ;;  %p7807_p12 = scmp.lt.s32.totalorder %s7803_s18, %s10989_s14 }
 0x153   :  { %p7808_p13 = scmp.lt.s32.totalorder %s7806_s6, %s7804_s1 }
 0x154   :  { %s215_s11 = sshll.u32 %s10990_s10, 4  ;;  %s8744_s11 = int_to_ptr.hbm [resolvable:$true] %s215_s11 }
 0x155   :  { %p7809_p0 = por %p7808_p13, %p7807_p12 }
 0x157   :  { %p7810_p1 = pnand %p7809_p0, %p7805_p11 }
 0x159   :  { %7813 = shalt.err (!%p7810_p1)
}
 0x15a   :  { %s10991_s29 = sld [smem:[#allocation86_spill]]  ;;  %s8322_s9 = smov [#allocation13]  }
 0x15b   :  { %195 = dma.hbm_to_vmem [thread:$0]  %s188_s24, 32, %s190_s5, [#allocation9], %s8297_s15, %s8297_s15, %s8298_s16  }
 0x15c   :  { %s217_s19 = sshll.u32 %s8322_s9, 4  ;;  %s7826_s8 = sshra.s32 %s8744_s11, 4  ;;  %s218_s19 = int_to_ptr.vmem [resolvable:$true] %s217_s19  ;;  %s7827_s8 = int_to_ptr.hbm [resolvable:$true] %s7826_s8 }
 0x15d   :  { %s7828_s22 = scalar_lea.hbm %s7827_s8, 2  ;;  %s7830_s14 = scalar_lea.hbm %s10990_s10, 2 }
 0x15e   :  { %p7829_p2 = scmp.ne.s32.totalorder %s7827_s8, %s7828_s22  ;;  %p7831_p3 = scmp.lt.s32.totalorder %s7827_s8, %s10990_s10 }
 0x15f   :  { %p7832_p4 = scmp.lt.s32.totalorder %s7830_s14, %s7828_s22 }
 0x160   :  { %s241_s23 = sshll.u32 %s10991_s29, 4  ;;  %s8752_s23 = int_to_ptr.hbm [resolvable:$true] %s241_s23 }
 0x161   :  { %p7833_p5 = por %p7832_p4, %p7831_p3 }
 0x163   :  { %p7834_p6 = pnand %p7833_p5, %p7829_p2 }
 0x165   :  { %7837 = shalt.err (!%p7834_p6)
}
 0x166   :  { %s10992_s27 = sld [smem:[#allocation87_spill]]  ;;  %s8323_s25 = smov [#allocation16]  }
 0x167   :  { %223 = dma.hbm_to_vmem [thread:$0]  %s8744_s11, 32, %s218_s19, [#allocation12], %s8297_s15, %s8297_s15, %s8298_s16  }
 0x168   :  { %s243_s21 = sshll.u32 %s8323_s25, 4  ;;  %s7850_s7 = sshra.s32 %s8752_s23, 4  ;;  %s244_s21 = int_to_ptr.vmem [resolvable:$true] %s243_s21  ;;  %s7851_s7 = int_to_ptr.hbm [resolvable:$true] %s7850_s7 }
 0x169   :  { %s7852_s26 = scalar_lea.hbm %s7851_s7, 2  ;;  %s7854_s13 = scalar_lea.hbm %s10991_s29, 2 }
 0x16a   :  { %p7853_p7 = scmp.ne.s32.totalorder %s7851_s7, %s7852_s26  ;;  %p7855_p8 = scmp.lt.s32.totalorder %s7851_s7, %s10991_s29 }
 0x16b   :  { %p7856_p9 = scmp.lt.s32.totalorder %s7854_s13, %s7852_s26 }
 0x16c   :  { %s267_s24 = sshll.u32 %s10992_s27, 4  ;;  %s8762_s24 = int_to_ptr.hbm [resolvable:$true] %s267_s24 }
 0x16d   :  { %p7857_p10 = por %p7856_p9, %p7855_p8 }
 0x16f   :  { %p7858_p11 = pnand %p7857_p10, %p7853_p7 }
 0x171   :  { %7861 = shalt.err (!%p7858_p11)
}
 0x172   :  { %s10993_s10 = sld [smem:[#allocation88_spill]]  ;;  %s8324_s5 = smov [#allocation19]  }
 0x173   :  { %249 = dma.hbm_to_vmem [thread:$0]  %s8752_s23, 32, %s244_s21, [#allocation15], %s8297_s15, %s8297_s15, %s8298_s16  }
 0x174   :  { %s269_s11 = sshll.u32 %s8324_s5, 4  ;;  %s7874_s18 = sshra.s32 %s8762_s24, 4  ;;  %s270_s11 = int_to_ptr.vmem [resolvable:$true] %s269_s11  ;;  %s7875_s18 = int_to_ptr.hbm [resolvable:$true] %s7874_s18 }
 0x175   :  { %s7876_s1 = scalar_lea.hbm %s7875_s18, 32  ;;  %s7878_s6 = scalar_lea.hbm %s10992_s27, 32 }
 0x176   :  { %p7877_p12 = scmp.ne.s32.totalorder %s7875_s18, %s7876_s1  ;;  %p7879_p13 = scmp.lt.s32.totalorder %s7875_s18, %s10992_s27 }
 0x177   :  { %p7880_p0 = scmp.lt.s32.totalorder %s7878_s6, %s7876_s1 }
 0x178   :  { %s293_s4 = sshll.u32 %s10993_s10, 4  ;;  %s8772_s4 = int_to_ptr.hbm [resolvable:$true] %s293_s4 }
 0x179   :  { %p7881_p1 = por %p7880_p0, %p7879_p13 }
 0x17b   :  { %p7882_p2 = pnand %p7881_p1, %p7877_p12 }
 0x17d   :  { %7885 = shalt.err (!%p7882_p2)
}
 0x17e   :  { %s10994_s29 = sld [smem:[#allocation89_spill]]  ;;  %s8325_s23 = smov [#allocation22]  }
 0x17f   :  { %275 = dma.hbm_to_vmem [thread:$0]  %s8762_s24, 512, %s270_s11, [#allocation18], %s8300_s28, %s8300_s28, %s8301_s0  }
 0x180   :  { %s295_s9 = sshll.u32 %s8325_s23, 4  ;;  %s7898_s8 = sshra.s32 %s8772_s4, 4  ;;  %s296_s9 = int_to_ptr.vmem [resolvable:$true] %s295_s9  ;;  %s7899_s8 = int_to_ptr.hbm [resolvable:$true] %s7898_s8 }
 0x181   :  { %s7900_s22 = scalar_lea.hbm %s7899_s8, 32  ;;  %s7902_s14 = scalar_lea.hbm %s10993_s10, 32 }
 0x182   :  { %p7901_p3 = scmp.ne.s32.totalorder %s7899_s8, %s7900_s22  ;;  %p7903_p4 = scmp.lt.s32.totalorder %s7899_s8, %s10993_s10 }
 0x183   :  { %p7904_p5 = scmp.lt.s32.totalorder %s7902_s14, %s7900_s22 }
 0x184   :  { %s319_s19 = sshll.u32 %s10994_s29, 4  ;;  %s8782_s19 = int_to_ptr.hbm [resolvable:$true] %s319_s19 }
 0x185   :  { %p7905_p6 = por %p7904_p5, %p7903_p4 }
 0x187   :  { %p7906_p7 = pnand %p7905_p6, %p7901_p3 }
 0x189   :  { %7909 = shalt.err (!%p7906_p7)
}
 0x18a   :  { %s10995_s27 = sld [smem:[#allocation90_spill]]  ;;  %s8326_s21 = smov [#allocation25]  }
 0x18b   :  { %301 = dma.hbm_to_vmem [thread:$0]  %s8772_s4, 512, %s296_s9, [#allocation21], %s8300_s28, %s8300_s28, %s8301_s0  }
 0x18c   :  { %s321_s24 = sshll.u32 %s8326_s21, 4  ;;  %s7922_s7 = sshra.s32 %s8782_s19, 4  ;;  %s322_s24 = int_to_ptr.vmem [resolvable:$true] %s321_s24  ;;  %s7923_s7 = int_to_ptr.hbm [resolvable:$true] %s7922_s7 }
 0x18d   :  { %s7924_s26 = scalar_lea.hbm %s7923_s7, 32  ;;  %s7926_s13 = scalar_lea.hbm %s10994_s29, 32 }
 0x18e   :  { %p7925_p8 = scmp.ne.s32.totalorder %s7923_s7, %s7924_s26  ;;  %p7927_p9 = scmp.lt.s32.totalorder %s7923_s7, %s10994_s29 }
 0x18f   :  { %p7928_p10 = scmp.lt.s32.totalorder %s7926_s13, %s7924_s26 }
 0x190   :  { %s345_s25 = sshll.u32 %s10995_s27, 4  ;;  %s8792_s25 = int_to_ptr.hbm [resolvable:$true] %s345_s25 }
 0x191   :  { %p7929_p11 = por %p7928_p10, %p7927_p9 }
 0x193   :  { %p7930_p12 = pnand %p7929_p11, %p7925_p8 }
 0x195   :  { %7933 = shalt.err (!%p7930_p12)
}
 0x196   :  { %s10996_s10 = sld [smem:[#allocation91_spill]]  ;;  %s8327_s4 = smov [#allocation28]  }
 0x197   :  { %327 = dma.hbm_to_vmem [thread:$0]  %s8782_s19, 512, %s322_s24, [#allocation24], %s8300_s28, %s8300_s28, %s8301_s0  }
 0x198   :  { %s347_s5 = sshll.u32 %s8327_s4, 4  ;;  %s7946_s18 = sshra.s32 %s8792_s25, 4  ;;  %s348_s5 = int_to_ptr.vmem [resolvable:$true] %s347_s5  ;;  %s7947_s18 = int_to_ptr.hbm [resolvable:$true] %s7946_s18 }
 0x199   :  { %s7948_s1 = scalar_lea.hbm %s7947_s18, 32  ;;  %s7950_s6 = scalar_lea.hbm %s10995_s27, 32 }
 0x19a   :  { %p7949_p13 = scmp.ne.s32.totalorder %s7947_s18, %s7948_s1  ;;  %p7951_p0 = scmp.lt.s32.totalorder %s7947_s18, %s10995_s27 }
 0x19b   :  { %p7952_p1 = scmp.lt.s32.totalorder %s7950_s6, %s7948_s1 }
 0x19c   :  { %s371_s11 = sshll.u32 %s10996_s10, 4  ;;  %s8802_s11 = int_to_ptr.hbm [resolvable:$true] %s371_s11 }
 0x19d   :  { %p7953_p2 = por %p7952_p1, %p7951_p0 }
 0x19f   :  { %p7954_p3 = pnand %p7953_p2, %p7949_p13 }
 0x1a1   :  { %7957 = shalt.err (!%p7954_p3)
}
 0x1a2   :  { %s10997_s29 = sld [smem:[#allocation92_spill]]  ;;  %s8328_s9 = smov [#allocation31]  }
 0x1a3   :  { %353 = dma.hbm_to_vmem [thread:$0]  %s8792_s25, 512, %s348_s5, [#allocation27], %s8300_s28, %s8300_s28, %s8301_s0  }
 0x1a4   :  { %s373_s19 = sshll.u32 %s8328_s9, 4  ;;  %s7970_s8 = sshra.s32 %s8802_s11, 4  ;;  %s374_s19 = int_to_ptr.vmem [resolvable:$true] %s373_s19  ;;  %s7971_s8 = int_to_ptr.hbm [resolvable:$true] %s7970_s8 }
 0x1a5   :  { %s7972_s22 = scalar_lea.hbm %s7971_s8, 32  ;;  %s7974_s14 = scalar_lea.hbm %s10996_s10, 32 }
 0x1a6   :  { %p7973_p4 = scmp.ne.s32.totalorder %s7971_s8, %s7972_s22  ;;  %p7975_p5 = scmp.lt.s32.totalorder %s7971_s8, %s10996_s10 }
 0x1a7   :  { %p7976_p6 = scmp.lt.s32.totalorder %s7974_s14, %s7972_s22 }
 0x1a8   :  { %s397_s23 = sshll.u32 %s10997_s29, 4  ;;  %s8812_s23 = int_to_ptr.hbm [resolvable:$true] %s397_s23 }
 0x1a9   :  { %p7977_p7 = por %p7976_p6, %p7975_p5 }
 0x1ab   :  { %p7978_p8 = pnand %p7977_p7, %p7973_p4 }
 0x1ad   :  { %7981 = shalt.err (!%p7978_p8)
}
 0x1ae   :  { %s10998_s27 = sld [smem:[#allocation94_spill]]  ;;  %s8329_s25 = smov [#allocation34]  }
 0x1af   :  { %379 = dma.hbm_to_vmem [thread:$0]  %s8802_s11, 512, %s374_s19, [#allocation30], %s8300_s28, %s8300_s28, %s8301_s0  }
 0x1b0   :  { %s399_s21 = sshll.u32 %s8329_s25, 4  ;;  %s7994_s7 = sshra.s32 %s8812_s23, 4  ;;  %s400_s21 = int_to_ptr.vmem [resolvable:$true] %s399_s21  ;;  %s7995_s7 = int_to_ptr.hbm [resolvable:$true] %s7994_s7 }
 0x1b1   :  { %s7996_s26 = scalar_lea.hbm %s7995_s7, 32  ;;  %s7998_s13 = scalar_lea.hbm %s10997_s29, 32 }
 0x1b2   :  { %p7997_p9 = scmp.ne.s32.totalorder %s7995_s7, %s7996_s26  ;;  %p7999_p10 = scmp.lt.s32.totalorder %s7995_s7, %s10997_s29 }
 0x1b3   :  { %p8000_p11 = scmp.lt.s32.totalorder %s7998_s13, %s7996_s26 }
 0x1b4   :  { %s425_s24 = sshll.u32 %s10998_s27, 4  ;;  %s8822_s24 = int_to_ptr.hbm [resolvable:$true] %s425_s24 }
 0x1b5   :  { %p8001_p12 = por %p8000_p11, %p7999_p10 }
 0x1b7   :  { %p8002_p13 = pnand %p8001_p12, %p7997_p9 }
 0x1b9   :  { %8005 = shalt.err (!%p8002_p13)
}
 0x1ba   :  { %s10999_s10 = sld [smem:[#allocation95_spill]]  ;;  %s8330_s5 = smov [#allocation37]  }
 0x1bb   :  { %405 = dma.hbm_to_vmem [thread:$0]  %s8812_s23, 512, %s400_s21, [#allocation33], %s8300_s28, %s8300_s28, %s8301_s0  }
 0x1bc   :  { %s427_s11 = sshll.u32 %s8330_s5, 4  ;;  %s8018_s18 = sshra.s32 %s8822_s24, 4  ;;  %s428_s11 = int_to_ptr.vmem [resolvable:$true] %s427_s11  ;;  %s8019_s18 = int_to_ptr.hbm [resolvable:$true] %s8018_s18 }
 0x1bd   :  { %s8020_s1 = scalar_lea.hbm %s8019_s18, 2  ;;  %s8022_s6 = scalar_lea.hbm %s10998_s27, 2 }
 0x1be   :  { %p8021_p0 = scmp.ne.s32.totalorder %s8019_s18, %s8020_s1  ;;  %p8023_p1 = scmp.lt.s32.totalorder %s8019_s18, %s10998_s27 }
 0x1bf   :  { %p8024_p2 = scmp.lt.s32.totalorder %s8022_s6, %s8020_s1 }
 0x1c0   :  { %s451_s4 = sshll.u32 %s10999_s10, 4  ;;  %s8832_s4 = int_to_ptr.hbm [resolvable:$true] %s451_s4 }
 0x1c1   :  { %p8025_p3 = por %p8024_p2, %p8023_p1 }
 0x1c3   :  { %p8026_p4 = pnand %p8025_p3, %p8021_p0 }
 0x1c5   :  { %8029 = shalt.err (!%p8026_p4)
}
 0x1c6   :  { %s11000_s0 = sld [smem:[#allocation96_spill]]  ;;  %s8331_s29 = smov [#allocation40]  }
 0x1c7   :  { %433 = dma.hbm_to_vmem [thread:$0]  %s8822_s24, 32, %s428_s11, [#allocation36], %s8297_s15, %s8297_s15, %s8298_s16  }
 0x1c8   :  { %s453_s23 = sshll.u32 %s8331_s29, 4  ;;  %s8042_s19 = sshra.s32 %s8832_s4, 4  ;;  %s454_s23 = int_to_ptr.vmem [resolvable:$true] %s453_s23  ;;  %s8043_s19 = int_to_ptr.hbm [resolvable:$true] %s8042_s19 }
 0x1c9   :  { %s8044_s8 = scalar_lea.hbm %s8043_s19, 2  ;;  %s8046_s22 = scalar_lea.hbm %s10999_s10, 2 }
 0x1ca   :  { %p8045_p5 = scmp.ne.s32.totalorder %s8043_s19, %s8044_s8  ;;  %p8047_p6 = scmp.lt.s32.totalorder %s8043_s19, %s10999_s10 }
 0x1cb   :  { %p8048_p7 = scmp.lt.s32.totalorder %s8046_s22, %s8044_s8 }
 0x1cc   :  { %s477_s9 = sshll.u32 %s11000_s0, 4  ;;  %s8842_s9 = int_to_ptr.hbm [resolvable:$true] %s477_s9 }
 0x1cd   :  { %p8049_p8 = por %p8048_p7, %p8047_p6 }
 0x1cf   :  { %p8050_p9 = pnand %p8049_p8, %p8045_p5 }
 0x1d1   :  { %8053 = shalt.err (!%p8050_p9)
}
 0x1d2   :  { %s11001_s14 = sld [smem:[#allocation97_spill]]  ;;  %s8332_s25 = smov [#allocation43]  }
 0x1d3   :  { %459 = dma.hbm_to_vmem [thread:$0]  %s8832_s4, 32, %s454_s23, [#allocation39], %s8297_s15, %s8297_s15, %s8298_s16  }
 0x1d4   :  { %s479_s21 = sshll.u32 %s8332_s25, 4  ;;  %s8066_s24 = sshra.s32 %s8842_s9, 4  ;;  %s480_s21 = int_to_ptr.vmem [resolvable:$true] %s479_s21  ;;  %s8067_s24 = int_to_ptr.hbm [resolvable:$true] %s8066_s24 }
 0x1d5   :  { %s8068_s7 = scalar_lea.hbm %s8067_s24, 2  ;;  %s8070_s26 = scalar_lea.hbm %s11000_s0, 2 }
 0x1d6   :  { %p8069_p10 = scmp.ne.s32.totalorder %s8067_s24, %s8068_s7  ;;  %p8071_p11 = scmp.lt.s32.totalorder %s8067_s24, %s11000_s0 }
 0x1d7   :  { %p8072_p12 = scmp.lt.s32.totalorder %s8070_s26, %s8068_s7 }
 0x1d8   :  { %s503_s27 = sshll.u32 %s11001_s14, 4  ;;  %s8852_s27 = int_to_ptr.hbm [resolvable:$true] %s503_s27 }
 0x1d9   :  { %p8073_p13 = por %p8072_p12, %p8071_p11 }
 0x1db   :  { %p8074_p0 = pnand %p8073_p13, %p8069_p10 }
 0x1dd   :  { %8077 = shalt.err (!%p8074_p0)
}
 0x1de   :  { %s11002_s13 = sld [smem:[#allocation99_spill]]  ;;  %s8333_s10 = smov [#allocation46]  }
 0x1df   :  { %485 = dma.hbm_to_vmem [thread:$0]  %s8842_s9, 32, %s480_s21, [#allocation42], %s8297_s15, %s8297_s15, %s8298_s16  }
 0x1e0   :  { %s505_s4 = sshll.u32 %s8333_s10, 4  ;;  %s8090_s11 = sshra.s32 %s8852_s27, 4  ;;  %s506_s4 = int_to_ptr.vmem [resolvable:$true] %s505_s4  ;;  %s8091_s11 = int_to_ptr.hbm [resolvable:$true] %s8090_s11 }
 0x1e1   :  { %s8092_s18 = scalar_lea.hbm %s8091_s11, 2  ;;  %s8094_s1 = scalar_lea.hbm %s11001_s14, 2 }
 0x1e2   :  { %p8093_p1 = scmp.ne.s32.totalorder %s8091_s11, %s8092_s18  ;;  %p8095_p2 = scmp.lt.s32.totalorder %s8091_s11, %s11001_s14 }
 0x1e3   :  { %p8096_p3 = scmp.lt.s32.totalorder %s8094_s1, %s8092_s18 }
 0x1e4   :  { %s528_s5 = sshll.u32 %s11002_s13, 4  ;;  %s529_s5 = int_to_ptr.hbm [resolvable:$true] %s528_s5 }
 0x1e5   :  { %p8097_p4 = por %p8096_p3, %p8095_p2 }
 0x1e7   :  { %p8098_p5 = pnand %p8097_p4, %p8093_p1 }
 0x1e9   :  { %8101 = shalt.err (!%p8098_p5)
}
 0x1ea   :  { %s11003_s6 = sld [smem:[#allocation101_spill]]  ;;  %s8334_s29 = smov [#allocation49]  }
 0x1eb   :  { %511 = dma.hbm_to_vmem [thread:$0]  %s8852_s27, 32, %s506_s4, [#allocation45], %s8297_s15, %s8297_s15, %s8298_s16  }
 0x1ec   :  { %s530_s23 = sshll.u32 %s8334_s29, 4  ;;  %s8114_s9 = sshra.s32 %s529_s5, 4  ;;  %s531_s23 = int_to_ptr.vmem [resolvable:$true] %s530_s23  ;;  %s8115_s9 = int_to_ptr.hbm [resolvable:$true] %s8114_s9 }
 0x1ed   :  { %s8116_s19 = scalar_lea.hbm %s8115_s9, 1  ;;  %s8118_s8 = scalar_lea.hbm %s11002_s13, 1 }
 0x1ee   :  { %p8117_p6 = scmp.ne.s32.totalorder %s8115_s9, %s8116_s19  ;;  %p8119_p7 = scmp.lt.s32.totalorder %s8115_s9, %s11002_s13 }
 0x1ef   :  { %p8120_p8 = scmp.lt.s32.totalorder %s8118_s8, %s8116_s19 }
 0x1f0   :  { %s550_s0 = sshll.u32 %s11003_s6, 4  ;;  %s551_s0 = int_to_ptr.hbm [resolvable:$true] %s550_s0 }
 0x1f1   :  { %p8121_p9 = por %p8120_p8, %p8119_p7 }
 0x1f3   :  { %p8122_p10 = pnand %p8121_p9, %p8117_p6 }
 0x1f5   :  { %8125 = shalt.err (!%p8122_p10)
}
 0x1f6   :  { %533 = dma.hbm_to_vmem [thread:$0]  %s529_s5, 16, %s531_s23, [#allocation48]  }
 0x1f7   :  { %s11004_s22 = sld [smem:[#allocation106_spill]]  ;;  %s8335_s15 = smov [#allocation52]  }
 0x1f8   :  { %s552_s14 = sshll.u32 %s8335_s15, 4  ;;  %s8138_s25 = sshra.s32 %s551_s0, 4  ;;  %s553_s14 = int_to_ptr.vmem [resolvable:$true] %s552_s14  ;;  %s8139_s25 = int_to_ptr.hbm [resolvable:$true] %s8138_s25 }
 0x1f9   :  { %s8140_s21 = scalar_lea.hbm %s8139_s25, 1  ;;  %s8142_s24 = scalar_lea.hbm %s11003_s6, 1 }
 0x1fa   :  { %p8141_p11 = scmp.ne.s32.totalorder %s8139_s25, %s8140_s21  ;;  %p8143_p12 = scmp.lt.s32.totalorder %s8139_s25, %s11003_s6 }
 0x1fb   :  { %p8144_p13 = scmp.lt.s32.totalorder %s8142_s24, %s8140_s21 }
 0x1fd   :  { %s577_s27 = sshll.u32 %s11004_s22, 4  ;;  %p8145_p0 = por %p8144_p13, %p8143_p12  ;;  %s578_s27 = int_to_ptr.hbm [resolvable:$true] %s577_s27 }
 0x1ff   :  { %p8146_p1 = pnand %p8145_p0, %p8141_p11 }
 0x201   :  { %8149 = shalt.err (!%p8146_p1)
}
 0x202   :  { %555 = dma.hbm_to_vmem [thread:$0]  %s551_s0, 16, %s553_s14, [#allocation51]  }
 0x203   :  { %s8336_s7 = smov [#allocation55]   ;;  %s8162_s13 = sshra.s32 %s578_s27, 4  ;;  %s8163_s13 = int_to_ptr.hbm [resolvable:$true] %s8162_s13 }
 0x204   :  { %s579_s26 = sshll.u32 %s8336_s7, 4  ;;  %s8164_s10 = scalar_lea.hbm %s8163_s13, 16  ;;  %s580_s26 = int_to_ptr.vmem [resolvable:$true] %s579_s26 }
 0x205   :  { %p8165_p2 = scmp.ne.s32.totalorder %s8163_s13, %s8164_s10  ;;  %s8166_s4 = scalar_lea.hbm %s11004_s22, 16 }
 0x206   :  { %p8167_p3 = scmp.lt.s32.totalorder %s8163_s13, %s11004_s22  ;;  %p8168_p4 = scmp.lt.s32.totalorder %s8166_s4, %s8164_s10 }
 0x208   :  { %p8169_p5 = por %p8168_p4, %p8167_p3 }
 0x20a   :  { %p8170_p6 = pnand %p8169_p5, %p8165_p2 }
 0x20c   :  { %8173 = shalt.err (!%p8170_p6)
}
 0x20d   :  { %585 = dma.hbm_to_vmem [thread:$0]  %s578_s27, 256, %s580_s26, [#allocation54], %s8318_s2, %s8318_s2, %s8319_s20  }
 0x20e   :  { %8210 = dma.done.wait [#allocation3], 256  }
 0x20f   :  { %8211 = vsyncadd [#allocation3], 4294967040 }
 0x210   :  { %8212 = dma.done.wait [#allocation6], 64  }
 0x211   :  { %8213 = vsyncadd [#allocation6], 4294967232 }
 0x212   :  { %8214 = dma.done.wait [#allocation9], 544  }
 0x213   :  { %8215 = vsyncadd [#allocation9], 4294966752 }
 0x214   :  { %8216 = dma.done.wait [#allocation12], 64  }
 0x215   :  { %8217 = vsyncadd [#allocation12], 4294967232 }
 0x216   :  { %8218 = dma.done.wait [#allocation15], 64  }
 0x217   :  { %8219 = vsyncadd [#allocation15], 4294967232 }
 0x218   :  { %8220 = dma.done.wait [#allocation18], 544  }
 0x219   :  { %8221 = vsyncadd [#allocation18], 4294966752 }
 0x21a   :  { %8222 = dma.done.wait [#allocation21], 544  }
 0x21b   :  { %8223 = vsyncadd [#allocation21], 4294966752 }
 0x21c   :  { %8224 = dma.done.wait [#allocation24], 544  }
 0x21d   :  { %8225 = vsyncadd [#allocation24], 4294966752 }
 0x21e   :  { %8226 = dma.done.wait [#allocation27], 544  }
 0x21f   :  { %8227 = vsyncadd [#allocation27], 4294966752 }
 0x220   :  { %8228 = dma.done.wait [#allocation30], 544  }
 0x221   :  { %8229 = vsyncadd [#allocation30], 4294966752 }
 0x222   :  { %8230 = dma.done.wait [#allocation33], 544  }
 0x223   :  { %8231 = vsyncadd [#allocation33], 4294966752 }
 0x224   :  { %8232 = dma.done.wait [#allocation36], 64  }
 0x225   :  { %8233 = vsyncadd [#allocation36], 4294967232 }
 0x226   :  { %8234 = dma.done.wait [#allocation39], 64  }
 0x227   :  { %8235 = vsyncadd [#allocation39], 4294967232 }
 0x228   :  { %8236 = dma.done.wait [#allocation42], 64  }
 0x229   :  { %8237 = vsyncadd [#allocation42], 4294967232 }
 0x22a   :  { %8238 = dma.done.wait [#allocation45], 64  }
 0x22b   :  { %8239 = vsyncadd [#allocation45], 4294967232 }
 0x22c   :  { %8240 = dma.done.wait [#allocation48], 32  }
 0x22d   :  { %8241 = vsyncadd [#allocation48], 4294967264 }
 0x22e   :  { %8242 = dma.done.wait [#allocation51], 32  }
 0x22f   :  { %8243 = vsyncadd [#allocation51], 4294967264 }
 0x230   :  { %8244 = dma.done.wait [#allocation54], 272  }
 0x231   :  { %8245 = vsyncadd [#allocation54], 4294967024  ;;  %s11005_s5 = sld [smem:[#allocation76_spill]]  ;;  %v10937_v0 = vmov 0   ;;  %v799_v21 = vlaneseq  ;;  %v10935_v24 = vmov 1.0   ;;  %v794_v31 = vld [vmem:[#allocation2] sm:$0xff] }
 0x232   :  { %s11006_s11 = sld [smem:[#allocation78_spill]]  ;;  %6908 = vset.pattern.permute.xlu0 %v10937_v0  ;;  %6909 = vset.pattern.permute.xlu1 %v10937_v0  ;;  %vm876_vm4 = vcmask 261120   ;;  %v6973_v41 = vld [vmem:[#allocation5] ss:$0 sm:$0xff]  ;;  %s8339_s1 = smov 96   ;;  %vm915_vm5 = vcmask 523264  }
 0x233   :  { %6910 = vset.pattern.permute.xlu2 %v10937_v0  ;;  %s11007_s18 = sld [smem:[#allocation80_spill]]  ;;  %v8903_v22 = vand.u32 127, %v799_v21  ;;  %s8340_s0 = smov 32   ;;  %vm917_vm6 = vcmask 785408   ;;  %vm995_vm7 = vcmask 130048   ;;  %vm1078_vm8 = vcmask 1043456  }
 0x234   :  { %s11009_s6 = sld [smem:[#allocation105_spill]]  ;;  %vm1065_vm9 = vcmask 31744   ;;  %s8202_s15 = scalar_lea.hbm %s8591_s3, 32 }
 0x235   :  { %11008 = vst [vmem:[#allocation107_spill] sm:$0xff] %v8903_v22  ;;  %s11012_s29 = sld [smem:[#allocation81_spill]] }
 0x236   :  { %s11013_s23 = sld [smem:[#allocation104_spill]] }
 0x237   :  { %v795_v1 = vld [vmem:[%s11005_s5] sm:$0xff]  ;;  %v797_v2 = vld [vmem:[%s11005_s5 + $0x10] sm:$0xff]  ;;  %v796_v6 = vld [vmem:[%s11005_s5 + $0x8] sm:$0xff]  ;;  %s11017_s9 = sld [smem:[#allocation84_spill]] }
 0x238   :  { %802 = vperm.xlu0 %6908, %v795_v1   ;;  %808 = vperm.xlu1 %6909, %v797_v2   ;;  %v793_v3 = vld [vmem:[%s11006_s11 + $0x78] sm:$0xff]  ;;  %v792_v4 = vld [vmem:[%s11006_s11 + $0x70] sm:$0xff]  ;;  %v791_v5 = vld [vmem:[%s11006_s11 + $0x68] sm:$0xff]  ;;  %s11023_s19 = sld [smem:[#allocation77_spill]] }
 0x239   :  { %825 = vmatpush.msra.mxu0 %v793_v3  ;;  %v798_v7 = vld [vmem:[%s11005_s5 + $0x18] sm:$0xff]  ;;  %v790_v8 = vld [vmem:[%s11006_s11 + $0x60] sm:$0xff]  ;;  %v788_v10 = vld [vmem:[%s11006_s11 + $0x50] sm:$0xff]  ;;  %s11030_s8 = sld [smem:[#allocation93_spill]] }
 0x23a   :  { %v789_v9 = vld [vmem:[%s11006_s11 + $0x58] sm:$0xff]  ;;  %v787_v11 = vld [vmem:[%s11006_s11 + $0x48] sm:$0xff]  ;;  %v786_v12 = vld [vmem:[%s11006_s11 + $0x40] sm:$0xff] }
 0x23b   :  { %826 = vmatpush.msra.mxu0 %v792_v4  ;;  %v785_v13 = vld [vmem:[%s11006_s11 + $0x38] sm:$0xff]  ;;  %v784_v14 = vld [vmem:[%s11006_s11 + $0x30] sm:$0xff]  ;;  %v783_v15 = vld [vmem:[%s11006_s11 + $0x28] sm:$0xff] }
 0x23c   :  { %v782_v16 = vld [vmem:[%s11006_s11 + $0x20] sm:$0xff]  ;;  %v781_v17 = vld [vmem:[%s11006_s11 + $0x18] sm:$0xff]  ;;  %v780_v18 = vld [vmem:[%s11006_s11 + $0x10] sm:$0xff] }
 0x23d   :  { %827 = vmatpush.msra.mxu0 %v791_v5  ;;  %v779_v19 = vld [vmem:[%s11006_s11 + $0x8] sm:$0xff]  ;;  %v778_v20 = vld [vmem:[%s11006_s11] sm:$0xff]  ;;  %v8957_v50 = vld [vmem:[%s11009_s6 + $0x78] sm:$0xff] }
 0x23e   :  { %v6744_v28 = vld [vmem:[%s11007_s18 + $0x8] sm:$0xff]  ;;  %v6743_v29 = vld [vmem:[%s11007_s18] sm:$0xff]  ;;  %v8960_v51 = vld [vmem:[%s11009_s6 + $0x70] sm:$0xff]  ;;  %966 = vmatpush.msra.mxu2 %v8957_v50 }
 0x23f   :  { %828 = vmatpush.msra.mxu0 %v790_v8  ;;  %889 = vmatpush.bf16.msra.mxu1 %v6744_v28  ;;  %v8964_v52 = vld [vmem:[%s11009_s6 + $0x68] sm:$0xff]  ;;  %v8968_v53 = vld [vmem:[%s11009_s6 + $0x60] sm:$0xff]  ;;  %v8972_v54 = vld [vmem:[%s11009_s6 + $0x58] sm:$0xff] }
 0x240   :  { %805 = vperm.xlu0 %6908, %v796_v6   ;;  %811 = vperm.xlu1 %6909, %v798_v7   ;;  %v8977_v55 = vld [vmem:[%s11009_s6 + $0x50] sm:$0xff]  ;;  %v8981_v56 = vld [vmem:[%s11009_s6 + $0x48] sm:$0xff]  ;;  %v8984_v57 = vld [vmem:[%s11009_s6 + $0x40] sm:$0xff] }
 0x241   :  { %829 = vmatpush.msra.mxu0 %v789_v9  ;;  %967 = vmatpush.msra.mxu2 %v8960_v51  ;;  %v8988_v58 = vld [vmem:[%s11009_s6 + $0x38] sm:$0xff]  ;;  %v8993_v59 = vld [vmem:[%s11009_s6 + $0x30] sm:$0xff]  ;;  %v8997_v60 = vld [vmem:[%s11009_s6 + $0x28] sm:$0xff] }
 0x242   :  { %v9000_v61 = vld [vmem:[%s11009_s6 + $0x20] sm:$0xff]  ;;  %v9004_v62 = vld [vmem:[%s11009_s6 + $0x18] sm:$0xff]  ;;  %v9009_v63 = vld [vmem:[%s11009_s6 + $0x10] sm:$0xff] }
 0x243   :  { %830 = vmatpush.msra.mxu0 %v788_v10  ;;  %890 = vmatpush.bf16.msra.mxu1 %v6743_v29  ;;  %v9013_v1 = vld [vmem:[%s11009_s6 + $0x8] sm:$0xff]  ;;  %v9016_v2 = vld [vmem:[%s11009_s6] sm:$0xff] }
 0x244   :  { %968 = vmatpush.msra.mxu2 %v8964_v52 }
 0x245   :  { %831 = vmatpush.msra.mxu0 %v787_v11 }
 0x246   :  { %969 = vmatpush.msra.mxu2 %v8968_v53 }
 0x247   :  { %832 = vmatpush.msra.mxu0 %v786_v12 }
 0x248   :  { %970 = vmatpush.msra.mxu2 %v8972_v54 }
 0x249   :  { %833 = vmatpush.msra.mxu0 %v785_v13 }
 0x24a   :  { %971 = vmatpush.msra.mxu2 %v8977_v55 }
 0x24b   :  { %834 = vmatpush.msra.mxu0 %v784_v14 }
 0x24c   :  { %972 = vmatpush.msra.mxu2 %v8981_v56 }
 0x24d   :  { %835 = vmatpush.msra.mxu0 %v783_v15 }
 0x24e   :  { %973 = vmatpush.msra.mxu2 %v8984_v57 }
 0x24f   :  { %836 = vmatpush.msra.mxu0 %v782_v16 }
 0x250   :  { %974 = vmatpush.msra.mxu2 %v8988_v58 }
 0x251   :  { %837 = vmatpush.msra.mxu0 %v781_v17 }
 0x252   :  { %975 = vmatpush.msra.mxu2 %v8993_v59 }
 0x253   :  { %838 = vmatpush.msra.mxu0 %v780_v18 }
 0x254   :  { %976 = vmatpush.msra.mxu2 %v8997_v60 }
 0x255   :  { %839 = vmatpush.msra.mxu0 %v779_v19 }
 0x256   :  { %977 = vmatpush.msra.mxu2 %v9000_v61 }
 0x257   :  { %840 = vmatpush.msra.mxu0 %v778_v20 }
 0x258   :  { %978 = vmatpush.msra.mxu2 %v9004_v62 }
 0x25a   :  { %979 = vmatpush.msra.mxu2 %v9009_v63 }
 0x25c   :  { %980 = vmatpush.msra.mxu2 %v9013_v1 }
 0x25e   :  { %981 = vmatpush.msra.mxu2 %v9016_v2 }
 0x2aa   :  { %v803_v23 = vpop.permute.xlu0 %802  ;;  %v809_v26 = vpop.permute.xlu1 %808 }
 0x2ab   :  { %vm813_vm0 = vcmp.eq.s32.totalorder %v8903_v22, %v803_v23  ;;  %vm815_vm2 = vcmp.eq.s32.totalorder %v8903_v22, %v809_v26 }
 0x2ac   :  { %6319 = vmatmul.msk.f32.vlgmr.msra.gmra.mxu0 %vm813_vm0, %v10935_v24 }
 0x2b2   :  { %v806_v25 = vpop.permute.xlu0 %805  ;;  %v812_v27 = vpop.permute.xlu1 %811 }
 0x2b3   :  { %vm814_vm1 = vcmp.eq.s32.totalorder %v8903_v22, %v806_v25  ;;  %vm816_vm3 = vcmp.eq.s32.totalorder %v8903_v22, %v812_v27 }
 0x2b4   :  { %6320 = vmatmul.msk.f32.gmra.mxu0 %vm814_vm1, %v10935_v24 }
 0x2bc   :  { %6321 = vmatmul.msk.f32.gmra.mxu0 %vm815_vm2, %v10935_v24 }
 0x2c4   :  { %6322 = vmatmul.msk.f32.gmra.mxu0 %vm816_vm3, %v10935_v24 }
 0x329   :  { %v842_v30 = vpop.f32.mrf.mxu0 }
 0x32a   :  { %v8915_v33 = vadd.f32 %v842_v30, %v794_v31 }
 0x331   :  { %v845_v32 = vpop.f32.mrf.mxu0 }
 0x332   :  { %v8917_v34 = vadd.f32 %v845_v32, %v794_v31 }
 0x334   :  { %v859_v35 = vpack.c.bf16 %v8917_v34, %v8915_v33 }
 0x336   :  { %6331 = vmatmul.msk.bf16.vlgmr.msra.gmra.mxu1 %vm876_vm4, %v859_v35 }
 0x339   :  { %v848_v36 = vpop.f32.mrf.mxu0 }
 0x33a   :  { %v8922_v38 = vadd.f32 %v848_v36, %v794_v31 }
 0x341   :  { %v851_v37 = vpop.f32.mrf.mxu0 }
 0x342   :  { %v8924_v39 = vadd.f32 %v851_v37, %v794_v31 }
 0x344   :  { %v860_v40 = vpack.c.bf16 %v8924_v39, %v8922_v38 }
 0x346   :  { %6332 = vmatmul.msk.bf16.gmra.mxu1 %vm876_vm4, %v860_v40 }
 0x3b3   :  { %v892_v42 = vpop.f32.mrf.mxu1 }
 0x3b4   :  { %v893_v43 = vadd.f32 %v6973_v41, %v892_v42 }
 0x3b6   :  { %919 = vrot.lane.b32.xlu1 %v893_v43, %s8300_s28  ;;  %903 = vrot.lane.b32.xlu2 %v893_v43, %s8339_s1 }
 0x3bb   :  { %v894_v44 = vpop.f32.mrf.mxu1 }
 0x3bc   :  { %v8931_v45 = vadd.f32 %v6973_v41, %v894_v44 }
 0x3be   :  { %938 = vrot.lane.b32.xlu1 %v8931_v45, %s8300_s28  ;;  %932 = vrot.lane.b32.xlu2 %v893_v43, %s8340_s0 }
 0x3c3   :  { %v897_v46 = vpop.f32.mrf.mxu1 }
 0x3c4   :  { %v8936_v47 = vadd.f32 %v6973_v41, %v897_v46 }
 0x3c6   :  { %907 = vrot.lane.b32.xlu0 %v8936_v47, %s8340_s0  ;;  %944 = vrot.lane.b32.xlu1 %v8936_v47, %s8339_s1 }
 0x3cb   :  { %v899_v48 = vpop.f32.mrf.mxu1 }
 0x3cc   :  { %v8942_v49 = vadd.f32 %v6973_v41, %v899_v48 }
 0x3ce   :  { %934 = vrot.lane.b32.xlu0 %v8931_v45, %s8340_s0  ;;  %911 = vrot.lane.b32.xlu2 %v8942_v49, %s8300_s28 }
 0x3d6   :  { %940 = vrot.lane.b32.xlu0 %v8936_v47, %s8300_s28  ;;  %923 = vrot.lane.b32.xlu2 %v8931_v45, %s8339_s1 }
 0x3de   :  { %946 = vrot.lane.b32.xlu0 %v8942_v49, %s8339_s1  ;;  %926 = vrot.lane.b32.xlu2 %v8942_v49, %s8340_s0 }
 0x410   :  { %v904_v3 = vpop.permute.xlu2 %903 }
 0x411   :  { %v914_v9 = vsel %vm876_vm4, %v904_v3, %v8931_v45 }
 0x418   :  { %v933_v4 = vpop.permute.xlu2 %932 }
 0x419   :  { %v950_v6 = vsel %vm876_vm4, %v893_v43, %v933_v4 }
 0x428   :  { %v9020_v5 = vpop.permute.xlu1 %919  ;;  %v912_v7 = vpop.permute.xlu2 %911 }
 0x429   :  { %v954_v8 = vsel %vm915_vm5, %v950_v6, %v9020_v5 }
 0x42a   :  { %v958_v13 = vsel %vm917_vm6, %v954_v8, %v904_v3  ;;  %v9057_v3 = vld [vmem:[%s8576_s12] sm:$0xff] }
 0x42b   :  { %v9061_v8 = vld [vmem:[%s8581_s17] sm:$0xf] }
 0x430   :  { %v939_v15 = vpop.permute.xlu1 %938  ;;  %v9030_v16 = vpop.permute.xlu2 %923 }
 0x438   :  { %v908_v10 = vpop.permute.xlu0 %907  ;;  %v945_v26 = vpop.permute.xlu1 %944 }
 0x439   :  { %v916_v11 = vsel %vm915_vm5, %v914_v9, %v908_v10  ;;  %v952_v23 = vsel %vm876_vm4, %v8936_v47, %v908_v10  ;;  %v9040_v28 = vpop.permute.xlu2 %926 }
 0x43a   :  { %v918_v12 = vsel %vm917_vm6, %v916_v11, %v912_v7  ;;  %v953_v31 = vsel %vm876_vm4, %v8942_v49, %v9040_v28  ;;  %v9053_v49 = vld [vmem:[%s8576_s12 + $0x8] sm:$0xff] }
 0x43b   :  { %v962_v14 = vmul.f32 %v958_v13, %v918_v12  ;;  %v957_v35 = vsel %vm915_vm5, %v953_v31, %v912_v7  ;;  %1046 = vmatpush.msra.mxu3 %v9053_v49 }
 0x43d   :  { %982 = vmatmul.f32.vlgmr.msra.gmra.mxu2 %v962_v14  ;;  %1047 = vmatpush.msra.mxu3 %v9057_v3 }
 0x43f   :  { %6337 = vmatpush.msk.msrb.mxu3 %vm1078_vm8, %v9061_v8 }
 0x440   :  { %v935_v17 = vpop.permute.xlu0 %934 }
 0x441   :  { %v951_v18 = vsel %vm876_vm4, %v8931_v45, %v935_v17 }
 0x442   :  { %v955_v19 = vsel %vm915_vm5, %v951_v18, %v939_v15 }
 0x443   :  { %v959_v20 = vsel %vm917_vm6, %v955_v19, %v9030_v16 }
 0x444   :  { %v963_v21 = vmul.f32 %v959_v20, %v918_v12 }
 0x446   :  { %985 = vmatmul.f32.gmra.mxu2 %v963_v21 }
 0x448   :  { %v941_v25 = vpop.permute.xlu0 %940 }
 0x449   :  { %v956_v27 = vsel %vm915_vm5, %v952_v23, %v941_v25 }
 0x44a   :  { %v960_v29 = vsel %vm917_vm6, %v956_v27, %v945_v26  ;;  %v9075_v26 = vld [vmem:[#allocation55 + $0x8] sm:$0xff]  ;;  %v9077_v27 = vld [vmem:[#allocation55] sm:$0xff] }
 0x44b   :  { %v964_v30 = vmul.f32 %v960_v29, %v918_v12  ;;  %11010 = vst [vmem:[#allocation108_spill] sm:$0xff] %v9075_v26  ;;  %1141 = vmatpush.msrb.mxu1 %v9075_v26 }
 0x44c   :  { %11011 = vst [vmem:[#allocation109_spill] sm:$0xff] %v9077_v27 }
 0x44d   :  { %1142 = vmatpush.msrb.mxu1 %v9077_v27 }
 0x44e   :  { %988 = vmatmul.f32.gmra.mxu2 %v964_v30 }
 0x450   :  { %v947_v32 = vpop.permute.xlu0 %946 }
 0x451   :  { %v961_v36 = vsel %vm917_vm6, %v957_v35, %v947_v32 }
 0x452   :  { %v965_v37 = vmul.f32 %v961_v36, %v918_v12 }
 0x456   :  { %991 = vmatmul.f32.gmra.mxu2 %v965_v37 }
 0x4c0   :  { %v983_v40 = vpop.f32.mrf.mxu2 }
 0x4c1   :  { %v996_v41 = vsel %vm995_vm7, %v983_v40, -inf }
 0x4c2   :  { %997 = vmax.xlane.f32.xlu1 %v996_v41  ;;  %v9089_v41 = vld [vmem:[%s8586_s30 + $0x70] sm:$0xff] }
 0x4c9   :  { %v986_v42 = vpop.f32.mrf.mxu2 }
 0x4ca   :  { %v999_v43 = vsel %vm995_vm7, %v986_v42, -inf }
 0x4cb   :  { %1000 = vmax.xlane.f32.xlu2 %v999_v43 }
 0x4d1   :  { %v989_v44 = vpop.f32.mrf.mxu2 }
 0x4d2   :  { %v1002_v45 = vsel %vm995_vm7, %v989_v44, -inf }
 0x4d3   :  { %1003 = vmax.xlane.f32.xlu0 %v1002_v45 }
 0x4d9   :  { %v992_v46 = vpop.f32.mrf.mxu2 }
 0x4da   :  { %v1005_v48 = vsel %vm995_vm7, %v992_v46, -inf }
 0x4db   :  { %1006 = vmax.xlane.f32.xlu2 %v1005_v48  ;;  %v9109_v48 = vld [vmem:[%s8586_s30 + $0x50] sm:$0xff] }
 0x535   :  { %v998_v4 = vpop.xlane.xlu1 %997 }
 0x536   :  { %v1008_v6 = vsub.f32 %v983_v40, %v998_v4  ;;  %v9086_v40 = vld [vmem:[%s8586_s30 + $0x78] sm:$0xff]  ;;  %v9114_v4 = vld [vmem:[%s8586_s30 + $0x48] sm:$0xff] }
 0x537   :  { %1160 = vmatpush.msrb.mxu0 %v9086_v40  ;;  %6797 = vmatpush.msrb.mxu2 %v9086_v40 }
 0x538   :  { %v1012_v7 = vmul.f32 1.442695, %v1008_v6  ;;  %v9119_v6 = vld [vmem:[%s8586_s30 + $0x40] sm:$0xff] }
 0x539   :  { %1161 = vmatpush.msrb.mxu0 %v9089_v41  ;;  %6798 = vmatpush.msrb.mxu2 %v9089_v41 }
 0x53a   :  { %7020 = vpow2.f32 %v1012_v7 }
 0x53e   :  { %v1001_v9 = vpop.xlane.xlu2 %1000 }
 0x53f   :  { %v1009_v10 = vsub.f32 %v986_v42, %v1001_v9  ;;  %v9094_v42 = vld [vmem:[%s8586_s30 + $0x68] sm:$0xff] }
 0x540   :  { %v7021_v11 = vpop.eup %7020  ;;  %1162 = vmatpush.msrb.mxu0 %v9094_v42  ;;  %6799 = vmatpush.msrb.mxu2 %v9094_v42 }
 0x541   :  { %v1014_v12 = vmul.f32 1.442695, %v1009_v10  ;;  %6333 = vmatmul.msk.f32.vlgmr.msra.gmra.mxu3 %vm995_vm7, %v7021_v11  ;;  %v9124_v10 = vld [vmem:[%s8586_s30 + $0x38] sm:$0xff] }
 0x543   :  { %7022 = vpow2.f32 %v1014_v12  ;;  %v9135_v12 = vld [vmem:[%s8586_s30 + $0x28] sm:$0xff] }
 0x546   :  { %v1004_v13 = vpop.xlane.xlu0 %1003 }
 0x547   :  { %v1010_v14 = vsub.f32 %v989_v44, %v1004_v13  ;;  %v9099_v44 = vld [vmem:[%s8586_s30 + $0x60] sm:$0xff] }
 0x548   :  { %1163 = vmatpush.msrb.mxu0 %v9099_v44  ;;  %6800 = vmatpush.msrb.mxu2 %v9099_v44  ;;  %v9140_v13 = vld [vmem:[%s8586_s30 + $0x20] sm:$0xff] }
 0x549   :  { %v7023_v15 = vpop.eup %7022  ;;  %v1016_v17 = vmul.f32 1.442695, %v1010_v14 }
 0x54a   :  { %6334 = vmatmul.msk.f32.gmra.mxu3 %vm995_vm7, %v7023_v15 }
 0x54b   :  { %7024 = vpow2.f32 %v1016_v17  ;;  %v9146_v17 = vld [vmem:[%s8586_s30 + $0x18] sm:$0xff] }
 0x54e   :  { %v1007_v18 = vpop.xlane.xlu2 %1006 }
 0x54f   :  { %v1011_v19 = vsub.f32 %v992_v46, %v1007_v18  ;;  %v9104_v46 = vld [vmem:[%s8586_s30 + $0x58] sm:$0xff]  ;;  %v9152_v18 = vld [vmem:[%s8586_s30 + $0x10] sm:$0xff] }
 0x550   :  { %1164 = vmatpush.msrb.mxu0 %v9104_v46  ;;  %6801 = vmatpush.msrb.mxu2 %v9104_v46 }
 0x551   :  { %v9067_v20 = vpop.eup %7024  ;;  %v1018_v21 = vmul.f32 1.442695, %v1011_v19 }
 0x552   :  { %6335 = vmatmul.msk.f32.gmra.mxu3 %vm995_vm7, %v9067_v20  ;;  %1165 = vmatpush.msrb.mxu0 %v9109_v48 }
 0x553   :  { %7026 = vpow2.f32 %v1018_v21  ;;  %6802 = vmatpush.msrb.mxu2 %v9109_v48  ;;  %v9162_v21 = vld [vmem:[%s8586_s30 + $0x8] sm:$0xff] }
 0x554   :  { %1166 = vmatpush.msrb.mxu0 %v9114_v4 }
 0x555   :  { %6803 = vmatpush.msrb.mxu2 %v9114_v4 }
 0x556   :  { %1167 = vmatpush.msrb.mxu0 %v9119_v6 }
 0x557   :  { %6804 = vmatpush.msrb.mxu2 %v9119_v6 }
 0x558   :  { %1168 = vmatpush.msrb.mxu0 %v9124_v10 }
 0x559   :  { %v9071_v23 = vpop.eup %7026  ;;  %6805 = vmatpush.msrb.mxu2 %v9124_v10 }
 0x55a   :  { %6336 = vmatmul.msk.f32.gmra.mxu3 %vm995_vm7, %v9071_v23 }
 0x5c4   :  { %v1049_v25 = vpop.f32.mrf.mxu3 }
 0x5c5   :  { %7028 = vrcp.f32 %v1049_v25  ;;  %v9166_v25 = vld [vmem:[%s8586_s30] sm:$0xff] }
 0x5cb   :  { %v7029_v29 = vpop.eup %7028 }
 0x5cc   :  { %6338 = vmatmul.msk.f32.vlgmr.msrb.gmra.mxu3 %vm1065_vm9, %v7029_v29  ;;  %v929_v29 = vsel %vm876_vm4, %v9020_v5, %v9030_v16  ;;  %v6746_v5 = vld [vmem:[%s11012_s29 + $0x8] sm:$0xff] }
 0x5cd   :  { %v1052_v30 = vpop.f32.mrf.mxu3 }
 0x5ce   :  { %7030 = vrcp.f32 %v1052_v30 }
 0x5d4   :  { %v7031_v31 = vpop.eup %7030 }
 0x5d5   :  { %v1055_v32 = vpop.f32.mrf.mxu3  ;;  %6339 = vmatmul.msk.f32.gmra.mxu3 %vm1065_vm9, %v7031_v31 }
 0x5d6   :  { %7032 = vrcp.f32 %v1055_v32 }
 0x5dc   :  { %v7033_v35 = vpop.eup %7032 }
 0x5dd   :  { %v1058_v36 = vpop.f32.mrf.mxu3  ;;  %6340 = vmatmul.msk.f32.gmra.mxu3 %vm1065_vm9, %v7033_v35 }
 0x5de   :  { %7034 = vrcp.f32 %v1058_v36 }
 0x5e4   :  { %v7035_v37 = vpop.eup %7034 }
 0x5e5   :  { %6341 = vmatmul.msk.f32.gmra.mxu3 %vm1065_vm9, %v7035_v37 }
 0x64f   :  { %v1099_v43 = vpop.f32.mrf.mxu3 }
 0x650   :  { %v1111_v45 = vmul.f32 %v7021_v11, %v1099_v43  ;;  %v9130_v11 = vld [vmem:[%s8586_s30 + $0x30] sm:$0xff] }
 0x651   :  { %1169 = vmatpush.msrb.mxu0 %v9130_v11  ;;  %6806 = vmatpush.msrb.mxu2 %v9130_v11 }
 0x652   :  { %6342 = vmatmul.msk.f32.vlgmr.msrb.gmra.mxu1 %vm995_vm7, %v1111_v45 }
 0x653   :  { %1170 = vmatpush.msrb.mxu0 %v9135_v12  ;;  %6807 = vmatpush.msrb.mxu2 %v9135_v12 }
 0x655   :  { %1171 = vmatpush.msrb.mxu0 %v9140_v13  ;;  %6808 = vmatpush.msrb.mxu2 %v9140_v13 }
 0x657   :  { %1172 = vmatpush.msrb.mxu0 %v9146_v17  ;;  %6809 = vmatpush.msrb.mxu2 %v9146_v17 }
 0x658   :  { %v1102_v7 = vpop.f32.mrf.mxu3 }
 0x659   :  { %v1112_v9 = vmul.f32 %v7023_v15, %v1102_v7  ;;  %1173 = vmatpush.msrb.mxu0 %v9152_v18  ;;  %6810 = vmatpush.msrb.mxu2 %v9152_v18 }
 0x65b   :  { %6343 = vmatmul.msk.f32.gmra.mxu1 %vm995_vm7, %v1112_v9  ;;  %1174 = vmatpush.msrb.mxu0 %v9162_v21 }
 0x65c   :  { %6811 = vmatpush.msrb.mxu2 %v9162_v21 }
 0x65d   :  { %1175 = vmatpush.msrb.mxu0 %v9166_v25 }
 0x65e   :  { %6812 = vmatpush.msrb.mxu2 %v9166_v25 }
 0x660   :  { %v1105_v14 = vpop.f32.mrf.mxu3  ;;  %1223 = vmatpush.bf16.msra.mxu2 %v6746_v5 }
 0x661   :  { %v1113_v15 = vmul.f32 %v9067_v20, %v1105_v14 }
 0x663   :  { %6344 = vmatmul.msk.f32.gmra.mxu1 %vm995_vm7, %v1113_v15 }
 0x668   :  { %v1108_v19 = vpop.f32.mrf.mxu3 }
 0x669   :  { %v1114_v20 = vmul.f32 %v9071_v23, %v1108_v19  ;;  %v930_v23 = vsel %vm915_vm5, %v929_v29, %v8936_v47  ;;  %v6745_v47 = vld [vmem:[%s11012_s29] sm:$0xff] }
 0x66a   :  { %v931_v30 = vsel %vm917_vm6, %v930_v23, %v9040_v28  ;;  %1224 = vmatpush.bf16.msra.mxu2 %v6745_v47 }
 0x66b   :  { %6345 = vmatmul.msk.f32.gmra.mxu1 %vm995_vm7, %v1114_v20  ;;  %v6974_v20 = vld [vmem:[#allocation7] ss:$0 sm:$0xff] }
 0x6cf   :  { %v1144_v31 = vpop.f32.mrf.mxu1 }
 0x6d0   :  { %v1156_v32 = vmul.f32 %v1144_v31, %v931_v30 }
 0x6d2   :  { %1176 = vmatmul.f32.vlgmr.msrb.gmra.mxu0 %v1156_v32  ;;  %v9188_v32 = vld [vmem:[%s11013_s23 + $0x38] sm:$0xff] }
 0x6d3   :  { %1286 = vmatpush.msra.mxu3 %v9188_v32 }
 0x6d8   :  { %v1147_v35 = vpop.f32.mrf.mxu1 }
 0x6d9   :  { %v1157_v36 = vmul.f32 %v1147_v35, %v931_v30  ;;  %v9191_v35 = vld [vmem:[%s11013_s23 + $0x30] sm:$0xff] }
 0x6da   :  { %1287 = vmatpush.msra.mxu3 %v9191_v35 }
 0x6db   :  { %1179 = vmatmul.f32.gmra.mxu0 %v1157_v36 }
 0x6e0   :  { %v1150_v37 = vpop.f32.mrf.mxu1 }
 0x6e1   :  { %v1158_v43 = vmul.f32 %v1150_v37, %v931_v30 }
 0x6e3   :  { %1182 = vmatmul.f32.vlgmr.msrb.gmra.mxu2 %v1158_v43 }
 0x6e4   :  { %1601 = vmatpush.msrb.mxu2 %v9188_v32 }
 0x6e6   :  { %1602 = vmatpush.msrb.mxu2 %v9191_v35 }
 0x6e8   :  { %v1153_v45 = vpop.f32.mrf.mxu1 }
 0x6e9   :  { %v1159_v7 = vmul.f32 %v1153_v45, %v931_v30 }
 0x6eb   :  { %1185 = vmatmul.f32.gmra.mxu2 %v1159_v7 }
 0x74f   :  { %v1177_v16 = vpop.f32.mrf.mxu0 }
 0x758   :  { %v1180_v28 = vpop.f32.mrf.mxu0 }
 0x759   :  { %v1194_v9 = vpack.c.bf16 %v1180_v28, %v1177_v16 }
 0x75b   :  { %6354 = vmatmul.msk.bf16.vlgmr.msra.gmra.mxu2 %vm876_vm4, %v1194_v9 }
 0x766   :  { %v1183_v14 = vpop.f32.mrf.mxu2 }
 0x76e   :  { %v1186_v15 = vpop.f32.mrf.mxu2 }
 0x76f   :  { %v1195_v19 = vpack.c.bf16 %v1186_v15, %v1183_v14  ;;  %v9217_v14 = vld [vmem:[%s11013_s23 + $0x28] sm:$0xff]  ;;  %v9225_v15 = vld [vmem:[%s11013_s23 + $0x18] sm:$0xff] }
 0x770   :  { %1288 = vmatpush.msra.mxu3 %v9217_v14  ;;  %1603 = vmatpush.msrb.mxu2 %v9217_v14 }
 0x771   :  { %6355 = vmatmul.msk.bf16.gmra.mxu2 %vm876_vm4, %v1195_v19  ;;  %v9235_v19 = vld [vmem:[%s11013_s23 + $0x8] sm:$0xff] }
 0x772   :  { %11014 = vst [vmem:[#allocation110_spill] sm:$0xff] %v9235_v19 }
 0x7de   :  { %v1226_v29 = vpop.f32.mrf.mxu2 }
 0x7df   :  { %v1227_v23 = vadd.f32 %v6974_v20, %v1226_v29 }
 0x7e1   :  { %v9183_v30 = vadd.f32 %v1227_v23, %v8915_v33 }
 0x7e3   :  { %v1242_v31 = vmul.f32 %v9183_v30, %v9183_v30 }
 0x7e5   :  { %1250 = vrot.lane.b32.xlu1 %v1242_v31, %s8340_s0 }
 0x7e6   :  { %v1228_v36 = vpop.f32.mrf.mxu2 }
 0x7e7   :  { %v1229_v33 = vadd.f32 %v6974_v20, %v1228_v36 }
 0x7e9   :  { %v9199_v37 = vadd.f32 %v1229_v33, %v8917_v34 }
 0x7eb   :  { %v1243_v43 = vmul.f32 %v9199_v37, %v9199_v37 }
 0x7ed   :  { %1252 = vrot.lane.b32.xlu2 %v1243_v43, %s8340_s0 }
 0x7f4   :  { %v1231_v45 = vpop.f32.mrf.mxu2 }
 0x7f5   :  { %v1232_v7 = vadd.f32 %v6974_v20, %v1231_v45 }
 0x7f7   :  { %v9205_v5 = vadd.f32 %v1232_v7, %v8922_v38  ;;  %v9220_v38 = vld [vmem:[%s11013_s23 + $0x20] sm:$0xff] }
 0x7f8   :  { %1289 = vmatpush.msra.mxu3 %v9220_v38  ;;  %1604 = vmatpush.msrb.mxu2 %v9220_v38 }
 0x7f9   :  { %v1244_v47 = vmul.f32 %v9205_v5, %v9205_v5 }
 0x7fa   :  { %1290 = vmatpush.msra.mxu3 %v9225_v15  ;;  %1605 = vmatpush.msrb.mxu2 %v9225_v15 }
 0x7fb   :  { %1254 = vrot.lane.b32.xlu0 %v1244_v47, %s8340_s0 }
 0x7fc   :  { %v1233_v34 = vpop.f32.mrf.mxu2 }
 0x7fd   :  { %v1234_v16 = vadd.f32 %v6974_v20, %v1233_v34  ;;  %v9242_v20 = vld [vmem:[%s11013_s23] sm:$0xff] }
 0x7fe   :  { %11015 = vst [vmem:[#allocation111_spill] sm:$0xff] %v9242_v20 }
 0x7ff   :  { %v9211_v28 = vadd.f32 %v1234_v16, %v8924_v39  ;;  %v9230_v39 = vld [vmem:[%s11013_s23 + $0x10] sm:$0xff] }
 0x800   :  { %1291 = vmatpush.msra.mxu3 %v9230_v39  ;;  %1606 = vmatpush.msrb.mxu2 %v9230_v39 }
 0x801   :  { %v1245_v9 = vmul.f32 %v9211_v28, %v9211_v28 }
 0x802   :  { %1292 = vmatpush.msra.mxu3 %v9235_v19  ;;  %1607 = vmatpush.msrb.mxu2 %v9235_v19 }
 0x803   :  { %1256 = vrot.lane.b32.xlu1 %v1245_v9, %s8340_s0 }
 0x804   :  { %1293 = vmatpush.msra.mxu3 %v9242_v20  ;;  %1608 = vmatpush.msrb.mxu2 %v9242_v20 }
 0x806   :  { %6410 = vmatpush.msk.msra.mxu2 %vm1078_vm8, %v9061_v8 }
 0x847   :  { %v1253_v31 = vpop.permute.xlu2 %1252 }
 0x848   :  { %v1263_v36 = vsel %vm876_vm4, %v9199_v37, %v1253_v31 }
 0x857   :  { %v1251_v29 = vpop.permute.xlu1 %1250 }
 0x858   :  { %v1262_v23 = vsel %vm876_vm4, %v9183_v30, %v1251_v29 }
 0x859   :  { %6356 = vmatmul.msk.f32.vlgmr.msra.gmra.mxu3 %vm915_vm5, %v1262_v23 }
 0x861   :  { %6357 = vmatmul.msk.f32.gmra.mxu3 %vm915_vm5, %v1263_v36  ;;  %v10943_v36 = vmov 1  }
 0x862   :  { %6911 = vset.pattern.permute.xlu0 %v10943_v36 }
 0x86d   :  { %v1255_v33 = vpop.permute.xlu0 %1254 }
 0x86e   :  { %v1264_v43 = vsel %vm876_vm4, %v9205_v5, %v1255_v33 }
 0x86f   :  { %6358 = vmatmul.msk.f32.gmra.mxu3 %vm915_vm5, %v1264_v43 }
 0x875   :  { %v1257_v45 = vpop.permute.xlu1 %1256 }
 0x876   :  { %v1265_v8 = vsel %vm876_vm4, %v9211_v28, %v1257_v45 }
 0x877   :  { %6359 = vmatmul.msk.f32.gmra.mxu3 %vm915_vm5, %v1265_v8 }
 0x8dc   :  { %v1295_v7 = vpop.f32.mrf.mxu3 }
 0x8dd   :  { %v1307_v47 = vmul.f32 %v1295_v7, %v1295_v7 }
 0x8df   :  { %1315 = vrot.lane.b32.xlu0 %v1307_v47, %s8298_s16 }
 0x8e4   :  { %v1298_v34 = vpop.f32.mrf.mxu3 }
 0x8e5   :  { %v1308_v16 = vmul.f32 %v1298_v34, %v1298_v34 }
 0x8e7   :  { %1317 = vrot.lane.b32.xlu2 %v1308_v16, %s8298_s16 }
 0x8ef   :  { %1333 = vperm.xlu2 %6910, %v1295_v7  }
 0x8f2   :  { %v1301_v9 = vpop.f32.mrf.mxu3 }
 0x8f3   :  { %v1309_v29 = vmul.f32 %v1301_v9, %v1301_v9 }
 0x8f5   :  { %1319 = vrot.lane.b32.xlu1 %v1309_v29, %s8298_s16 }
 0x8f7   :  { %6912 = vset.pattern.permute.xlu2 %v10943_v36 }
 0x8fa   :  { %v1304_v23 = vpop.f32.mrf.mxu3 }
 0x8fb   :  { %v1310_v31 = vmul.f32 %v1304_v23, %v1304_v23 }
 0x8fd   :  { %1338 = vperm.xlu1 %6909, %v1298_v34   ;;  %1321 = vrot.lane.b32.xlu0 %v1310_v31, %s8298_s16 }
 0x905   :  { %1343 = vperm.xlu1 %6909, %v1301_v9  }
 0x90d   :  { %6914 = vset.pattern.permute.xlu1 %v10943_v36 }
 0x941   :  { %v1318_v33 = vpop.permute.xlu2 %1317 }
 0x942   :  { %v1328_v43 = vsub.f32 %v1298_v34, %v1318_v33  ;;  %v11016_v33 = vmov 0  }
 0x944   :  { %v1356_v45 = vadd.f32 1e-05, %v1328_v43 }
 0x946   :  { %7036 = vrsqrt.f32 %v1356_v45  ;;  %vm1375_vm11 = vweird.f32 %v1356_v45 }
 0x94c   :  { %v7037_v8 = vpop.eup %7036 }
 0x94d   :  { %v1370_v47 = vmul.f32 %v7037_v8, %v1356_v45  ;;  %vm1376_vm10 = vweird.f32 %v7037_v8 }
 0x94e   :  { %vm1377_vm12 = vmor %vm1375_vm11, %vm1376_vm10 }
 0x94f   :  { %v1371_v16 = vmul.f32 %v7037_v8, %v1370_v47 }
 0x951   :  { %v1316_v29 = vpop.permute.xlu0 %1315  ;;  %v1372_v24 = vmul.f32 0.5, %v1371_v16 }
 0x952   :  { %v1327_v0 = vsub.f32 %v1295_v7, %v1316_v29 }
 0x953   :  { %v1373_v22 = vsub.f32 1.5, %v1372_v24 }
 0x954   :  { %v1355_v31 = vadd.f32 1e-05, %v1327_v0 }
 0x955   :  { %v1374_v27 = vmul.f32 %v7037_v8, %v1373_v22 }
 0x956   :  { %7038 = vrsqrt.f32 %v1355_v31  ;;  %vm1365_vm14 = vweird.f32 %v1355_v31 }
 0x957   :  { %v1378_v26 = vsel %vm1377_vm12, %v7037_v8, %v1374_v27 }
 0x958   :  { %1406 = vperm.xlu2 %6912, %v1378_v26  }
 0x95c   :  { %v7039_v36 = vpop.eup %7038 }
 0x95d   :  { %v1360_v20 = vmul.f32 %v7039_v36, %v1355_v31  ;;  %vm1366_vm13 = vweird.f32 %v7039_v36 }
 0x95e   :  { %vm1367_vm15 = vmor %vm1365_vm14, %vm1366_vm13 }
 0x95f   :  { %v1361_v34 = vmul.f32 %v7039_v36, %v1360_v20 }
 0x960   :  { %6913 = vset.pattern.permute.xlu2 %v11016_v33 }
 0x961   :  { %1348 = vperm.xlu2 %6913, %v1304_v23   ;;  %v1362_v43 = vmul.f32 0.5, %v1361_v34 }
 0x963   :  { %v1363_v47 = vsub.f32 1.5, %v1362_v43 }
 0x965   :  { %v1364_v16 = vmul.f32 %v7039_v36, %v1363_v47 }
 0x967   :  { %v1320_v24 = vpop.permute.xlu1 %1319  ;;  %v1368_v0 = vsel %vm1367_vm15, %v7039_v36, %v1364_v16 }
 0x968   :  { %v1329_v22 = vsub.f32 %v1301_v9, %v1320_v24  ;;  %1401 = vperm.xlu0 %6911, %v1368_v0  }
 0x96a   :  { %v1357_v7 = vadd.f32 1e-05, %v1329_v22  ;;  %v6747_v22 = vld [vmem:[#allocation8] sm:$0xff] }
 0x96c   :  { %7040 = vrsqrt.f32 %v1357_v7  ;;  %vm1385_vm1 = vweird.f32 %v1357_v7 }
 0x96f   :  { %v1322_v27 = vpop.permute.xlu0 %1321 }
 0x970   :  { %v1330_v26 = vsub.f32 %v1304_v23, %v1322_v27  ;;  %v1339_v27 = vpop.permute.xlu1 %1338 }
 0x972   :  { %v7041_v45 = vpop.eup %7040  ;;  %v1358_v8 = vadd.f32 1e-05, %v1330_v26 }
 0x973   :  { %v1380_v20 = vmul.f32 %v7041_v45, %v1357_v7  ;;  %vm1386_vm0 = vweird.f32 %v7041_v45  ;;  %v1334_v7 = vpop.permute.xlu2 %1333 }
 0x974   :  { %7042 = vrsqrt.f32 %v1358_v8  ;;  %vm1387_vm2 = vmor %vm1385_vm1, %vm1386_vm0  ;;  %vm1395_vm10 = vweird.f32 %v1358_v8 }
 0x975   :  { %v1381_v29 = vmul.f32 %v7041_v45, %v1380_v20 }
 0x977   :  { %v1382_v19 = vmul.f32 0.5, %v1381_v29 }
 0x979   :  { %v1383_v34 = vsub.f32 1.5, %v1382_v19  ;;  %v6748_v19 = vld [vmem:[#allocation8 + $0x8] sm:$0xff] }
 0x97a   :  { %v7043_v43 = vpop.eup %7042  ;;  %1471 = vmatpush.bf16.msra.mxu1 %v6748_v19 }
 0x97b   :  { %v1390_v47 = vmul.f32 %v7043_v43, %v1358_v8  ;;  %v1384_v31 = vmul.f32 %v7041_v45, %v1383_v34  ;;  %vm1396_vm3 = vweird.f32 %v7043_v43 }
 0x97c   :  { %vm1397_vm11 = vmor %vm1395_vm10, %vm1396_vm3 }
 0x97d   :  { %v1391_v36 = vmul.f32 %v7043_v43, %v1390_v47  ;;  %v1388_v9 = vsel %vm1387_vm2, %v7041_v45, %v1384_v31 }
 0x97e   :  { %1411 = vperm.xlu1 %6914, %v1388_v9   ;;  %1472 = vmatpush.bf16.msra.mxu1 %v6747_v22 }
 0x97f   :  { %v1392_v16 = vmul.f32 0.5, %v1391_v36 }
 0x981   :  { %v1393_v24 = vsub.f32 1.5, %v1392_v16 }
 0x982   :  { %1863 = vmatpush.msrb.mxu1 %v8957_v50  ;;  %v1352_v50 = vsub.f32 %v9199_v37, %v1339_v27 }
 0x983   :  { %v1394_v23 = vmul.f32 %v7043_v43, %v1393_v24 }
 0x984   :  { %1864 = vmatpush.msrb.mxu1 %v8960_v51  ;;  %v6975_v51 = vld [vmem:[#allocation13] ss:$0 sm:$0xff] }
 0x985   :  { %v1398_v0 = vsel %vm1397_vm11, %v7043_v43, %v1394_v23 }
 0x986   :  { %1416 = vperm.xlu0 %6911, %v1398_v0   ;;  %1865 = vmatpush.msrb.mxu1 %v8964_v52 }
 0x988   :  { %1866 = vmatpush.msrb.mxu1 %v8968_v53  ;;  %v1351_v53 = vsub.f32 %v9183_v30, %v1334_v7  ;;  %v6749_v30 = vld [vmem:[%s11017_s9] sm:$0xff] }
 0x98a   :  { %1867 = vmatpush.msrb.mxu1 %v8972_v54 }
 0x98c   :  { %1868 = vmatpush.msrb.mxu1 %v8977_v55  ;;  %v6976_v55 = vld [vmem:[#allocation14] ss:$0 sm:$0xff] }
 0x98e   :  { %6915 = vset.pattern.permute.xlu0 %v11016_v33  ;;  %1869 = vmatpush.msrb.mxu1 %v8981_v56 }
 0x990   :  { %1870 = vmatpush.msrb.mxu1 %v8984_v57 }
 0x992   :  { %1871 = vmatpush.msrb.mxu1 %v8988_v58 }
 0x994   :  { %1872 = vmatpush.msrb.mxu1 %v8993_v59 }
 0x996   :  { %1873 = vmatpush.msrb.mxu1 %v8997_v60 }
 0x998   :  { %1874 = vmatpush.msrb.mxu1 %v9000_v61 }
 0x99a   :  { %1875 = vmatpush.msrb.mxu1 %v9004_v62  ;;  %v1344_v62 = vpop.permute.xlu1 %1343 }
 0x99c   :  { %1876 = vmatpush.msrb.mxu1 %v9009_v63 }
 0x99e   :  { %1877 = vmatpush.msrb.mxu1 %v9013_v1  ;;  %v1353_v1 = vsub.f32 %v9205_v5, %v1344_v62 }
 0x9a0   :  { %1878 = vmatpush.msrb.mxu1 %v9016_v2 }
 0x9b2   :  { %v1407_v26 = vpop.permute.xlu2 %1406 }
 0x9b3   :  { %v1420_v52 = vmul.f32 %v1407_v26, %v1352_v50 }
 0x9b5   :  { %v1427_v56 = vmul.f32 %v6975_v51, %v1420_v52 }
 0x9b7   :  { %v9286_v59 = vadd.f32 %v6976_v55, %v1427_v56  ;;  %v11018_v56 = vld [vmem:[#allocation110_spill] sm:$0xff] }
 0x9bb   :  { %v1349_v2 = vpop.permute.xlu2 %1348 }
 0x9da   :  { %v1402_v54 = vpop.permute.xlu0 %1401 }
 0x9db   :  { %v1419_v57 = vmul.f32 %v1402_v54, %v1351_v53 }
 0x9dd   :  { %v1426_v58 = vmul.f32 %v6975_v51, %v1419_v57  ;;  %v11019_v57 = vld [vmem:[#allocation111_spill] sm:$0xff] }
 0x9df   :  { %v9288_v60 = vadd.f32 %v6976_v55, %v1426_v58 }
 0x9e1   :  { %v1442_v61 = vpack.c.bf16 %v9286_v59, %v9288_v60 }
 0x9e3   :  { %6368 = vmatmul.msk.bf16.vlgmr.msra.gmra.mxu1 %vm876_vm4, %v1442_v61 }
 0x9e4   :  { %2051 = vmatpush.msra.mxu1 %v9086_v40 }
 0x9e6   :  { %2052 = vmatpush.msra.mxu1 %v9089_v41  ;;  %v1354_v41 = vsub.f32 %v9211_v28, %v1349_v2 }
 0x9e8   :  { %2053 = vmatpush.msra.mxu1 %v9094_v42 }
 0x9ea   :  { %2054 = vmatpush.msra.mxu1 %v9099_v44 }
 0x9ec   :  { %2055 = vmatpush.msra.mxu1 %v9104_v46 }
 0x9ee   :  { %2056 = vmatpush.msra.mxu1 %v9109_v48 }
 0x9f0   :  { %2057 = vmatpush.msra.mxu1 %v9114_v4  ;;  %v1412_v63 = vpop.permute.xlu1 %1411 }
 0x9f1   :  { %v1421_v40 = vmul.f32 %v1412_v63, %v1353_v1 }
 0x9f2   :  { %2058 = vmatpush.msra.mxu1 %v9119_v6 }
 0x9f3   :  { %v1428_v44 = vmul.f32 %v6975_v51, %v1421_v40 }
 0x9f4   :  { %2059 = vmatpush.msra.mxu1 %v9124_v10 }
 0x9f5   :  { %v1435_v4 = vadd.f32 %v6976_v55, %v1428_v44 }
 0x9f6   :  { %2060 = vmatpush.msra.mxu1 %v9130_v11  ;;  %v6752_v11 = vld [vmem:[%s11017_s9 + $0x18] sm:$0xff] }
 0x9f7   :  { %1536 = vmatpush.bf16.msra.mxu0 %v6752_v11 }
 0x9f8   :  { %v1417_v42 = vpop.permute.xlu0 %1416  ;;  %2061 = vmatpush.msra.mxu1 %v9135_v12  ;;  %v6751_v12 = vld [vmem:[%s11017_s9 + $0x10] sm:$0xff] }
 0x9f9   :  { %v1422_v46 = vmul.f32 %v1417_v42, %v1354_v41 }
 0x9fa   :  { %2062 = vmatpush.msra.mxu1 %v9140_v13  ;;  %v6750_v13 = vld [vmem:[%s11017_s9 + $0x8] sm:$0xff] }
 0x9fb   :  { %v1429_v48 = vmul.f32 %v6975_v51, %v1422_v46  ;;  %1537 = vmatpush.bf16.msra.mxu0 %v6751_v12 }
 0x9fc   :  { %2063 = vmatpush.msra.mxu1 %v9146_v17 }
 0x9fd   :  { %v1436_v6 = vadd.f32 %v6976_v55, %v1429_v48 }
 0x9fe   :  { %2064 = vmatpush.msra.mxu1 %v9152_v18  ;;  %v6977_v18 = vld [vmem:[#allocation10] ss:$0 sm:$0xff] }
 0x9ff   :  { %v1443_v10 = vpack.c.bf16 %v1436_v6, %v1435_v4  ;;  %1538 = vmatpush.bf16.msra.mxu0 %v6750_v13 }
 0xa00   :  { %2065 = vmatpush.msra.mxu1 %v9162_v21 }
 0xa01   :  { %6369 = vmatmul.msk.bf16.gmra.mxu1 %vm876_vm4, %v1443_v10 }
 0xa02   :  { %2066 = vmatpush.msra.mxu1 %v9166_v25 }
 0xa03   :  { %1539 = vmatpush.bf16.msra.mxu0 %v6749_v30 }
 0xa07   :  { %1942 = vmatpush.msrb.mxu0 %v9053_v49  ;;  %v6978_v49 = vld [vmem:[#allocation11] ss:$0 sm:$0xff] }
 0xa09   :  { %1943 = vmatpush.msrb.mxu0 %v9057_v3 }
 0xa60   :  { %v1474_v17 = vpop.f32.mrf.mxu1 }
 0xa61   :  { %v1475_v37 = vadd.f32 %v6977_v18, %v1474_v17 }
 0xa63   :  { %v1484_v28 = vmax.f32 %v1475_v37, 0.0 }
 0xa68   :  { %v1476_v21 = vpop.f32.mrf.mxu1 }
 0xa69   :  { %v1477_v5 = vadd.f32 %v6977_v18, %v1476_v21 }
 0xa6b   :  { %v1485_v45 = vmax.f32 %v1477_v5, 0.0 }
 0xa6d   :  { %v1497_v25 = vpack.c.bf16 %v1485_v45, %v1484_v28 }
 0xa6f   :  { %6386 = vmatmul.msk.bf16.vlgmr.msra.gmra.mxu0 %vm915_vm5, %v1497_v25 }
 0xa7e   :  { %v1479_v8 = vpop.f32.mrf.mxu1 }
 0xa7f   :  { %v1480_v20 = vadd.f32 %v6977_v18, %v1479_v8 }
 0xa81   :  { %v1486_v43 = vmax.f32 %v1480_v20, 0.0 }
 0xa86   :  { %v1481_v29 = vpop.f32.mrf.mxu1 }
 0xa87   :  { %v1482_v34 = vadd.f32 %v6977_v18, %v1481_v29 }
 0xa89   :  { %v1487_v47 = vmax.f32 %v1482_v34, 0.0 }
 0xa8b   :  { %v1498_v31 = vpack.c.bf16 %v1487_v47, %v1486_v43 }
 0xa8d   :  { %6387 = vmatmul.msk.bf16.gmra.mxu0 %vm915_vm5, %v1498_v31 }
 0xaec   :  { %v1541_v3 = vpop.f32.mrf.mxu0 }
 0xaed   :  { %v1542_v36 = vadd.f32 %v6978_v49, %v1541_v3 }
 0xaef   :  { %v9322_v9 = vadd.f32 %v1542_v36, %v9288_v60 }
 0xaf1   :  { %v1557_v16 = vmul.f32 %v9322_v9, %v9322_v9 }
 0xaf3   :  { %1565 = vrot.lane.b32.xlu2 %v1557_v16, %s8340_s0 }
 0xaf4   :  { %v1543_v24 = vpop.f32.mrf.mxu0 }
 0xaf5   :  { %v1544_v23 = vadd.f32 %v6978_v49, %v1543_v24 }
 0xaf7   :  { %v9328_v0 = vadd.f32 %v1544_v23, %v9286_v59 }
 0xaf9   :  { %v1558_v19 = vmul.f32 %v9328_v0, %v9328_v0 }
 0xafb   :  { %1567 = vrot.lane.b32.xlu1 %v1558_v19, %s8340_s0 }
 0xb0a   :  { %v1546_v22 = vpop.f32.mrf.mxu0 }
 0xb0b   :  { %v1547_v7 = vadd.f32 %v6978_v49, %v1546_v22 }
 0xb0d   :  { %v9333_v27 = vadd.f32 %v1547_v7, %v1435_v4  ;;  %v11020_v4 = vmov 1  }
 0xb0f   :  { %v1559_v26 = vmul.f32 %v9333_v27, %v9333_v27 }
 0xb11   :  { %1569 = vrot.lane.b32.xlu0 %v1559_v26, %s8340_s0 }
 0xb12   :  { %v1548_v50 = vpop.f32.mrf.mxu0 }
 0xb13   :  { %v1549_v51 = vadd.f32 %v6978_v49, %v1548_v50 }
 0xb15   :  { %v9338_v52 = vadd.f32 %v1549_v51, %v1436_v6 }
 0xb17   :  { %v1560_v53 = vmul.f32 %v9338_v52, %v9338_v52 }
 0xb19   :  { %1571 = vrot.lane.b32.xlu2 %v1560_v53, %s8340_s0 }
 0xb4d   :  { %v1566_v54 = vpop.permute.xlu2 %1565 }
 0xb4e   :  { %v1577_v55 = vsel %vm876_vm4, %v9322_v9, %v1566_v54 }
 0xb4f   :  { %6388 = vmatmul.msk.f32.vlgmr.msrb.gmra.mxu2 %vm915_vm5, %v1577_v55 }
 0xb50   :  { %2181 = vmatpush.msrb.mxu2 %v9188_v32 }
 0xb52   :  { %2182 = vmatpush.msrb.mxu2 %v9191_v35 }
 0xb54   :  { %2183 = vmatpush.msrb.mxu2 %v9217_v14 }
 0xb56   :  { %2184 = vmatpush.msrb.mxu2 %v9220_v38 }
 0xb58   :  { %2185 = vmatpush.msrb.mxu2 %v9225_v15 }
 0xb5a   :  { %2186 = vmatpush.msrb.mxu2 %v9230_v39 }
 0xb5c   :  { %2187 = vmatpush.msrb.mxu2 %v11018_v56 }
 0xb5e   :  { %2188 = vmatpush.msrb.mxu2 %v11019_v57 }
 0xb6d   :  { %v1568_v58 = vpop.permute.xlu1 %1567 }
 0xb6e   :  { %v1578_v59 = vsel %vm876_vm4, %v9328_v0, %v1568_v58 }
 0xb6f   :  { %6389 = vmatmul.msk.f32.gmra.mxu2 %vm915_vm5, %v1578_v59 }
 0xb73   :  { %v1572_v62 = vpop.permute.xlu2 %1571 }
 0xb74   :  { %v1580_v63 = vsel %vm876_vm4, %v9338_v52, %v1572_v62  ;;  %v6754_v62 = vld [vmem:[%s11007_s18 + $0x18] sm:$0xff] }
 0xb75   :  { %1788 = vmatpush.bf16.msrb.mxu3 %v6754_v62 }
 0xb83   :  { %v1570_v60 = vpop.permute.xlu0 %1569 }
 0xb84   :  { %v1579_v61 = vsel %vm876_vm4, %v9333_v27, %v1570_v60 }
 0xb85   :  { %6390 = vmatmul.msk.f32.gmra.mxu2 %vm915_vm5, %v1579_v61 }
 0xb8d   :  { %6391 = vmatmul.msk.f32.gmra.mxu2 %vm915_vm5, %v1580_v63  ;;  %v6753_v63 = vld [vmem:[%s11007_s18 + $0x10] sm:$0xff] }
 0xb8e   :  { %1789 = vmatpush.bf16.msrb.mxu3 %v6753_v63 }
 0xbd2   :  { %v1610_v1 = vpop.f32.mrf.mxu2 }
 0xbd3   :  { %v1622_v2 = vmul.f32 %v1610_v1, %v1610_v1 }
 0xbd5   :  { %1630 = vrot.lane.b32.xlu1 %v1622_v2, %s8298_s16  ;;  %v11022_v2 = vld [vmem:[#allocation109_spill] sm:$0xff] }
 0xbf2   :  { %v1613_v40 = vpop.f32.mrf.mxu2 }
 0xbf3   :  { %v1623_v41 = vmul.f32 %v1613_v40, %v1613_v40 }
 0xbf5   :  { %1632 = vrot.lane.b32.xlu0 %v1623_v41, %s8298_s16 }
 0xbfd   :  { %1648 = vperm.xlu0 %6915, %v1610_v1  }
 0xc08   :  { %v1616_v42 = vpop.f32.mrf.mxu2 }
 0xc09   :  { %v1624_v44 = vmul.f32 %v1616_v42, %v1616_v42 }
 0xc0b   :  { %1634 = vrot.lane.b32.xlu2 %v1624_v44, %s8298_s16 }
 0xc10   :  { %v1619_v46 = vpop.f32.mrf.mxu2 }
 0xc11   :  { %1663 = vperm.xlu0 %6915, %v1619_v46   ;;  %v1625_v48 = vmul.f32 %v1619_v46, %v1619_v46 }
 0xc13   :  { %1653 = vperm.xlu2 %6913, %v1613_v40   ;;  %1636 = vrot.lane.b32.xlu1 %v1625_v48, %s8298_s16 }
 0xc19   :  { %6921 = vset.pattern.permute.xlu0 %v11020_v4 }
 0xc1b   :  { %6916 = vset.pattern.permute.xlu2 %v11020_v4 }
 0xc47   :  { %v1631_v6 = vpop.permute.xlu1 %1630 }
 0xc48   :  { %v1642_v10 = vsub.f32 %v1610_v1, %v1631_v6  ;;  %v11021_v1 = vld [vmem:[#allocation108_spill] sm:$0xff] }
 0xc49   :  { %2032 = vmatpush.msra.mxu3 %v11021_v1 }
 0xc4a   :  { %v1670_v11 = vadd.f32 1e-05, %v1642_v10 }
 0xc4b   :  { %2033 = vmatpush.msra.mxu3 %v11022_v2 }
 0xc4c   :  { %7044 = vrsqrt.f32 %v1670_v11  ;;  %vm1680_vm13 = vweird.f32 %v1670_v11 }
 0xc52   :  { %v7045_v12 = vpop.eup %7044 }
 0xc53   :  { %v1675_v13 = vmul.f32 %v7045_v12, %v1670_v11  ;;  %vm1681_vm12 = vweird.f32 %v7045_v12  ;;  %v6980_v11 = vld [vmem:[#allocation17] ss:$0 sm:$0xff] }
 0xc54   :  { %vm1682_vm14 = vmor %vm1680_vm13, %vm1681_vm12 }
 0xc55   :  { %v1676_v30 = vmul.f32 %v7045_v12, %v1675_v13 }
 0xc57   :  { %v1677_v17 = vmul.f32 0.5, %v1676_v30 }
 0xc59   :  { %v1678_v18 = vsub.f32 1.5, %v1677_v17 }
 0xc5b   :  { %v1679_v37 = vmul.f32 %v7045_v12, %v1678_v18 }
 0xc5d   :  { %v1683_v21 = vsel %vm1682_vm14, %v7045_v12, %v1679_v37 }
 0xc5e   :  { %1716 = vperm.xlu1 %6914, %v1683_v21  }
 0xc65   :  { %v1635_v5 = vpop.permute.xlu2 %1634 }
 0xc66   :  { %v1644_v28 = vsub.f32 %v1616_v42, %v1635_v5  ;;  %6917 = vset.pattern.permute.xlu1 %v11016_v33 }
 0xc67   :  { %1658 = vperm.xlu1 %6917, %v1616_v42   ;;  %v1633_v45 = vpop.permute.xlu0 %1632 }
 0xc68   :  { %v1672_v25 = vadd.f32 1e-05, %v1644_v28  ;;  %v1643_v8 = vsub.f32 %v1613_v40, %v1633_v45 }
 0xc6a   :  { %7046 = vrsqrt.f32 %v1672_v25  ;;  %v1671_v20 = vadd.f32 1e-05, %v1643_v8  ;;  %vm1700_vm3 = vweird.f32 %v1672_v25 }
 0xc6c   :  { %7048 = vrsqrt.f32 %v1671_v20  ;;  %vm1690_vm0 = vweird.f32 %v1671_v20 }
 0xc6d   :  { %v1654_v40 = vpop.permute.xlu2 %1653 }
 0xc6e   :  { %v1667_v6 = vsub.f32 %v9328_v0, %v1654_v40 }
 0xc6f   :  { %6918 = vset.pattern.permute.xlu1 %v11020_v4  ;;  %v1649_v41 = vpop.permute.xlu0 %1648 }
 0xc70   :  { %v7047_v29 = vpop.eup %7046  ;;  %v1666_v44 = vsub.f32 %v9322_v9, %v1649_v41 }
 0xc71   :  { %v1695_v34 = vmul.f32 %v7047_v29, %v1672_v25  ;;  %vm1701_vm2 = vweird.f32 %v7047_v29 }
 0xc72   :  { %v7049_v43 = vpop.eup %7048  ;;  %vm1702_vm10 = vmor %vm1700_vm3, %vm1701_vm2 }
 0xc73   :  { %v1685_v47 = vmul.f32 %v7049_v43, %v1671_v20  ;;  %v1696_v31 = vmul.f32 %v7047_v29, %v1695_v34  ;;  %vm1691_vm15 = vweird.f32 %v7049_v43 }
 0xc74   :  { %vm1692_vm1 = vmor %vm1690_vm0, %vm1691_vm15 }
 0xc75   :  { %v1686_v49 = vmul.f32 %v7049_v43, %v1685_v47  ;;  %v1697_v16 = vmul.f32 0.5, %v1696_v31  ;;  %v6981_v31 = vld [vmem:[#allocation5 + $0x1] ss:$0 sm:$0xff] }
 0xc77   :  { %v1687_v3 = vmul.f32 0.5, %v1686_v49  ;;  %v1698_v19 = vsub.f32 1.5, %v1697_v16 }
 0xc79   :  { %v1688_v36 = vsub.f32 1.5, %v1687_v3  ;;  %v1699_v22 = vmul.f32 %v7047_v29, %v1698_v19 }
 0xc7b   :  { %v1689_v24 = vmul.f32 %v7049_v43, %v1688_v36  ;;  %v1703_v26 = vsel %vm1702_vm10, %v7047_v29, %v1699_v22 }
 0xc7d   :  { %v1693_v23 = vsel %vm1692_vm1, %v7049_v43, %v1689_v24 }
 0xc7e   :  { %1721 = vperm.xlu2 %6916, %v1693_v23  }
 0xc83   :  { %v1664_v28 = vpop.permute.xlu0 %1663 }
 0xc84   :  { %v1669_v45 = vsub.f32 %v9338_v52, %v1664_v28 }
 0xc85   :  { %v1637_v7 = vpop.permute.xlu1 %1636 }
 0xc86   :  { %v1645_v50 = vsub.f32 %v1619_v46, %v1637_v7  ;;  %1726 = vperm.xlu2 %6916, %v1703_v26   ;;  %v6979_v46 = vld [vmem:[#allocation16] ss:$0 sm:$0xff] }
 0xc88   :  { %v1673_v51 = vadd.f32 1e-05, %v1645_v50 }
 0xc8a   :  { %7050 = vrsqrt.f32 %v1673_v51  ;;  %vm1710_vm12 = vweird.f32 %v1673_v51 }
 0xc8e   :  { %6920 = vset.pattern.permute.xlu2 %v11016_v33 }
 0xc90   :  { %v7051_v53 = vpop.eup %7050 }
 0xc91   :  { %v1705_v54 = vmul.f32 %v7051_v53, %v1673_v51  ;;  %vm1711_vm11 = vweird.f32 %v7051_v53 }
 0xc92   :  { %vm1712_vm13 = vmor %vm1710_vm12, %vm1711_vm11 }
 0xc93   :  { %v1706_v55 = vmul.f32 %v7051_v53, %v1705_v54 }
 0xc95   :  { %v1707_v58 = vmul.f32 0.5, %v1706_v55 }
 0xc97   :  { %v1708_v59 = vsub.f32 1.5, %v1707_v58 }
 0xc99   :  { %v1709_v60 = vmul.f32 %v7051_v53, %v1708_v59 }
 0xc9b   :  { %v1713_v61 = vsel %vm1712_vm13, %v7051_v53, %v1709_v60 }
 0xc9c   :  { %1731 = vperm.xlu1 %6918, %v1713_v61  }
 0xca4   :  { %6919 = vset.pattern.permute.xlu1 %v11016_v33 }
 0xcd0   :  { %v1717_v42 = vpop.permute.xlu1 %1716 }
 0xcd1   :  { %v1734_v48 = vmul.f32 %v1717_v42, %v1666_v44 }
 0xcd3   :  { %v1741_v12 = vmul.f32 %v6979_v46, %v1734_v48 }
 0xcd5   :  { %v9379_v17 = vadd.f32 %v6980_v11, %v1741_v12 }
 0xcd8   :  { %v1722_v10 = vpop.permute.xlu2 %1721 }
 0xcd9   :  { %v1735_v13 = vmul.f32 %v1722_v10, %v1667_v6  ;;  %v1659_v21 = vpop.permute.xlu1 %1658 }
 0xcda   :  { %v1668_v5 = vsub.f32 %v9333_v27, %v1659_v21 }
 0xcdb   :  { %v1742_v30 = vmul.f32 %v6979_v46, %v1735_v13 }
 0xcdd   :  { %v9381_v18 = vadd.f32 %v6980_v11, %v1742_v30 }
 0xcdf   :  { %v1759_v37 = vpack.c.bf16 %v9381_v18, %v9379_v17 }
 0xce0   :  { %v1727_v9 = vpop.permute.xlu2 %1726 }
 0xce1   :  { %6404 = vmatmul.msk.bf16.vlgmr.msrb.gmra.mxu3 %vm876_vm4, %v1759_v37  ;;  %v1736_v0 = vmul.f32 %v1727_v9, %v1668_v5 }
 0xce3   :  { %v1743_v8 = vmul.f32 %v6979_v46, %v1736_v0 }
 0xce5   :  { %v9388_v34 = vadd.f32 %v6980_v11, %v1743_v8 }
 0xd0e   :  { %v1732_v25 = vpop.permute.xlu1 %1731 }
 0xd0f   :  { %v1737_v20 = vmul.f32 %v1732_v25, %v1669_v45 }
 0xd11   :  { %v1744_v29 = vmul.f32 %v6979_v46, %v1737_v20 }
 0xd13   :  { %v9390_v43 = vadd.f32 %v6980_v11, %v1744_v29 }
 0xd15   :  { %v1760_v47 = vpack.c.bf16 %v9390_v43, %v9388_v34 }
 0xd17   :  { %6405 = vmatmul.msk.bf16.gmra.mxu3 %vm876_vm4, %v1760_v47 }
 0xd64   :  { %v1791_v49 = vpop.f32.mrf.mxu3 }
 0xd65   :  { %v1792_v27 = vadd.f32 %v6981_v31, %v1791_v49 }
 0xd67   :  { %1829 = vrot.lane.b32.xlu2 %v1792_v27, %s8340_s0  ;;  %1802 = vrot.lane.b32.xlu0 %v1792_v27, %s8339_s1 }
 0xd6c   :  { %v1793_v52 = vpop.f32.mrf.mxu3 }
 0xd6d   :  { %v1794_v3 = vadd.f32 %v6981_v31, %v1793_v52 }
 0xd6f   :  { %1816 = vrot.lane.b32.xlu0 %v1792_v27, %s8300_s28 }
 0xd77   :  { %1835 = vrot.lane.b32.xlu0 %v1794_v3, %s8300_s28 }
 0xd9a   :  { %v1796_v36 = vpop.f32.mrf.mxu3 }
 0xd9b   :  { %v9399_v16 = vadd.f32 %v6981_v31, %v1796_v36 }
 0xd9d   :  { %1841 = vrot.lane.b32.xlu0 %v9399_v16, %s8339_s1  ;;  %1806 = vrot.lane.b32.xlu1 %v9399_v16, %s8340_s0 }
 0xda2   :  { %v1798_v24 = vpop.f32.mrf.mxu3 }
 0xda3   :  { %v1799_v23 = vadd.f32 %v6981_v31, %v1798_v24 }
 0xda5   :  { %1810 = vrot.lane.b32.xlu2 %v1799_v23, %s8300_s28  ;;  %1831 = vrot.lane.b32.xlu1 %v1794_v3, %s8340_s0 }
 0xdad   :  { %1820 = vrot.lane.b32.xlu2 %v1794_v3, %s8339_s1  ;;  %1837 = vrot.lane.b32.xlu1 %v9399_v16, %s8300_s28 }
 0xdb5   :  { %1823 = vrot.lane.b32.xlu2 %v1799_v23, %s8340_s0  ;;  %1843 = vrot.lane.b32.xlu1 %v1799_v23, %s8339_s1 }
 0xdc1   :  { %v1830_v22 = vpop.permute.xlu2 %1829 }
 0xdc2   :  { %v1847_v26 = vsel %vm876_vm4, %v1792_v27, %v1830_v22 }
 0xdd9   :  { %v1803_v19 = vpop.permute.xlu0 %1802 }
 0xdda   :  { %v1813_v53 = vsel %vm876_vm4, %v1803_v19, %v1794_v3 }
 0xde1   :  { %v9412_v7 = vpop.permute.xlu0 %1816 }
 0xde2   :  { %v1851_v51 = vsel %vm915_vm5, %v1847_v26, %v9412_v7 }
 0xde3   :  { %v1855_v58 = vsel %vm917_vm6, %v1851_v51, %v1803_v19 }
 0xde9   :  { %v1836_v63 = vpop.permute.xlu0 %1835 }
 0xdff   :  { %v1811_v50 = vpop.permute.xlu2 %1810 }
 0xe07   :  { %v9421_v61 = vpop.permute.xlu2 %1820 }
 0xe0f   :  { %v1807_v54 = vpop.permute.xlu1 %1806  ;;  %v1842_v46 = vpop.permute.xlu0 %1841 }
 0xe10   :  { %v1814_v55 = vsel %vm915_vm5, %v1813_v53, %v1807_v54  ;;  %v1849_v42 = vsel %vm876_vm4, %v9399_v16, %v1807_v54  ;;  %v9430_v6 = vpop.permute.xlu2 %1823 }
 0xe11   :  { %v1815_v59 = vsel %vm917_vm6, %v1814_v55, %v1811_v50  ;;  %v1850_v12 = vsel %vm876_vm4, %v1799_v23, %v9430_v6 }
 0xe12   :  { %v1859_v60 = vmul.f32 %v1855_v58, %v1815_v59  ;;  %v1854_v13 = vsel %vm915_vm5, %v1850_v12, %v1811_v50 }
 0xe14   :  { %1879 = vmatmul.f32.vlgmr.msrb.gmra.mxu1 %v1859_v60 }
 0xe17   :  { %v1832_v62 = vpop.permute.xlu1 %1831 }
 0xe18   :  { %v1848_v1 = vsel %vm876_vm4, %v1794_v3, %v1832_v62 }
 0xe19   :  { %v1852_v2 = vsel %vm915_vm5, %v1848_v1, %v1836_v63 }
 0xe1a   :  { %v1856_v40 = vsel %vm917_vm6, %v1852_v2, %v9421_v61 }
 0xe1b   :  { %v1860_v41 = vmul.f32 %v1856_v40, %v1815_v59 }
 0xe1d   :  { %1882 = vmatmul.f32.gmra.mxu1 %v1860_v41 }
 0xe1f   :  { %v1838_v44 = vpop.permute.xlu1 %1837 }
 0xe20   :  { %v1853_v48 = vsel %vm915_vm5, %v1849_v42, %v1838_v44 }
 0xe21   :  { %v1857_v10 = vsel %vm917_vm6, %v1853_v48, %v1842_v46  ;;  %v1826_v48 = vsel %vm876_vm4, %v9412_v7, %v9421_v61 }
 0xe22   :  { %v1861_v11 = vmul.f32 %v1857_v10, %v1815_v59  ;;  %v6756_v10 = vld [vmem:[%s11012_s29 + $0x18] sm:$0xff]  ;;  %v1827_v12 = vsel %vm915_vm5, %v1826_v48, %v9399_v16 }
 0xe23   :  { %2116 = vmatpush.bf16.msra.mxu0 %v6756_v10 }
 0xe25   :  { %1885 = vmatmul.f32.gmra.mxu1 %v1861_v11  ;;  %v6755_v11 = vld [vmem:[%s11012_s29 + $0x10] sm:$0xff] }
 0xe27   :  { %v1844_v30 = vpop.permute.xlu1 %1843  ;;  %2117 = vmatpush.bf16.msra.mxu0 %v6755_v11 }
 0xe28   :  { %v1858_v37 = vsel %vm917_vm6, %v1854_v13, %v1844_v30  ;;  %v1828_v13 = vsel %vm917_vm6, %v1827_v12, %v9430_v6 }
 0xe29   :  { %v1862_v21 = vmul.f32 %v1858_v37, %v1815_v59 }
 0xe2d   :  { %1888 = vmatmul.f32.gmra.mxu1 %v1862_v21  ;;  %v9471_v21 = vld [vmem:[%s11013_s23 + $0x38] sm:$0xff] }
 0xe91   :  { %v1880_v9 = vpop.f32.mrf.mxu1 }
 0xe92   :  { %v1892_v5 = vsel %vm995_vm7, %v1880_v9, -inf }
 0xe93   :  { %1893 = vmax.xlane.f32.xlu0 %v1892_v5 }
 0xe9a   :  { %v1883_v28 = vpop.f32.mrf.mxu1 }
 0xe9b   :  { %v1895_v0 = vsel %vm995_vm7, %v1883_v28, -inf }
 0xe9c   :  { %1896 = vmax.xlane.f32.xlu2 %v1895_v0  ;;  %v7216_v0 = vld [vmem:[%s11009_s6 + $0x68] sm:$0xff] }
 0xea2   :  { %v1886_v45 = vpop.f32.mrf.mxu1 }
 0xea3   :  { %v1898_v25 = vsel %vm995_vm7, %v1886_v45, -inf }
 0xea4   :  { %1899 = vmax.xlane.f32.xlu1 %v1898_v25  ;;  %v7218_v25 = vld [vmem:[%s11009_s6 + $0x58] sm:$0xff] }
 0xeaa   :  { %v1889_v8 = vpop.f32.mrf.mxu1 }
 0xeab   :  { %v1901_v20 = vsel %vm995_vm7, %v1889_v8, -inf }
 0xeac   :  { %1902 = vmax.xlane.f32.xlu0 %v1901_v20 }
 0xf06   :  { %v1894_v29 = vpop.xlane.xlu0 %1893 }
 0xf07   :  { %v1904_v47 = vsub.f32 %v1880_v9, %v1894_v29  ;;  %v9475_v9 = vld [vmem:[%s11013_s23 + $0x30] sm:$0xff]  ;;  %v7220_v29 = vld [vmem:[%s11009_s6 + $0x48] sm:$0xff] }
 0xf09   :  { %v1908_v31 = vmul.f32 1.442695, %v1904_v47 }
 0xf0b   :  { %7052 = vpow2.f32 %v1908_v31  ;;  %v7221_v31 = vld [vmem:[%s11009_s6 + $0x40] sm:$0xff] }
 0xf0f   :  { %v1897_v49 = vpop.xlane.xlu2 %1896 }
 0xf10   :  { %v1905_v27 = vsub.f32 %v1883_v28, %v1897_v49  ;;  %v7222_v49 = vld [vmem:[%s11009_s6 + $0x38] sm:$0xff] }
 0xf11   :  { %v7053_v52 = vpop.eup %7052 }
 0xf12   :  { %v1910_v3 = vmul.f32 1.442695, %v1905_v27  ;;  %6406 = vmatmul.msk.f32.vlgmr.msrb.gmra.mxu0 %vm995_vm7, %v7053_v52  ;;  %v7223_v27 = vld [vmem:[%s11009_s6 + $0x30] sm:$0xff] }
 0xf13   :  { %2502 = vmatpush.msrb.mxu0 %v9471_v21 }
 0xf14   :  { %7054 = vpow2.f32 %v1910_v3  ;;  %v7225_v3 = vld [vmem:[%s11009_s6 + $0x20] sm:$0xff] }
 0xf15   :  { %2503 = vmatpush.msrb.mxu0 %v9475_v9 }
 0xf17   :  { %v1900_v36 = vpop.xlane.xlu1 %1899  ;;  %2504 = vmatpush.msrb.mxu0 %v9217_v14 }
 0xf18   :  { %v1906_v24 = vsub.f32 %v1886_v45, %v1900_v36  ;;  %v7217_v45 = vld [vmem:[%s11009_s6 + $0x60] sm:$0xff]  ;;  %v7226_v36 = vld [vmem:[%s11009_s6 + $0x18] sm:$0xff] }
 0xf19   :  { %2505 = vmatpush.msrb.mxu0 %v9220_v38 }
 0xf1a   :  { %v7055_v23 = vpop.eup %7054  ;;  %v1912_v19 = vmul.f32 1.442695, %v1906_v24  ;;  %v7227_v24 = vld [vmem:[%s11009_s6 + $0x10] sm:$0xff] }
 0xf1b   :  { %6407 = vmatmul.msk.f32.gmra.mxu0 %vm995_vm7, %v7055_v23 }
 0xf1c   :  { %7056 = vpow2.f32 %v1912_v19  ;;  %2506 = vmatpush.msrb.mxu0 %v9225_v15  ;;  %v7229_v19 = vld [vmem:[%s11009_s6] sm:$0xff] }
 0xf1e   :  { %2507 = vmatpush.msrb.mxu0 %v9230_v39 }
 0xf1f   :  { %v1903_v22 = vpop.xlane.xlu0 %1902 }
 0xf20   :  { %v1907_v26 = vsub.f32 %v1889_v8, %v1903_v22  ;;  %2508 = vmatpush.msrb.mxu0 %v11018_v56  ;;  %v7219_v8 = vld [vmem:[%s11009_s6 + $0x50] sm:$0xff] }
 0xf21   :  { %v6982_v22 = vld [vmem:[#allocation7 + $0x1] ss:$0 sm:$0xff] }
 0xf22   :  { %v7057_v50 = vpop.eup %7056  ;;  %v1914_v51 = vmul.f32 1.442695, %v1907_v26  ;;  %2509 = vmatpush.msrb.mxu0 %v11019_v57 }
 0xf23   :  { %6408 = vmatmul.msk.f32.gmra.mxu0 %vm995_vm7, %v7057_v50 }
 0xf24   :  { %7058 = vpow2.f32 %v1914_v51 }
 0xf2a   :  { %v7059_v53 = vpop.eup %7058 }
 0xf2b   :  { %6409 = vmatmul.msk.f32.gmra.mxu0 %vm995_vm7, %v7059_v53 }
 0xf8f   :  { %v1945_v54 = vpop.f32.mrf.mxu0 }
 0xf90   :  { %7060 = vrcp.f32 %v1945_v54 }
 0xf96   :  { %v7061_v55 = vpop.eup %7060 }
 0xf97   :  { %6411 = vmatmul.msk.f32.vlgmr.msra.gmra.mxu2 %vm1065_vm9, %v7061_v55 }
 0xf98   :  { %v1948_v58 = vpop.f32.mrf.mxu0  ;;  %2699 = vmatpush.msra.mxu2 %v9188_v32 }
 0xf99   :  { %7062 = vrcp.f32 %v1948_v58 }
 0xf9a   :  { %2700 = vmatpush.msra.mxu2 %v9191_v35 }
 0xf9c   :  { %2701 = vmatpush.msra.mxu2 %v9217_v14 }
 0xf9e   :  { %2702 = vmatpush.msra.mxu2 %v9220_v38 }
 0xf9f   :  { %v7063_v59 = vpop.eup %7062 }
 0xfa0   :  { %v1951_v60 = vpop.f32.mrf.mxu0  ;;  %6412 = vmatmul.msk.f32.gmra.mxu2 %vm1065_vm9, %v7063_v59 }
 0xfa1   :  { %7064 = vrcp.f32 %v1951_v60  ;;  %2703 = vmatpush.msra.mxu2 %v9225_v15 }
 0xfa3   :  { %2704 = vmatpush.msra.mxu2 %v9230_v39  ;;  %v7214_v39 = vld [vmem:[%s11009_s6 + $0x78] sm:$0xff] }
 0xfa5   :  { %2705 = vmatpush.msra.mxu2 %v11018_v56  ;;  %v7215_v56 = vld [vmem:[%s11009_s6 + $0x70] sm:$0xff] }
 0xfa7   :  { %v7065_v62 = vpop.eup %7064  ;;  %2706 = vmatpush.msra.mxu2 %v11019_v57 }
 0xfa8   :  { %v1954_v32 = vpop.f32.mrf.mxu0  ;;  %6413 = vmatmul.msk.f32.gmra.mxu2 %vm1065_vm9, %v7065_v62 }
 0xfa9   :  { %7066 = vrcp.f32 %v1954_v32 }
 0xfaf   :  { %v7067_v35 = vpop.eup %7066 }
 0xfb0   :  { %6414 = vmatmul.msk.f32.gmra.mxu2 %vm1065_vm9, %v7067_v35 }
0x101a   :  { %v1990_v63 = vpop.f32.mrf.mxu2 }
0x101b   :  { %v2002_v1 = vmul.f32 %v7053_v52, %v1990_v63  ;;  %v7224_v52 = vld [vmem:[%s11009_s6 + $0x28] sm:$0xff] }
0x101d   :  { %6415 = vmatmul.msk.f32.vlgmr.msra.gmra.mxu3 %vm995_vm7, %v2002_v1 }
0x1023   :  { %v1993_v2 = vpop.f32.mrf.mxu2 }
0x1024   :  { %v2003_v40 = vmul.f32 %v7055_v23, %v1993_v2  ;;  %v7228_v23 = vld [vmem:[%s11009_s6 + $0x8] sm:$0xff] }
0x1026   :  { %6416 = vmatmul.msk.f32.gmra.mxu3 %vm995_vm7, %v2003_v40  ;;  %v9530_v40 = vld [vmem:[%s8576_s12 + $0x8] sm:$0xff] }
0x102b   :  { %v1996_v41 = vpop.f32.mrf.mxu2 }
0x102c   :  { %v2004_v42 = vmul.f32 %v7057_v50, %v1996_v41  ;;  %v9534_v41 = vld [vmem:[%s8576_s12] sm:$0xff] }
0x102e   :  { %6417 = vmatmul.msk.f32.gmra.mxu3 %vm995_vm7, %v2004_v42 }
0x1033   :  { %v1999_v44 = vpop.f32.mrf.mxu2 }
0x1034   :  { %v2005_v46 = vmul.f32 %v7059_v53, %v1999_v44 }
0x1036   :  { %6418 = vmatmul.msk.f32.gmra.mxu3 %vm995_vm7, %v2005_v46 }
0x10a0   :  { %v2035_v30 = vpop.f32.mrf.mxu3 }
0x10a1   :  { %v2047_v37 = vmul.f32 %v2035_v30, %v1828_v13 }
0x10a3   :  { %2067 = vmatmul.f32.vlgmr.msra.gmra.mxu1 %v2047_v37 }
0x10a9   :  { %v2038_v7 = vpop.f32.mrf.mxu3 }
0x10aa   :  { %v2048_v16 = vmul.f32 %v2038_v7, %v1828_v13 }
0x10ac   :  { %2070 = vmatmul.f32.gmra.mxu1 %v2048_v16 }
0x10b1   :  { %v2041_v61 = vpop.f32.mrf.mxu3 }
0x10b2   :  { %v2049_v6 = vmul.f32 %v2041_v61, %v1828_v13 }
0x10b4   :  { %2073 = vmatmul.f32.gmra.mxu1 %v2049_v6 }
0x10b9   :  { %v2044_v14 = vpop.f32.mrf.mxu3 }
0x10ba   :  { %v2050_v38 = vmul.f32 %v2044_v14, %v1828_v13 }
0x10bc   :  { %2076 = vmatmul.f32.gmra.mxu1 %v2050_v38 }
0x1120   :  { %v2068_v5 = vpop.f32.mrf.mxu1 }
0x1129   :  { %v2071_v15 = vpop.f32.mrf.mxu1 }
0x112a   :  { %v2087_v28 = vpack.c.bf16 %v2071_v15, %v2068_v5 }
0x112c   :  { %6431 = vmatmul.msk.bf16.vlgmr.msra.gmra.mxu0 %vm876_vm4, %v2087_v28 }
0x112d   :  { %3016 = vmatpush.msra.mxu0 %v7214_v39 }
0x112f   :  { %3017 = vmatpush.msra.mxu0 %v7215_v56 }
0x1131   :  { %v2074_v57 = vpop.f32.mrf.mxu1  ;;  %3018 = vmatpush.msra.mxu0 %v7216_v0 }
0x1133   :  { %3019 = vmatpush.msra.mxu0 %v7217_v45 }
0x1135   :  { %3020 = vmatpush.msra.mxu0 %v7218_v25 }
0x1137   :  { %3021 = vmatpush.msra.mxu0 %v7219_v8 }
0x1139   :  { %v2077_v20 = vpop.f32.mrf.mxu1  ;;  %3022 = vmatpush.msra.mxu0 %v7220_v29 }
0x113a   :  { %v2088_v47 = vpack.c.bf16 %v2077_v20, %v2074_v57 }
0x113b   :  { %3023 = vmatpush.msra.mxu0 %v7221_v31 }
0x113c   :  { %6432 = vmatmul.msk.bf16.gmra.mxu0 %vm876_vm4, %v2088_v47 }
0x113d   :  { %3024 = vmatpush.msra.mxu0 %v7222_v49 }
0x113f   :  { %3025 = vmatpush.msra.mxu0 %v7223_v27 }
0x1141   :  { %3026 = vmatpush.msra.mxu0 %v7224_v52 }
0x1143   :  { %3027 = vmatpush.msra.mxu0 %v7225_v3 }
0x1145   :  { %3028 = vmatpush.msra.mxu0 %v7226_v36 }
0x1147   :  { %3029 = vmatpush.msra.mxu0 %v7227_v24 }
0x1149   :  { %3030 = vmatpush.msra.mxu0 %v7228_v23 }
0x114b   :  { %3031 = vmatpush.msra.mxu0 %v7229_v19 }
0x11a9   :  { %v2119_v26 = vpop.f32.mrf.mxu0 }
0x11aa   :  { %v2120_v50 = vadd.f32 %v6982_v22, %v2119_v26 }
0x11ac   :  { %v9503_v51 = vadd.f32 %v2120_v50, %v9379_v17 }
0x11ae   :  { %v2137_v53 = vmul.f32 %v9503_v51, %v9503_v51 }
0x11b0   :  { %2145 = vrot.lane.b32.xlu2 %v2137_v53, %s8340_s0  ;;  %v2851_v53 = vld [vmem:[%s11023_s19 + $0x8] sm:$0xff] }
0x11b1   :  { %v2121_v54 = vpop.f32.mrf.mxu0 }
0x11b2   :  { %v2122_v55 = vadd.f32 %v6982_v22, %v2121_v54 }
0x11b4   :  { %v9509_v58 = vadd.f32 %v2122_v55, %v9381_v18 }
0x11b6   :  { %v2138_v59 = vmul.f32 %v9509_v58, %v9509_v58 }
0x11b8   :  { %2147 = vrot.lane.b32.xlu1 %v2138_v59, %s8340_s0 }
0x11b9   :  { %v2124_v60 = vpop.f32.mrf.mxu0 }
0x11ba   :  { %v2125_v17 = vadd.f32 %v6982_v22, %v2124_v60 }
0x11bc   :  { %v9515_v62 = vadd.f32 %v2125_v17, %v9388_v34 }
0x11be   :  { %v2139_v32 = vmul.f32 %v9515_v62, %v9515_v62 }
0x11c0   :  { %2149 = vrot.lane.b32.xlu0 %v2139_v32, %s8340_s0 }
0x11c1   :  { %v2126_v35 = vpop.f32.mrf.mxu0 }
0x11c2   :  { %v2127_v18 = vadd.f32 %v6982_v22, %v2126_v35 }
0x11c4   :  { %v9521_v63 = vadd.f32 %v2127_v18, %v9390_v43 }
0x11c6   :  { %v2140_v1 = vmul.f32 %v9521_v63, %v9521_v63 }
0x11c8   :  { %2151 = vrot.lane.b32.xlu2 %v2140_v1, %s8340_s0 }
0x120a   :  { %v2146_v2 = vpop.permute.xlu2 %2145 }
0x120b   :  { %v2157_v34 = vsel %vm876_vm4, %v9503_v51, %v2146_v2 }
0x120c   :  { %6433 = vmatmul.msk.f32.vlgmr.msrb.gmra.mxu2 %vm915_vm5, %v2157_v34 }
0x120d   :  { %3095 = vmatpush.msrb.mxu2 %v9530_v40 }
0x120f   :  { %3096 = vmatpush.msrb.mxu2 %v9534_v41 }
0x1222   :  { %v2152_v48 = vpop.permute.xlu2 %2151 }
0x1223   :  { %v2160_v10 = vsel %vm876_vm4, %v9521_v63, %v2152_v48  ;;  %v6758_v48 = vld [vmem:[#allocation8 + $0x18] sm:$0xff] }
0x1224   :  { %2368 = vmatpush.bf16.msrb.mxu3 %v6758_v48  ;;  %v7252_v48 = vld [vmem:[%s11013_s23 + $0x10] sm:$0xff] }
0x122a   :  { %v2148_v43 = vpop.permute.xlu1 %2147 }
0x122b   :  { %v2158_v42 = vsel %vm876_vm4, %v9509_v58, %v2148_v43  ;;  %v2850_v43 = vld [vmem:[%s11023_s19] sm:$0xff] }
0x122c   :  { %6434 = vmatmul.msk.f32.gmra.mxu2 %vm915_vm5, %v2158_v42 }
0x1232   :  { %v2150_v44 = vpop.permute.xlu0 %2149 }
0x1233   :  { %v2159_v46 = vsel %vm876_vm4, %v9515_v62, %v2150_v44  ;;  %v2853_v44 = vld [vmem:[%s11023_s19 + $0x18] sm:$0xff] }
0x1234   :  { %6435 = vmatmul.msk.f32.gmra.mxu2 %vm915_vm5, %v2159_v46  ;;  %v2852_v46 = vld [vmem:[%s11023_s19 + $0x10] sm:$0xff] }
0x123c   :  { %6436 = vmatmul.msk.f32.gmra.mxu2 %vm915_vm5, %v2160_v10  ;;  %v6757_v10 = vld [vmem:[#allocation8 + $0x10] sm:$0xff] }
0x123d   :  { %2369 = vmatpush.bf16.msrb.mxu3 %v6757_v10  ;;  %v7254_v10 = vld [vmem:[%s11013_s23] sm:$0xff] }
0x128f   :  { %v2190_v11 = vpop.f32.mrf.mxu2 }
0x1290   :  { %v2202_v12 = vmul.f32 %v2190_v11, %v2190_v11 }
0x1292   :  { %2210 = vrot.lane.b32.xlu0 %v2202_v12, %s8298_s16  ;;  %v7233_v12 = vld [vmem:[%s11006_s11 + $0x70] sm:$0xff] }
0x12af   :  { %v2193_v13 = vpop.f32.mrf.mxu2 }
0x12b0   :  { %v2203_v30 = vmul.f32 %v2193_v13, %v2193_v13 }
0x12b2   :  { %2212 = vrot.lane.b32.xlu1 %v2203_v30, %s8298_s16  ;;  %v7235_v30 = vld [vmem:[%s11006_s11 + $0x60] sm:$0xff] }
0x12b7   :  { %v2196_v37 = vpop.f32.mrf.mxu2 }
0x12b8   :  { %v2204_v7 = vmul.f32 %v2196_v37, %v2196_v37 }
0x12ba   :  { %2228 = vperm.xlu1 %6919, %v2190_v11   ;;  %2214 = vrot.lane.b32.xlu2 %v2204_v7, %s8298_s16  ;;  %v7237_v7 = vld [vmem:[%s11006_s11 + $0x50] sm:$0xff] }
0x12bf   :  { %v2199_v16 = vpop.f32.mrf.mxu2 }
0x12c0   :  { %v2205_v61 = vmul.f32 %v2199_v16, %v2199_v16 }
0x12c2   :  { %2233 = vperm.xlu2 %6920, %v2193_v13   ;;  %2216 = vrot.lane.b32.xlu0 %v2205_v61, %s8298_s16  ;;  %v7239_v61 = vld [vmem:[%s11006_s11 + $0x40] sm:$0xff] }
0x12c3   :  { %6922 = vset.pattern.permute.xlu1 %v11020_v4 }
0x12ca   :  { %2238 = vperm.xlu2 %6920, %v2196_v37  }
0x12d2   :  { %6924 = vset.pattern.permute.xlu2 %v11020_v4 }
0x1304   :  { %v2211_v6 = vpop.permute.xlu0 %2210 }
0x1305   :  { %v2222_v14 = vsub.f32 %v2190_v11, %v2211_v6  ;;  %v7232_v11 = vld [vmem:[%s11006_s11 + $0x78] sm:$0xff] }
0x1306   :  { %2878 = vmatpush.msra.mxu3 %v7232_v11  ;;  %v7240_v6 = vld [vmem:[%s11006_s11 + $0x38] sm:$0xff]  ;;  %v6759_v11 = vld [vmem:[%s11017_s9 + $0x20] sm:$0xff] }
0x1307   :  { %v2250_v38 = vadd.f32 1e-05, %v2222_v14  ;;  %v7241_v14 = vld [vmem:[%s11006_s11 + $0x30] sm:$0xff] }
0x1308   :  { %2879 = vmatpush.msra.mxu3 %v7233_v12 }
0x1309   :  { %7068 = vrsqrt.f32 %v2250_v38  ;;  %vm2260_vm15 = vweird.f32 %v2250_v38 }
0x130f   :  { %v7069_v5 = vpop.eup %7068 }
0x1310   :  { %v2255_v15 = vmul.f32 %v7069_v5, %v2250_v38  ;;  %vm2261_vm14 = vweird.f32 %v7069_v5  ;;  %v7242_v38 = vld [vmem:[%s11006_s11 + $0x28] sm:$0xff] }
0x1311   :  { %vm2262_vm0 = vmor %vm2260_vm15, %vm2261_vm14 }
0x1312   :  { %v2256_v28 = vmul.f32 %v7069_v5, %v2255_v15  ;;  %v7244_v15 = vld [vmem:[%s11006_s11 + $0x18] sm:$0xff] }
0x1314   :  { %v2215_v39 = vpop.permute.xlu2 %2214  ;;  %v2257_v56 = vmul.f32 0.5, %v2256_v28  ;;  %v7245_v28 = vld [vmem:[%s11006_s11 + $0x10] sm:$0xff] }
0x1315   :  { %v2224_v57 = vsub.f32 %v2196_v37, %v2215_v39  ;;  %v7236_v37 = vld [vmem:[%s11006_s11 + $0x58] sm:$0xff]  ;;  %v7246_v39 = vld [vmem:[%s11006_s11 + $0x8] sm:$0xff] }
0x1316   :  { %v2258_v0 = vsub.f32 1.5, %v2257_v56  ;;  %v7247_v56 = vld [vmem:[%s11006_s11] sm:$0xff] }
0x1317   :  { %v2252_v45 = vadd.f32 1e-05, %v2224_v57 }
0x1318   :  { %v2259_v25 = vmul.f32 %v7069_v5, %v2258_v0 }
0x1319   :  { %7070 = vrsqrt.f32 %v2252_v45  ;;  %vm2280_vm2 = vweird.f32 %v2252_v45 }
0x131a   :  { %v2263_v8 = vsel %vm2262_vm0, %v7069_v5, %v2259_v25  ;;  %v7243_v5 = vld [vmem:[%s11006_s11 + $0x20] sm:$0xff] }
0x131b   :  { %2296 = vperm.xlu0 %6921, %v2263_v8  }
0x131c   :  { %v2234_v57 = vpop.permute.xlu2 %2233 }
0x131f   :  { %v7071_v20 = vpop.eup %7070 }
0x1320   :  { %v2275_v29 = vmul.f32 %v7071_v20, %v2252_v45  ;;  %vm2281_vm1 = vweird.f32 %v7071_v20 }
0x1321   :  { %vm2282_vm3 = vmor %vm2280_vm2, %vm2281_vm1 }
0x1322   :  { %v2276_v47 = vmul.f32 %v7071_v20, %v2275_v29  ;;  %v6983_v29 = vld [vmem:[#allocation13 + $0x1] ss:$0 sm:$0xff] }
0x1324   :  { %v2213_v31 = vpop.permute.xlu1 %2212  ;;  %v2277_v49 = vmul.f32 0.5, %v2276_v47 }
0x1325   :  { %v2223_v27 = vsub.f32 %v2193_v13, %v2213_v31  ;;  %v7234_v13 = vld [vmem:[%s11006_s11 + $0x68] sm:$0xff] }
0x1326   :  { %v2278_v52 = vsub.f32 1.5, %v2277_v49  ;;  %2880 = vmatpush.msra.mxu3 %v7234_v13  ;;  %v6985_v13 = vld [vmem:[#allocation10 + $0x1] ss:$0 sm:$0xff] }
0x1327   :  { %v2251_v3 = vadd.f32 1e-05, %v2223_v27  ;;  %v2239_v27 = vpop.permute.xlu2 %2238 }
0x1328   :  { %v2279_v36 = vmul.f32 %v7071_v20, %v2278_v52  ;;  %2881 = vmatpush.msra.mxu3 %v7235_v30  ;;  %v6984_v52 = vld [vmem:[#allocation14 + $0x1] ss:$0 sm:$0xff] }
0x1329   :  { %7072 = vrsqrt.f32 %v2251_v3  ;;  %vm2270_vm11 = vweird.f32 %v2251_v3 }
0x132a   :  { %v2283_v24 = vsel %vm2282_vm3, %v7071_v20, %v2279_v36  ;;  %2882 = vmatpush.msra.mxu3 %v7236_v37  ;;  %v2247_v20 = vsub.f32 %v9509_v58, %v2234_v57  ;;  %v2248_v58 = vsub.f32 %v9515_v62, %v2239_v27  ;;  %v6762_v62 = vld [vmem:[%s11017_s9 + $0x38] sm:$0xff]  ;;  %v6764_v37 = vld [vmem:[#allocation19 + $0x8] sm:$0xff] }
0x132b   :  { %2306 = vperm.xlu2 %6924, %v2283_v24   ;;  %2435 = vmatpush.bf16.msrb.mxu1 %v6762_v62 }
0x132c   :  { %2883 = vmatpush.msra.mxu3 %v7237_v7  ;;  %v2229_v0 = vpop.permute.xlu1 %2228 }
0x132d   :  { %v2246_v25 = vsub.f32 %v9503_v51, %v2229_v0 }
0x132f   :  { %v7073_v23 = vpop.eup %7072 }
0x1330   :  { %v2265_v19 = vmul.f32 %v7073_v23, %v2251_v3  ;;  %vm2271_vm10 = vweird.f32 %v7073_v23 }
0x1331   :  { %vm2272_vm12 = vmor %vm2270_vm11, %vm2271_vm10 }
0x1332   :  { %v2266_v22 = vmul.f32 %v7073_v23, %v2265_v19  ;;  %v7248_v19 = vld [vmem:[%s8581_s17] sm:$0xf] }
0x1333   :  { %6925 = vset.pattern.permute.xlu2 %v11016_v33 }
0x1334   :  { %v2217_v26 = vpop.permute.xlu0 %2216  ;;  %v2267_v50 = vmul.f32 0.5, %v2266_v22  ;;  %2858 = vperm.xlu2 %6925, %v2851_v53  }
0x1335   :  { %v2225_v54 = vsub.f32 %v2199_v16, %v2217_v26 }
0x1336   :  { %v2268_v55 = vsub.f32 1.5, %v2267_v50 }
0x1337   :  { %v2253_v59 = vadd.f32 1e-05, %v2225_v54 }
0x1338   :  { %v2269_v60 = vmul.f32 %v7073_v23, %v2268_v55 }
0x1339   :  { %7074 = vrsqrt.f32 %v2253_v59  ;;  %vm2290_vm14 = vweird.f32 %v2253_v59 }
0x133a   :  { %v2273_v17 = vsel %vm2272_vm12, %v7073_v23, %v2269_v60 }
0x133b   :  { %2301 = vperm.xlu1 %6922, %v2273_v17  }
0x133f   :  { %v7075_v32 = vpop.eup %7074 }
0x1340   :  { %v2285_v35 = vmul.f32 %v7075_v32, %v2253_v59  ;;  %vm2291_vm13 = vweird.f32 %v7075_v32 }
0x1341   :  { %vm2292_vm15 = vmor %vm2290_vm14, %vm2291_vm13 }
0x1342   :  { %v2286_v18 = vmul.f32 %v7075_v32, %v2285_v35  ;;  %v6761_v35 = vld [vmem:[%s11017_s9 + $0x30] sm:$0xff] }
0x1343   :  { %6923 = vset.pattern.permute.xlu1 %v11016_v33  ;;  %2436 = vmatpush.bf16.msrb.mxu1 %v6761_v35 }
0x1344   :  { %2243 = vperm.xlu1 %6923, %v2199_v16   ;;  %v2287_v1 = vmul.f32 0.5, %v2286_v18  ;;  %v7238_v16 = vld [vmem:[%s11006_s11 + $0x48] sm:$0xff] }
0x1345   :  { %2884 = vmatpush.msra.mxu3 %v7238_v16  ;;  %v6760_v18 = vld [vmem:[%s11017_s9 + $0x28] sm:$0xff] }
0x1346   :  { %v2288_v2 = vsub.f32 1.5, %v2287_v1  ;;  %v11024_v1 = vld [vmem:[#allocation107_spill] sm:$0xff] }
0x1347   :  { %2885 = vmatpush.msra.mxu3 %v7239_v61  ;;  %2437 = vmatpush.bf16.msrb.mxu1 %v6760_v18 }
0x1348   :  { %v2289_v34 = vmul.f32 %v7075_v32, %v2288_v2  ;;  %v11025_v2 = vmov 1.0  }
0x1349   :  { %2886 = vmatpush.msra.mxu3 %v7240_v6 }
0x134a   :  { %v2293_v42 = vsel %vm2292_vm15, %v7075_v32, %v2289_v34 }
0x134b   :  { %2311 = vperm.xlu0 %6921, %v2293_v42   ;;  %2887 = vmatpush.msra.mxu3 %v7241_v14  ;;  %v7250_v42 = vld [vmem:[%s11013_s23 + $0x20] sm:$0xff] }
0x134c   :  { %2855 = vperm.xlu1 %6923, %v2850_v43   ;;  %v7249_v43 = vld [vmem:[%s11013_s23 + $0x28] sm:$0xff]  ;;  %2438 = vmatpush.bf16.msrb.mxu1 %v6759_v11  ;;  %v6763_v14 = vld [vmem:[#allocation19] sm:$0xff]  ;;  %v9696_v11 = vld [vmem:[%s8586_s30 + $0x70] sm:$0xff] }
0x134d   :  { %2888 = vmatpush.msra.mxu3 %v7242_v38 }
0x134f   :  { %2889 = vmatpush.msra.mxu3 %v7243_v5 }
0x1350   :  { %2941 = vmatpush.bf16.msra.mxu1 %v6764_v37  ;;  %v9712_v37 = vld [vmem:[%s8586_s30 + $0x50] sm:$0xff] }
0x1351   :  { %2890 = vmatpush.msra.mxu3 %v7244_v15  ;;  %v7255_v15 = vld [vmem:[#allocation55 + $0x8] sm:$0xff] }
0x1353   :  { %6926 = vset.pattern.permute.xlu0 %v11016_v33  ;;  %2891 = vmatpush.msra.mxu3 %v7245_v28  ;;  %v7256_v28 = vld [vmem:[#allocation55] sm:$0xff] }
0x1354   :  { %2864 = vperm.xlu1 %6923, %v2853_v44   ;;  %2861 = vperm.xlu0 %6926, %v2852_v46   ;;  %v7251_v44 = vld [vmem:[%s11013_s23 + $0x18] sm:$0xff] }
0x1355   :  { %2892 = vmatpush.msra.mxu3 %v7246_v39  ;;  %2942 = vmatpush.bf16.msra.mxu1 %v6763_v14  ;;  %v9732_v14 = vld [vmem:[%s8586_s30 + $0x28] sm:$0xff] }
0x1357   :  { %2893 = vmatpush.msra.mxu3 %v7247_v56 }
0x135c   :  { %6927 = vset.pattern.permute.xlu0 %v11020_v4 }
0x1385   :  { %v2307_v51 = vpop.permute.xlu2 %2306 }
0x1386   :  { %v2316_v26 = vmul.f32 %v2307_v51, %v2248_v58 }
0x1388   :  { %v2323_v54 = vmul.f32 %v6983_v29, %v2316_v26 }
0x138a   :  { %v9589_v60 = vadd.f32 %v6984_v52, %v2323_v54 }
0x138d   :  { %v2297_v45 = vpop.permute.xlu0 %2296 }
0x138e   :  { %v2314_v8 = vmul.f32 %v2297_v45, %v2246_v25  ;;  %v2859_v34 = vpop.permute.xlu2 %2858 }
0x138f   :  { %vm2867_vm1 = vcmp.eq.s32.totalorder %v11024_v1, %v2859_v34 }
0x1390   :  { %v2321_v31 = vmul.f32 %v6983_v29, %v2314_v8 }
0x1392   :  { %v9578_v36 = vadd.f32 %v6984_v52, %v2321_v31 }
0x13ad   :  { %v2302_v47 = vpop.permute.xlu1 %2301 }
0x13ae   :  { %v2315_v49 = vmul.f32 %v2302_v47, %v2247_v20 }
0x13b0   :  { %v2322_v3 = vmul.f32 %v6983_v29, %v2315_v49 }
0x13b2   :  { %v9580_v24 = vadd.f32 %v6984_v52, %v2322_v3 }
0x13b4   :  { %v2339_v23 = vpack.c.bf16 %v9580_v24, %v9578_v36 }
0x13b6   :  { %6445 = vmatmul.msk.bf16.vlgmr.msrb.gmra.mxu3 %vm876_vm4, %v2339_v23  ;;  %v2244_v22 = vpop.permute.xlu1 %2243 }
0x13b7   :  { %6503 = vmatpush.msk.msrb.mxu3 %vm1078_vm8, %v7248_v19  ;;  %v2249_v50 = vsub.f32 %v9521_v63, %v2244_v22  ;;  %v6986_v19 = vld [vmem:[#allocation11 + $0x1] ss:$0 sm:$0xff] }
0x13bd   :  { %v2312_v53 = vpop.permute.xlu0 %2311 }
0x13be   :  { %v2317_v55 = vmul.f32 %v2312_v53, %v2249_v50  ;;  %v2856_v63 = vpop.permute.xlu1 %2855 }
0x13bf   :  { %vm2866_vm0 = vcmp.eq.s32.totalorder %v11024_v1, %v2856_v63 }
0x13c0   :  { %v2324_v59 = vmul.f32 %v6983_v29, %v2317_v55  ;;  %v7257_v29 = vld [vmem:[#allocation2] sm:$0xff] }
0x13c2   :  { %v9591_v17 = vadd.f32 %v6984_v52, %v2324_v59 }
0x13c4   :  { %v2340_v32 = vpack.c.bf16 %v9591_v17, %v9589_v60 }
0x13c6   :  { %6446 = vmatmul.msk.bf16.gmra.mxu3 %vm876_vm4, %v2340_v32  ;;  %v2862_v46 = vpop.permute.xlu0 %2861 }
0x13c7   :  { %vm2868_vm2 = vcmp.eq.s32.totalorder %v11024_v1, %v2862_v46 }
0x13d6   :  { %6485 = vmatmul.msk.f32.vlgmr.msra.gmra.mxu3 %vm2866_vm0, %v11025_v2 }
0x13d7   :  { %3330 = vmatpush.msra.mxu3 %v9471_v21  ;;  %v7253_v21 = vld [vmem:[%s11013_s23 + $0x8] sm:$0xff] }
0x13d9   :  { %3331 = vmatpush.msra.mxu3 %v9475_v9  ;;  %v2865_v9 = vpop.permute.xlu1 %2864 }
0x13da   :  { %vm2869_vm3 = vcmp.eq.s32.totalorder %v11024_v1, %v2865_v9  ;;  %v9692_v9 = vld [vmem:[%s8586_s30 + $0x78] sm:$0xff] }
0x13db   :  { %3332 = vmatpush.msra.mxu3 %v7249_v43 }
0x13dd   :  { %3333 = vmatpush.msra.mxu3 %v7250_v42 }
0x13de   :  { %6486 = vmatmul.msk.f32.gmra.mxu3 %vm2867_vm1, %v11025_v2 }
0x13df   :  { %3334 = vmatpush.msra.mxu3 %v7251_v44 }
0x13e1   :  { %3335 = vmatpush.msra.mxu3 %v7252_v48 }
0x13e3   :  { %3336 = vmatpush.msra.mxu3 %v7253_v21 }
0x13e5   :  { %3337 = vmatpush.msra.mxu3 %v7254_v10 }
0x13e6   :  { %6487 = vmatmul.msk.f32.gmra.mxu3 %vm2868_vm2, %v11025_v2 }
0x13ee   :  { %6488 = vmatmul.msk.f32.gmra.mxu3 %vm2869_vm3, %v11025_v2  ;;  %v6987_v2 = vld [vmem:[#allocation20] ss:$0 sm:$0xff] }
0x1439   :  { %v2371_v12 = vpop.f32.mrf.mxu3 }
0x143a   :  { %v2372_v30 = vadd.f32 %v6985_v13, %v2371_v12  ;;  %v9700_v12 = vld [vmem:[%s8586_s30 + $0x68] sm:$0xff] }
0x143c   :  { %v2381_v61 = vmax.f32 %v2372_v30, 0.0  ;;  %v9708_v30 = vld [vmem:[%s8586_s30 + $0x58] sm:$0xff] }
0x1441   :  { %v2373_v7 = vpop.f32.mrf.mxu3 }
0x1442   :  { %v2374_v16 = vadd.f32 %v6985_v13, %v2373_v7  ;;  %v9716_v7 = vld [vmem:[%s8586_s30 + $0x48] sm:$0xff] }
0x1444   :  { %v2382_v6 = vmax.f32 %v2374_v16, 0.0  ;;  %v9720_v16 = vld [vmem:[%s8586_s30 + $0x40] sm:$0xff] }
0x1446   :  { %v2396_v38 = vpack.c.bf16 %v2382_v6, %v2381_v61  ;;  %v9724_v61 = vld [vmem:[%s8586_s30 + $0x38] sm:$0xff]  ;;  %v9728_v6 = vld [vmem:[%s8586_s30 + $0x30] sm:$0xff] }
0x1448   :  { %6471 = vmatmul.msk.bf16.vlgmr.msrb.gmra.mxu1 %vm915_vm5, %v2396_v38  ;;  %v9736_v38 = vld [vmem:[%s8586_s30 + $0x20] sm:$0xff] }
0x1449   :  { %v2376_v5 = vpop.f32.mrf.mxu3  ;;  %3185 = vmatpush.msrb.mxu1 %v7255_v15  ;;  %v9744_v15 = vld [vmem:[%s8586_s30 + $0x10] sm:$0xff] }
0x144a   :  { %v2377_v39 = vadd.f32 %v6985_v13, %v2376_v5  ;;  %v9740_v5 = vld [vmem:[%s8586_s30 + $0x18] sm:$0xff] }
0x144b   :  { %3186 = vmatpush.msrb.mxu1 %v7256_v28  ;;  %v9748_v28 = vld [vmem:[%s8586_s30 + $0x8] sm:$0xff] }
0x144c   :  { %v2383_v0 = vmax.f32 %v2377_v39, 0.0 }
0x1451   :  { %v2378_v56 = vpop.f32.mrf.mxu3 }
0x1452   :  { %v2379_v57 = vadd.f32 %v6985_v13, %v2378_v56  ;;  %v9704_v13 = vld [vmem:[%s8586_s30 + $0x60] sm:$0xff] }
0x1454   :  { %v2384_v45 = vmax.f32 %v2379_v57, 0.0  ;;  %v9754_v57 = vld [vmem:[%s8586_s30] sm:$0xff] }
0x1456   :  { %v2397_v25 = vpack.c.bf16 %v2384_v45, %v2383_v0 }
0x1458   :  { %6472 = vmatmul.msk.bf16.gmra.mxu1 %vm915_vm5, %v2397_v25 }
0x1459   :  { %v2895_v8 = vpop.f32.mrf.mxu3 }
0x145a   :  { %v9620_v31 = vadd.f32 %v7257_v29, %v2895_v8 }
0x1461   :  { %v2898_v20 = vpop.f32.mrf.mxu3 }
0x1462   :  { %v9618_v47 = vadd.f32 %v7257_v29, %v2898_v20 }
0x1464   :  { %v2912_v49 = vpack.c.bf16 %v9618_v47, %v9620_v31 }
0x1468   :  { %6497 = vmatmul.msk.bf16.vlgmr.msra.gmra.mxu1 %vm876_vm4, %v2912_v49 }
0x1469   :  { %v2901_v27 = vpop.f32.mrf.mxu3 }
0x146a   :  { %v9625_v3 = vadd.f32 %v7257_v29, %v2901_v27 }
0x1471   :  { %v2904_v52 = vpop.f32.mrf.mxu3 }
0x1472   :  { %v9627_v23 = vadd.f32 %v7257_v29, %v2904_v52 }
0x1474   :  { %v2913_v51 = vpack.c.bf16 %v9627_v23, %v9625_v3 }
0x1478   :  { %6498 = vmatmul.msk.bf16.gmra.mxu1 %vm876_vm4, %v2913_v51 }
0x14c5   :  { %v2440_v58 = vpop.f32.mrf.mxu1 }
0x14c6   :  { %v2441_v22 = vadd.f32 %v6986_v19, %v2440_v58 }
0x14c8   :  { %v9633_v26 = vadd.f32 %v2441_v22, %v9578_v36 }
0x14ca   :  { %v2458_v50 = vmul.f32 %v9633_v26, %v9633_v26 }
0x14cc   :  { %2466 = vrot.lane.b32.xlu2 %v2458_v50, %s8340_s0 }
0x14cd   :  { %v2442_v53 = vpop.f32.mrf.mxu1 }
0x14ce   :  { %v2443_v54 = vadd.f32 %v6986_v19, %v2442_v53 }
0x14d0   :  { %v9639_v55 = vadd.f32 %v2443_v54, %v9580_v24 }
0x14d2   :  { %v2459_v59 = vmul.f32 %v9639_v55, %v9639_v55 }
0x14d4   :  { %2468 = vrot.lane.b32.xlu1 %v2459_v59, %s8340_s0 }
0x14d5   :  { %v2445_v32 = vpop.f32.mrf.mxu1 }
0x14d6   :  { %v2446_v62 = vadd.f32 %v6986_v19, %v2445_v32 }
0x14d8   :  { %v9645_v36 = vadd.f32 %v2446_v62, %v9589_v60 }
0x14da   :  { %v2460_v35 = vmul.f32 %v9645_v36, %v9645_v36 }
0x14dc   :  { %2470 = vrot.lane.b32.xlu2 %v2460_v35, %s8340_s0 }
0x14dd   :  { %v2447_v63 = vpop.f32.mrf.mxu1 }
0x14de   :  { %v2448_v18 = vadd.f32 %v6986_v19, %v2447_v63 }
0x14e0   :  { %v9651_v24 = vadd.f32 %v2448_v18, %v9591_v17 }
0x14e2   :  { %v2461_v1 = vmul.f32 %v9651_v24, %v9651_v24 }
0x14e4   :  { %2472 = vrot.lane.b32.xlu0 %v2461_v1, %s8340_s0 }
0x14e5   :  { %v2944_v34 = vpop.f32.mrf.mxu1 }
0x14e6   :  { %v9656_v43 = vadd.f32 %v6987_v2, %v2944_v34 }
0x14e8   :  { %2955 = vrot.lane.b32.xlu1 %v9656_v43, %s8339_s1  ;;  %2982 = vrot.lane.b32.xlu2 %v9656_v43, %s8340_s0 }
0x14ed   :  { %v2946_v60 = vpop.f32.mrf.mxu1 }
0x14ee   :  { %v9664_v42 = vadd.f32 %v6987_v2, %v2946_v60 }
0x14f0   :  { %2969 = vrot.lane.b32.xlu1 %v9656_v43, %s8300_s28 }
0x14f5   :  { %v2949_v17 = vpop.f32.mrf.mxu1 }
0x14f6   :  { %v9666_v44 = vadd.f32 %v6987_v2, %v2949_v17 }
0x14f8   :  { %2988 = vrot.lane.b32.xlu1 %v9664_v42, %s8300_s28  ;;  %2959 = vrot.lane.b32.xlu0 %v9666_v44, %s8340_s0 }
0x14fd   :  { %v2951_v46 = vpop.f32.mrf.mxu1 }
0x14fe   :  { %v9672_v48 = vadd.f32 %v6987_v2, %v2951_v46 }
0x1500   :  { %2963 = vrot.lane.b32.xlu2 %v9672_v48, %s8300_s28  ;;  %2994 = vrot.lane.b32.xlu1 %v9666_v44, %s8339_s1 }
0x1501   :  { %2984 = vrot.lane.b32.xlu0 %v9664_v42, %s8340_s0 }
0x1508   :  { %2973 = vrot.lane.b32.xlu2 %v9664_v42, %s8339_s1 }
0x1509   :  { %2990 = vrot.lane.b32.xlu0 %v9666_v44, %s8300_s28 }
0x1510   :  { %2976 = vrot.lane.b32.xlu2 %v9672_v48, %s8340_s0 }
0x1511   :  { %2996 = vrot.lane.b32.xlu0 %v9672_v48, %s8339_s1 }
0x1526   :  { %v2467_v21 = vpop.permute.xlu2 %2466 }
0x1527   :  { %v2478_v10 = vsel %vm876_vm4, %v9633_v26, %v2467_v21 }
0x1528   :  { %6473 = vmatmul.msk.f32.vlgmr.msrb.gmra.mxu0 %vm915_vm5, %v2478_v10 }
0x1529   :  { %3204 = vmatpush.msrb.mxu0 %v9692_v9 }
0x152b   :  { %3205 = vmatpush.msrb.mxu0 %v9696_v11 }
0x152d   :  { %3206 = vmatpush.msrb.mxu0 %v9700_v12 }
0x152f   :  { %3207 = vmatpush.msrb.mxu0 %v9704_v13 }
0x1531   :  { %3208 = vmatpush.msrb.mxu0 %v9708_v30 }
0x1533   :  { %3209 = vmatpush.msrb.mxu0 %v9712_v37 }
0x1535   :  { %3210 = vmatpush.msrb.mxu0 %v9716_v7 }
0x1536   :  { %v2471_v0 = vpop.permute.xlu2 %2470 }
0x1537   :  { %3211 = vmatpush.msrb.mxu0 %v9720_v16  ;;  %v2480_v45 = vsel %vm876_vm4, %v9645_v36, %v2471_v0 }
0x1539   :  { %3212 = vmatpush.msrb.mxu0 %v9724_v61 }
0x153b   :  { %3213 = vmatpush.msrb.mxu0 %v9728_v6 }
0x153d   :  { %3214 = vmatpush.msrb.mxu0 %v9732_v14 }
0x153f   :  { %3215 = vmatpush.msrb.mxu0 %v9736_v38 }
0x1541   :  { %3216 = vmatpush.msrb.mxu0 %v9740_v5 }
0x1542   :  { %v2983_v29 = vpop.permute.xlu2 %2982 }
0x1543   :  { %3217 = vmatpush.msrb.mxu0 %v9744_v15  ;;  %v3000_v27 = vsel %vm876_vm4, %v9656_v43, %v2983_v29 }
0x1545   :  { %3218 = vmatpush.msrb.mxu0 %v9748_v28 }
0x1546   :  { %v2469_v39 = vpop.permute.xlu1 %2468 }
0x1547   :  { %v2479_v56 = vsel %vm876_vm4, %v9639_v55, %v2469_v39  ;;  %3219 = vmatpush.msrb.mxu0 %v9754_v57 }
0x1548   :  { %6474 = vmatmul.msk.f32.gmra.mxu0 %vm915_vm5, %v2479_v56 }
0x1550   :  { %6475 = vmatmul.msk.f32.gmra.mxu0 %vm915_vm5, %v2480_v45 }
0x1556   :  { %v2473_v25 = vpop.permute.xlu0 %2472 }
0x1557   :  { %v2481_v8 = vsel %vm876_vm4, %v9651_v24, %v2473_v25 }
0x1558   :  { %6476 = vmatmul.msk.f32.gmra.mxu0 %vm915_vm5, %v2481_v8 }
0x155a   :  { %v2956_v20 = vpop.permute.xlu1 %2955  ;;  %v2964_v52 = vpop.permute.xlu2 %2963 }
0x155b   :  { %v2966_v19 = vsel %vm876_vm4, %v2956_v20, %v9664_v42 }
0x1562   :  { %v9764_v49 = vpop.permute.xlu1 %2969  ;;  %v9775_v32 = vpop.permute.xlu2 %2973 }
0x1563   :  { %v3004_v51 = vsel %vm915_vm5, %v3000_v27, %v9764_v49 }
0x1564   :  { %v3008_v50 = vsel %vm917_vm6, %v3004_v51, %v2956_v20 }
0x156a   :  { %v2960_v58 = vpop.permute.xlu0 %2959  ;;  %v2989_v59 = vpop.permute.xlu1 %2988 }
0x156b   :  { %v2967_v22 = vsel %vm915_vm5, %v2966_v19, %v2960_v58  ;;  %v3002_v2 = vsel %vm876_vm4, %v9666_v44, %v2960_v58  ;;  %v9785_v17 = vpop.permute.xlu2 %2976 }
0x156c   :  { %v2968_v53 = vsel %vm917_vm6, %v2967_v22, %v2964_v52 }
0x156d   :  { %v3012_v54 = vmul.f32 %v3008_v50, %v2968_v53 }
0x156f   :  { %3032 = vmatmul.f32.vlgmr.msra.gmra.mxu0 %v3012_v54 }
0x1572   :  { %v2995_v43 = vpop.permute.xlu1 %2994 }
0x1573   :  { %v2985_v62 = vpop.permute.xlu0 %2984 }
0x1574   :  { %v3001_v35 = vsel %vm876_vm4, %v9664_v42, %v2985_v62  ;;  %v3003_v42 = vsel %vm876_vm4, %v9672_v48, %v9785_v17 }
0x1575   :  { %v3005_v63 = vsel %vm915_vm5, %v3001_v35, %v2989_v59  ;;  %v3007_v10 = vsel %vm915_vm5, %v3003_v42, %v2964_v52 }
0x1576   :  { %v3009_v18 = vsel %vm917_vm6, %v3005_v63, %v9775_v32 }
0x1577   :  { %v3013_v1 = vmul.f32 %v3009_v18, %v2968_v53 }
0x1579   :  { %3035 = vmatmul.f32.gmra.mxu0 %v3013_v1 }
0x157b   :  { %v2991_v34 = vpop.permute.xlu0 %2990 }
0x157c   :  { %v3006_v60 = vsel %vm915_vm5, %v3002_v2, %v2991_v34 }
0x157d   :  { %v3010_v46 = vsel %vm917_vm6, %v3006_v60, %v2995_v43 }
0x157e   :  { %v3014_v21 = vmul.f32 %v3010_v46, %v2968_v53 }
0x1581   :  { %3038 = vmatmul.f32.gmra.mxu0 %v3014_v21 }
0x1583   :  { %v2997_v39 = vpop.permute.xlu0 %2996 }
0x1584   :  { %v3011_v56 = vsel %vm917_vm6, %v3007_v10, %v2997_v39 }
0x1585   :  { %v3015_v0 = vmul.f32 %v3011_v56, %v2968_v53 }
0x1589   :  { %3041 = vmatmul.f32.gmra.mxu0 %v3015_v0 }
0x15a5   :  { %v2511_v45 = vpop.f32.mrf.mxu0 }
0x15a6   :  { %v2523_v25 = vmul.f32 %v2511_v45, %v2511_v45 }
0x15a8   :  { %2531 = vrot.lane.b32.xlu1 %v2523_v25, %s8298_s16 }
0x15c5   :  { %v2514_v8 = vpop.f32.mrf.mxu0 }
0x15c6   :  { %v2524_v20 = vmul.f32 %v2514_v8, %v2514_v8 }
0x15c8   :  { %2533 = vrot.lane.b32.xlu2 %v2524_v20, %s8298_s16 }
0x15cd   :  { %v2517_v29 = vpop.f32.mrf.mxu0 }
0x15ce   :  { %v2525_v27 = vmul.f32 %v2517_v29, %v2517_v29 }
0x15d0   :  { %2549 = vperm.xlu2 %6925, %v2511_v45   ;;  %2535 = vrot.lane.b32.xlu0 %v2525_v27, %s8298_s16 }
0x15d5   :  { %v2520_v48 = vpop.f32.mrf.mxu0 }
0x15d6   :  { %v2526_v52 = vmul.f32 %v2520_v48, %v2520_v48 }
0x15d8   :  { %2537 = vrot.lane.b32.xlu1 %v2526_v52, %s8298_s16  ;;  %6928 = vset.pattern.permute.xlu2 %v11020_v4 }
0x15e0   :  { %2554 = vperm.xlu1 %6923, %v2514_v8  }
0x15e8   :  { %2559 = vperm.xlu1 %6923, %v2517_v29  }
0x15ec   :  { %v9800_v0 = vpop.f32.mrf.mxu0 }
0x15f0   :  { %6930 = vset.pattern.permute.xlu1 %v11020_v4 }
0x161a   :  { %v2532_v51 = vpop.permute.xlu1 %2531 }
0x161b   :  { %v2543_v19 = vsub.f32 %v2511_v45, %v2532_v51 }
0x161d   :  { %v2571_v58 = vadd.f32 1e-05, %v2543_v19  ;;  %v9802_v19 = vpop.f32.mrf.mxu0 }
0x161f   :  { %7076 = vrsqrt.f32 %v2571_v58  ;;  %vm2581_vm11 = vweird.f32 %v2571_v58 }
0x1622   :  { %v2534_v22 = vpop.permute.xlu2 %2533 }
0x1623   :  { %v2544_v50 = vsub.f32 %v2514_v8, %v2534_v22 }
0x1625   :  { %v7077_v53 = vpop.eup %7076  ;;  %v2572_v54 = vadd.f32 1e-05, %v2544_v50 }
0x1626   :  { %v2576_v59 = vmul.f32 %v7077_v53, %v2571_v58  ;;  %vm2582_vm10 = vweird.f32 %v7077_v53 }
0x1627   :  { %7078 = vrsqrt.f32 %v2572_v54  ;;  %vm2583_vm12 = vmor %vm2581_vm11, %vm2582_vm10  ;;  %vm2591_vm14 = vweird.f32 %v2572_v54 }
0x1628   :  { %v2577_v62 = vmul.f32 %v7077_v53, %v2576_v59 }
0x162a   :  { %v2578_v35 = vmul.f32 0.5, %v2577_v62  ;;  %v9804_v62 = vpop.f32.mrf.mxu0 }
0x162c   :  { %v2579_v63 = vsub.f32 1.5, %v2578_v35 }
0x162d   :  { %v7079_v18 = vpop.eup %7078 }
0x162e   :  { %v2586_v1 = vmul.f32 %v7079_v18, %v2572_v54  ;;  %v2580_v2 = vmul.f32 %v7077_v53, %v2579_v63  ;;  %vm2592_vm13 = vweird.f32 %v7079_v18 }
0x162f   :  { %vm2593_vm15 = vmor %vm2591_vm14, %vm2592_vm13 }
0x1630   :  { %v2587_v34 = vmul.f32 %v7079_v18, %v2586_v1  ;;  %v2584_v43 = vsel %vm2583_vm12, %v7077_v53, %v2580_v2 }
0x1631   :  { %2617 = vperm.xlu0 %6927, %v2584_v43  }
0x1632   :  { %v2588_v60 = vmul.f32 0.5, %v2587_v34  ;;  %v9809_v1 = vpop.f32.mrf.mxu0  ;;  %v2550_v34 = vpop.permute.xlu2 %2549 }
0x1633   :  { %v3054_v2 = vsel %vm995_vm7, %v9809_v1, -inf }
0x1634   :  { %v2589_v46 = vsub.f32 1.5, %v2588_v60 }
0x1636   :  { %v2590_v21 = vmul.f32 %v7079_v18, %v2589_v46  ;;  %v6988_v46 = vld [vmem:[#allocation16 + $0x1] ss:$0 sm:$0xff] }
0x1638   :  { %v2594_v42 = vsel %vm2593_vm15, %v7079_v18, %v2590_v21  ;;  %v3045_v18 = vsel %vm995_vm7, %v9800_v0, -inf }
0x1639   :  { %2622 = vperm.xlu2 %6928, %v2594_v42   ;;  %6929 = vset.pattern.permute.xlu0 %v11016_v33  ;;  %v6989_v42 = vld [vmem:[#allocation17 + $0x1] ss:$0 sm:$0xff] }
0x163a   :  { %2564 = vperm.xlu0 %6929, %v2520_v48  }
0x1642   :  { %v2536_v10 = vpop.permute.xlu0 %2535 }
0x1643   :  { %v2545_v39 = vsub.f32 %v2517_v29, %v2536_v10 }
0x1645   :  { %v2573_v56 = vadd.f32 1e-05, %v2545_v39 }
0x1647   :  { %7080 = vrsqrt.f32 %v2573_v56  ;;  %vm2601_vm1 = vweird.f32 %v2573_v56 }
0x164a   :  { %v2538_v45 = vpop.permute.xlu1 %2537 }
0x164b   :  { %v2546_v25 = vsub.f32 %v2520_v48, %v2538_v45 }
0x164d   :  { %v7081_v8 = vpop.eup %7080  ;;  %v2574_v20 = vadd.f32 1e-05, %v2546_v25  ;;  %v2567_v25 = vsub.f32 %v9633_v26, %v2550_v34  ;;  %v3051_v34 = vsel %vm995_vm7, %v9804_v62, -inf }
0x164e   :  { %v2596_v27 = vmul.f32 %v7081_v8, %v2573_v56  ;;  %vm2602_vm0 = vweird.f32 %v7081_v8 }
0x164f   :  { %7082 = vrsqrt.f32 %v2574_v20  ;;  %vm2603_vm2 = vmor %vm2601_vm1, %vm2602_vm0  ;;  %vm2611_vm10 = vweird.f32 %v2574_v20 }
0x1650   :  { %v2597_v52 = vmul.f32 %v7081_v8, %v2596_v27 }
0x1652   :  { %v2598_v51 = vmul.f32 0.5, %v2597_v52  ;;  %v2555_v43 = vpop.permute.xlu1 %2554 }
0x1653   :  { %v2568_v60 = vsub.f32 %v9639_v55, %v2555_v43 }
0x1654   :  { %v2599_v58 = vsub.f32 1.5, %v2598_v51 }
0x1655   :  { %v7083_v22 = vpop.eup %7082 }
0x1656   :  { %v2606_v50 = vmul.f32 %v7083_v22, %v2574_v20  ;;  %v2600_v53 = vmul.f32 %v7081_v8, %v2599_v58  ;;  %vm2612_vm3 = vweird.f32 %v7083_v22 }
0x1657   :  { %vm2613_vm11 = vmor %vm2611_vm10, %vm2612_vm3 }
0x1658   :  { %v2607_v29 = vmul.f32 %v7083_v22, %v2606_v50  ;;  %v2604_v54 = vsel %vm2603_vm2, %v7081_v8, %v2600_v53 }
0x1659   :  { %2627 = vperm.xlu2 %6928, %v2604_v54  }
0x165a   :  { %v2608_v59 = vmul.f32 0.5, %v2607_v29  ;;  %v2560_v51 = vpop.permute.xlu1 %2559 }
0x165b   :  { %v2569_v58 = vsub.f32 %v9645_v36, %v2560_v51 }
0x165c   :  { %v2609_v48 = vsub.f32 1.5, %v2608_v59 }
0x165e   :  { %v2610_v35 = vmul.f32 %v7083_v22, %v2609_v48 }
0x1660   :  { %v2614_v63 = vsel %vm2613_vm11, %v7083_v22, %v2610_v35 }
0x1661   :  { %2632 = vperm.xlu1 %6930, %v2614_v63   ;;  %6931 = vset.pattern.permute.xlu2 %v11016_v33 }
0x1664   :  { %3046 = vmax.xlane.f32.xlu0 %v3045_v18 }
0x166c   :  { %3055 = vmax.xlane.f32.xlu0 %v3054_v2  ;;  %v3048_v2 = vsel %vm995_vm7, %v9802_v19, -inf }
0x1693   :  { %v2623_v21 = vpop.permute.xlu2 %2622 }
0x1694   :  { %v2636_v10 = vmul.f32 %v2623_v21, %v2568_v60 }
0x1696   :  { %v2643_v39 = vmul.f32 %v6988_v46, %v2636_v10 }
0x1698   :  { %v9814_v56 = vadd.f32 %v6989_v42, %v2643_v39 }
0x169a   :  { %v2656_v45 = vmul.f32 %v9814_v56, %v9814_v56 }
0x169c   :  { %2665 = vrot.lane.b32.xlu1 %v2656_v45, %s8340_s0 }
0x16a3   :  { %v2618_v8 = vpop.permute.xlu0 %2617 }
0x16a4   :  { %v2635_v20 = vmul.f32 %v2618_v8, %v2567_v25 }
0x16a6   :  { %v2642_v27 = vmul.f32 %v6988_v46, %v2635_v20 }
0x16a8   :  { %v9820_v52 = vadd.f32 %v6989_v42, %v2642_v27 }
0x16aa   :  { %v2655_v55 = vmul.f32 %v9820_v52, %v9820_v52 }
0x16ac   :  { %2663 = vrot.lane.b32.xlu2 %v2655_v55, %s8340_s0  ;;  %v2565_v54 = vpop.permute.xlu0 %2564 }
0x16ad   :  { %v2570_v59 = vsub.f32 %v9651_v24, %v2565_v54 }
0x16b3   :  { %v2628_v22 = vpop.permute.xlu2 %2627 }
0x16b4   :  { %v2637_v50 = vmul.f32 %v2628_v22, %v2569_v58 }
0x16b6   :  { %v2644_v53 = vmul.f32 %v6988_v46, %v2637_v50 }
0x16b8   :  { %v9826_v29 = vadd.f32 %v6989_v42, %v2644_v53 }
0x16ba   :  { %v2657_v26 = vmul.f32 %v9826_v29, %v9826_v29 }
0x16bc   :  { %2667 = vrot.lane.b32.xlu2 %v2657_v26, %s8340_s0 }
0x16d3   :  { %v2633_v48 = vpop.permute.xlu1 %2632 }
0x16d4   :  { %v2638_v35 = vmul.f32 %v2633_v48, %v2570_v59 }
0x16d6   :  { %v2645_v63 = vmul.f32 %v6988_v46, %v2638_v35 }
0x16d7   :  { %v3047_v10 = vpop.xlane.xlu0 %3046 }
0x16d8   :  { %v9832_v18 = vadd.f32 %v6989_v42, %v2645_v63  ;;  %v3057_v39 = vsub.f32 %v9800_v0, %v3047_v10 }
0x16da   :  { %v2658_v36 = vmul.f32 %v9832_v18, %v9832_v18  ;;  %v3061_v45 = vmul.f32 1.442695, %v3057_v39 }
0x16dc   :  { %2669 = vrot.lane.b32.xlu1 %v2658_v36, %s8340_s0  ;;  %7084 = vpow2.f32 %v3061_v45 }
0x16df   :  { %v3056_v50 = vpop.xlane.xlu0 %3055 }
0x16e0   :  { %v3060_v26 = vsub.f32 %v9809_v1, %v3056_v50 }
0x16e2   :  { %v7085_v20 = vpop.eup %7084  ;;  %v3067_v54 = vmul.f32 1.442695, %v3060_v26  ;;  %v7275_v26 = vld [vmem:[%s11009_s6 + $0x70] sm:$0xff] }
0x16e5   :  { %3049 = vmax.xlane.f32.xlu2 %v3048_v2 }
0x1706   :  { %v2664_v43 = vpop.permute.xlu2 %2663  ;;  %3052 = vmax.xlane.f32.xlu1 %v3051_v34 }
0x1707   :  { %v2675_v24 = vsel %vm876_vm4, %v9820_v52, %v2664_v43 }
0x1708   :  { %6477 = vmatmul.msk.f32.vlgmr.msra.gmra.mxu2 %vm915_vm5, %v2675_v24 }
0x170e   :  { %v2666_v60 = vpop.permute.xlu1 %2665 }
0x170f   :  { %v2676_v46 = vsel %vm876_vm4, %v9814_v56, %v2666_v60 }
0x1710   :  { %6478 = vmatmul.msk.f32.gmra.mxu2 %vm915_vm5, %v2676_v46 }
0x1716   :  { %v2668_v21 = vpop.permute.xlu2 %2667 }
0x1717   :  { %v2677_v42 = vsel %vm876_vm4, %v9826_v29, %v2668_v21 }
0x1718   :  { %6479 = vmatmul.msk.f32.gmra.mxu2 %vm915_vm5, %v2677_v42 }
0x174e   :  { %v2670_v25 = vpop.permute.xlu1 %2669 }
0x174f   :  { %v2678_v8 = vsel %vm876_vm4, %v9832_v18, %v2670_v25 }
0x1750   :  { %6480 = vmatmul.msk.f32.gmra.mxu2 %vm915_vm5, %v2678_v8  ;;  %v2979_v8 = vsel %vm876_vm4, %v9764_v49, %v9775_v32 }
0x1758   :  { %v3050_v27 = vpop.xlane.xlu2 %3049  ;;  %6499 = vmatmul.msk.f32.vlgmr.msrb.gmra.mxu2 %vm995_vm7, %v7085_v20 }
0x1759   :  { %v3058_v55 = vsub.f32 %v9802_v19, %v3050_v27 }
0x175b   :  { %v3063_v51 = vmul.f32 1.442695, %v3058_v55 }
0x175d   :  { %7086 = vpow2.f32 %v3063_v51 }
0x1763   :  { %v7087_v58 = vpop.eup %7086 }
0x1764   :  { %6500 = vmatmul.msk.f32.gmra.mxu2 %vm995_vm7, %v7087_v58 }
0x1779   :  { %v3053_v0 = vpop.xlane.xlu1 %3052 }
0x177a   :  { %v3059_v22 = vsub.f32 %v9804_v62, %v3053_v0 }
0x177c   :  { %v3065_v53 = vmul.f32 1.442695, %v3059_v22 }
0x177e   :  { %7088 = vpow2.f32 %v3065_v53  ;;  %v7274_v53 = vld [vmem:[%s11009_s6 + $0x78] sm:$0xff] }
0x177f   :  { %7090 = vpow2.f32 %v3067_v54  ;;  %v7276_v54 = vld [vmem:[%s11009_s6 + $0x68] sm:$0xff] }
0x1784   :  { %v7089_v59 = vpop.eup %7088 }
0x1785   :  { %6501 = vmatmul.msk.f32.gmra.mxu2 %vm995_vm7, %v7089_v59  ;;  %v7091_v48 = vpop.eup %7090 }
0x178b   :  { %v9861_v19 = vpop.f32.mrf.mxu2 }
0x178d   :  { %6502 = vmatmul.msk.f32.gmra.mxu2 %vm995_vm7, %v7091_v48 }
0x1793   :  { %v9863_v35 = vpop.f32.mrf.mxu2 }
0x179b   :  { %v9865_v63 = vpop.f32.mrf.mxu2 }
0x17d3   :  { %v9867_v62 = vpop.f32.mrf.mxu2 }
0x17db   :  { %v3098_v36 = vpop.f32.mrf.mxu2 }
0x17dc   :  { %7092 = vrcp.f32 %v3098_v36  ;;  %v7279_v36 = vld [vmem:[%s11009_s6 + $0x50] sm:$0xff] }
0x17e2   :  { %v7093_v1 = vpop.eup %7092 }
0x17e3   :  { %6504 = vmatmul.msk.f32.vlgmr.msrb.gmra.mxu3 %vm1065_vm9, %v7093_v1  ;;  %v7280_v1 = vld [vmem:[%s11009_s6 + $0x48] sm:$0xff] }
0x17e4   :  { %3738 = vmatpush.msrb.mxu3 %v9530_v40 }
0x17e6   :  { %3739 = vmatpush.msrb.mxu3 %v9534_v41 }
0x17e7   :  { %v3101_v2 = vpop.f32.mrf.mxu2 }
0x17e8   :  { %7094 = vrcp.f32 %v3101_v2  ;;  %v7281_v2 = vld [vmem:[%s11009_s6 + $0x40] sm:$0xff] }
0x17ee   :  { %v7095_v34 = vpop.eup %7094 }
0x17ef   :  { %6505 = vmatmul.msk.f32.gmra.mxu3 %vm1065_vm9, %v7095_v34  ;;  %v7282_v34 = vld [vmem:[%s11009_s6 + $0x38] sm:$0xff] }
0x1808   :  { %v3104_v43 = vpop.f32.mrf.mxu2 }
0x1809   :  { %7096 = vrcp.f32 %v3104_v43  ;;  %v7283_v43 = vld [vmem:[%s11009_s6 + $0x30] sm:$0xff] }
0x180f   :  { %v7097_v24 = vpop.eup %7096 }
0x1810   :  { %v3107_v60 = vpop.f32.mrf.mxu2  ;;  %6506 = vmatmul.msk.f32.gmra.mxu3 %vm1065_vm9, %v7097_v24  ;;  %v7284_v24 = vld [vmem:[%s11009_s6 + $0x28] sm:$0xff] }
0x1811   :  { %7098 = vrcp.f32 %v3107_v60 }
0x1817   :  { %v7099_v46 = vpop.eup %7098 }
0x1818   :  { %6507 = vmatmul.msk.f32.gmra.mxu3 %vm1065_vm9, %v7099_v46  ;;  %v7285_v46 = vld [vmem:[%s11009_s6 + $0x20] sm:$0xff] }
0x1866   :  { %v3143_v21 = vpop.f32.mrf.mxu3 }
0x1867   :  { %v3155_v42 = vmul.f32 %v7085_v20, %v3143_v21  ;;  %v2980_v20 = vsel %vm915_vm5, %v2979_v8, %v9666_v44  ;;  %v6766_v44 = vld [vmem:[#allocation22 + $0x8] sm:$0xff]  ;;  %v7286_v21 = vld [vmem:[%s11009_s6 + $0x18] sm:$0xff] }
0x1868   :  { %v2981_v27 = vsel %vm917_vm6, %v2980_v20, %v9785_v17  ;;  %3267 = vmatpush.bf16.msra.mxu2 %v6766_v44  ;;  %v6765_v17 = vld [vmem:[#allocation22] sm:$0xff] }
0x1869   :  { %6508 = vmatmul.msk.f32.vlgmr.msrb.gmra.mxu1 %vm995_vm7, %v3155_v42  ;;  %v7287_v42 = vld [vmem:[%s11009_s6 + $0x10] sm:$0xff] }
0x186c   :  { %3268 = vmatpush.bf16.msra.mxu2 %v6765_v17 }
0x1870   :  { %3659 = vmatpush.msrb.mxu2 %v7274_v53 }
0x1872   :  { %v3146_v40 = vpop.f32.mrf.mxu3  ;;  %3660 = vmatpush.msrb.mxu2 %v7275_v26 }
0x1873   :  { %v3156_v41 = vmul.f32 %v7087_v58, %v3146_v40  ;;  %v7288_v40 = vld [vmem:[%s11009_s6 + $0x8] sm:$0xff] }
0x1874   :  { %3661 = vmatpush.msrb.mxu2 %v7276_v54 }
0x1875   :  { %6509 = vmatmul.msk.f32.gmra.mxu1 %vm995_vm7, %v3156_v41 }
0x1893   :  { %v3149_v10 = vpop.f32.mrf.mxu3 }
0x1894   :  { %v3157_v39 = vmul.f32 %v7089_v59, %v3149_v10  ;;  %v7277_v59 = vld [vmem:[%s11009_s6 + $0x60] sm:$0xff] }
0x1895   :  { %3662 = vmatpush.msrb.mxu2 %v7277_v59  ;;  %v7289_v10 = vld [vmem:[%s11009_s6] sm:$0xff] }
0x1896   :  { %6510 = vmatmul.msk.f32.gmra.mxu1 %vm995_vm7, %v3157_v39 }
0x189b   :  { %v3152_v45 = vpop.f32.mrf.mxu3 }
0x189c   :  { %v3158_v25 = vmul.f32 %v7091_v48, %v3152_v45  ;;  %v7278_v48 = vld [vmem:[%s11009_s6 + $0x58] sm:$0xff] }
0x189d   :  { %3663 = vmatpush.msrb.mxu2 %v7278_v48 }
0x189e   :  { %6511 = vmatmul.msk.f32.gmra.mxu1 %vm995_vm7, %v3158_v25 }
0x189f   :  { %3664 = vmatpush.msrb.mxu2 %v7279_v36 }
0x18a1   :  { %3665 = vmatpush.msrb.mxu2 %v7280_v1 }
0x18a3   :  { %3666 = vmatpush.msrb.mxu2 %v7281_v2 }
0x18a5   :  { %3667 = vmatpush.msrb.mxu2 %v7282_v34 }
0x18a7   :  { %3668 = vmatpush.msrb.mxu2 %v7283_v43 }
0x18a9   :  { %3669 = vmatpush.msrb.mxu2 %v7284_v24 }
0x18ab   :  { %3670 = vmatpush.msrb.mxu2 %v7285_v46 }
0x18ad   :  { %3671 = vmatpush.msrb.mxu2 %v7286_v21 }
0x18af   :  { %3672 = vmatpush.msrb.mxu2 %v7287_v42 }
0x18b1   :  { %3673 = vmatpush.msrb.mxu2 %v7288_v40 }
0x18b3   :  { %3674 = vmatpush.msrb.mxu2 %v7289_v10 }
0x18e6   :  { %v3188_v55 = vpop.f32.mrf.mxu1 }
0x18e7   :  { %v3200_v51 = vmul.f32 %v3188_v55, %v2981_v27 }
0x18e9   :  { %3220 = vmatmul.f32.vlgmr.msrb.gmra.mxu0 %v3200_v51 }
0x18f2   :  { %v3191_v58 = vpop.f32.mrf.mxu1 }
0x18f3   :  { %v3201_v0 = vmul.f32 %v3191_v58, %v2981_v27 }
0x18f5   :  { %3223 = vmatmul.f32.gmra.mxu0 %v3201_v0 }
0x1913   :  { %v3194_v22 = vpop.f32.mrf.mxu1 }
0x1914   :  { %v3202_v50 = vmul.f32 %v3194_v22, %v2981_v27 }
0x1916   :  { %3226 = vmatmul.f32.gmra.mxu0 %v3202_v50 }
0x191b   :  { %v3197_v49 = vpop.f32.mrf.mxu1 }
0x191c   :  { %v3203_v32 = vmul.f32 %v3197_v49, %v2981_v27  ;;  %v2721_v27 = vmul.f32 %v9863_v35, %v9863_v35 }
0x191e   :  { %3229 = vmatmul.f32.gmra.mxu0 %v3203_v32 }
0x1966   :  { %v3221_v60 = vpop.f32.mrf.mxu0 }
0x1972   :  { %v3224_v41 = vpop.f32.mrf.mxu0 }
0x1973   :  { %v3238_v39 = vpack.c.bf16 %v3224_v41, %v3221_v60 }
0x1975   :  { %6520 = vmatmul.msk.bf16.vlgmr.msra.gmra.mxu2 %vm876_vm4, %v3238_v39 }
0x1976   :  { %3847 = vmatpush.msra.mxu2 %v9692_v9 }
0x1978   :  { %3848 = vmatpush.msra.mxu2 %v9696_v11 }
0x197a   :  { %3849 = vmatpush.msra.mxu2 %v9700_v12 }
0x197c   :  { %3850 = vmatpush.msra.mxu2 %v9704_v13  ;;  %v6990_v13 = vld [vmem:[#allocation23] ss:$0 sm:$0xff] }
0x197e   :  { %3851 = vmatpush.msra.mxu2 %v9708_v30 }
0x1980   :  { %3852 = vmatpush.msra.mxu2 %v9712_v37 }
0x1982   :  { %3853 = vmatpush.msra.mxu2 %v9716_v7 }
0x1984   :  { %3854 = vmatpush.msra.mxu2 %v9720_v16 }
0x1986   :  { %3855 = vmatpush.msra.mxu2 %v9724_v61 }
0x1988   :  { %3856 = vmatpush.msra.mxu2 %v9728_v6 }
0x198a   :  { %3857 = vmatpush.msra.mxu2 %v9732_v14 }
0x198c   :  { %3858 = vmatpush.msra.mxu2 %v9736_v38 }
0x198e   :  { %3859 = vmatpush.msra.mxu2 %v9740_v5  ;;  %v2720_v5 = vmul.f32 %v9861_v19, %v9861_v19 }
0x1990   :  { %3860 = vmatpush.msra.mxu2 %v9744_v15 }
0x1992   :  { %3861 = vmatpush.msra.mxu2 %v9748_v28 }
0x1993   :  { %v3227_v9 = vpop.f32.mrf.mxu0 }
0x1994   :  { %3862 = vmatpush.msra.mxu2 %v9754_v57 }
0x199b   :  { %v3230_v11 = vpop.f32.mrf.mxu0 }
0x199c   :  { %v3239_v12 = vpack.c.bf16 %v3230_v11, %v3227_v9 }
0x199e   :  { %6521 = vmatmul.msk.bf16.gmra.mxu2 %vm876_vm4, %v3239_v12 }
0x19f8   :  { %v3270_v30 = vpop.f32.mrf.mxu2 }
0x19f9   :  { %v3271_v37 = vadd.f32 %v6990_v13, %v3270_v30 }
0x19fb   :  { %v9921_v7 = vadd.f32 %v3271_v37, %v9620_v31  ;;  %v2723_v31 = vmul.f32 %v9867_v62, %v9867_v62 }
0x19fd   :  { %v3286_v16 = vmul.f32 %v9921_v7, %v9921_v7 }
0x19ff   :  { %3294 = vrot.lane.b32.xlu2 %v3286_v16, %s8340_s0 }
0x1a00   :  { %v3272_v61 = vpop.f32.mrf.mxu2 }
0x1a01   :  { %v3273_v6 = vadd.f32 %v6990_v13, %v3272_v61 }
0x1a03   :  { %v9927_v14 = vadd.f32 %v3273_v6, %v9618_v47 }
0x1a05   :  { %v3287_v38 = vmul.f32 %v9927_v14, %v9927_v14 }
0x1a07   :  { %3296 = vrot.lane.b32.xlu0 %v3287_v38, %s8340_s0  ;;  %2728 = vrot.lane.b32.xlu2 %v2720_v5, %s8298_s16 }
0x1a0f   :  { %2734 = vrot.lane.b32.xlu2 %v2723_v31, %s8298_s16 }
0x1a21   :  { %v3275_v15 = vpop.f32.mrf.mxu2 }
0x1a22   :  { %v3276_v28 = vadd.f32 %v6990_v13, %v3275_v15 }
0x1a24   :  { %v9939_v47 = vadd.f32 %v3276_v28, %v9625_v3  ;;  %v2722_v3 = vmul.f32 %v9865_v63, %v9865_v63 }
0x1a26   :  { %v3288_v57 = vmul.f32 %v9939_v47, %v9939_v47 }
0x1a28   :  { %3298 = vrot.lane.b32.xlu1 %v3288_v57, %s8340_s0 }
0x1a29   :  { %v3277_v45 = vpop.f32.mrf.mxu2 }
0x1a2a   :  { %v3278_v25 = vadd.f32 %v6990_v13, %v3277_v45 }
0x1a2c   :  { %v9945_v8 = vadd.f32 %v3278_v25, %v9627_v23 }
0x1a2e   :  { %v3289_v20 = vmul.f32 %v9945_v8, %v9945_v8 }
0x1a30   :  { %3300 = vrot.lane.b32.xlu0 %v3289_v20, %s8340_s0  ;;  %2730 = vrot.lane.b32.xlu1 %v2721_v27, %s8298_s16 }
0x1a38   :  { %2732 = vrot.lane.b32.xlu0 %v2722_v3, %s8298_s16 }
0x1a59   :  { %v3295_v55 = vpop.permute.xlu2 %3294 }
0x1a5a   :  { %v3306_v23 = vsel %vm876_vm4, %v9921_v7, %v3295_v55 }
0x1a5b   :  { %6522 = vmatmul.msk.f32.vlgmr.msra.gmra.mxu3 %vm915_vm5, %v3306_v23 }
0x1a61   :  { %v2729_v34 = vpop.permute.xlu2 %2728 }
0x1a62   :  { %v2740_v24 = vsub.f32 %v9861_v19, %v2729_v34 }
0x1a64   :  { %v2768_v46 = vadd.f32 1e-05, %v2740_v24 }
0x1a66   :  { %vm2778_vm0 = vweird.f32 %v2768_v46 }
0x1a69   :  { %v2735_v39 = vpop.permute.xlu2 %2734 }
0x1a6a   :  { %v2743_v9 = vsub.f32 %v9867_v62, %v2735_v39 }
0x1a6c   :  { %v2771_v30 = vadd.f32 1e-05, %v2743_v9  ;;  %v7290_v9 = vld [vmem:[#allocation55 + $0x8] sm:$0xff] }
0x1a79   :  { %v3297_v51 = vpop.permute.xlu0 %3296 }
0x1a7a   :  { %v3307_v58 = vsel %vm876_vm4, %v9927_v14, %v3297_v51 }
0x1a7b   :  { %6523 = vmatmul.msk.f32.gmra.mxu3 %vm915_vm5, %v3307_v58 }
0x1a9a   :  { %v3299_v0 = vpop.permute.xlu1 %3298 }
0x1a9b   :  { %v3308_v22 = vsel %vm876_vm4, %v9939_v47, %v3299_v0 }
0x1a9c   :  { %6524 = vmatmul.msk.f32.gmra.mxu3 %vm915_vm5, %v3308_v22 }
0x1aa2   :  { %v3301_v50 = vpop.permute.xlu0 %3300  ;;  %v2731_v17 = vpop.permute.xlu1 %2730 }
0x1aa3   :  { %v3309_v49 = vsel %vm876_vm4, %v9945_v8, %v3301_v50  ;;  %v2741_v53 = vsub.f32 %v9863_v35, %v2731_v17 }
0x1aa4   :  { %6525 = vmatmul.msk.f32.gmra.mxu3 %vm915_vm5, %v3309_v49 }
0x1aa5   :  { %v2769_v26 = vadd.f32 1e-05, %v2741_v53 }
0x1aa7   :  { %7100 = vrsqrt.f32 %v2769_v26  ;;  %vm2788_vm13 = vweird.f32 %v2769_v26 }
0x1aa8   :  { %7102 = vrsqrt.f32 %v2768_v46 }
0x1aaa   :  { %v2733_v42 = vpop.permute.xlu0 %2732 }
0x1aab   :  { %v2742_v40 = vsub.f32 %v9865_v63, %v2733_v42 }
0x1aad   :  { %v7101_v54 = vpop.eup %7100  ;;  %v2770_v41 = vadd.f32 1e-05, %v2742_v40 }
0x1aae   :  { %v2783_v59 = vmul.f32 %v7101_v54, %v2769_v26  ;;  %vm2789_vm12 = vweird.f32 %v7101_v54  ;;  %v7103_v10 = vpop.eup %7102 }
0x1aaf   :  { %vm2790_vm14 = vmor %vm2788_vm13, %vm2789_vm12  ;;  %7104 = vrsqrt.f32 %v2770_v41  ;;  %vm2779_vm15 = vweird.f32 %v7103_v10  ;;  %vm2798_vm3 = vweird.f32 %v2770_v41  ;;  %vm2808_vm12 = vweird.f32 %v2771_v30 }
0x1ab0   :  { %v2784_v1 = vmul.f32 %v7101_v54, %v2783_v59  ;;  %7106 = vrsqrt.f32 %v2771_v30  ;;  %vm2780_vm1 = vmor %vm2778_vm0, %vm2779_vm15 }
0x1ab2   :  { %v2785_v2 = vmul.f32 0.5, %v2784_v1 }
0x1ab4   :  { %v2786_v43 = vsub.f32 1.5, %v2785_v2 }
0x1ab5   :  { %v7105_v37 = vpop.eup %7104 }
0x1ab6   :  { %v2787_v60 = vmul.f32 %v7101_v54, %v2786_v43  ;;  %v2793_v61 = vmul.f32 %v7105_v37, %v2770_v41  ;;  %v7107_v15 = vpop.eup %7106  ;;  %vm2799_vm2 = vweird.f32 %v7105_v37 }
0x1ab7   :  { %v2803_v45 = vmul.f32 %v7107_v15, %v2771_v30  ;;  %vm2800_vm10 = vmor %vm2798_vm3, %vm2799_vm2  ;;  %vm2809_vm11 = vweird.f32 %v7107_v15 }
0x1ab8   :  { %v2791_v21 = vsel %vm2790_vm14, %v7101_v54, %v2787_v60  ;;  %v2794_v31 = vmul.f32 %v7105_v37, %v2793_v61  ;;  %vm2810_vm13 = vmor %vm2808_vm12, %vm2809_vm11 }
0x1ab9   :  { %v2804_v27 = vmul.f32 %v7107_v15, %v2803_v45 }
0x1aba   :  { %v2795_v57 = vmul.f32 0.5, %v2794_v31 }
0x1abc   :  { %v2796_v20 = vsub.f32 1.5, %v2795_v57 }
0x1abe   :  { %v2797_v3 = vmul.f32 %v7105_v37, %v2796_v20  ;;  %v6992_v20 = vld [vmem:[#allocation49] ss:$0 sm:$0xff] }
0x1ac0   :  { %v2801_v55 = vsel %vm2800_vm10, %v7105_v37, %v2797_v3 }
0x1ade   :  { %v9968_v32 = vpop.f32.mrf.mxu3 }
0x1adf   :  { %v3351_v44 = vmul.f32 %v9968_v32, %v9968_v32 }
0x1ae1   :  { %3359 = vrot.lane.b32.xlu1 %v3351_v44, %s8298_s16 }
0x1afe   :  { %v9974_v48 = vpop.f32.mrf.mxu3 }
0x1aff   :  { %v3352_v36 = vmul.f32 %v9974_v48, %v9974_v48 }
0x1b01   :  { %3361 = vrot.lane.b32.xlu0 %v3352_v36, %s8298_s16 }
0x1b09   :  { %2746 = vperm.xlu0 %6929, %v9861_v19   ;;  %v2773_v19 = vmul.f32 %v7103_v10, %v2768_v46 }
0x1b0b   :  { %v2774_v13 = vmul.f32 %v7103_v10, %v2773_v19 }
0x1b0d   :  { %v2775_v16 = vmul.f32 0.5, %v2774_v13 }
0x1b0f   :  { %v2776_v5 = vsub.f32 1.5, %v2775_v16 }
0x1b11   :  { %6932 = vset.pattern.permute.xlu0 %v11020_v4  ;;  %v2777_v28 = vmul.f32 %v7103_v10, %v2776_v5 }
0x1b12   :  { %2819 = vperm.xlu0 %6932, %v2791_v21   ;;  %v6770_v21 = vld [vmem:[#allocation28 + $0x8] sm:$0xff] }
0x1b13   :  { %v2781_v25 = vsel %vm2780_vm1, %v7103_v10, %v2777_v28  ;;  %3562 = vmatpush.bf16.msra.mxu0 %v6770_v21  ;;  %v6769_v10 = vld [vmem:[#allocation28] sm:$0xff]  ;;  %v6991_v28 = vld [vmem:[#allocation47] ss:$0 sm:$0xff]  ;;  %v6993_v21 = vld [vmem:[#allocation38] ss:$0 sm:$0xff] }
0x1b17   :  { %3563 = vmatpush.bf16.msra.mxu0 %v6769_v10 }
0x1b1a   :  { %6936 = vset.pattern.permute.xlu0 %v11016_v33 }
0x1b1b   :  { %3377 = vperm.xlu0 %6936, %v9968_v32   ;;  %3828 = vmatpush.msrb.mxu0 %v7290_v9 }
0x1b1f   :  { %v9986_v11 = vpop.f32.mrf.mxu3 }
0x1b20   :  { %v3353_v12 = vmul.f32 %v9986_v11, %v9986_v11 }
0x1b22   :  { %3363 = vrot.lane.b32.xlu2 %v3353_v12, %s8298_s16  ;;  %v7291_v12 = vld [vmem:[#allocation55] sm:$0xff] }
0x1b23   :  { %3829 = vmatpush.msrb.mxu0 %v7291_v12  ;;  %v10047_v12 = vld [vmem:[%s11013_s23 + $0x30] sm:$0xff] }
0x1b27   :  { %v9991_v6 = vpop.f32.mrf.mxu3 }
0x1b28   :  { %3392 = vperm.xlu0 %6936, %v9991_v6   ;;  %v3354_v38 = vmul.f32 %v9991_v6, %v9991_v6 }
0x1b2a   :  { %2751 = vperm.xlu2 %6931, %v9863_v35   ;;  %3365 = vrot.lane.b32.xlu1 %v3354_v38, %s8298_s16  ;;  %v2805_v35 = vmul.f32 0.5, %v2804_v27 }
0x1b2c   :  { %v2806_v23 = vsub.f32 1.5, %v2805_v35 }
0x1b2e   :  { %v2807_v51 = vmul.f32 %v7107_v15, %v2806_v23 }
0x1b30   :  { %6943 = vset.pattern.permute.xlu0 %v11020_v4 }
0x1b32   :  { %2756 = vperm.xlu2 %6931, %v9865_v63   ;;  %2814 = vperm.xlu1 %6930, %v2781_v25   ;;  %v2811_v63 = vsel %vm2810_vm13, %v7107_v15, %v2807_v51 }
0x1b3a   :  { %6934 = vset.pattern.permute.xlu2 %v11020_v4  ;;  %6933 = vset.pattern.permute.xlu1 %v11016_v33 }
0x1b3b   :  { %2824 = vperm.xlu2 %6934, %v2801_v55   ;;  %2761 = vperm.xlu1 %6933, %v9867_v62  }
0x1b43   :  { %6937 = vset.pattern.permute.xlu2 %v11016_v33  ;;  %6935 = vset.pattern.permute.xlu1 %v11020_v4 }
0x1b44   :  { %3382 = vperm.xlu2 %6937, %v9974_v48   ;;  %2829 = vperm.xlu1 %6935, %v2811_v63  }
0x1b4c   :  { %6938 = vset.pattern.permute.xlu2 %v11020_v4 }
0x1b53   :  { %v3360_v58 = vpop.permute.xlu1 %3359 }
0x1b54   :  { %v3371_v0 = vsub.f32 %v9968_v32, %v3360_v58 }
0x1b56   :  { %v3399_v22 = vadd.f32 1e-05, %v3371_v0 }
0x1b58   :  { %7108 = vrsqrt.f32 %v3399_v22  ;;  %vm3409_vm15 = vweird.f32 %v3399_v22 }
0x1b5e   :  { %v7109_v62 = vpop.eup %7108 }
0x1b5f   :  { %v3404_v50 = vmul.f32 %v7109_v62, %v3399_v22  ;;  %vm3410_vm14 = vweird.f32 %v7109_v62 }
0x1b60   :  { %vm3411_vm0 = vmor %vm3409_vm15, %vm3410_vm14 }
0x1b61   :  { %v3405_v49 = vmul.f32 %v7109_v62, %v3404_v50 }
0x1b63   :  { %v3406_v44 = vmul.f32 0.5, %v3405_v49 }
0x1b65   :  { %v3407_v17 = vsub.f32 1.5, %v3406_v44 }
0x1b67   :  { %v3408_v53 = vmul.f32 %v7109_v62, %v3407_v17 }
0x1b69   :  { %v3412_v26 = vsel %vm3411_vm0, %v7109_v62, %v3408_v53 }
0x1b6a   :  { %3445 = vperm.xlu1 %6935, %v3412_v26  }
0x1b72   :  { %6939 = vset.pattern.permute.xlu1 %v11016_v33 }
0x1b73   :  { %v3362_v54 = vpop.permute.xlu0 %3361  ;;  %3387 = vperm.xlu1 %6939, %v9986_v11  }
0x1b74   :  { %v3372_v32 = vsub.f32 %v9974_v48, %v3362_v54 }
0x1b76   :  { %v3400_v59 = vadd.f32 1e-05, %v3372_v32 }
0x1b78   :  { %7110 = vrsqrt.f32 %v3400_v59  ;;  %vm3419_vm2 = vweird.f32 %v3400_v59 }
0x1b7b   :  { %6940 = vset.pattern.permute.xlu1 %v11020_v4  ;;  %v2747_v37 = vpop.permute.xlu0 %2746 }
0x1b7c   :  { %v3364_v36 = vpop.permute.xlu2 %3363  ;;  %v2764_v45 = vsub.f32 %v9820_v52, %v2747_v37  ;;  %v10059_v37 = vld [vmem:[%s11013_s23 + $0x18] sm:$0xff] }
0x1b7d   :  { %v3373_v1 = vsub.f32 %v9986_v11, %v3364_v36 }
0x1b7e   :  { %v7111_v2 = vpop.eup %7110 }
0x1b7f   :  { %v3414_v34 = vmul.f32 %v7111_v2, %v3400_v59  ;;  %v3401_v43 = vadd.f32 1e-05, %v3373_v1  ;;  %vm3420_vm1 = vweird.f32 %v7111_v2 }
0x1b80   :  { %vm3421_vm3 = vmor %vm3419_vm2, %vm3420_vm1 }
0x1b81   :  { %v3415_v24 = vmul.f32 %v7111_v2, %v3414_v34  ;;  %7112 = vrsqrt.f32 %v3401_v43  ;;  %vm3429_vm11 = vweird.f32 %v3401_v43  ;;  %v6767_v34 = vld [vmem:[#allocation25] sm:$0xff] }
0x1b83   :  { %v3416_v60 = vmul.f32 0.5, %v3415_v24 }
0x1b84   :  { %v2752_v16 = vpop.permute.xlu2 %2751  ;;  %v2820_v15 = vpop.permute.xlu0 %2819 }
0x1b85   :  { %v3417_v46 = vsub.f32 1.5, %v3416_v60  ;;  %v2765_v38 = vsub.f32 %v9814_v56, %v2752_v16  ;;  %v10063_v16 = vld [vmem:[%s11013_s23 + $0x10] sm:$0xff] }
0x1b87   :  { %v7113_v42 = vpop.eup %7112  ;;  %v3418_v40 = vmul.f32 %v7111_v2, %v3417_v46  ;;  %v2833_v57 = vmul.f32 %v2820_v15, %v2765_v38  ;;  %v10071_v38 = vld [vmem:[%s11013_s23] sm:$0xff] }
0x1b88   :  { %v3424_v48 = vmul.f32 %v7113_v42, %v3401_v43  ;;  %vm3430_vm10 = vweird.f32 %v7113_v42  ;;  %v10029_v43 = vld [vmem:[%s8581_s17] sm:$0xf] }
0x1b89   :  { %v3422_v41 = vsel %vm3421_vm3, %v7111_v2, %v3418_v40  ;;  %vm3431_vm12 = vmor %vm3429_vm11, %vm3430_vm10  ;;  %v2840_v27 = vmul.f32 %v6991_v28, %v2833_v57 }
0x1b8a   :  { %v3425_v39 = vmul.f32 %v7113_v42, %v3424_v48  ;;  %3450 = vperm.xlu2 %6938, %v3422_v41   ;;  %v6994_v41 = vld [vmem:[#allocation40] ss:$0 sm:$0xff] }
0x1b8b   :  { %v2847_v63 = vadd.f32 %v6992_v20, %v2840_v27 }
0x1b8c   :  { %v3426_v19 = vmul.f32 0.5, %v3425_v39  ;;  %v2757_v35 = vpop.permute.xlu2 %2756 }
0x1b8d   :  { %v2766_v49 = vsub.f32 %v9826_v29, %v2757_v35  ;;  %v6768_v29 = vld [vmem:[#allocation25 + $0x8] sm:$0xff] }
0x1b8e   :  { %v3427_v11 = vsub.f32 1.5, %v3426_v19  ;;  %3515 = vmatpush.bf16.msra.mxu1 %v6768_v29 }
0x1b90   :  { %v3428_v13 = vmul.f32 %v7113_v42, %v3427_v11 }
0x1b92   :  { %v3432_v30 = vsel %vm3431_vm12, %v7113_v42, %v3428_v13  ;;  %3516 = vmatpush.bf16.msra.mxu1 %v6767_v34  ;;  %v10051_v13 = vld [vmem:[%s11013_s23 + $0x28] sm:$0xff] }
0x1b93   :  { %3455 = vperm.xlu2 %6938, %v3432_v30   ;;  %v10055_v30 = vld [vmem:[%s11013_s23 + $0x20] sm:$0xff] }
0x1b95   :  { %v2825_v52 = vpop.permute.xlu2 %2824 }
0x1b96   :  { %v2834_v17 = vmul.f32 %v2825_v52, %v2766_v49  ;;  %6550 = vmatpush.msk.msrb.mxu1 %vm1078_vm8, %v10029_v43 }
0x1b98   :  { %v2841_v54 = vmul.f32 %v6991_v28, %v2834_v17 }
0x1b9a   :  { %v2848_v36 = vadd.f32 %v6992_v20, %v2841_v54 }
0x1b9b   :  { %6942 = vset.pattern.permute.xlu2 %v11016_v33 }
0x1b9c   :  { %v3366_v61 = vpop.permute.xlu1 %3365 }
0x1b9d   :  { %v3374_v5 = vsub.f32 %v9991_v6, %v3366_v61  ;;  %v10067_v61 = vld [vmem:[%s11013_s23 + $0x8] sm:$0xff] }
0x1b9e   :  { %v3383_v24 = vpop.permute.xlu2 %3382 }
0x1b9f   :  { %v3402_v31 = vadd.f32 1e-05, %v3374_v5  ;;  %v3396_v40 = vsub.f32 %v9927_v14, %v3383_v24  ;;  %v10043_v14 = vld [vmem:[%s11013_s23 + $0x38] sm:$0xff] }
0x1ba1   :  { %7114 = vrsqrt.f32 %v3402_v31  ;;  %vm3439_vm14 = vweird.f32 %v3402_v31 }
0x1ba4   :  { %v2815_v25 = vpop.permute.xlu1 %2814 }
0x1ba5   :  { %v2832_v3 = vmul.f32 %v2815_v25, %v2764_v45 }
0x1ba7   :  { %v7115_v55 = vpop.eup %7114  ;;  %v2839_v23 = vmul.f32 %v6991_v28, %v2832_v3 }
0x1ba8   :  { %v3434_v51 = vmul.f32 %v7115_v55, %v3402_v31  ;;  %vm3440_vm13 = vweird.f32 %v7115_v55 }
0x1ba9   :  { %v2846_v58 = vadd.f32 %v6992_v20, %v2839_v23  ;;  %vm3441_vm15 = vmor %vm3439_vm14, %vm3440_vm13 }
0x1baa   :  { %v3435_v56 = vmul.f32 %v7115_v55, %v3434_v51 }
0x1bab   :  { %v10017_v0 = vpack.c.bf16 %v2847_v63, %v2846_v58  ;;  %v6995_v63 = vld [vmem:[#allocation29] ss:$0 sm:$0xff] }
0x1bac   :  { %v3436_v6 = vmul.f32 0.5, %v3435_v56 }
0x1bad   :  { %6544 = vmatmul.msk.bf16.vlgmr.msra.gmra.mxu0 %vm876_vm4, %v10017_v0  ;;  %v2762_v22 = vpop.permute.xlu1 %2761 }
0x1bae   :  { %v3437_v62 = vsub.f32 1.5, %v3436_v6  ;;  %v2767_v53 = vsub.f32 %v9832_v18, %v2762_v22  ;;  %v3378_v18 = vpop.permute.xlu0 %3377  ;;  %v6996_v6 = vld [vmem:[#allocation26] ss:$0 sm:$0xff] }
0x1baf   :  { %v3395_v46 = vsub.f32 %v9921_v7, %v3378_v18 }
0x1bb0   :  { %v3438_v50 = vmul.f32 %v7115_v55, %v3437_v62 }
0x1bb2   :  { %v3442_v44 = vsel %vm3441_vm15, %v7115_v55, %v3438_v50 }
0x1bb3   :  { %3460 = vperm.xlu1 %6940, %v3442_v44  }
0x1bb6   :  { %v2830_v26 = vpop.permute.xlu1 %2829 }
0x1bb7   :  { %v2835_v32 = vmul.f32 %v2830_v26, %v2767_v53 }
0x1bb9   :  { %v2842_v59 = vmul.f32 %v6991_v28, %v2835_v32  ;;  %v3393_v28 = vpop.permute.xlu0 %3392 }
0x1bba   :  { %v3398_v45 = vsub.f32 %v9945_v8, %v3393_v28 }
0x1bbb   :  { %v2849_v1 = vadd.f32 %v6992_v20, %v2842_v59  ;;  %6941 = vset.pattern.permute.xlu1 %v11016_v33 }
0x1bbd   :  { %v10024_v2 = vpack.c.bf16 %v2849_v1, %v2848_v36 }
0x1bbf   :  { %6545 = vmatmul.msk.bf16.gmra.mxu0 %vm876_vm4, %v10024_v2 }
0x1bdc   :  { %v3446_v60 = vpop.permute.xlu1 %3445 }
0x1bdd   :  { %v3463_v42 = vmul.f32 %v3446_v60, %v3395_v46 }
0x1bdf   :  { %v3470_v10 = vmul.f32 %v6993_v21, %v3463_v42 }
0x1be1   :  { %v10035_v9 = vadd.f32 %v6994_v41, %v3470_v10 }
0x1be4   :  { %v3451_v48 = vpop.permute.xlu2 %3450 }
0x1be5   :  { %v3464_v39 = vmul.f32 %v3451_v48, %v3396_v40  ;;  %v3388_v5 = vpop.permute.xlu1 %3387 }
0x1be6   :  { %v3397_v15 = vsub.f32 %v9939_v47, %v3388_v5 }
0x1be7   :  { %v3471_v19 = vmul.f32 %v6993_v21, %v3464_v39 }
0x1be9   :  { %v10037_v11 = vadd.f32 %v6994_v41, %v3471_v19 }
0x1beb   :  { %v3486_v7 = vpack.c.bf16 %v10037_v11, %v10035_v9 }
0x1bed   :  { %6534 = vmatmul.msk.bf16.vlgmr.msra.gmra.mxu1 %vm876_vm4, %v3486_v7  ;;  %v3456_v31 = vpop.permute.xlu2 %3455 }
0x1bee   :  { %3973 = vmatpush.msra.mxu1 %v10043_v14  ;;  %v3465_v57 = vmul.f32 %v3456_v31, %v3397_v15 }
0x1bf0   :  { %3974 = vmatpush.msra.mxu1 %v10047_v12  ;;  %v3472_v20 = vmul.f32 %v6993_v21, %v3465_v57 }
0x1bf2   :  { %3975 = vmatpush.msra.mxu1 %v10051_v13  ;;  %v10076_v35 = vadd.f32 %v6994_v41, %v3472_v20 }
0x1bf4   :  { %3976 = vmatpush.msra.mxu1 %v10055_v30 }
0x1bf6   :  { %3977 = vmatpush.msra.mxu1 %v10059_v37 }
0x1bf8   :  { %3978 = vmatpush.msra.mxu1 %v10063_v16 }
0x1bfa   :  { %3979 = vmatpush.msra.mxu1 %v10067_v61 }
0x1bfc   :  { %3980 = vmatpush.msra.mxu1 %v10071_v38 }
0x1c25   :  { %v3461_v25 = vpop.permute.xlu1 %3460 }
0x1c26   :  { %v3466_v27 = vmul.f32 %v3461_v25, %v3398_v45 }
0x1c28   :  { %v3473_v3 = vmul.f32 %v6993_v21, %v3466_v27 }
0x1c2a   :  { %v10078_v55 = vadd.f32 %v6994_v41, %v3473_v3  ;;  %v3565_v23 = vpop.f32.mrf.mxu0 }
0x1c2b   :  { %v3566_v1 = vadd.f32 %v6995_v63, %v3565_v23 }
0x1c2c   :  { %v3487_v51 = vpack.c.bf16 %v10078_v55, %v10076_v35 }
0x1c2e   :  { %6535 = vmatmul.msk.bf16.gmra.mxu1 %vm876_vm4, %v3487_v51 }
0x1c32   :  { %v3567_v47 = vpop.f32.mrf.mxu0 }
0x1c33   :  { %v10083_v58 = vadd.f32 %v6995_v63, %v3567_v47 }
0x1c35   :  { %3576 = vrot.lane.b32.xlu0 %v10083_v58, %s8340_s0 }
0x1c3c   :  { %v3570_v8 = vpop.f32.mrf.mxu0 }
0x1c3d   :  { %v10087_v56 = vadd.f32 %v6995_v63, %v3570_v8 }
0x1c3f   :  { %3580 = vrot.lane.b32.xlu1 %v10087_v56, %s8300_s28 }
0x1c44   :  { %v3572_v52 = vpop.f32.mrf.mxu0 }
0x1c45   :  { %v10094_v44 = vadd.f32 %v6995_v63, %v3572_v52 }
0x1c6a   :  { %v3518_v22 = vpop.f32.mrf.mxu1 }
0x1c6b   :  { %v3519_v62 = vadd.f32 %v6996_v6, %v3518_v22 }
0x1c6d   :  { %3631 = vrot.lane.b32.xlu1 %v3519_v62, %s8339_s1  ;;  %3619 = vrot.lane.b32.xlu0 %v3519_v62, %s8300_s28 }
0x1c6e   :  { %3607 = vrot.lane.b32.xlu2 %v3519_v62, %s8340_s0 }
0x1c72   :  { %v3520_v50 = vpop.f32.mrf.mxu1 }
0x1c73   :  { %v3521_v49 = vadd.f32 %v6996_v6, %v3520_v50 }
0x1c75   :  { %3633 = vrot.lane.b32.xlu1 %v3521_v49, %s8339_s1  ;;  %3609 = vrot.lane.b32.xlu0 %v3521_v49, %s8340_s0 }
0x1c76   :  { %3584 = vrot.lane.b32.xlu2 %v10094_v44, %s8339_s1 }
0x1c7e   :  { %3621 = vrot.lane.b32.xlu2 %v3521_v49, %s8300_s28 }
0x1ca7   :  { %v3577_v59 = vpop.permute.xlu0 %3576 }
0x1ca8   :  { %v3587_v34 = vsel %vm876_vm4, %v3566_v1, %v3577_v59 }
0x1cab   :  { %v3523_v17 = vpop.f32.mrf.mxu1 }
0x1cac   :  { %v3524_v53 = vadd.f32 %v6996_v6, %v3523_v17 }
0x1cae   :  { %3635 = vrot.lane.b32.xlu1 %v3524_v53, %s8339_s1  ;;  %3623 = vrot.lane.b32.xlu2 %v3524_v53, %s8300_s28 }
0x1caf   :  { %3611 = vrot.lane.b32.xlu0 %v3524_v53, %s8340_s0 }
0x1cb1   :  { %v3581_v36 = vpop.permute.xlu1 %3580 }
0x1cb2   :  { %v3588_v46 = vsel %vm915_vm5, %v3587_v34, %v3581_v36 }
0x1cb3   :  { %v3525_v26 = vpop.f32.mrf.mxu1 }
0x1cb4   :  { %v3526_v54 = vadd.f32 %v6996_v6, %v3525_v26 }
0x1cb6   :  { %3637 = vrot.lane.b32.xlu1 %v3526_v54, %s8339_s1  ;;  %3625 = vrot.lane.b32.xlu2 %v3526_v54, %s8300_s28 }
0x1cb7   :  { %3613 = vrot.lane.b32.xlu0 %v3526_v54, %s8340_s0 }
0x1cc8   :  { %v3608_v32 = vpop.permute.xlu2 %3607 }
0x1cc9   :  { %v3643_v18 = vsel %vm876_vm4, %v3519_v62, %v3608_v32 }
0x1cd0   :  { %v3585_v29 = vpop.permute.xlu2 %3584 }
0x1cd1   :  { %v3589_v42 = vsel %vm917_vm6, %v3588_v46, %v3585_v29 }
0x1cd8   :  { %v3622_v10 = vpop.permute.xlu2 %3621 }
0x1cdf   :  { %v3620_v24 = vpop.permute.xlu0 %3619  ;;  %v3632_v60 = vpop.permute.xlu1 %3631 }
0x1ce0   :  { %v3647_v21 = vsel %vm915_vm5, %v3643_v18, %v3620_v24 }
0x1ce1   :  { %v3651_v40 = vsel %vm917_vm6, %v3647_v21, %v3632_v60 }
0x1ce2   :  { %v3655_v48 = vmul.f32 %v3651_v40, %v3589_v42 }
0x1ce4   :  { %3675 = vmatmul.f32.vlgmr.msrb.gmra.mxu2 %v3655_v48 }
0x1ce7   :  { %v3610_v41 = vpop.permute.xlu0 %3609  ;;  %v3634_v7 = vpop.permute.xlu1 %3633 }
0x1ce8   :  { %v3644_v39 = vsel %vm876_vm4, %v3521_v49, %v3610_v41 }
0x1ce9   :  { %v3648_v19 = vsel %vm915_vm5, %v3644_v39, %v3622_v10 }
0x1cea   :  { %v3652_v5 = vsel %vm917_vm6, %v3648_v19, %v3634_v7 }
0x1ceb   :  { %v3656_v31 = vmul.f32 %v3652_v5, %v3589_v42 }
0x1ced   :  { %3678 = vmatmul.f32.gmra.mxu2 %v3656_v31 }
0x1d08   :  { %v3624_v15 = vpop.permute.xlu2 %3623 }
0x1d10   :  { %v3626_v23 = vpop.permute.xlu2 %3625 }
0x1d20   :  { %v3636_v57 = vpop.permute.xlu1 %3635 }
0x1d21   :  { %v3612_v28 = vpop.permute.xlu0 %3611 }
0x1d22   :  { %v3645_v45 = vsel %vm876_vm4, %v3524_v53, %v3612_v28 }
0x1d23   :  { %v3649_v25 = vsel %vm915_vm5, %v3645_v45, %v3624_v15 }
0x1d24   :  { %v3653_v20 = vsel %vm917_vm6, %v3649_v25, %v3636_v57 }
0x1d25   :  { %v3657_v27 = vmul.f32 %v3653_v20, %v3589_v42 }
0x1d27   :  { %3681 = vmatmul.f32.gmra.mxu2 %v3657_v27 }
0x1d28   :  { %v3638_v47 = vpop.permute.xlu1 %3637 }
0x1d29   :  { %v3614_v3 = vpop.permute.xlu0 %3613 }
0x1d2a   :  { %v3646_v51 = vsel %vm876_vm4, %v3526_v54, %v3614_v3 }
0x1d2b   :  { %v3650_v63 = vsel %vm915_vm5, %v3646_v51, %v3626_v23 }
0x1d2c   :  { %v3654_v8 = vsel %vm917_vm6, %v3650_v63, %v3638_v47 }
0x1d2d   :  { %v3658_v6 = vmul.f32 %v3654_v8, %v3589_v42 }
0x1d2f   :  { %3684 = vmatmul.f32.gmra.mxu2 %v3658_v6 }
0x1d67   :  { %v3676_v22 = vpop.f32.mrf.mxu2 }
0x1d68   :  { %v3688_v62 = vsel %vm995_vm7, %v3676_v22, -inf }
0x1d69   :  { %3689 = vmax.xlane.f32.xlu0 %v3688_v62 }
0x1d70   :  { %v3679_v52 = vpop.f32.mrf.mxu2 }
0x1d71   :  { %v3691_v50 = vsel %vm995_vm7, %v3679_v52, -inf }
0x1d72   :  { %3692 = vmax.xlane.f32.xlu2 %v3691_v50 }
0x1d8a   :  { %3591 = vrot.lane.b32.xlu2 %v3566_v1, %s8339_s1 }
0x1daa   :  { %v3682_v49 = vpop.f32.mrf.mxu2 }
0x1dab   :  { %v3694_v17 = vsel %vm995_vm7, %v3682_v49, -inf }
0x1dac   :  { %3695 = vmax.xlane.f32.xlu1 %v3694_v17 }
0x1db2   :  { %v3685_v53 = vpop.f32.mrf.mxu2 }
0x1db3   :  { %v3697_v26 = vsel %vm995_vm7, %v3685_v53, -inf }
0x1db4   :  { %3698 = vmax.xlane.f32.xlu0 %v3697_v26 }
0x1dc5   :  { %3594 = vrot.lane.b32.xlu1 %v10087_v56, %s8340_s0 }
0x1dc8   :  { %3597 = vrot.lane.b32.xlu0 %v10094_v44, %s8300_s28 }
0x1ddc   :  { %v3690_v54 = vpop.xlane.xlu0 %3689 }
0x1ddd   :  { %v3700_v32 = vsub.f32 %v3676_v22, %v3690_v54  ;;  %v6772_v54 = vld [vmem:[#allocation31 + $0x8] sm:$0xff] }
0x1dde   :  { %3910 = vmatpush.bf16.msra.mxu3 %v6772_v54 }
0x1ddf   :  { %v3704_v59 = vmul.f32 1.442695, %v3700_v32  ;;  %v6771_v32 = vld [vmem:[#allocation31] sm:$0xff] }
0x1de1   :  { %7116 = vpow2.f32 %v3704_v59 }
0x1de2   :  { %3911 = vmatpush.bf16.msra.mxu3 %v6771_v32 }
0x1de5   :  { %v3693_v36 = vpop.xlane.xlu2 %3692 }
0x1de6   :  { %v3701_v1 = vsub.f32 %v3679_v52, %v3693_v36 }
0x1de7   :  { %v7117_v29 = vpop.eup %7116 }
0x1de8   :  { %v3706_v34 = vmul.f32 1.442695, %v3701_v1  ;;  %6546 = vmatmul.msk.f32.vlgmr.msrb.gmra.mxu3 %vm995_vm7, %v7117_v29 }
0x1de9   :  { %4288 = vmatpush.msrb.mxu3 %v10043_v14 }
0x1dea   :  { %7118 = vpow2.f32 %v3706_v34 }
0x1deb   :  { %4289 = vmatpush.msrb.mxu3 %v10047_v12 }
0x1ded   :  { %v3592_v23 = vpop.permute.xlu2 %3591  ;;  %4290 = vmatpush.msrb.mxu3 %v10051_v13 }
0x1dee   :  { %v3600_v47 = vsel %vm876_vm4, %v3592_v23, %v10083_v58 }
0x1def   :  { %4291 = vmatpush.msrb.mxu3 %v10055_v30 }
0x1df0   :  { %v7119_v18 = vpop.eup %7118 }
0x1df1   :  { %6547 = vmatmul.msk.f32.gmra.mxu3 %vm995_vm7, %v7119_v18 }
0x1df2   :  { %4292 = vmatpush.msrb.mxu3 %v10059_v37 }
0x1df4   :  { %4293 = vmatpush.msrb.mxu3 %v10063_v16 }
0x1df6   :  { %4294 = vmatpush.msrb.mxu3 %v10067_v61 }
0x1df8   :  { %4295 = vmatpush.msrb.mxu3 %v10071_v38 }
0x1e1f   :  { %v3696_v24 = vpop.xlane.xlu1 %3695 }
0x1e20   :  { %v3702_v60 = vsub.f32 %v3682_v49, %v3696_v24 }
0x1e22   :  { %v3708_v56 = vmul.f32 1.442695, %v3702_v60 }
0x1e24   :  { %7120 = vpow2.f32 %v3708_v56 }
0x1e27   :  { %v3699_v46 = vpop.xlane.xlu0 %3698 }
0x1e28   :  { %v3703_v44 = vsub.f32 %v3685_v53, %v3699_v46 }
0x1e2a   :  { %v7121_v21 = vpop.eup %7120  ;;  %v3710_v42 = vmul.f32 1.442695, %v3703_v44 }
0x1e2b   :  { %6548 = vmatmul.msk.f32.gmra.mxu3 %vm995_vm7, %v7121_v21 }
0x1e2c   :  { %7122 = vpow2.f32 %v3710_v42 }
0x1e32   :  { %v7123_v40 = vpop.eup %7122 }
0x1e33   :  { %6549 = vmatmul.msk.f32.gmra.mxu3 %vm995_vm7, %v7123_v40 }
0x1e37   :  { %v3595_v51 = vpop.permute.xlu1 %3594 }
0x1e38   :  { %v3601_v8 = vsel %vm915_vm5, %v3600_v47, %v3595_v51 }
0x1e3a   :  { %v3598_v63 = vpop.permute.xlu0 %3597 }
0x1e3b   :  { %v3602_v6 = vsel %vm917_vm6, %v3601_v8, %v3598_v63 }
0x1e6b   :  { %v3741_v48 = vpop.f32.mrf.mxu3 }
0x1e6c   :  { %7124 = vrcp.f32 %v3741_v48 }
0x1e72   :  { %v7125_v41 = vpop.eup %7124 }
0x1e73   :  { %6551 = vmatmul.msk.f32.vlgmr.msrb.gmra.mxu1 %vm1065_vm9, %v7125_v41 }
0x1e74   :  { %v3744_v10 = vpop.f32.mrf.mxu3 }
0x1e75   :  { %7126 = vrcp.f32 %v3744_v10 }
0x1e7b   :  { %v7127_v39 = vpop.eup %7126 }
0x1e7c   :  { %6552 = vmatmul.msk.f32.gmra.mxu1 %vm1065_vm9, %v7127_v39 }
0x1eae   :  { %v3747_v19 = vpop.f32.mrf.mxu3 }
0x1eaf   :  { %7128 = vrcp.f32 %v3747_v19 }
0x1eb5   :  { %v7129_v7 = vpop.eup %7128 }
0x1eb6   :  { %v3750_v5 = vpop.f32.mrf.mxu3  ;;  %6553 = vmatmul.msk.f32.gmra.mxu1 %vm1065_vm9, %v7129_v7 }
0x1eb7   :  { %7130 = vrcp.f32 %v3750_v5 }
0x1ebd   :  { %v7131_v31 = vpop.eup %7130 }
0x1ebe   :  { %6554 = vmatmul.msk.f32.gmra.mxu1 %vm1065_vm9, %v7131_v31 }
0x1ef0   :  { %v3786_v15 = vpop.f32.mrf.mxu1 }
0x1ef1   :  { %v3798_v28 = vmul.f32 %v7117_v29, %v3786_v15 }
0x1ef3   :  { %6555 = vmatmul.msk.f32.vlgmr.msrb.gmra.mxu0 %vm995_vm7, %v3798_v28 }
0x1ef9   :  { %v3789_v57 = vpop.f32.mrf.mxu1 }
0x1efa   :  { %v3799_v45 = vmul.f32 %v7119_v18, %v3789_v57  ;;  %v6997_v18 = vld [vmem:[#allocation32] ss:$0 sm:$0xff] }
0x1efc   :  { %6556 = vmatmul.msk.f32.gmra.mxu0 %vm995_vm7, %v3799_v45 }
0x1f33   :  { %v3792_v25 = vpop.f32.mrf.mxu1 }
0x1f34   :  { %v3800_v20 = vmul.f32 %v7121_v21, %v3792_v25 }
0x1f36   :  { %6557 = vmatmul.msk.f32.gmra.mxu0 %vm995_vm7, %v3800_v20 }
0x1f3b   :  { %v3795_v27 = vpop.f32.mrf.mxu1 }
0x1f3c   :  { %v3801_v3 = vmul.f32 %v7123_v40, %v3795_v27 }
0x1f3e   :  { %6558 = vmatmul.msk.f32.gmra.mxu0 %vm995_vm7, %v3801_v3 }
0x1f70   :  { %v3831_v22 = vpop.f32.mrf.mxu0 }
0x1f71   :  { %v3843_v62 = vmul.f32 %v3831_v22, %v3602_v6 }
0x1f73   :  { %3863 = vmatmul.f32.vlgmr.msra.gmra.mxu2 %v3843_v62 }
0x1f79   :  { %v3834_v52 = vpop.f32.mrf.mxu0 }
0x1f7a   :  { %v3844_v50 = vmul.f32 %v3834_v52, %v3602_v6 }
0x1f7c   :  { %3866 = vmatmul.f32.gmra.mxu2 %v3844_v50 }
0x1fb3   :  { %v3837_v49 = vpop.f32.mrf.mxu0 }
0x1fb4   :  { %v3845_v17 = vmul.f32 %v3837_v49, %v3602_v6 }
0x1fb6   :  { %3869 = vmatmul.f32.gmra.mxu2 %v3845_v17 }
0x1fbb   :  { %v3840_v53 = vpop.f32.mrf.mxu0 }
0x1fbc   :  { %v3846_v26 = vmul.f32 %v3840_v53, %v3602_v6 }
0x1fbe   :  { %3872 = vmatmul.f32.gmra.mxu2 %v3846_v26 }
0x1ff6   :  { %v3864_v58 = vpop.f32.mrf.mxu2 }
0x1fff   :  { %v3867_v59 = vpop.f32.mrf.mxu2 }
0x2000   :  { %v3881_v36 = vpack.c.bf16 %v3867_v59, %v3864_v58 }
0x2002   :  { %6567 = vmatmul.msk.bf16.vlgmr.msra.gmra.mxu3 %vm876_vm4, %v3881_v36 }
0x2003   :  { %6619 = vmatpush.msk.msra.mxu3 %vm1078_vm8, %v10029_v43 }
0x2039   :  { %v3870_v1 = vpop.f32.mrf.mxu2 }
0x2041   :  { %v3873_v29 = vpop.f32.mrf.mxu2 }
0x2042   :  { %v3882_v34 = vpack.c.bf16 %v3873_v29, %v3870_v1 }
0x2044   :  { %6568 = vmatmul.msk.bf16.gmra.mxu3 %vm876_vm4, %v3882_v34 }
0x2085   :  { %v3913_v24 = vpop.f32.mrf.mxu3 }
0x2086   :  { %v3914_v60 = vadd.f32 %v6997_v18, %v3913_v24 }
0x2088   :  { %v10160_v56 = vadd.f32 %v3914_v60, %v10035_v9 }
0x208a   :  { %v3929_v46 = vmul.f32 %v10160_v56, %v10160_v56 }
0x208c   :  { %3937 = vrot.lane.b32.xlu2 %v3929_v46, %s8340_s0 }
0x208d   :  { %v3915_v44 = vpop.f32.mrf.mxu3 }
0x208e   :  { %v3916_v21 = vadd.f32 %v6997_v18, %v3915_v44 }
0x2090   :  { %v10166_v43 = vadd.f32 %v3916_v21, %v10037_v11 }
0x2092   :  { %v3930_v42 = vmul.f32 %v10166_v43, %v10166_v43 }
0x2094   :  { %3939 = vrot.lane.b32.xlu0 %v3930_v42, %s8340_s0 }
0x20c7   :  { %v3918_v40 = vpop.f32.mrf.mxu3 }
0x20c8   :  { %v3919_v48 = vadd.f32 %v6997_v18, %v3918_v40 }
0x20ca   :  { %v10172_v9 = vadd.f32 %v3919_v48, %v10076_v35 }
0x20cc   :  { %v3931_v41 = vmul.f32 %v10172_v9, %v10172_v9 }
0x20ce   :  { %3941 = vrot.lane.b32.xlu1 %v3931_v41, %s8340_s0 }
0x20cf   :  { %v3920_v10 = vpop.f32.mrf.mxu3 }
0x20d0   :  { %v3921_v39 = vadd.f32 %v6997_v18, %v3920_v10 }
0x20d2   :  { %v10178_v11 = vadd.f32 %v3921_v39, %v10078_v55 }
0x20d4   :  { %v3932_v19 = vmul.f32 %v10178_v11, %v10178_v11 }
0x20d6   :  { %3943 = vrot.lane.b32.xlu2 %v3932_v19, %s8340_s0 }
0x20e6   :  { %v3938_v7 = vpop.permute.xlu2 %3937 }
0x20e7   :  { %v3949_v35 = vsel %vm876_vm4, %v10160_v56, %v3938_v7 }
0x20e8   :  { %6569 = vmatmul.msk.f32.vlgmr.msra.gmra.mxu1 %vm915_vm5, %v3949_v35 }
0x2106   :  { %v3940_v5 = vpop.permute.xlu0 %3939 }
0x2107   :  { %v3950_v31 = vsel %vm876_vm4, %v10166_v43, %v3940_v5 }
0x2108   :  { %6570 = vmatmul.msk.f32.gmra.mxu1 %vm915_vm5, %v3950_v31 }
0x2130   :  { %v3944_v28 = vpop.permute.xlu2 %3943 }
0x2131   :  { %v3952_v57 = vsel %vm876_vm4, %v10178_v11, %v3944_v28 }
0x2140   :  { %v3942_v15 = vpop.permute.xlu1 %3941 }
0x2141   :  { %v3951_v55 = vsel %vm876_vm4, %v10172_v9, %v3942_v15 }
0x2142   :  { %6571 = vmatmul.msk.f32.gmra.mxu1 %vm915_vm5, %v3951_v55 }
0x214a   :  { %6572 = vmatmul.msk.f32.gmra.mxu1 %vm915_vm5, %v3952_v57 }
0x2165   :  { %v3982_v45 = vpop.f32.mrf.mxu1 }
0x2166   :  { %v3994_v25 = vmul.f32 %v3982_v45, %v3982_v45 }
0x2168   :  { %4002 = vrot.lane.b32.xlu0 %v3994_v25, %s8298_s16  ;;  %v6773_v25 = vld [vmem:[#allocation34] sm:$0xff] }
0x2185   :  { %v3985_v20 = vpop.f32.mrf.mxu1 }
0x2186   :  { %v3995_v27 = vmul.f32 %v3985_v20, %v3985_v20 }
0x2188   :  { %4004 = vrot.lane.b32.xlu1 %v3995_v27, %s8298_s16  ;;  %v10208_v27 = vld [vmem:[%s11009_s6 + $0x70] sm:$0xff] }
0x2190   :  { %4020 = vperm.xlu1 %6941, %v3982_v45  }
0x2198   :  { %6944 = vset.pattern.permute.xlu1 %v11020_v4 }
0x21bf   :  { %v3988_v3 = vpop.f32.mrf.mxu1 }
0x21c0   :  { %v3996_v23 = vmul.f32 %v3988_v3, %v3988_v3 }
0x21c2   :  { %4006 = vrot.lane.b32.xlu2 %v3996_v23, %s8298_s16  ;;  %v10216_v23 = vld [vmem:[%s11009_s6 + $0x60] sm:$0xff] }
0x21c7   :  { %v3991_v51 = vpop.f32.mrf.mxu1 }
0x21c8   :  { %v3997_v63 = vmul.f32 %v3991_v51, %v3991_v51 }
0x21ca   :  { %4025 = vperm.xlu2 %6942, %v3985_v20   ;;  %4008 = vrot.lane.b32.xlu0 %v3997_v63, %s8298_s16  ;;  %v10224_v63 = vld [vmem:[%s11009_s6 + $0x50] sm:$0xff] }
0x21d2   :  { %4030 = vperm.xlu2 %6942, %v3988_v3  }
0x21da   :  { %v4003_v47 = vpop.permute.xlu0 %4002  ;;  %6946 = vset.pattern.permute.xlu2 %v11020_v4 }
0x21db   :  { %v4014_v8 = vsub.f32 %v3982_v45, %v4003_v47  ;;  %v6774_v45 = vld [vmem:[#allocation34 + $0x8] sm:$0xff]  ;;  %v10228_v47 = vld [vmem:[%s11009_s6 + $0x48] sm:$0xff] }
0x21dc   :  { %4158 = vmatpush.bf16.msra.mxu0 %v6774_v45 }
0x21dd   :  { %v4042_v6 = vadd.f32 1e-05, %v4014_v8  ;;  %v10232_v8 = vld [vmem:[%s11009_s6 + $0x40] sm:$0xff] }
0x21df   :  { %7132 = vrsqrt.f32 %v4042_v6  ;;  %vm4052_vm1 = vweird.f32 %v4042_v6 }
0x21e0   :  { %4159 = vmatpush.bf16.msra.mxu0 %v6773_v25 }
0x21e5   :  { %v7133_v22 = vpop.eup %7132 }
0x21e6   :  { %v4047_v62 = vmul.f32 %v7133_v22, %v4042_v6  ;;  %vm4053_vm0 = vweird.f32 %v7133_v22 }
0x21e7   :  { %vm4054_vm2 = vmor %vm4052_vm1, %vm4053_vm0 }
0x21e8   :  { %v4048_v52 = vmul.f32 %v7133_v22, %v4047_v62 }
0x21ea   :  { %v4049_v50 = vmul.f32 0.5, %v4048_v52  ;;  %v10240_v52 = vld [vmem:[%s11009_s6 + $0x30] sm:$0xff] }
0x21ec   :  { %v4050_v49 = vsub.f32 1.5, %v4049_v50 }
0x21ee   :  { %v4051_v17 = vmul.f32 %v7133_v22, %v4050_v49 }
0x21f0   :  { %v4055_v53 = vsel %vm4054_vm2, %v7133_v22, %v4051_v17  ;;  %v10236_v22 = vld [vmem:[%s11009_s6 + $0x38] sm:$0xff]  ;;  %v10245_v17 = vld [vmem:[%s11009_s6 + $0x28] sm:$0xff] }
0x21f1   :  { %4088 = vperm.xlu0 %6943, %v4055_v53   ;;  %v10248_v53 = vld [vmem:[#allocation41] ss:$0 sm:$0xff] }
0x21fa   :  { %v4005_v26 = vpop.permute.xlu1 %4004 }
0x21fb   :  { %v4015_v54 = vsub.f32 %v3985_v20, %v4005_v26  ;;  %v10204_v20 = vld [vmem:[%s11009_s6 + $0x78] sm:$0xff] }
0x21fc   :  { %4550 = vmatpush.msrb.mxu0 %v10204_v20 }
0x21fd   :  { %v4043_v32 = vadd.f32 1e-05, %v4015_v54  ;;  %v10251_v54 = vld [vmem:[%s11009_s6 + $0x20] sm:$0xff] }
0x21fe   :  { %4551 = vmatpush.msrb.mxu0 %v10208_v27 }
0x21ff   :  { %7134 = vrsqrt.f32 %v4043_v32  ;;  %vm4062_vm10 = vweird.f32 %v4043_v32 }
0x2202   :  { %v4021_v6 = vpop.permute.xlu1 %4020 }
0x2203   :  { %v4038_v50 = vsub.f32 %v10160_v56, %v4021_v6  ;;  %v6999_v56 = vld [vmem:[#allocation43] ss:$0 sm:$0xff] }
0x2205   :  { %v7135_v58 = vpop.eup %7134 }
0x2206   :  { %v4057_v59 = vmul.f32 %v7135_v58, %v4043_v32  ;;  %vm4063_vm3 = vweird.f32 %v7135_v58 }
0x2207   :  { %vm4064_vm11 = vmor %vm4062_vm10, %vm4063_vm3 }
0x2208   :  { %v4058_v36 = vmul.f32 %v7135_v58, %v4057_v59  ;;  %v10256_v59 = vld [vmem:[%s11009_s6 + $0x18] sm:$0xff] }
0x220a   :  { %v4059_v1 = vmul.f32 0.5, %v4058_v36 }
0x220c   :  { %v4060_v29 = vsub.f32 1.5, %v4059_v1 }
0x220e   :  { %v4061_v34 = vmul.f32 %v7135_v58, %v4060_v29  ;;  %v10261_v29 = vld [vmem:[%s11009_s6 + $0x10] sm:$0xff] }
0x2210   :  { %v4065_v18 = vsel %vm4064_vm11, %v7135_v58, %v4061_v34 }
0x2211   :  { %4093 = vperm.xlu1 %6944, %v4065_v18  }
0x2219   :  { %6945 = vset.pattern.permute.xlu1 %v11016_v33 }
0x221a   :  { %4035 = vperm.xlu1 %6945, %v3991_v51  }
0x221c   :  { %v4007_v24 = vpop.permute.xlu2 %4006 }
0x221d   :  { %v4016_v60 = vsub.f32 %v3988_v3, %v4007_v24  ;;  %v10212_v3 = vld [vmem:[%s11009_s6 + $0x68] sm:$0xff] }
0x221e   :  { %4552 = vmatpush.msrb.mxu0 %v10212_v3 }
0x221f   :  { %v4044_v46 = vadd.f32 1e-05, %v4016_v60  ;;  %v10274_v60 = vld [vmem:[%s11009_s6] sm:$0xff] }
0x2220   :  { %4553 = vmatpush.msrb.mxu0 %v10216_v23 }
0x2221   :  { %7136 = vrsqrt.f32 %v4044_v46  ;;  %vm4072_vm13 = vweird.f32 %v4044_v46 }
0x2224   :  { %v4026_v49 = vpop.permute.xlu2 %4025 }
0x2225   :  { %v4039_v32 = vsub.f32 %v10166_v43, %v4026_v49  ;;  %v10266_v43 = vld [vmem:[%s11009_s6 + $0x8] sm:$0xff] }
0x2227   :  { %v7137_v44 = vpop.eup %7136 }
0x2228   :  { %v4067_v21 = vmul.f32 %v7137_v44, %v4044_v46  ;;  %vm4073_vm12 = vweird.f32 %v7137_v44 }
0x2229   :  { %vm4074_vm14 = vmor %vm4072_vm13, %vm4073_vm12 }
0x222a   :  { %v4068_v42 = vmul.f32 %v7137_v44, %v4067_v21  ;;  %v10285_v21 = vld [vmem:[%s8586_s30 + $0x70] sm:$0xff] }
0x222c   :  { %v4069_v40 = vmul.f32 0.5, %v4068_v42  ;;  %v10289_v42 = vld [vmem:[%s8586_s30 + $0x68] sm:$0xff] }
0x222e   :  { %v4070_v48 = vsub.f32 1.5, %v4069_v40  ;;  %v10293_v40 = vld [vmem:[%s8586_s30 + $0x60] sm:$0xff] }
0x2230   :  { %v4071_v41 = vmul.f32 %v7137_v44, %v4070_v48  ;;  %v10297_v48 = vld [vmem:[%s8586_s30 + $0x58] sm:$0xff] }
0x2232   :  { %v4075_v10 = vsel %vm4074_vm14, %v7137_v44, %v4071_v41  ;;  %v10281_v44 = vld [vmem:[%s8586_s30 + $0x78] sm:$0xff]  ;;  %v10301_v41 = vld [vmem:[%s8586_s30 + $0x50] sm:$0xff] }
0x2233   :  { %4098 = vperm.xlu2 %6946, %v4075_v10   ;;  %v10305_v10 = vld [vmem:[%s8586_s30 + $0x48] sm:$0xff] }
0x223c   :  { %v4009_v39 = vpop.permute.xlu0 %4008 }
0x223d   :  { %v4017_v19 = vsub.f32 %v3991_v51, %v4009_v39  ;;  %v10220_v51 = vld [vmem:[%s11009_s6 + $0x58] sm:$0xff]  ;;  %v10309_v39 = vld [vmem:[%s8586_s30 + $0x40] sm:$0xff] }
0x223e   :  { %4554 = vmatpush.msrb.mxu0 %v10220_v51 }
0x223f   :  { %v4045_v7 = vadd.f32 1e-05, %v4017_v19  ;;  %v10313_v19 = vld [vmem:[%s8586_s30 + $0x38] sm:$0xff] }
0x2240   :  { %4555 = vmatpush.msrb.mxu0 %v10224_v63 }
0x2241   :  { %7138 = vrsqrt.f32 %v4045_v7  ;;  %vm4082_vm0 = vweird.f32 %v4045_v7 }
0x2242   :  { %4556 = vmatpush.msrb.mxu0 %v10228_v47 }
0x2244   :  { %4557 = vmatpush.msrb.mxu0 %v10232_v8 }
0x2246   :  { %4558 = vmatpush.msrb.mxu0 %v10236_v22 }
0x2247   :  { %v7139_v35 = vpop.eup %7138 }
0x2248   :  { %v4077_v5 = vmul.f32 %v7139_v35, %v4045_v7  ;;  %vm4083_vm15 = vweird.f32 %v7139_v35  ;;  %4559 = vmatpush.msrb.mxu0 %v10240_v52  ;;  %v10317_v7 = vld [vmem:[%s8586_s30 + $0x30] sm:$0xff] }
0x2249   :  { %vm4084_vm1 = vmor %vm4082_vm0, %vm4083_vm15 }
0x224a   :  { %v4078_v31 = vmul.f32 %v7139_v35, %v4077_v5  ;;  %4560 = vmatpush.msrb.mxu0 %v10245_v17  ;;  %v10325_v5 = vld [vmem:[%s8586_s30 + $0x20] sm:$0xff] }
0x224c   :  { %v4079_v15 = vmul.f32 0.5, %v4078_v31  ;;  %4561 = vmatpush.msrb.mxu0 %v10251_v54  ;;  %v10329_v31 = vld [vmem:[%s8586_s30 + $0x18] sm:$0xff] }
0x224d   :  { %11026 = vst [vmem:[#allocation110_spill] sm:$0xff] %v10329_v31 }
0x224e   :  { %v4080_v55 = vsub.f32 1.5, %v4079_v15  ;;  %4562 = vmatpush.msrb.mxu0 %v10256_v59  ;;  %v10333_v15 = vld [vmem:[%s8586_s30 + $0x10] sm:$0xff] }
0x224f   :  { %11027 = vst [vmem:[#allocation111_spill] sm:$0xff] %v10333_v15 }
0x2250   :  { %v4081_v28 = vmul.f32 %v7139_v35, %v4080_v55  ;;  %4563 = vmatpush.msrb.mxu0 %v10261_v29  ;;  %v10337_v55 = vld [vmem:[%s8586_s30 + $0x8] sm:$0xff] }
0x2251   :  { %11028 = vst [vmem:[#allocation108_spill] sm:$0xff] %v10337_v55 }
0x2252   :  { %v4085_v57 = vsel %vm4084_vm1, %v7139_v35, %v4081_v28  ;;  %4564 = vmatpush.msrb.mxu0 %v10266_v43  ;;  %v10321_v35 = vld [vmem:[%s8586_s30 + $0x28] sm:$0xff]  ;;  %v10341_v28 = vld [vmem:[%s8586_s30] sm:$0xff]  ;;  %s8342_s30 = smov [#allocation56]  }
0x2253   :  { %4103 = vperm.xlu0 %6943, %v4085_v57   ;;  %11029 = vst [vmem:[#allocation109_spill] sm:$0xff] %v10341_v28  ;;  %v4031_v57 = vpop.permute.xlu2 %4030 }
0x2254   :  { %4565 = vmatpush.msrb.mxu0 %v10274_v60  ;;  %v4040_v25 = vsub.f32 %v10172_v9, %v4031_v57  ;;  %v6778_v9 = vld [vmem:[%s11030_s8 + $0x18] sm:$0xff]  ;;  %v6776_v57 = vld [vmem:[%s11030_s8 + $0x8] sm:$0xff] }
0x2255   :  { %4223 = vmatpush.bf16.msrb.mxu2 %v6778_v9 }
0x225b   :  { %6947 = vset.pattern.permute.xlu0 %v11016_v33 }
0x2263   :  { %v4089_v62 = vpop.permute.xlu0 %4088 }
0x2264   :  { %v4106_v26 = vmul.f32 %v4089_v62, %v4038_v50 }
0x2266   :  { %v4113_v36 = vmul.f32 %v10248_v53, %v4106_v26 }
0x2268   :  { %v10269_v18 = vadd.f32 %v6999_v56, %v4113_v36 }
0x2283   :  { %v4094_v58 = vpop.permute.xlu1 %4093 }
0x2284   :  { %v4107_v1 = vmul.f32 %v4094_v58, %v4039_v32 }
0x2286   :  { %v4114_v34 = vmul.f32 %v10248_v53, %v4107_v1 }
0x2288   :  { %v10271_v24 = vadd.f32 %v6999_v56, %v4114_v34 }
0x228a   :  { %v4129_v46 = vpack.c.bf16 %v10271_v24, %v10269_v18 }
0x228c   :  { %6581 = vmatmul.msk.bf16.vlgmr.msra.gmra.mxu0 %vm876_vm4, %v4129_v46  ;;  %v4036_v6 = vpop.permute.xlu1 %4035  ;;  %v6777_v46 = vld [vmem:[%s11030_s8 + $0x10] sm:$0xff] }
0x228d   :  { %4738 = vmatpush.msra.mxu0 %v10281_v44  ;;  %v4099_v45 = vpop.permute.xlu2 %4098  ;;  %v4041_v50 = vsub.f32 %v10178_v11, %v4036_v6  ;;  %4224 = vmatpush.bf16.msrb.mxu2 %v6777_v46  ;;  %v6775_v11 = vld [vmem:[%s11030_s8] sm:$0xff] }
0x228e   :  { %v4108_v62 = vmul.f32 %v4099_v45, %v4040_v25  ;;  %v10354_v45 = vld [vmem:[%s8576_s12 + $0x8] sm:$0xff]  ;;  %v10358_v25 = vld [vmem:[%s8576_s12] sm:$0xff]  ;;  %s6235_s12 = sshll.u32 %s8342_s30, 4  ;;  %s6236_s12 = int_to_ptr.vmem [resolvable:$true] %s6235_s12 }
0x228f   :  { %4739 = vmatpush.msra.mxu0 %v10285_v21 }
0x2290   :  { %v4115_v26 = vmul.f32 %v10248_v53, %v4108_v62 }
0x2291   :  { %4740 = vmatpush.msra.mxu0 %v10289_v42  ;;  %4225 = vmatpush.bf16.msrb.mxu2 %v6776_v57 }
0x2292   :  { %v4122_v36 = vadd.f32 %v6999_v56, %v4115_v26 }
0x2293   :  { %4741 = vmatpush.msra.mxu0 %v10293_v40 }
0x2295   :  { %4742 = vmatpush.msra.mxu0 %v10297_v48  ;;  %4226 = vmatpush.bf16.msrb.mxu2 %v6775_v11 }
0x2297   :  { %4743 = vmatpush.msra.mxu0 %v10301_v41 }
0x2299   :  { %4744 = vmatpush.msra.mxu0 %v10305_v10  ;;  %4629 = vmatpush.msra.mxu2 %v10354_v45 }
0x229b   :  { %4745 = vmatpush.msra.mxu0 %v10309_v39  ;;  %4630 = vmatpush.msra.mxu2 %v10358_v25 }
0x229d   :  { %4746 = vmatpush.msra.mxu0 %v10313_v19 }
0x229f   :  { %4747 = vmatpush.msra.mxu0 %v10317_v7 }
0x22a1   :  { %4748 = vmatpush.msra.mxu0 %v10321_v35 }
0x22a3   :  { %4749 = vmatpush.msra.mxu0 %v10325_v5 }
0x22a5   :  { %4750 = vmatpush.msra.mxu0 %v10329_v31 }
0x22a7   :  { %4751 = vmatpush.msra.mxu0 %v10333_v15 }
0x22a9   :  { %4752 = vmatpush.msra.mxu0 %v10337_v55  ;;  %v7001_v55 = vld [vmem:[#allocation37] ss:$0 sm:$0xff] }
0x22ab   :  { %4753 = vmatpush.msra.mxu0 %v10341_v28 }
0x22c5   :  { %v4104_v49 = vpop.permute.xlu0 %4103 }
0x22c6   :  { %v4109_v32 = vmul.f32 %v4104_v49, %v4041_v50 }
0x22c8   :  { %v4116_v58 = vmul.f32 %v10248_v53, %v4109_v32 }
0x22ca   :  { %v4123_v1 = vadd.f32 %v6999_v56, %v4116_v58  ;;  %v7000_v56 = vld [vmem:[#allocation35] ss:$0 sm:$0xff] }
0x22cc   :  { %v4130_v34 = vpack.c.bf16 %v4123_v1, %v4122_v36 }
0x22ce   :  { %6582 = vmatmul.msk.bf16.gmra.mxu0 %vm876_vm4, %v4130_v34 }
0x2309   :  { %v4161_v53 = vpop.f32.mrf.mxu0 }
0x230a   :  { %v4162_v6 = vadd.f32 %v7000_v56, %v4161_v53 }
0x230c   :  { %v4171_v49 = vmax.f32 %v4162_v6, 0.0 }
0x2311   :  { %v4163_v62 = vpop.f32.mrf.mxu0 }
0x2312   :  { %v4164_v50 = vadd.f32 %v7000_v56, %v4163_v62 }
0x2314   :  { %v4172_v26 = vmax.f32 %v4164_v50, 0.0 }
0x2316   :  { %v4184_v32 = vpack.c.bf16 %v4172_v26, %v4171_v49 }
0x2318   :  { %6599 = vmatmul.msk.bf16.vlgmr.msrb.gmra.mxu2 %vm915_vm5, %v4184_v32 }
0x234b   :  { %v4166_v58 = vpop.f32.mrf.mxu0 }
0x234c   :  { %v4167_v34 = vadd.f32 %v7000_v56, %v4166_v58 }
0x234e   :  { %v4173_v57 = vmax.f32 %v4167_v34, 0.0 }
0x2353   :  { %v4168_v9 = vpop.f32.mrf.mxu0 }
0x2354   :  { %v4169_v46 = vadd.f32 %v7000_v56, %v4168_v9 }
0x2356   :  { %v4174_v11 = vmax.f32 %v4169_v46, 0.0 }
0x2358   :  { %v4185_v28 = vpack.c.bf16 %v4174_v11, %v4173_v57 }
0x235a   :  { %6600 = vmatmul.msk.bf16.gmra.mxu2 %vm915_vm5, %v4185_v28 }
0x239b   :  { %v4228_v15 = vpop.f32.mrf.mxu2 }
0x239c   :  { %v4229_v31 = vadd.f32 %v7001_v55, %v4228_v15 }
0x239e   :  { %v10364_v53 = vadd.f32 %v4229_v31, %v10269_v18 }
0x23a0   :  { %v4244_v6 = vmul.f32 %v10364_v53, %v10364_v53 }
0x23a2   :  { %4252 = vrot.lane.b32.xlu1 %v4244_v6, %s8340_s0 }
0x23a3   :  { %v4230_v62 = vpop.f32.mrf.mxu2 }
0x23a4   :  { %v4231_v50 = vadd.f32 %v7001_v55, %v4230_v62 }
0x23a6   :  { %v10370_v56 = vadd.f32 %v4231_v50, %v10271_v24 }
0x23a8   :  { %v4245_v49 = vmul.f32 %v10370_v56, %v10370_v56 }
0x23aa   :  { %4254 = vrot.lane.b32.xlu2 %v4245_v49, %s8340_s0 }
0x23dd   :  { %v4233_v28 = vpop.f32.mrf.mxu2 }
0x23de   :  { %v4234_v15 = vadd.f32 %v7001_v55, %v4233_v28 }
0x23e0   :  { %v10375_v26 = vadd.f32 %v4234_v15, %v4122_v36 }
0x23e2   :  { %v4246_v18 = vmul.f32 %v10375_v26, %v10375_v26 }
0x23e4   :  { %4256 = vrot.lane.b32.xlu0 %v4246_v18, %s8340_s0 }
0x23e5   :  { %v4235_v31 = vpop.f32.mrf.mxu2 }
0x23e6   :  { %v4236_v32 = vadd.f32 %v7001_v55, %v4235_v31 }
0x23e8   :  { %v10380_v58 = vadd.f32 %v4236_v32, %v4123_v1 }
0x23ea   :  { %v4247_v24 = vmul.f32 %v10380_v58, %v10380_v58 }
0x23ec   :  { %4258 = vrot.lane.b32.xlu1 %v4247_v24, %s8340_s0 }
0x2404   :  { %v4255_v36 = vpop.permute.xlu2 %4254 }
0x2405   :  { %v4265_v55 = vsel %vm876_vm4, %v10370_v56, %v4255_v36 }
0x2414   :  { %v4253_v34 = vpop.permute.xlu1 %4252 }
0x2415   :  { %v4264_v9 = vsel %vm876_vm4, %v10364_v53, %v4253_v34 }
0x2416   :  { %6601 = vmatmul.msk.f32.vlgmr.msrb.gmra.mxu3 %vm915_vm5, %v4264_v9 }
0x2417   :  { %4868 = vmatpush.msrb.mxu3 %v10043_v14 }
0x2419   :  { %4869 = vmatpush.msrb.mxu3 %v10047_v12 }
0x241b   :  { %4870 = vmatpush.msrb.mxu3 %v10051_v13 }
0x241d   :  { %4871 = vmatpush.msrb.mxu3 %v10055_v30 }
0x241e   :  { %6602 = vmatmul.msk.f32.gmra.mxu3 %vm915_vm5, %v4265_v55 }
0x241f   :  { %4872 = vmatpush.msrb.mxu3 %v10059_v37 }
0x2421   :  { %4873 = vmatpush.msrb.mxu3 %v10063_v16 }
0x2423   :  { %4874 = vmatpush.msrb.mxu3 %v10067_v61 }
0x2425   :  { %4875 = vmatpush.msrb.mxu3 %v10071_v38 }
0x2456   :  { %v4257_v14 = vpop.permute.xlu0 %4256 }
0x2457   :  { %v4266_v12 = vsel %vm876_vm4, %v10375_v26, %v4257_v14 }
0x2458   :  { %6603 = vmatmul.msk.f32.gmra.mxu3 %vm915_vm5, %v4266_v12 }
0x245e   :  { %v4259_v13 = vpop.permute.xlu1 %4258 }
0x245f   :  { %v4267_v30 = vsel %vm876_vm4, %v10380_v58, %v4259_v13 }
0x2460   :  { %6604 = vmatmul.msk.f32.gmra.mxu3 %vm915_vm5, %v4267_v30 }
0x2499   :  { %v4297_v1 = vpop.f32.mrf.mxu3 }
0x249a   :  { %v4309_v37 = vmul.f32 %v4297_v1, %v4297_v1 }
0x249c   :  { %4317 = vrot.lane.b32.xlu2 %v4309_v37, %s8298_s16 }
0x24a1   :  { %v4300_v16 = vpop.f32.mrf.mxu3 }
0x24a2   :  { %v4310_v61 = vmul.f32 %v4300_v16, %v4300_v16 }
0x24a4   :  { %4319 = vrot.lane.b32.xlu0 %v4310_v61, %s8298_s16 }
0x24ac   :  { %4335 = vperm.xlu0 %6947, %v4297_v1  }
0x24db   :  { %v4303_v38 = vpop.f32.mrf.mxu3 }
0x24dc   :  { %v4311_v46 = vmul.f32 %v4303_v38, %v4303_v38 }
0x24de   :  { %4321 = vrot.lane.b32.xlu1 %v4311_v46, %s8298_s16 }
0x24e3   :  { %v4306_v57 = vpop.f32.mrf.mxu3 }
0x24e4   :  { %v4312_v11 = vmul.f32 %v4306_v57, %v4306_v57  ;;  %4350 = vperm.xlu0 %6947, %v4306_v57  }
0x24e6   :  { %4340 = vperm.xlu1 %6945, %v4300_v16   ;;  %4323 = vrot.lane.b32.xlu2 %v4312_v11, %s8298_s16 }
0x24ec   :  { %6953 = vset.pattern.permute.xlu0 %v11020_v4 }
0x24ee   :  { %6948 = vset.pattern.permute.xlu1 %v11020_v4 }
0x24f6   :  { %v4318_v6 = vpop.permute.xlu2 %4317 }
0x24f7   :  { %v4329_v62 = vsub.f32 %v4297_v1, %v4318_v6 }
0x24f9   :  { %v4357_v50 = vadd.f32 1e-05, %v4329_v62 }
0x24fb   :  { %7140 = vrsqrt.f32 %v4357_v50  ;;  %vm4367_vm3 = vweird.f32 %v4357_v50 }
0x2501   :  { %v7141_v49 = vpop.eup %7140 }
0x2502   :  { %v4362_v28 = vmul.f32 %v7141_v49, %v4357_v50  ;;  %vm4368_vm2 = vweird.f32 %v7141_v49 }
0x2503   :  { %vm4369_vm10 = vmor %vm4367_vm3, %vm4368_vm2 }
0x2504   :  { %v4363_v15 = vmul.f32 %v7141_v49, %v4362_v28 }
0x2506   :  { %v4364_v18 = vmul.f32 0.5, %v4363_v15 }
0x2508   :  { %v4365_v31 = vsub.f32 1.5, %v4364_v18 }
0x250a   :  { %v4366_v32 = vmul.f32 %v7141_v49, %v4365_v31 }
0x250c   :  { %v4370_v24 = vsel %vm4369_vm10, %v7141_v49, %v4366_v32 }
0x250d   :  { %4403 = vperm.xlu2 %6946, %v4370_v24  }
0x2515   :  { %6949 = vset.pattern.permute.xlu2 %v11016_v33 }
0x2516   :  { %v4320_v34 = vpop.permute.xlu0 %4319  ;;  %4345 = vperm.xlu2 %6949, %v4303_v38  }
0x2517   :  { %v4330_v9 = vsub.f32 %v4300_v16, %v4320_v34 }
0x2519   :  { %v4358_v36 = vadd.f32 1e-05, %v4330_v9 }
0x251b   :  { %7142 = vrsqrt.f32 %v4358_v36  ;;  %vm4377_vm12 = vweird.f32 %v4358_v36 }
0x251e   :  { %6950 = vset.pattern.permute.xlu2 %v11020_v4 }
0x2521   :  { %v7143_v55 = vpop.eup %7142 }
0x2522   :  { %v4372_v14 = vmul.f32 %v7143_v55, %v4358_v36  ;;  %vm4378_vm11 = vweird.f32 %v7143_v55 }
0x2523   :  { %vm4379_vm13 = vmor %vm4377_vm12, %vm4378_vm11 }
0x2524   :  { %v4373_v12 = vmul.f32 %v7143_v55, %v4372_v14  ;;  %v6780_v14 = vld [vmem:[#allocation19 + $0x18] sm:$0xff] }
0x2525   :  { %4475 = vmatpush.bf16.msrb.mxu1 %v6780_v14 }
0x2526   :  { %v4374_v13 = vmul.f32 0.5, %v4373_v12  ;;  %v6779_v12 = vld [vmem:[#allocation19 + $0x10] sm:$0xff] }
0x2528   :  { %v4375_v30 = vsub.f32 1.5, %v4374_v13  ;;  %v10415_v13 = vld [vmem:[#allocation55 + $0x8] sm:$0xff] }
0x2529   :  { %4476 = vmatpush.bf16.msrb.mxu1 %v6779_v12 }
0x252a   :  { %v4376_v1 = vmul.f32 %v7143_v55, %v4375_v30  ;;  %v10418_v30 = vld [vmem:[#allocation55] sm:$0xff] }
0x252c   :  { %v4380_v37 = vsel %vm4379_vm13, %v7143_v55, %v4376_v1  ;;  %v4336_v1 = vpop.permute.xlu0 %4335 }
0x252d   :  { %4408 = vperm.xlu1 %6948, %v4380_v37   ;;  %4719 = vmatpush.msra.mxu1 %v10415_v13 }
0x252f   :  { %4720 = vmatpush.msra.mxu1 %v10418_v30 }
0x2540   :  { %v4324_v61 = vpop.permute.xlu2 %4323 }
0x2541   :  { %v4332_v46 = vsub.f32 %v4306_v57, %v4324_v61 }
0x2543   :  { %v4360_v11 = vadd.f32 1e-05, %v4332_v46  ;;  %v4353_v46 = vsub.f32 %v10364_v53, %v4336_v1 }
0x2545   :  { %7144 = vrsqrt.f32 %v4360_v11  ;;  %vm4397_vm15 = vweird.f32 %v4360_v11 }
0x254b   :  { %v7145_v16 = vpop.eup %7144 }
0x254c   :  { %v4392_v6 = vmul.f32 %v7145_v16, %v4360_v11  ;;  %vm4398_vm14 = vweird.f32 %v7145_v16  ;;  %v7002_v11 = vld [vmem:[#allocation44] ss:$0 sm:$0xff] }
0x254d   :  { %vm4399_vm0 = vmor %vm4397_vm15, %vm4398_vm14 }
0x254e   :  { %v4393_v62 = vmul.f32 %v7145_v16, %v4392_v6 }
0x2550   :  { %v4394_v50 = vmul.f32 0.5, %v4393_v62  ;;  %v4322_v49 = vpop.permute.xlu1 %4321 }
0x2551   :  { %v4331_v28 = vsub.f32 %v4303_v38, %v4322_v49 }
0x2552   :  { %v4395_v15 = vsub.f32 1.5, %v4394_v50  ;;  %v7003_v50 = vld [vmem:[#allocation46] ss:$0 sm:$0xff] }
0x2553   :  { %v4359_v18 = vadd.f32 1e-05, %v4331_v28 }
0x2554   :  { %v4396_v31 = vmul.f32 %v7145_v16, %v4395_v15 }
0x2555   :  { %7146 = vrsqrt.f32 %v4359_v18  ;;  %vm4387_vm2 = vweird.f32 %v4359_v18 }
0x2556   :  { %v4400_v32 = vsel %vm4399_vm0, %v7145_v16, %v4396_v31  ;;  %v4351_v53 = vpop.permute.xlu0 %4350 }
0x2557   :  { %4418 = vperm.xlu2 %6950, %v4400_v32  }
0x2558   :  { %v4341_v37 = vpop.permute.xlu1 %4340 }
0x2559   :  { %v4354_v6 = vsub.f32 %v10370_v56, %v4341_v37 }
0x255b   :  { %v7147_v24 = vpop.eup %7146 }
0x255c   :  { %v4382_v34 = vmul.f32 %v7147_v24, %v4359_v18  ;;  %vm4388_vm1 = vweird.f32 %v7147_v24 }
0x255d   :  { %vm4389_vm3 = vmor %vm4387_vm2, %vm4388_vm1 }
0x255e   :  { %v4383_v57 = vmul.f32 %v7147_v24, %v4382_v34 }
0x255f   :  { %6952 = vset.pattern.permute.xlu2 %v11016_v33 }
0x2560   :  { %v4384_v9 = vmul.f32 0.5, %v4383_v57  ;;  %v4356_v57 = vsub.f32 %v10380_v58, %v4351_v53 }
0x2562   :  { %v4385_v36 = vsub.f32 1.5, %v4384_v9 }
0x2564   :  { %v4386_v55 = vmul.f32 %v7147_v24, %v4385_v36 }
0x2566   :  { %v4390_v38 = vsel %vm4389_vm3, %v7147_v24, %v4386_v55 }
0x2567   :  { %4413 = vperm.xlu1 %6948, %v4390_v38   ;;  %v4404_v61 = vpop.permute.xlu2 %4403 }
0x2568   :  { %v4421_v16 = vmul.f32 %v4404_v61, %v4353_v46  ;;  %v7004_v61 = vld [vmem:[#allocation20 + $0x1] ss:$0 sm:$0xff] }
0x256a   :  { %v4428_v49 = vmul.f32 %v7002_v11, %v4421_v16 }
0x256c   :  { %v10423_v18 = vadd.f32 %v7003_v50, %v4428_v49 }
0x256f   :  { %6951 = vset.pattern.permute.xlu1 %v11016_v33 }
0x2570   :  { %v4346_v24 = vpop.permute.xlu2 %4345 }
0x2571   :  { %v4355_v9 = vsub.f32 %v10375_v26, %v4346_v24 }
0x259f   :  { %v4409_v62 = vpop.permute.xlu1 %4408 }
0x25a0   :  { %v4422_v28 = vmul.f32 %v4409_v62, %v4354_v6 }
0x25a2   :  { %v4429_v15 = vmul.f32 %v7002_v11, %v4422_v28 }
0x25a4   :  { %v10425_v31 = vadd.f32 %v7003_v50, %v4429_v15 }
0x25a6   :  { %v4446_v32 = vpack.c.bf16 %v10425_v31, %v10423_v18 }
0x25a8   :  { %6613 = vmatmul.msk.bf16.vlgmr.msrb.gmra.mxu1 %vm876_vm4, %v4446_v32 }
0x25b1   :  { %v4419_v34 = vpop.permute.xlu2 %4418 }
0x25b2   :  { %v4424_v56 = vmul.f32 %v4419_v34, %v4356_v57 }
0x25b4   :  { %v4431_v55 = vmul.f32 %v7002_v11, %v4424_v56 }
0x25b6   :  { %v10432_v12 = vadd.f32 %v7003_v50, %v4431_v55 }
0x25d9   :  { %v4414_v36 = vpop.permute.xlu1 %4413 }
0x25da   :  { %v4423_v38 = vmul.f32 %v4414_v36, %v4355_v9 }
0x25dc   :  { %v4430_v14 = vmul.f32 %v7002_v11, %v4423_v38 }
0x25de   :  { %v10434_v1 = vadd.f32 %v7003_v50, %v4430_v14 }
0x25e0   :  { %v4447_v37 = vpack.c.bf16 %v10432_v12, %v10434_v1 }
0x25e2   :  { %6614 = vmatmul.msk.bf16.gmra.mxu1 %vm876_vm4, %v4447_v37 }
0x2625   :  { %v4478_v46 = vpop.f32.mrf.mxu1 }
0x2626   :  { %v4479_v16 = vadd.f32 %v7004_v61, %v4478_v46 }
0x2628   :  { %4516 = vrot.lane.b32.xlu1 %v4479_v16, %s8340_s0  ;;  %4489 = vrot.lane.b32.xlu0 %v4479_v16, %s8339_s1 }
0x262d   :  { %v4480_v26 = vpop.f32.mrf.mxu1 }
0x262e   :  { %v4481_v58 = vadd.f32 %v7004_v61, %v4480_v26 }
0x2630   :  { %4503 = vrot.lane.b32.xlu0 %v4479_v16, %s8300_s28 }
0x2638   :  { %4522 = vrot.lane.b32.xlu0 %v4481_v58, %s8300_s28 }
0x265f   :  { %v4483_v11 = vpop.f32.mrf.mxu1 }
0x2660   :  { %v10443_v6 = vadd.f32 %v7004_v61, %v4483_v11 }
0x2662   :  { %4528 = vrot.lane.b32.xlu0 %v10443_v6, %s8339_s1  ;;  %4493 = vrot.lane.b32.xlu2 %v10443_v6, %s8340_s0 }
0x2667   :  { %v4485_v62 = vpop.f32.mrf.mxu1 }
0x2668   :  { %v4486_v50 = vadd.f32 %v7004_v61, %v4485_v62 }
0x266a   :  { %4497 = vrot.lane.b32.xlu1 %v4486_v50, %s8300_s28  ;;  %4518 = vrot.lane.b32.xlu2 %v4481_v58, %s8340_s0 }
0x2672   :  { %4507 = vrot.lane.b32.xlu1 %v4481_v58, %s8339_s1  ;;  %4524 = vrot.lane.b32.xlu2 %v10443_v6, %s8300_s28 }
0x267a   :  { %4510 = vrot.lane.b32.xlu1 %v4486_v50, %s8340_s0  ;;  %4530 = vrot.lane.b32.xlu2 %v4486_v50, %s8339_s1 }
0x269a   :  { %v4490_v49 = vpop.permute.xlu0 %4489  ;;  %v4517_v28 = vpop.permute.xlu1 %4516 }
0x269b   :  { %v4534_v24 = vsel %vm876_vm4, %v4479_v16, %v4517_v28  ;;  %v4500_v34 = vsel %vm876_vm4, %v4490_v49, %v4481_v58 }
0x26a2   :  { %v10456_v32 = vpop.permute.xlu0 %4503 }
0x26a3   :  { %v4538_v53 = vsel %vm915_vm5, %v4534_v24, %v10456_v32 }
0x26a4   :  { %v4542_v9 = vsel %vm917_vm6, %v4538_v53, %v4490_v49 }
0x26aa   :  { %v4523_v37 = vpop.permute.xlu0 %4522 }
0x26bc   :  { %v4494_v15 = vpop.permute.xlu2 %4493 }
0x26bd   :  { %v4501_v57 = vsel %vm915_vm5, %v4500_v34, %v4494_v15  ;;  %v4536_v49 = vsel %vm876_vm4, %v10443_v6, %v4494_v15 }
0x26c4   :  { %v4519_v55 = vpop.permute.xlu2 %4518 }
0x26c5   :  { %v4535_v14 = vsel %vm876_vm4, %v4481_v58, %v4519_v55 }
0x26c6   :  { %v4539_v61 = vsel %vm915_vm5, %v4535_v14, %v4523_v37 }
0x26cc   :  { %v4525_v11 = vpop.permute.xlu2 %4524 }
0x26cd   :  { %v4540_v28 = vsel %vm915_vm5, %v4536_v49, %v4525_v11 }
0x26d4   :  { %v4529_v62 = vpop.permute.xlu0 %4528 }
0x26d5   :  { %v4544_v58 = vsel %vm917_vm6, %v4540_v28, %v4529_v62 }
0x26dc   :  { %v4498_v56 = vpop.permute.xlu1 %4497 }
0x26dd   :  { %v4502_v36 = vsel %vm917_vm6, %v4501_v57, %v4498_v56 }
0x26de   :  { %v4546_v38 = vmul.f32 %v4542_v9, %v4502_v36  ;;  %v4548_v34 = vmul.f32 %v4544_v58, %v4502_v36  ;;  %v4531_v9 = vpop.permute.xlu2 %4530 }
0x26e0   :  { %4566 = vmatmul.f32.vlgmr.msrb.gmra.mxu0 %v4546_v38 }
0x26e4   :  { %v10467_v46 = vpop.permute.xlu1 %4507 }
0x26e5   :  { %v4543_v16 = vsel %vm917_vm6, %v4539_v61, %v10467_v46 }
0x26e6   :  { %v4547_v26 = vmul.f32 %v4543_v16, %v4502_v36 }
0x26e8   :  { %4569 = vmatmul.f32.gmra.mxu0 %v4547_v26 }
0x26ec   :  { %v10474_v24 = vpop.permute.xlu1 %4510 }
0x26ed   :  { %v4537_v53 = vsel %vm876_vm4, %v4486_v50, %v10474_v24 }
0x26ee   :  { %v4541_v57 = vsel %vm915_vm5, %v4537_v53, %v4498_v56 }
0x26ef   :  { %v4545_v55 = vsel %vm917_vm6, %v4541_v57, %v4531_v9 }
0x26f0   :  { %4572 = vmatmul.f32.gmra.mxu0 %v4548_v34  ;;  %v4549_v38 = vmul.f32 %v4545_v55, %v4502_v36 }
0x26f8   :  { %4575 = vmatmul.f32.gmra.mxu0 %v4549_v38 }
0x275d   :  { %v4567_v14 = vpop.f32.mrf.mxu0 }
0x275e   :  { %v4579_v15 = vsel %vm995_vm7, %v4567_v14, -inf }
0x275f   :  { %4580 = vmax.xlane.f32.xlu0 %v4579_v15 }
0x2765   :  { %v4570_v37 = vpop.f32.mrf.mxu0 }
0x2766   :  { %v4582_v61 = vsel %vm995_vm7, %v4570_v37, -inf }
0x2767   :  { %4583 = vmax.xlane.f32.xlu1 %v4582_v61 }
0x276d   :  { %v4573_v16 = vpop.f32.mrf.mxu0 }
0x276e   :  { %v4585_v50 = vsel %vm995_vm7, %v4573_v16, -inf }
0x276f   :  { %4586 = vmax.xlane.f32.xlu2 %v4585_v50 }
0x2775   :  { %v4576_v26 = vpop.f32.mrf.mxu0 }
0x2776   :  { %v4588_v56 = vsel %vm995_vm7, %v4576_v26, -inf }
0x2777   :  { %4589 = vmax.xlane.f32.xlu0 %v4588_v56 }
0x27d2   :  { %v4581_v11 = vpop.xlane.xlu0 %4580 }
0x27d3   :  { %v4591_v62 = vsub.f32 %v4567_v14, %v4581_v11 }
0x27d5   :  { %v4595_v36 = vmul.f32 1.442695, %v4591_v62 }
0x27d7   :  { %7148 = vpow2.f32 %v4595_v36 }
0x27da   :  { %v4584_v49 = vpop.xlane.xlu1 %4583 }
0x27db   :  { %v4592_v28 = vsub.f32 %v4570_v37, %v4584_v49 }
0x27dd   :  { %v7149_v58 = vpop.eup %7148  ;;  %v4597_v53 = vmul.f32 1.442695, %v4592_v28 }
0x27de   :  { %6615 = vmatmul.msk.f32.vlgmr.msra.gmra.mxu2 %vm995_vm7, %v7149_v58 }
0x27df   :  { %7150 = vpow2.f32 %v4597_v53 }
0x27e2   :  { %v4587_v34 = vpop.xlane.xlu2 %4586 }
0x27e3   :  { %v4593_v57 = vsub.f32 %v4573_v16, %v4587_v34 }
0x27e5   :  { %v7151_v9 = vpop.eup %7150  ;;  %v4599_v55 = vmul.f32 1.442695, %v4593_v57 }
0x27e6   :  { %6616 = vmatmul.msk.f32.gmra.mxu2 %vm995_vm7, %v7151_v9 }
0x27e7   :  { %7152 = vpow2.f32 %v4599_v55 }
0x27ea   :  { %v4590_v38 = vpop.xlane.xlu0 %4589 }
0x27eb   :  { %v4594_v15 = vsub.f32 %v4576_v26, %v4590_v38 }
0x27ed   :  { %v7153_v61 = vpop.eup %7152  ;;  %v4601_v14 = vmul.f32 1.442695, %v4594_v15  ;;  %v6786_v15 = vld [vmem:[#allocation28 + $0x18] sm:$0xff] }
0x27ee   :  { %6617 = vmatmul.msk.f32.gmra.mxu2 %vm995_vm7, %v7153_v61  ;;  %5096 = vmatpush.bf16.msrb.mxu0 %v6786_v15 }
0x27ef   :  { %7154 = vpow2.f32 %v4601_v14  ;;  %v4513_v14 = vsel %vm876_vm4, %v10456_v32, %v10467_v46 }
0x27f5   :  { %v7155_v37 = vpop.eup %7154 }
0x27f6   :  { %6618 = vmatmul.msk.f32.gmra.mxu2 %vm995_vm7, %v7155_v37 }
0x2861   :  { %v4632_v50 = vpop.f32.mrf.mxu2 }
0x2862   :  { %7156 = vrcp.f32 %v4632_v50 }
0x2868   :  { %v7157_v56 = vpop.eup %7156 }
0x2869   :  { %v4635_v11 = vpop.f32.mrf.mxu2  ;;  %6620 = vmatmul.msk.f32.vlgmr.msra.gmra.mxu3 %vm1065_vm9, %v7157_v56 }
0x286a   :  { %7158 = vrcp.f32 %v4635_v11  ;;  %5272 = vmatpush.msra.mxu3 %v10354_v45 }
0x286c   :  { %5273 = vmatpush.msra.mxu3 %v10358_v25 }
0x2870   :  { %v7159_v16 = vpop.eup %7158 }
0x2871   :  { %v4638_v26 = vpop.f32.mrf.mxu2  ;;  %6621 = vmatmul.msk.f32.gmra.mxu3 %vm1065_vm9, %v7159_v16  ;;  %v6782_v16 = vld [vmem:[#allocation22 + $0x18] sm:$0xff] }
0x2872   :  { %7160 = vrcp.f32 %v4638_v26  ;;  %4803 = vmatpush.bf16.msrb.mxu2 %v6782_v16 }
0x2878   :  { %v7161_v62 = vpop.eup %7160 }
0x2879   :  { %v4641_v36 = vpop.f32.mrf.mxu2  ;;  %6622 = vmatmul.msk.f32.gmra.mxu3 %vm1065_vm9, %v7161_v62 }
0x287a   :  { %7162 = vrcp.f32 %v4641_v36 }
0x2880   :  { %v7163_v49 = vpop.eup %7162 }
0x2881   :  { %6623 = vmatmul.msk.f32.gmra.mxu3 %vm1065_vm9, %v7163_v49 }
0x28ec   :  { %v4677_v28 = vpop.f32.mrf.mxu3 }
0x28ed   :  { %v4689_v53 = vmul.f32 %v7149_v58, %v4677_v28  ;;  %v6785_v58 = vld [vmem:[#allocation28 + $0x10] sm:$0xff] }
0x28ee   :  { %5097 = vmatpush.bf16.msrb.mxu0 %v6785_v58 }
0x28ef   :  { %6624 = vmatmul.msk.f32.vlgmr.msra.gmra.mxu1 %vm995_vm7, %v4689_v53 }
0x28f4   :  { %v4680_v45 = vpop.f32.mrf.mxu3 }
0x28f5   :  { %v4690_v34 = vmul.f32 %v7151_v9, %v4680_v45  ;;  %v4514_v9 = vsel %vm915_vm5, %v4513_v14, %v10443_v6  ;;  %v6781_v6 = vld [vmem:[#allocation22 + $0x10] sm:$0xff] }
0x28f6   :  { %v4515_v50 = vsel %vm917_vm6, %v4514_v9, %v10474_v24  ;;  %4804 = vmatpush.bf16.msrb.mxu2 %v6781_v6 }
0x28f7   :  { %6625 = vmatmul.msk.f32.gmra.mxu1 %vm995_vm7, %v4690_v34 }
0x28fa   :  { %5193 = vmatpush.msra.mxu2 %v10204_v20 }
0x28fc   :  { %v4683_v25 = vpop.f32.mrf.mxu3  ;;  %5194 = vmatpush.msra.mxu2 %v10208_v27 }
0x28fd   :  { %v4691_v57 = vmul.f32 %v7153_v61, %v4683_v25 }
0x28fe   :  { %5195 = vmatpush.msra.mxu2 %v10212_v3 }
0x28ff   :  { %6626 = vmatmul.msk.f32.gmra.mxu1 %vm995_vm7, %v4691_v57 }
0x2900   :  { %5196 = vmatpush.msra.mxu2 %v10216_v23 }
0x2902   :  { %5197 = vmatpush.msra.mxu2 %v10220_v51  ;;  %v10539_v51 = vld [vmem:[#allocation29 + $0x1] ss:$0 sm:$0xff] }
0x2904   :  { %v4686_v55 = vpop.f32.mrf.mxu3  ;;  %5198 = vmatpush.msra.mxu2 %v10224_v63 }
0x2905   :  { %v4692_v38 = vmul.f32 %v7155_v37, %v4686_v55 }
0x2906   :  { %5199 = vmatpush.msra.mxu2 %v10228_v47 }
0x2907   :  { %6627 = vmatmul.msk.f32.gmra.mxu1 %vm995_vm7, %v4692_v38 }
0x2908   :  { %5200 = vmatpush.msra.mxu2 %v10232_v8  ;;  %v11031_v8 = vld [vmem:[#allocation110_spill] sm:$0xff] }
0x290a   :  { %5201 = vmatpush.msra.mxu2 %v10236_v22  ;;  %v11032_v22 = vld [vmem:[#allocation111_spill] sm:$0xff] }
0x290c   :  { %5202 = vmatpush.msra.mxu2 %v10240_v52  ;;  %v11033_v52 = vld [vmem:[#allocation108_spill] sm:$0xff] }
0x290e   :  { %5203 = vmatpush.msra.mxu2 %v10245_v17  ;;  %v11034_v17 = vld [vmem:[#allocation109_spill] sm:$0xff] }
0x2910   :  { %5204 = vmatpush.msra.mxu2 %v10251_v54  ;;  %v7006_v54 = vld [vmem:[#allocation23 + $0x1] ss:$0 sm:$0xff] }
0x2912   :  { %5205 = vmatpush.msra.mxu2 %v10256_v59 }
0x2914   :  { %5206 = vmatpush.msra.mxu2 %v10261_v29 }
0x2916   :  { %5207 = vmatpush.msra.mxu2 %v10266_v43 }
0x2918   :  { %5208 = vmatpush.msra.mxu2 %v10274_v60 }
0x296c   :  { %v4722_v61 = vpop.f32.mrf.mxu1 }
0x296d   :  { %v4734_v56 = vmul.f32 %v4722_v61, %v4515_v50 }
0x296f   :  { %4754 = vmatmul.f32.vlgmr.msra.gmra.mxu0 %v4734_v56 }
0x2970   :  { %5362 = vmatpush.msra.mxu0 %v10415_v13 }
0x2972   :  { %5363 = vmatpush.msra.mxu0 %v10418_v30 }
0x2974   :  { %v4725_v37 = vpop.f32.mrf.mxu1 }
0x2975   :  { %v4735_v11 = vmul.f32 %v4725_v37, %v4515_v50 }
0x2977   :  { %4757 = vmatmul.f32.gmra.mxu0 %v4735_v11 }
0x297c   :  { %v4728_v32 = vpop.f32.mrf.mxu1 }
0x297d   :  { %v4736_v46 = vmul.f32 %v4728_v32, %v4515_v50 }
0x297f   :  { %4760 = vmatmul.f32.gmra.mxu0 %v4736_v46 }
0x2984   :  { %v4731_v26 = vpop.f32.mrf.mxu1 }
0x2985   :  { %v4737_v62 = vmul.f32 %v4731_v26, %v4515_v50 }
0x2987   :  { %4763 = vmatmul.f32.gmra.mxu0 %v4737_v62 }
0x298f   :  { %6660 = vmatmul.msk.bf16.vlgmr.msrb.gmra.mxu0 %vm876_vm4, %v10017_v0 }
0x299f   :  { %6661 = vmatmul.msk.bf16.gmra.mxu0 %vm876_vm4, %v10024_v2 }
0x29ec   :  { %v4755_v0 = vpop.f32.mrf.mxu0 }
0x29f4   :  { %v4758_v20 = vpop.f32.mrf.mxu0 }
0x29f5   :  { %v4774_v27 = vpack.c.bf16 %v4758_v20, %v4755_v0 }
0x29f7   :  { %6636 = vmatmul.msk.bf16.vlgmr.msrb.gmra.mxu2 %vm876_vm4, %v4774_v27 }
0x29f8   :  { %5381 = vmatpush.msrb.mxu2 %v10281_v44 }
0x29fa   :  { %5382 = vmatpush.msrb.mxu2 %v10285_v21 }
0x29fc   :  { %v4761_v3 = vpop.f32.mrf.mxu0  ;;  %5383 = vmatpush.msrb.mxu2 %v10289_v42 }
0x29fe   :  { %5384 = vmatpush.msrb.mxu2 %v10293_v40 }
0x2a00   :  { %5385 = vmatpush.msrb.mxu2 %v10297_v48 }
0x2a02   :  { %5386 = vmatpush.msrb.mxu2 %v10301_v41 }
0x2a04   :  { %v4764_v2 = vpop.f32.mrf.mxu0  ;;  %5387 = vmatpush.msrb.mxu2 %v10305_v10 }
0x2a05   :  { %v4775_v23 = vpack.c.bf16 %v4764_v2, %v4761_v3 }
0x2a06   :  { %5388 = vmatpush.msrb.mxu2 %v10309_v39 }
0x2a07   :  { %6637 = vmatmul.msk.bf16.gmra.mxu2 %vm876_vm4, %v4775_v23 }
0x2a08   :  { %5389 = vmatpush.msrb.mxu2 %v10313_v19 }
0x2a0a   :  { %5390 = vmatpush.msrb.mxu2 %v10317_v7 }
0x2a0c   :  { %v5099_v63 = vpop.f32.mrf.mxu0  ;;  %5391 = vmatpush.msrb.mxu2 %v10321_v35 }
0x2a0d   :  { %v10544_v47 = vadd.f32 %v10539_v51, %v5099_v63 }
0x2a0e   :  { %5392 = vmatpush.msrb.mxu2 %v10325_v5 }
0x2a10   :  { %5393 = vmatpush.msrb.mxu2 %v11031_v8 }
0x2a12   :  { %5394 = vmatpush.msrb.mxu2 %v11032_v22 }
0x2a14   :  { %5395 = vmatpush.msrb.mxu2 %v11033_v52 }
0x2a16   :  { %5396 = vmatpush.msrb.mxu2 %v11034_v17 }
0x2a7a   :  { %v4806_v59 = vpop.f32.mrf.mxu2 }
0x2a7b   :  { %v4807_v29 = vadd.f32 %v7006_v54, %v4806_v59 }
0x2a7d   :  { %v10552_v43 = vadd.f32 %v4807_v29, %v10423_v18 }
0x2a7f   :  { %v4824_v60 = vmul.f32 %v10552_v43, %v10552_v43 }
0x2a81   :  { %4832 = vrot.lane.b32.xlu2 %v4824_v60, %s8340_s0 }
0x2a82   :  { %v4808_v44 = vpop.f32.mrf.mxu2 }
0x2a83   :  { %v4809_v21 = vadd.f32 %v7006_v54, %v4808_v44 }
0x2a85   :  { %v10558_v42 = vadd.f32 %v4809_v21, %v10425_v31 }
0x2a87   :  { %v4825_v40 = vmul.f32 %v10558_v42, %v10558_v42 }
0x2a89   :  { %4834 = vrot.lane.b32.xlu1 %v4825_v40, %s8340_s0 }
0x2a8a   :  { %v4811_v48 = vpop.f32.mrf.mxu2 }
0x2a8b   :  { %v4812_v41 = vadd.f32 %v7006_v54, %v4811_v48 }
0x2a8d   :  { %v10564_v10 = vadd.f32 %v4812_v41, %v10434_v1 }
0x2a8f   :  { %v4826_v39 = vmul.f32 %v10564_v10, %v10564_v10 }
0x2a91   :  { %4836 = vrot.lane.b32.xlu0 %v4826_v39, %s8340_s0  ;;  %v5101_v39 = vpop.f32.mrf.mxu0 }
0x2a92   :  { %v4813_v19 = vpop.f32.mrf.mxu2 }
0x2a93   :  { %v4814_v7 = vadd.f32 %v7006_v54, %v4813_v19 }
0x2a95   :  { %v10570_v35 = vadd.f32 %v4814_v7, %v10432_v12 }
0x2a97   :  { %v4827_v5 = vmul.f32 %v10570_v35, %v10570_v35 }
0x2a99   :  { %4838 = vrot.lane.b32.xlu2 %v4827_v5, %s8340_s0 }
0x2adb   :  { %v4833_v13 = vpop.permute.xlu2 %4832 }
0x2adc   :  { %v4844_v30 = vsel %vm876_vm4, %v10552_v43, %v4833_v13  ;;  %v10595_v13 = vadd.f32 %v10539_v51, %v5101_v39 }
0x2add   :  { %6638 = vmatmul.msk.f32.vlgmr.msrb.gmra.mxu3 %vm915_vm5, %v4844_v30 }
0x2af3   :  { %v4839_v24 = vpop.permute.xlu2 %4838 }
0x2af4   :  { %v4847_v36 = vsel %vm876_vm4, %v10570_v35, %v4839_v24  ;;  %v7337_v24 = vld [vmem:[%s8581_s17] sm:$0xf]  ;;  %s11035_s17 = sld [smem:[#allocation102_spill]] }
0x2afb   :  { %v4835_v18 = vpop.permute.xlu1 %4834 }
0x2afc   :  { %v4845_v31 = vsel %vm876_vm4, %v10558_v42, %v4835_v18  ;;  %v5104_v18 = vpop.f32.mrf.mxu0 }
0x2afd   :  { %6639 = vmatmul.msk.f32.gmra.mxu3 %vm915_vm5, %v4845_v31  ;;  %v10600_v31 = vadd.f32 %v10539_v51, %v5104_v18 }
0x2b03   :  { %v4837_v1 = vpop.permute.xlu0 %4836 }
0x2b04   :  { %v4846_v12 = vsel %vm876_vm4, %v10564_v10, %v4837_v1  ;;  %v6784_v1 = vld [vmem:[#allocation25 + $0x18] sm:$0xff] }
0x2b05   :  { %6640 = vmatmul.msk.f32.gmra.mxu3 %vm915_vm5, %v4846_v12  ;;  %5055 = vmatpush.bf16.msrb.mxu1 %v6784_v1  ;;  %v6783_v12 = vld [vmem:[#allocation25 + $0x10] sm:$0xff] }
0x2b09   :  { %5056 = vmatpush.bf16.msrb.mxu1 %v6783_v12 }
0x2b0d   :  { %6641 = vmatmul.msk.f32.gmra.mxu3 %vm915_vm5, %v4847_v36  ;;  %6666 = vmatpush.msk.msra.mxu1 %vm1078_vm8, %v7337_v24 }
0x2b60   :  { %v4877_v49 = vpop.f32.mrf.mxu3 }
0x2b61   :  { %v4889_v28 = vmul.f32 %v4877_v49, %v4877_v49 }
0x2b63   :  { %4897 = vrot.lane.b32.xlu0 %v4889_v28, %s8298_s16 }
0x2b80   :  { %v4880_v53 = vpop.f32.mrf.mxu3 }
0x2b81   :  { %v4890_v45 = vmul.f32 %v4880_v53, %v4880_v53 }
0x2b83   :  { %4899 = vrot.lane.b32.xlu1 %v4890_v45, %s8298_s16 }
0x2b88   :  { %v4883_v34 = vpop.f32.mrf.mxu3 }
0x2b89   :  { %v4891_v25 = vmul.f32 %v4883_v34, %v4883_v34 }
0x2b8b   :  { %4915 = vperm.xlu1 %6951, %v4877_v49   ;;  %4901 = vrot.lane.b32.xlu2 %v4891_v25, %s8298_s16  ;;  %v7007_v25 = vld [vmem:[#allocation38 + $0x1] ss:$0 sm:$0xff] }
0x2b90   :  { %v4886_v57 = vpop.f32.mrf.mxu3 }
0x2b91   :  { %v4892_v55 = vmul.f32 %v4886_v57, %v4886_v57 }
0x2b93   :  { %4920 = vperm.xlu2 %6952, %v4880_v53   ;;  %4903 = vrot.lane.b32.xlu0 %v4892_v55, %s8298_s16 }
0x2b94   :  { %6954 = vset.pattern.permute.xlu1 %v11020_v4 }
0x2b9b   :  { %4925 = vperm.xlu2 %6952, %v4883_v34  }
0x2ba3   :  { %6956 = vset.pattern.permute.xlu2 %v11020_v4 }
0x2bd5   :  { %v4898_v38 = vpop.permute.xlu0 %4897 }
0x2bd6   :  { %v4909_v15 = vsub.f32 %v4877_v49, %v4898_v38 }
0x2bd8   :  { %v4937_v14 = vadd.f32 1e-05, %v4909_v15 }
0x2bda   :  { %7164 = vrsqrt.f32 %v4937_v14  ;;  %vm4947_vm11 = vweird.f32 %v4937_v14 }
0x2be0   :  { %v7165_v58 = vpop.eup %7164 }
0x2be1   :  { %v4942_v9 = vmul.f32 %v7165_v58, %v4937_v14  ;;  %vm4948_vm10 = vweird.f32 %v7165_v58  ;;  %v7008_v14 = vld [vmem:[#allocation40 + $0x1] ss:$0 sm:$0xff] }
0x2be2   :  { %vm4949_vm12 = vmor %vm4947_vm11, %vm4948_vm10 }
0x2be3   :  { %v4943_v50 = vmul.f32 %v7165_v58, %v4942_v9 }
0x2be5   :  { %v4944_v61 = vmul.f32 0.5, %v4943_v50  ;;  %v4902_v56 = vpop.permute.xlu2 %4901 }
0x2be6   :  { %v4911_v37 = vsub.f32 %v4883_v34, %v4902_v56 }
0x2be7   :  { %v4945_v11 = vsub.f32 1.5, %v4944_v61  ;;  %v10617_v61 = vld [vmem:[%s11013_s23 + $0x38] sm:$0xff] }
0x2be8   :  { %v4939_v32 = vadd.f32 1e-05, %v4911_v37 }
0x2be9   :  { %v4946_v46 = vmul.f32 %v7165_v58, %v4945_v11  ;;  %v10622_v11 = vld [vmem:[%s11013_s23 + $0x30] sm:$0xff] }
0x2bea   :  { %7166 = vrsqrt.f32 %v4939_v32  ;;  %vm4967_vm14 = vweird.f32 %v4939_v32 }
0x2beb   :  { %v4950_v16 = vsel %vm4949_vm12, %v7165_v58, %v4946_v46  ;;  %v10626_v46 = vld [vmem:[%s11013_s23 + $0x28] sm:$0xff] }
0x2bec   :  { %4983 = vperm.xlu0 %6953, %v4950_v16  }
0x2bed   :  { %v4921_v36 = vpop.permute.xlu2 %4920 }
0x2bee   :  { %v4934_v34 = vsub.f32 %v10558_v42, %v4921_v36 }
0x2bf0   :  { %v7167_v6 = vpop.eup %7166 }
0x2bf1   :  { %v4962_v26 = vmul.f32 %v7167_v6, %v4939_v32  ;;  %vm4968_vm13 = vweird.f32 %v7167_v6 }
0x2bf2   :  { %vm4969_vm15 = vmor %vm4967_vm14, %vm4968_vm13 }
0x2bf3   :  { %v4963_v62 = vmul.f32 %v7167_v6, %v4962_v26  ;;  %v10631_v26 = vld [vmem:[%s11013_s23 + $0x20] sm:$0xff] }
0x2bf5   :  { %v4964_v0 = vmul.f32 0.5, %v4963_v62  ;;  %v4900_v20 = vpop.permute.xlu1 %4899  ;;  %v4926_v15 = vpop.permute.xlu2 %4925 }
0x2bf6   :  { %v4910_v27 = vsub.f32 %v4880_v53, %v4900_v20  ;;  %v4935_v56 = vsub.f32 %v10564_v10, %v4926_v15 }
0x2bf7   :  { %v4965_v3 = vsub.f32 1.5, %v4964_v0  ;;  %v10635_v0 = vld [vmem:[%s11013_s23 + $0x18] sm:$0xff] }
0x2bf8   :  { %v4938_v2 = vadd.f32 1e-05, %v4910_v27  ;;  %v10639_v27 = vld [vmem:[%s11013_s23 + $0x10] sm:$0xff] }
0x2bf9   :  { %v4966_v23 = vmul.f32 %v7167_v6, %v4965_v3 }
0x2bfa   :  { %7168 = vrsqrt.f32 %v4938_v2  ;;  %vm4957_vm1 = vweird.f32 %v4938_v2 }
0x2bfb   :  { %v4970_v63 = vsel %vm4969_vm15, %v7167_v6, %v4966_v23 }
0x2bfc   :  { %4993 = vperm.xlu2 %6956, %v4970_v63   ;;  %v10653_v63 = vld [vmem:[%s11013_s23] sm:$0xff] }
0x2bfd   :  { %v4916_v49 = vpop.permute.xlu1 %4915 }
0x2bfe   :  { %v4933_v53 = vsub.f32 %v10552_v43, %v4916_v49 }
0x2c00   :  { %v7169_v8 = vpop.eup %7168 }
0x2c01   :  { %v4952_v22 = vmul.f32 %v7169_v8, %v4938_v2  ;;  %vm4958_vm0 = vweird.f32 %v7169_v8  ;;  %v10647_v2 = vld [vmem:[%s11013_s23 + $0x8] sm:$0xff] }
0x2c02   :  { %vm4959_vm2 = vmor %vm4957_vm1, %vm4958_vm0 }
0x2c03   :  { %v4953_v52 = vmul.f32 %v7169_v8, %v4952_v22 }
0x2c05   :  { %v4954_v17 = vmul.f32 0.5, %v4953_v52  ;;  %v4904_v54 = vpop.permute.xlu0 %4903 }
0x2c06   :  { %v4912_v59 = vsub.f32 %v4886_v57, %v4904_v54 }
0x2c07   :  { %v4955_v29 = vsub.f32 1.5, %v4954_v17  ;;  %v5106_v17 = vpop.f32.mrf.mxu0 }
0x2c08   :  { %v4940_v60 = vadd.f32 1e-05, %v4912_v59 }
0x2c09   :  { %v4956_v44 = vmul.f32 %v7169_v8, %v4955_v29  ;;  %v10661_v29 = vadd.f32 %v10539_v51, %v5106_v17 }
0x2c0a   :  { %7170 = vrsqrt.f32 %v4940_v60  ;;  %vm4977_vm10 = vweird.f32 %v4940_v60 }
0x2c0b   :  { %v4960_v21 = vsel %vm4959_vm2, %v7169_v8, %v4956_v44  ;;  %v7009_v8 = vld [vmem:[#allocation26 + $0x1] ss:$0 sm:$0xff] }
0x2c0c   :  { %4988 = vperm.xlu1 %6954, %v4960_v21  }
0x2c10   :  { %v7171_v40 = vpop.eup %7170 }
0x2c11   :  { %v4972_v48 = vmul.f32 %v7171_v40, %v4940_v60  ;;  %vm4978_vm3 = vweird.f32 %v7171_v40 }
0x2c12   :  { %vm4979_vm11 = vmor %vm4977_vm10, %vm4978_vm3 }
0x2c13   :  { %v4973_v41 = vmul.f32 %v7171_v40, %v4972_v48 }
0x2c14   :  { %6955 = vset.pattern.permute.xlu1 %v11016_v33 }
0x2c15   :  { %v4974_v19 = vmul.f32 0.5, %v4973_v41  ;;  %4930 = vperm.xlu1 %6955, %v4886_v57  }
0x2c17   :  { %v4975_v7 = vsub.f32 1.5, %v4974_v19 }
0x2c19   :  { %v4976_v5 = vmul.f32 %v7171_v40, %v4975_v7 }
0x2c1b   :  { %v4980_v30 = vsel %vm4979_vm11, %v7171_v40, %v4976_v5 }
0x2c1c   :  { %4998 = vperm.xlu0 %6953, %v4980_v30  }
0x2c1d   :  { %5110 = vrot.lane.b32.xlu1 %v10595_v13, %s8340_s0 }
0x2c24   :  { %5114 = vrot.lane.b32.xlu0 %v10600_v31, %s8300_s28 }
0x2c25   :  { %6957 = vset.pattern.permute.xlu0 %v11016_v33 }
0x2c56   :  { %v4994_v42 = vpop.permute.xlu2 %4993 }
0x2c57   :  { %v5003_v32 = vmul.f32 %v4994_v42, %v4935_v56 }
0x2c59   :  { %v5010_v10 = vmul.f32 %v7007_v25, %v5003_v32 }
0x2c5b   :  { %v10642_v3 = vadd.f32 %v7008_v14, %v5010_v10 }
0x2c5e   :  { %v4984_v28 = vpop.permute.xlu0 %4983 }
0x2c5f   :  { %v5001_v45 = vmul.f32 %v4984_v28, %v4933_v53 }
0x2c61   :  { %v5008_v55 = vmul.f32 %v7007_v25, %v5001_v45 }
0x2c63   :  { %v10609_v9 = vadd.f32 %v7008_v14, %v5008_v55 }
0x2c7e   :  { %v4989_v57 = vpop.permute.xlu1 %4988 }
0x2c7f   :  { %v5002_v38 = vmul.f32 %v4989_v57, %v4934_v34 }
0x2c81   :  { %v5009_v58 = vmul.f32 %v7007_v25, %v5002_v38 }
0x2c83   :  { %v10611_v50 = vadd.f32 %v7008_v14, %v5009_v58 }
0x2c85   :  { %v5026_v43 = vpack.c.bf16 %v10611_v50, %v10609_v9 }
0x2c87   :  { %6650 = vmatmul.msk.bf16.vlgmr.msrb.gmra.mxu1 %vm876_vm4, %v5026_v43  ;;  %v4931_v37 = vpop.permute.xlu1 %4930 }
0x2c88   :  { %5511 = vmatpush.msrb.mxu1 %v10617_v61  ;;  %v4936_v16 = vsub.f32 %v10570_v35, %v4931_v37 }
0x2c8a   :  { %5512 = vmatpush.msrb.mxu1 %v10622_v11 }
0x2c8c   :  { %5513 = vmatpush.msrb.mxu1 %v10626_v46 }
0x2c8e   :  { %v4999_v6 = vpop.permute.xlu0 %4998  ;;  %5514 = vmatpush.msrb.mxu1 %v10631_v26 }
0x2c8f   :  { %v5004_v62 = vmul.f32 %v4999_v6, %v4936_v16  ;;  %v5111_v48 = vpop.permute.xlu1 %5110 }
0x2c90   :  { %5515 = vmatpush.msrb.mxu1 %v10635_v0  ;;  %v5121_v19 = vsel %vm876_vm4, %v10544_v47, %v5111_v48 }
0x2c91   :  { %v5011_v20 = vmul.f32 %v7007_v25, %v5004_v62 }
0x2c92   :  { %5516 = vmatpush.msrb.mxu1 %v10639_v27 }
0x2c93   :  { %v10644_v35 = vadd.f32 %v7008_v14, %v5011_v20 }
0x2c94   :  { %5517 = vmatpush.msrb.mxu1 %v10647_v2 }
0x2c95   :  { %v5027_v23 = vpack.c.bf16 %v10644_v35, %v10642_v3 }
0x2c96   :  { %5518 = vmatpush.msrb.mxu1 %v10653_v63  ;;  %v5115_v41 = vpop.permute.xlu0 %5114 }
0x2c97   :  { %6651 = vmatmul.msk.bf16.gmra.mxu1 %vm876_vm4, %v5027_v23  ;;  %v5122_v18 = vsel %vm915_vm5, %v5121_v19, %v5115_v41 }
0x2d04   :  { %v5058_v22 = vpop.f32.mrf.mxu1 }
0x2d05   :  { %v5059_v52 = vadd.f32 %v7009_v8, %v5058_v22 }
0x2d07   :  { %5165 = vrot.lane.b32.xlu0 %v5059_v52, %s8339_s1  ;;  %5153 = vrot.lane.b32.xlu1 %v5059_v52, %s8300_s28 }
0x2d08   :  { %5141 = vrot.lane.b32.xlu2 %v5059_v52, %s8340_s0 }
0x2d0c   :  { %v5060_v54 = vpop.f32.mrf.mxu1 }
0x2d0d   :  { %v5061_v59 = vadd.f32 %v7009_v8, %v5060_v54 }
0x2d0f   :  { %5167 = vrot.lane.b32.xlu0 %v5061_v59, %s8339_s1  ;;  %5143 = vrot.lane.b32.xlu1 %v5061_v59, %s8340_s0 }
0x2d10   :  { %5118 = vrot.lane.b32.xlu2 %v10661_v29, %s8339_s1 }
0x2d14   :  { %v5063_v60 = vpop.f32.mrf.mxu1 }
0x2d15   :  { %v5064_v44 = vadd.f32 %v7009_v8, %v5063_v60 }
0x2d17   :  { %5169 = vrot.lane.b32.xlu0 %v5064_v44, %s8339_s1  ;;  %5145 = vrot.lane.b32.xlu1 %v5064_v44, %s8340_s0 }
0x2d18   :  { %5155 = vrot.lane.b32.xlu2 %v5061_v59, %s8300_s28 }
0x2d1c   :  { %v5065_v21 = vpop.f32.mrf.mxu1 }
0x2d1d   :  { %v5066_v40 = vadd.f32 %v7009_v8, %v5065_v21 }
0x2d1f   :  { %5171 = vrot.lane.b32.xlu0 %v5066_v40, %s8339_s1  ;;  %5147 = vrot.lane.b32.xlu1 %v5066_v40, %s8340_s0 }
0x2d20   :  { %5157 = vrot.lane.b32.xlu2 %v5064_v44, %s8300_s28 }
0x2d28   :  { %5159 = vrot.lane.b32.xlu2 %v5066_v40, %s8300_s28 }
0x2d62   :  { %v5142_v51 = vpop.permute.xlu2 %5141 }
0x2d63   :  { %v5177_v7 = vsel %vm876_vm4, %v5059_v52, %v5142_v51 }
0x2d6a   :  { %v5119_v39 = vpop.permute.xlu2 %5118 }
0x2d6b   :  { %v5123_v12 = vsel %vm917_vm6, %v5122_v18, %v5119_v39 }
0x2d72   :  { %v5156_v49 = vpop.permute.xlu2 %5155 }
0x2d79   :  { %v5154_v5 = vpop.permute.xlu1 %5153  ;;  %v5166_v30 = vpop.permute.xlu0 %5165 }
0x2d7a   :  { %v5181_v1 = vsel %vm915_vm5, %v5177_v7, %v5154_v5  ;;  %v5158_v55 = vpop.permute.xlu2 %5157 }
0x2d7b   :  { %v5185_v24 = vsel %vm917_vm6, %v5181_v1, %v5166_v30 }
0x2d7c   :  { %v5189_v36 = vmul.f32 %v5185_v24, %v5123_v12 }
0x2d7e   :  { %5209 = vmatmul.f32.vlgmr.msra.gmra.mxu2 %v5189_v36 }
0x2d81   :  { %v5144_v28 = vpop.permute.xlu1 %5143  ;;  %v5168_v53 = vpop.permute.xlu0 %5167 }
0x2d82   :  { %v5178_v45 = vsel %vm876_vm4, %v5061_v59, %v5144_v28  ;;  %v5160_v37 = vpop.permute.xlu2 %5159 }
0x2d83   :  { %v5182_v34 = vsel %vm915_vm5, %v5178_v45, %v5156_v49 }
0x2d84   :  { %v5186_v25 = vsel %vm917_vm6, %v5182_v34, %v5168_v53 }
0x2d85   :  { %v5190_v57 = vmul.f32 %v5186_v25, %v5123_v12 }
0x2d87   :  { %5212 = vmatmul.f32.gmra.mxu2 %v5190_v57 }
0x2d89   :  { %v5146_v38 = vpop.permute.xlu1 %5145  ;;  %v5170_v15 = vpop.permute.xlu0 %5169 }
0x2d8a   :  { %v5179_v14 = vsel %vm876_vm4, %v5064_v44, %v5146_v38 }
0x2d8b   :  { %v5183_v58 = vsel %vm915_vm5, %v5179_v14, %v5158_v55 }
0x2d8c   :  { %v5187_v43 = vsel %vm917_vm6, %v5183_v58, %v5170_v15 }
0x2d8d   :  { %v5191_v42 = vmul.f32 %v5187_v43, %v5123_v12 }
0x2d8f   :  { %5215 = vmatmul.f32.gmra.mxu2 %v5191_v42 }
0x2d91   :  { %v5148_v56 = vpop.permute.xlu1 %5147  ;;  %v5172_v6 = vpop.permute.xlu0 %5171 }
0x2d92   :  { %v5180_v32 = vsel %vm876_vm4, %v5066_v40, %v5148_v56  ;;  %v6788_v56 = vld [vmem:[#allocation31 + $0x18] sm:$0xff] }
0x2d93   :  { %v5184_v16 = vsel %vm915_vm5, %v5180_v32, %v5160_v37  ;;  %5446 = vmatpush.bf16.msrb.mxu3 %v6788_v56 }
0x2d94   :  { %v5188_v10 = vsel %vm917_vm6, %v5184_v16, %v5172_v6  ;;  %v6787_v16 = vld [vmem:[#allocation31 + $0x10] sm:$0xff] }
0x2d95   :  { %v5192_v62 = vmul.f32 %v5188_v10, %v5123_v12 }
0x2d97   :  { %5218 = vmatmul.f32.gmra.mxu2 %v5192_v62  ;;  %5447 = vmatpush.bf16.msrb.mxu3 %v6787_v16 }
0x2e01   :  { %v5210_v20 = vpop.f32.mrf.mxu2 }
0x2e02   :  { %v5222_v23 = vsel %vm995_vm7, %v5210_v20, -inf }
0x2e03   :  { %5223 = vmax.xlane.f32.xlu1 %v5222_v23 }
0x2e0a   :  { %v5213_v8 = vpop.f32.mrf.mxu2 }
0x2e0b   :  { %v5225_v22 = vsel %vm995_vm7, %v5213_v8, -inf }
0x2e0c   :  { %5226 = vmax.xlane.f32.xlu2 %v5225_v22 }
0x2e12   :  { %v5216_v52 = vpop.f32.mrf.mxu2 }
0x2e13   :  { %v5228_v17 = vsel %vm995_vm7, %v5216_v52, -inf }
0x2e14   :  { %5229 = vmax.xlane.f32.xlu0 %v5228_v17 }
0x2e1a   :  { %v5219_v54 = vpop.f32.mrf.mxu2 }
0x2e1b   :  { %v5231_v59 = vsel %vm995_vm7, %v5219_v54, -inf }
0x2e1c   :  { %5232 = vmax.xlane.f32.xlu1 %v5231_v59 }
0x2e24   :  { %5125 = vrot.lane.b32.xlu2 %v10544_v47, %s8339_s1 }
0x2e28   :  { %5128 = vrot.lane.b32.xlu0 %v10600_v31, %s8340_s0 }
0x2e35   :  { %5131 = vrot.lane.b32.xlu1 %v10661_v29, %s8300_s28 }
0x2e76   :  { %v5224_v60 = vpop.xlane.xlu1 %5223 }
0x2e77   :  { %v5234_v44 = vsub.f32 %v5210_v20, %v5224_v60 }
0x2e79   :  { %v5238_v21 = vmul.f32 1.442695, %v5234_v44 }
0x2e7b   :  { %7172 = vpow2.f32 %v5238_v21 }
0x2e7f   :  { %v5227_v40 = vpop.xlane.xlu2 %5226 }
0x2e80   :  { %v5235_v51 = vsub.f32 %v5213_v8, %v5227_v40 }
0x2e81   :  { %v7173_v48 = vpop.eup %7172 }
0x2e82   :  { %v5240_v41 = vmul.f32 1.442695, %v5235_v51  ;;  %6662 = vmatmul.msk.f32.vlgmr.msra.gmra.mxu3 %vm995_vm7, %v7173_v48 }
0x2e83   :  { %5832 = vmatpush.msra.mxu3 %v10617_v61 }
0x2e84   :  { %7174 = vpow2.f32 %v5240_v41 }
0x2e85   :  { %5833 = vmatpush.msra.mxu3 %v10622_v11 }
0x2e87   :  { %v5230_v39 = vpop.xlane.xlu0 %5229  ;;  %v5126_v43 = vpop.permute.xlu2 %5125  ;;  %5834 = vmatpush.msra.mxu3 %v10626_v46 }
0x2e88   :  { %v5236_v19 = vsub.f32 %v5216_v52, %v5230_v39  ;;  %v5134_v32 = vsel %vm876_vm4, %v5126_v43, %v10595_v13 }
0x2e89   :  { %5835 = vmatpush.msra.mxu3 %v10631_v26 }
0x2e8a   :  { %v7175_v47 = vpop.eup %7174  ;;  %v5242_v7 = vmul.f32 1.442695, %v5236_v19 }
0x2e8b   :  { %6663 = vmatmul.msk.f32.gmra.mxu3 %vm995_vm7, %v7175_v47 }
0x2e8c   :  { %7176 = vpow2.f32 %v5242_v7  ;;  %5836 = vmatpush.msra.mxu3 %v10635_v0 }
0x2e8e   :  { %5837 = vmatpush.msra.mxu3 %v10639_v27 }
0x2e8f   :  { %v5233_v31 = vpop.xlane.xlu1 %5232 }
0x2e90   :  { %v5237_v29 = vsub.f32 %v5219_v54, %v5233_v31  ;;  %5838 = vmatpush.msra.mxu3 %v10647_v2 }
0x2e92   :  { %v7177_v5 = vpop.eup %7176  ;;  %v5244_v30 = vmul.f32 1.442695, %v5237_v29  ;;  %5839 = vmatpush.msra.mxu3 %v10653_v63 }
0x2e93   :  { %6664 = vmatmul.msk.f32.gmra.mxu3 %vm995_vm7, %v7177_v5 }
0x2e94   :  { %7178 = vpow2.f32 %v5244_v30 }
0x2e9a   :  { %v7179_v18 = vpop.eup %7178  ;;  %v5129_v42 = vpop.permute.xlu0 %5128 }
0x2e9b   :  { %6665 = vmatmul.msk.f32.gmra.mxu3 %vm995_vm7, %v7179_v18  ;;  %v5135_v6 = vsel %vm915_vm5, %v5134_v32, %v5129_v42 }
0x2ea7   :  { %v5132_v37 = vpop.permute.xlu1 %5131 }
0x2ea8   :  { %v5136_v10 = vsel %vm917_vm6, %v5135_v6, %v5132_v37 }
0x2f05   :  { %v5275_v1 = vpop.f32.mrf.mxu3 }
0x2f06   :  { %7180 = vrcp.f32 %v5275_v1 }
0x2f0c   :  { %v7181_v12 = vpop.eup %7180 }
0x2f0d   :  { %6667 = vmatmul.msk.f32.vlgmr.msra.gmra.mxu1 %vm1065_vm9, %v7181_v12 }
0x2f0e   :  { %v5278_v24 = vpop.f32.mrf.mxu3  ;;  %6029 = vmatpush.msra.mxu1 %v10617_v61 }
0x2f0f   :  { %7182 = vrcp.f32 %v5278_v24 }
0x2f10   :  { %6030 = vmatpush.msra.mxu1 %v10622_v11 }
0x2f12   :  { %6031 = vmatpush.msra.mxu1 %v10626_v46 }
0x2f14   :  { %6032 = vmatpush.msra.mxu1 %v10631_v26 }
0x2f15   :  { %v7183_v36 = vpop.eup %7182 }
0x2f16   :  { %v5281_v49 = vpop.f32.mrf.mxu3  ;;  %6668 = vmatmul.msk.f32.gmra.mxu1 %vm1065_vm9, %v7183_v36 }
0x2f17   :  { %7184 = vrcp.f32 %v5281_v49  ;;  %6033 = vmatpush.msra.mxu1 %v10635_v0 }
0x2f19   :  { %6034 = vmatpush.msra.mxu1 %v10639_v27  ;;  %v7010_v27 = vld [vmem:[#allocation32 + $0x1] ss:$0 sm:$0xff] }
0x2f1b   :  { %6035 = vmatpush.msra.mxu1 %v10647_v2 }
0x2f1d   :  { %v7185_v28 = vpop.eup %7184  ;;  %6036 = vmatpush.msra.mxu1 %v10653_v63 }
0x2f1e   :  { %v5284_v53 = vpop.f32.mrf.mxu3  ;;  %6669 = vmatmul.msk.f32.gmra.mxu1 %vm1065_vm9, %v7185_v28 }
0x2f1f   :  { %7186 = vrcp.f32 %v5284_v53 }
0x2f25   :  { %v7187_v45 = vpop.eup %7186 }
0x2f26   :  { %6670 = vmatmul.msk.f32.gmra.mxu1 %vm1065_vm9, %v7187_v45 }
0x2f8a   :  { %v5320_v34 = vpop.f32.mrf.mxu1 }
0x2f8b   :  { %v5332_v25 = vmul.f32 %v7173_v48, %v5320_v34 }
0x2f8d   :  { %6671 = vmatmul.msk.f32.vlgmr.msra.gmra.mxu0 %vm995_vm7, %v5332_v25 }
0x2f93   :  { %v5323_v57 = vpop.f32.mrf.mxu1 }
0x2f94   :  { %v5333_v55 = vmul.f32 %v7175_v47, %v5323_v57 }
0x2f96   :  { %6672 = vmatmul.msk.f32.gmra.mxu0 %vm995_vm7, %v5333_v55 }
0x2f9b   :  { %v5326_v38 = vpop.f32.mrf.mxu1 }
0x2f9c   :  { %v5334_v15 = vmul.f32 %v7177_v5, %v5326_v38 }
0x2f9e   :  { %6673 = vmatmul.msk.f32.gmra.mxu0 %vm995_vm7, %v5334_v15 }
0x2fa3   :  { %v5329_v14 = vpop.f32.mrf.mxu1 }
0x2fa4   :  { %v5335_v58 = vmul.f32 %v7179_v18, %v5329_v14 }
0x2fa6   :  { %6674 = vmatmul.msk.f32.gmra.mxu0 %vm995_vm7, %v5335_v58 }
0x300a   :  { %v5365_v62 = vpop.f32.mrf.mxu0 }
0x300b   :  { %v5377_v20 = vmul.f32 %v5365_v62, %v5136_v10 }
0x300d   :  { %5397 = vmatmul.f32.vlgmr.msrb.gmra.mxu2 %v5377_v20 }
0x3013   :  { %v5368_v23 = vpop.f32.mrf.mxu0 }
0x3014   :  { %v5378_v13 = vmul.f32 %v5368_v23, %v5136_v10 }
0x3016   :  { %5400 = vmatmul.f32.gmra.mxu2 %v5378_v13 }
0x301b   :  { %v5371_v8 = vpop.f32.mrf.mxu0 }
0x301c   :  { %v5379_v22 = vmul.f32 %v5371_v8, %v5136_v10 }
0x301e   :  { %5403 = vmatmul.f32.gmra.mxu2 %v5379_v22 }
0x3023   :  { %v5374_v61 = vpop.f32.mrf.mxu0 }
0x3024   :  { %v5380_v11 = vmul.f32 %v5374_v61, %v5136_v10 }
0x3026   :  { %5406 = vmatmul.f32.gmra.mxu2 %v5380_v11 }
0x3090   :  { %v5398_v46 = vpop.f32.mrf.mxu2 }
0x3099   :  { %v5401_v52 = vpop.f32.mrf.mxu2 }
0x309a   :  { %v5417_v17 = vpack.c.bf16 %v5401_v52, %v5398_v46 }
0x309c   :  { %6683 = vmatmul.msk.bf16.vlgmr.msrb.gmra.mxu3 %vm876_vm4, %v5417_v17 }
0x30a1   :  { %v5404_v26 = vpop.f32.mrf.mxu2 }
0x30a9   :  { %v5407_v0 = vpop.f32.mrf.mxu2 }
0x30aa   :  { %v5418_v54 = vpack.c.bf16 %v5407_v0, %v5404_v26 }
0x30ac   :  { %6684 = vmatmul.msk.bf16.gmra.mxu3 %vm876_vm4, %v5418_v54 }
0x311f   :  { %v5449_v2 = vpop.f32.mrf.mxu3 }
0x3120   :  { %v5450_v59 = vadd.f32 %v7010_v27, %v5449_v2 }
0x3122   :  { %v10735_v63 = vadd.f32 %v5450_v59, %v10609_v9 }
0x3124   :  { %v5467_v60 = vmul.f32 %v10735_v63, %v10735_v63 }
0x3126   :  { %5475 = vrot.lane.b32.xlu0 %v5467_v60, %s8340_s0 }
0x3127   :  { %v5451_v44 = vpop.f32.mrf.mxu3 }
0x3128   :  { %v5452_v21 = vadd.f32 %v7010_v27, %v5451_v44 }
0x312a   :  { %v10741_v40 = vadd.f32 %v5452_v21, %v10611_v50 }
0x312c   :  { %v5468_v51 = vmul.f32 %v10741_v40, %v10741_v40 }
0x312e   :  { %5477 = vrot.lane.b32.xlu2 %v5468_v51, %s8340_s0 }
0x312f   :  { %v5454_v48 = vpop.f32.mrf.mxu3 }
0x3130   :  { %v5455_v41 = vadd.f32 %v7010_v27, %v5454_v48 }
0x3132   :  { %v10747_v9 = vadd.f32 %v5455_v41, %v10642_v3 }
0x3134   :  { %v5469_v39 = vmul.f32 %v10747_v9, %v10747_v9 }
0x3136   :  { %5479 = vrot.lane.b32.xlu1 %v5469_v39, %s8340_s0 }
0x3137   :  { %v5456_v19 = vpop.f32.mrf.mxu3 }
0x3138   :  { %v5457_v47 = vadd.f32 %v7010_v27, %v5456_v19 }
0x313a   :  { %v10753_v50 = vadd.f32 %v5457_v47, %v10644_v35  ;;  %v6790_v47 = vld [vmem:[#allocation34 + $0x18] sm:$0xff] }
0x313b   :  { %5698 = vmatpush.bf16.msrb.mxu0 %v6790_v47 }
0x313c   :  { %v5470_v7 = vmul.f32 %v10753_v50, %v10753_v50 }
0x313e   :  { %5481 = vrot.lane.b32.xlu0 %v5470_v7, %s8340_s0  ;;  %v6789_v7 = vld [vmem:[#allocation34 + $0x10] sm:$0xff] }
0x313f   :  { %5699 = vmatpush.bf16.msrb.mxu0 %v6789_v7 }
0x3188   :  { %v5478_v29 = vpop.permute.xlu2 %5477 }
0x3189   :  { %v5488_v5 = vsel %vm876_vm4, %v10741_v40, %v5478_v29  ;;  %v6794_v29 = vld [vmem:[%s11030_s8 + $0x38] sm:$0xff] }
0x318a   :  { %5765 = vmatpush.bf16.msra.mxu2 %v6794_v29 }
0x3198   :  { %v5476_v31 = vpop.permute.xlu0 %5475 }
0x3199   :  { %v5487_v3 = vsel %vm876_vm4, %v10735_v63, %v5476_v31 }
0x319a   :  { %6685 = vmatmul.msk.f32.vlgmr.msrb.gmra.mxu1 %vm915_vm5, %v5487_v3 }
0x31a2   :  { %6686 = vmatmul.msk.f32.gmra.mxu1 %vm915_vm5, %v5488_v5 }
0x31a8   :  { %v5480_v30 = vpop.permute.xlu1 %5479 }
0x31a9   :  { %v5489_v35 = vsel %vm876_vm4, %v10747_v9, %v5480_v30  ;;  %v6793_v30 = vld [vmem:[%s11030_s8 + $0x30] sm:$0xff] }
0x31aa   :  { %6687 = vmatmul.msk.f32.gmra.mxu1 %vm915_vm5, %v5489_v35  ;;  %5766 = vmatpush.bf16.msra.mxu2 %v6793_v30 }
0x31b0   :  { %v5482_v18 = vpop.permute.xlu0 %5481 }
0x31b1   :  { %v5490_v1 = vsel %vm876_vm4, %v10753_v50, %v5482_v18  ;;  %v7011_v18 = vld [vmem:[#allocation41 + $0x1] ss:$0 sm:$0xff] }
0x31b2   :  { %6688 = vmatmul.msk.f32.gmra.mxu1 %vm915_vm5, %v5490_v1 }
0x3217   :  { %v5520_v12 = vpop.f32.mrf.mxu1 }
0x3218   :  { %v5532_v24 = vmul.f32 %v5520_v12, %v5520_v12 }
0x321a   :  { %5540 = vrot.lane.b32.xlu2 %v5532_v24, %s8298_s16  ;;  %v6792_v24 = vld [vmem:[%s11030_s8 + $0x28] sm:$0xff] }
0x321b   :  { %5767 = vmatpush.bf16.msra.mxu2 %v6792_v24 }
0x321f   :  { %v5523_v36 = vpop.f32.mrf.mxu1 }
0x3220   :  { %v5533_v49 = vmul.f32 %v5523_v36, %v5523_v36 }
0x3222   :  { %5542 = vrot.lane.b32.xlu1 %v5533_v49, %s8298_s16  ;;  %v7012_v49 = vld [vmem:[#allocation43 + $0x1] ss:$0 sm:$0xff] }
0x3227   :  { %v5526_v28 = vpop.f32.mrf.mxu1 }
0x3228   :  { %v5534_v53 = vmul.f32 %v5526_v28, %v5526_v28 }
0x322a   :  { %5558 = vperm.xlu1 %6955, %v5520_v12   ;;  %5544 = vrot.lane.b32.xlu0 %v5534_v53, %s8298_s16 }
0x322f   :  { %v10773_v45 = vpop.f32.mrf.mxu1 }
0x3230   :  { %v5535_v34 = vmul.f32 %v10773_v45, %v10773_v45 }
0x3232   :  { %5563 = vperm.xlu0 %6957, %v5523_v36   ;;  %5546 = vrot.lane.b32.xlu2 %v5535_v34, %s8298_s16 }
0x3233   :  { %6958 = vset.pattern.permute.xlu1 %v11020_v4 }
0x323a   :  { %6961 = vset.pattern.permute.xlu0 %v11020_v4 }
0x3274   :  { %v5541_v25 = vpop.permute.xlu2 %5540 }
0x3275   :  { %v5552_v57 = vsub.f32 %v5520_v12, %v5541_v25 }
0x3277   :  { %v5580_v55 = vadd.f32 1e-05, %v5552_v57 }
0x3279   :  { %7188 = vrsqrt.f32 %v5580_v55  ;;  %vm5590_vm7 = vweird.f32 %v5580_v55 }
0x327f   :  { %v7189_v38 = vpop.eup %7188 }
0x3280   :  { %v5585_v15 = vmul.f32 %v7189_v38, %v5580_v55  ;;  %vm5591_vm6 = vweird.f32 %v7189_v38 }
0x3281   :  { %vm5592_vm8 = vmor %vm5590_vm7, %vm5591_vm6 }
0x3282   :  { %v5586_v14 = vmul.f32 %v7189_v38, %v5585_v15 }
0x3284   :  { %v5587_v58 = vmul.f32 0.5, %v5586_v14 }
0x3286   :  { %v5588_v43 = vsub.f32 1.5, %v5587_v58 }
0x3288   :  { %v5589_v42 = vmul.f32 %v7189_v38, %v5588_v43 }
0x328a   :  { %v5593_v56 = vsel %vm5592_vm8, %v7189_v38, %v5589_v42 }
0x328b   :  { %5626 = vperm.xlu2 %6956, %v5593_v56  }
0x328c   :  { %v5547_v37 = vpop.permute.xlu2 %5546 }
0x328d   :  { %v5555_v32 = vsub.f32 %v10773_v45, %v5547_v37 }
0x328f   :  { %v5583_v16 = vadd.f32 1e-05, %v5555_v32 }
0x3291   :  { %7190 = vrsqrt.f32 %v5583_v16  ;;  %vm5620_vm12 = vweird.f32 %v5583_v16 }
0x3293   :  { %6959 = vset.pattern.permute.xlu2 %v11016_v33 }
0x3294   :  { %5568 = vperm.xlu2 %6959, %v5526_v28   ;;  %v5543_v6 = vpop.permute.xlu1 %5542 }
0x3295   :  { %v5553_v10 = vsub.f32 %v5523_v36, %v5543_v6  ;;  %v6791_v6 = vld [vmem:[%s11030_s8 + $0x20] sm:$0xff] }
0x3296   :  { %5768 = vmatpush.bf16.msra.mxu2 %v6791_v6 }
0x3297   :  { %v7191_v62 = vpop.eup %7190  ;;  %v5581_v20 = vadd.f32 1e-05, %v5553_v10 }
0x3298   :  { %v5615_v23 = vmul.f32 %v7191_v62, %v5583_v16  ;;  %vm5621_vm9 = vweird.f32 %v7191_v62 }
0x3299   :  { %7192 = vrsqrt.f32 %v5581_v20  ;;  %vm5622_vm13 = vmor %vm5620_vm12, %vm5621_vm9  ;;  %vm5600_vm15 = vweird.f32 %v5581_v20 }
0x329a   :  { %v5616_v13 = vmul.f32 %v7191_v62, %v5615_v23 }
0x329c   :  { %v5617_v8 = vmul.f32 0.5, %v5616_v13  ;;  %v5545_v22 = vpop.permute.xlu0 %5544  ;;  %6962 = vset.pattern.permute.xlu2 %v11020_v4  ;;  %v5559_v31 = vpop.permute.xlu1 %5558 }
0x329d   :  { %v5554_v61 = vsub.f32 %v5526_v28, %v5545_v22  ;;  %v5576_v5 = vsub.f32 %v10735_v63, %v5559_v31 }
0x329e   :  { %v5618_v11 = vsub.f32 1.5, %v5617_v8 }
0x329f   :  { %v7193_v46 = vpop.eup %7192  ;;  %v5582_v52 = vadd.f32 1e-05, %v5554_v61 }
0x32a0   :  { %v5595_v17 = vmul.f32 %v7193_v46, %v5581_v20  ;;  %v5619_v26 = vmul.f32 %v7191_v62, %v5618_v11  ;;  %vm5601_vm14 = vweird.f32 %v7193_v46 }
0x32a1   :  { %7194 = vrsqrt.f32 %v5582_v52  ;;  %vm5602_vm0 = vmor %vm5600_vm15, %vm5601_vm14  ;;  %vm5610_vm2 = vweird.f32 %v5582_v52 }
0x32a2   :  { %v5596_v0 = vmul.f32 %v7193_v46, %v5595_v17  ;;  %v5623_v54 = vsel %vm5622_vm13, %v7191_v62, %v5619_v26  ;;  %v7013_v62 = vld [vmem:[#allocation35 + $0x1] ss:$0 sm:$0xff] }
0x32a3   :  { %5641 = vperm.xlu2 %6962, %v5623_v54  }
0x32a4   :  { %v5597_v27 = vmul.f32 0.5, %v5596_v0  ;;  %v5564_v35 = vpop.permute.xlu0 %5563  ;;  %v7014_v0 = vld [vmem:[#allocation37 + $0x1] ss:$0 sm:$0xff] }
0x32a5   :  { %v5577_v12 = vsub.f32 %v10741_v40, %v5564_v35 }
0x32a6   :  { %v5598_v2 = vsub.f32 1.5, %v5597_v27 }
0x32a7   :  { %v7195_v59 = vpop.eup %7194 }
0x32a8   :  { %v5605_v60 = vmul.f32 %v7195_v59, %v5582_v52  ;;  %v5599_v44 = vmul.f32 %v7193_v46, %v5598_v2  ;;  %vm5611_vm1 = vweird.f32 %v7195_v59 }
0x32a9   :  { %vm5612_vm3 = vmor %vm5610_vm2, %vm5611_vm1 }
0x32aa   :  { %v5606_v21 = vmul.f32 %v7195_v59, %v5605_v60  ;;  %v5603_v51 = vsel %vm5602_vm0, %v7193_v46, %v5599_v44 }
0x32ab   :  { %5631 = vperm.xlu1 %6958, %v5603_v51   ;;  %6963 = vset.pattern.permute.xlu2 %v11016_v33 }
0x32ac   :  { %v5607_v48 = vmul.f32 0.5, %v5606_v21 }
0x32ae   :  { %v5608_v41 = vsub.f32 1.5, %v5607_v48 }
0x32b0   :  { %v5609_v39 = vmul.f32 %v7195_v59, %v5608_v41 }
0x32b2   :  { %v5613_v19 = vsel %vm5612_vm3, %v7195_v59, %v5609_v39 }
0x32b3   :  { %5636 = vperm.xlu0 %6961, %v5613_v19   ;;  %6960 = vset.pattern.permute.xlu1 %v11016_v33 }
0x32b4   :  { %5573 = vperm.xlu1 %6960, %v10773_v45  }
0x32e5   :  { %v5627_v3 = vpop.permute.xlu2 %5626 }
0x32e6   :  { %v5644_v1 = vmul.f32 %v5627_v3, %v5576_v5 }
0x32e8   :  { %v5651_v28 = vmul.f32 %v7011_v18, %v5644_v1 }
0x32ea   :  { %v5658_v25 = vadd.f32 %v7012_v49, %v5651_v28 }
0x32ee   :  { %v5569_v45 = vpop.permute.xlu2 %5568 }
0x32ef   :  { %v5578_v40 = vsub.f32 %v10747_v9, %v5569_v45 }
0x32fd   :  { %v5642_v14 = vpop.permute.xlu2 %5641 }
0x331d   :  { %v5632_v36 = vpop.permute.xlu1 %5631 }
0x331e   :  { %v5645_v53 = vmul.f32 %v5632_v36, %v5577_v12 }
0x3320   :  { %v5652_v34 = vmul.f32 %v7011_v18, %v5645_v53 }
0x3322   :  { %v5659_v57 = vadd.f32 %v7012_v49, %v5652_v34 }
0x3324   :  { %v5669_v63 = vpack.c.bf16 %v5659_v57, %v5658_v25 }
0x3325   :  { %v5637_v38 = vpop.permute.xlu0 %5636 }
0x3326   :  { %6697 = vmatmul.msk.bf16.vlgmr.msrb.gmra.mxu0 %vm876_vm4, %v5669_v63  ;;  %v5574_v55 = vpop.permute.xlu1 %5573  ;;  %v5646_v43 = vmul.f32 %v5637_v38, %v5578_v40 }
0x3327   :  { %v5579_v15 = vsub.f32 %v10753_v50, %v5574_v55 }
0x3328   :  { %v5653_v56 = vmul.f32 %v7011_v18, %v5646_v43 }
0x3329   :  { %v5647_v58 = vmul.f32 %v5642_v14, %v5579_v15 }
0x332a   :  { %v5660_v32 = vadd.f32 %v7012_v49, %v5653_v56 }
0x332b   :  { %v5654_v42 = vmul.f32 %v7011_v18, %v5647_v58 }
0x332d   :  { %v5661_v37 = vadd.f32 %v7012_v49, %v5654_v42 }
0x332f   :  { %v5670_v16 = vpack.c.bf16 %v5661_v37, %v5660_v32 }
0x3336   :  { %6698 = vmatmul.msk.bf16.gmra.mxu0 %vm876_vm4, %v5670_v16 }
0x33a3   :  { %v5701_v10 = vpop.f32.mrf.mxu0 }
0x33a4   :  { %v5702_v20 = vadd.f32 %v7013_v62, %v5701_v10 }
0x33a6   :  { %v5711_v50 = vmax.f32 %v5702_v20, 0.0 }
0x33ab   :  { %v5703_v23 = vpop.f32.mrf.mxu0 }
0x33ac   :  { %v5704_v13 = vadd.f32 %v7013_v62, %v5703_v23 }
0x33ae   :  { %v5712_v8 = vmax.f32 %v5704_v13, 0.0 }
0x33b0   :  { %v5726_v9 = vpack.c.bf16 %v5712_v8, %v5711_v50 }
0x33b2   :  { %6723 = vmatmul.msk.bf16.vlgmr.msra.gmra.mxu2 %vm915_vm5, %v5726_v9 }
0x33b3   :  { %v5706_v22 = vpop.f32.mrf.mxu0 }
0x33b4   :  { %v5707_v61 = vadd.f32 %v7013_v62, %v5706_v22 }
0x33b6   :  { %v5713_v52 = vmax.f32 %v5707_v61, 0.0 }
0x33bb   :  { %v5708_v11 = vpop.f32.mrf.mxu0 }
0x33bc   :  { %v5709_v46 = vadd.f32 %v7013_v62, %v5708_v11 }
0x33be   :  { %v5714_v17 = vmax.f32 %v5709_v46, 0.0 }
0x33c0   :  { %v5727_v26 = vpack.c.bf16 %v5714_v17, %v5713_v52 }
0x33c2   :  { %6724 = vmatmul.msk.bf16.gmra.mxu2 %vm915_vm5, %v5727_v26 }
0x3435   :  { %v5770_v54 = vpop.f32.mrf.mxu2 }
0x3436   :  { %v5771_v27 = vadd.f32 %v7014_v0, %v5770_v54 }
0x3438   :  { %v10798_v2 = vadd.f32 %v5771_v27, %v5658_v25 }
0x343a   :  { %v5788_v59 = vmul.f32 %v10798_v2, %v10798_v2 }
0x343c   :  { %5796 = vrot.lane.b32.xlu1 %v5788_v59, %s8340_s0 }
0x343d   :  { %v5772_v60 = vpop.f32.mrf.mxu2 }
0x343e   :  { %v5773_v44 = vadd.f32 %v7014_v0, %v5772_v60 }
0x3440   :  { %v10803_v21 = vadd.f32 %v5773_v44, %v5659_v57 }
0x3442   :  { %v5789_v51 = vmul.f32 %v10803_v21, %v10803_v21 }
0x3444   :  { %5798 = vrot.lane.b32.xlu2 %v5789_v51, %s8340_s0 }
0x3445   :  { %v5775_v48 = vpop.f32.mrf.mxu2 }
0x3446   :  { %v5776_v41 = vadd.f32 %v7014_v0, %v5775_v48 }
0x3448   :  { %v10808_v39 = vadd.f32 %v5776_v41, %v5660_v32 }
0x344a   :  { %v5790_v19 = vmul.f32 %v10808_v39, %v10808_v39 }
0x344c   :  { %5800 = vrot.lane.b32.xlu1 %v5790_v19, %s8340_s0 }
0x344d   :  { %v5777_v47 = vpop.f32.mrf.mxu2 }
0x344e   :  { %v5778_v7 = vadd.f32 %v7014_v0, %v5777_v47 }
0x3450   :  { %v10813_v31 = vadd.f32 %v5778_v7, %v5661_v37 }
0x3452   :  { %v5791_v3 = vmul.f32 %v10813_v31, %v10813_v31 }
0x3454   :  { %5802 = vrot.lane.b32.xlu0 %v5791_v3, %s8340_s0 }
0x349e   :  { %v5799_v30 = vpop.permute.xlu2 %5798 }
0x349f   :  { %v5809_v35 = vsel %vm876_vm4, %v10803_v21, %v5799_v30  ;;  %v7016_v30 = vld [vmem:[#allocation46 + $0x1] ss:$0 sm:$0xff] }
0x34ae   :  { %v5797_v29 = vpop.permute.xlu1 %5796 }
0x34af   :  { %v5808_v5 = vsel %vm876_vm4, %v10798_v2, %v5797_v29  ;;  %v7015_v29 = vld [vmem:[#allocation44 + $0x1] ss:$0 sm:$0xff] }
0x34b0   :  { %6725 = vmatmul.msk.f32.vlgmr.msra.gmra.mxu3 %vm915_vm5, %v5808_v5 }
0x34b8   :  { %6726 = vmatmul.msk.f32.gmra.mxu3 %vm915_vm5, %v5809_v35 }
0x34be   :  { %v5801_v18 = vpop.permute.xlu1 %5800 }
0x34bf   :  { %v5810_v1 = vsel %vm876_vm4, %v10808_v39, %v5801_v18 }
0x34c0   :  { %6727 = vmatmul.msk.f32.gmra.mxu3 %vm915_vm5, %v5810_v1 }
0x34c6   :  { %v5803_v12 = vpop.permute.xlu0 %5802 }
0x34c7   :  { %v5811_v24 = vsel %vm876_vm4, %v10813_v31, %v5803_v12 }
0x34c8   :  { %6728 = vmatmul.msk.f32.gmra.mxu3 %vm915_vm5, %v5811_v24 }
0x3533   :  { %v5841_v36 = vpop.f32.mrf.mxu3 }
0x3534   :  { %v5853_v49 = vmul.f32 %v5841_v36, %v5841_v36 }
0x3536   :  { %5861 = vrot.lane.b32.xlu2 %v5853_v49, %s8298_s16 }
0x353b   :  { %v5844_v28 = vpop.f32.mrf.mxu3 }
0x353c   :  { %v5854_v53 = vmul.f32 %v5844_v28, %v5844_v28 }
0x353e   :  { %5863 = vrot.lane.b32.xlu1 %v5854_v53, %s8298_s16 }
0x3543   :  { %v5847_v45 = vpop.f32.mrf.mxu3 }
0x3544   :  { %v5855_v34 = vmul.f32 %v5847_v45, %v5847_v45 }
0x3546   :  { %5879 = vperm.xlu1 %6960, %v5841_v36   ;;  %5865 = vrot.lane.b32.xlu0 %v5855_v34, %s8298_s16 }
0x354b   :  { %v10833_v25 = vpop.f32.mrf.mxu3 }
0x354c   :  { %v5856_v57 = vmul.f32 %v10833_v25, %v10833_v25 }
0x354e   :  { %5867 = vrot.lane.b32.xlu2 %v5856_v57, %s8298_s16  ;;  %6964 = vset.pattern.permute.xlu1 %v11020_v4 }
0x3556   :  { %5884 = vperm.xlu2 %6963, %v5844_v28  }
0x355e   :  { %6967 = vset.pattern.permute.xlu2 %v11020_v4 }
0x3590   :  { %v5862_v63 = vpop.permute.xlu2 %5861 }
0x3591   :  { %v5873_v55 = vsub.f32 %v5841_v36, %v5862_v63 }
0x3593   :  { %v5901_v38 = vadd.f32 1e-05, %v5873_v55 }
0x3595   :  { %7196 = vrsqrt.f32 %v5901_v38  ;;  %vm5911_vm11 = vweird.f32 %v5901_v38 }
0x359b   :  { %v7197_v15 = vpop.eup %7196 }
0x359c   :  { %v5906_v40 = vmul.f32 %v7197_v15, %v5901_v38  ;;  %vm5912_vm10 = vweird.f32 %v7197_v15 }
0x359d   :  { %vm5913_vm6 = vmor %vm5911_vm11, %vm5912_vm10 }
0x359e   :  { %v5907_v14 = vmul.f32 %v7197_v15, %v5906_v40 }
0x35a0   :  { %v5908_v58 = vmul.f32 0.5, %v5907_v14 }
0x35a2   :  { %v5909_v43 = vsub.f32 1.5, %v5908_v58 }
0x35a4   :  { %v5910_v42 = vmul.f32 %v7197_v15, %v5909_v43 }
0x35a6   :  { %v5914_v56 = vsel %vm5913_vm6, %v7197_v15, %v5910_v42 }
0x35a7   :  { %5947 = vperm.xlu0 %6961, %v5914_v56  }
0x35a8   :  { %v5868_v37 = vpop.permute.xlu2 %5867 }
0x35a9   :  { %v5876_v16 = vsub.f32 %v10833_v25, %v5868_v37 }
0x35ab   :  { %v5904_v62 = vadd.f32 1e-05, %v5876_v16 }
0x35ad   :  { %vm5941_vm0 = vweird.f32 %v5904_v62 }
0x35af   :  { %6965 = vset.pattern.permute.xlu0 %v11016_v33 }
0x35b0   :  { %5889 = vperm.xlu0 %6965, %v5847_v45   ;;  %v5864_v32 = vpop.permute.xlu1 %5863  ;;  %v5885_v24 = vpop.permute.xlu2 %5884 }
0x35b1   :  { %v5874_v6 = vsub.f32 %v5844_v28, %v5864_v32 }
0x35b3   :  { %v5902_v10 = vadd.f32 1e-05, %v5874_v6 }
0x35b5   :  { %7198 = vrsqrt.f32 %v5902_v10  ;;  %vm5921_vm8 = vweird.f32 %v5902_v10 }
0x35b6   :  { %7200 = vrsqrt.f32 %v5904_v62 }
0x35b8   :  { %v5866_v20 = vpop.permute.xlu0 %5865  ;;  %6969 = vset.pattern.permute.xlu0 %v11020_v4  ;;  %v5880_v7 = vpop.permute.xlu1 %5879 }
0x35b9   :  { %v5875_v23 = vsub.f32 %v5847_v45, %v5866_v20  ;;  %v5897_v3 = vsub.f32 %v10798_v2, %v5880_v7 }
0x35bb   :  { %v7199_v13 = vpop.eup %7198  ;;  %v5903_v50 = vadd.f32 1e-05, %v5875_v23 }
0x35bc   :  { %v5916_v8 = vmul.f32 %v7199_v13, %v5902_v10  ;;  %v7201_v22 = vpop.eup %7200  ;;  %vm5922_vm7 = vweird.f32 %v7199_v13 }
0x35bd   :  { %7202 = vrsqrt.f32 %v5903_v50  ;;  %v5936_v11 = vmul.f32 %v7201_v22, %v5904_v62  ;;  %vm5923_vm9 = vmor %vm5921_vm8, %vm5922_vm7  ;;  %vm5931_vm13 = vweird.f32 %v5903_v50  ;;  %vm5942_vm15 = vweird.f32 %v7201_v22 }
0x35be   :  { %v5917_v9 = vmul.f32 %v7199_v13, %v5916_v8  ;;  %vm5943_vm1 = vmor %vm5941_vm0, %vm5942_vm15 }
0x35bf   :  { %v5937_v0 = vmul.f32 %v7201_v22, %v5936_v11 }
0x35c0   :  { %v5918_v61 = vmul.f32 0.5, %v5917_v9 }
0x35c1   :  { %v5938_v60 = vmul.f32 0.5, %v5937_v0 }
0x35c2   :  { %v5919_v46 = vsub.f32 1.5, %v5918_v61 }
0x35c3   :  { %v7203_v52 = vpop.eup %7202  ;;  %v5939_v48 = vsub.f32 1.5, %v5938_v60 }
0x35c4   :  { %v5926_v17 = vmul.f32 %v7203_v52, %v5903_v50  ;;  %v5920_v26 = vmul.f32 %v7199_v13, %v5919_v46  ;;  %vm5932_vm12 = vweird.f32 %v7203_v52 }
0x35c5   :  { %vm5933_vm14 = vmor %vm5931_vm13, %vm5932_vm12  ;;  %v5940_v19 = vmul.f32 %v7201_v22, %v5939_v48 }
0x35c6   :  { %v5927_v54 = vmul.f32 %v7203_v52, %v5926_v17  ;;  %v5924_v27 = vsel %vm5923_vm9, %v7199_v13, %v5920_v26 }
0x35c7   :  { %5952 = vperm.xlu1 %6964, %v5924_v27   ;;  %v5944_v47 = vsel %vm5943_vm1, %v7201_v22, %v5940_v19 }
0x35c8   :  { %v5928_v59 = vmul.f32 0.5, %v5927_v54 }
0x35ca   :  { %v5929_v44 = vsub.f32 1.5, %v5928_v59 }
0x35cc   :  { %v5930_v51 = vmul.f32 %v7203_v52, %v5929_v44 }
0x35ce   :  { %v5934_v41 = vsel %vm5933_vm14, %v7203_v52, %v5930_v51 }
0x35cf   :  { %5957 = vperm.xlu2 %6967, %v5934_v41   ;;  %6966 = vset.pattern.permute.xlu1 %v11016_v33 }
0x35d0   :  { %5894 = vperm.xlu1 %6966, %v10833_v25   ;;  %v5898_v25 = vsub.f32 %v10803_v21, %v5885_v24 }
0x35d7   :  { %5962 = vperm.xlu2 %6967, %v5944_v47  }
0x35df   :  { %6968 = vset.pattern.permute.xlu2 %v11016_v33 }
0x3619   :  { %v5948_v5 = vpop.permute.xlu0 %5947 }
0x361a   :  { %v5965_v35 = vmul.f32 %v5948_v5, %v5897_v3 }
0x361c   :  { %v5972_v18 = vmul.f32 %v7015_v29, %v5965_v35 }
0x361e   :  { %v10847_v1 = vadd.f32 %v7016_v30, %v5972_v18 }
0x3620   :  { %v5985_v12 = vmul.f32 %v10847_v1, %v10847_v1 }
0x3622   :  { %5993 = vrot.lane.b32.xlu1 %v5985_v12, %s8340_s0  ;;  %v5890_v36 = vpop.permute.xlu0 %5889 }
0x3623   :  { %v5899_v49 = vsub.f32 %v10808_v39, %v5890_v36 }
0x3629   :  { %v5958_v28 = vpop.permute.xlu2 %5957 }
0x362a   :  { %v5967_v53 = vmul.f32 %v5958_v28, %v5899_v49 }
0x362c   :  { %v5974_v45 = vmul.f32 %v7015_v29, %v5967_v53 }
0x362e   :  { %v10853_v2 = vadd.f32 %v7016_v30, %v5974_v45 }
0x3630   :  { %v5987_v34 = vmul.f32 %v10853_v2, %v10853_v2 }
0x3631   :  { %v5963_v14 = vpop.permute.xlu2 %5962 }
0x3632   :  { %5997 = vrot.lane.b32.xlu2 %v5987_v34, %s8340_s0 }
0x3639   :  { %v5953_v57 = vpop.permute.xlu1 %5952 }
0x363a   :  { %v5966_v63 = vmul.f32 %v5953_v57, %v5898_v25 }
0x363c   :  { %v5973_v55 = vmul.f32 %v7015_v29, %v5966_v63 }
0x363e   :  { %v10859_v38 = vadd.f32 %v7016_v30, %v5973_v55 }
0x3640   :  { %v5986_v39 = vmul.f32 %v10859_v38, %v10859_v38 }
0x3642   :  { %5995 = vrot.lane.b32.xlu0 %v5986_v39, %s8340_s0  ;;  %v5895_v15 = vpop.permute.xlu1 %5894 }
0x3643   :  { %v5900_v40 = vsub.f32 %v10813_v31, %v5895_v15 }
0x3645   :  { %v5968_v58 = vmul.f32 %v5963_v14, %v5900_v40  ;;  %v6796_v14 = vld [vmem:[%s11035_s17 + $0x8] sm:$0xff] }
0x3646   :  { %6214 = vmatpush.bf16.msra.mxu0 %v6796_v14 }
0x3647   :  { %v5975_v43 = vmul.f32 %v7015_v29, %v5968_v58  ;;  %v6795_v58 = vld [vmem:[%s11035_s17] sm:$0xff] }
0x3649   :  { %v10865_v42 = vadd.f32 %v7016_v30, %v5975_v43 }
0x364a   :  { %6215 = vmatpush.bf16.msra.mxu0 %v6795_v58 }
0x364b   :  { %v5988_v21 = vmul.f32 %v10865_v42, %v10865_v42 }
0x364d   :  { %5999 = vrot.lane.b32.xlu1 %v5988_v21, %s8340_s0 }
0x368c   :  { %v5998_v16 = vpop.permute.xlu2 %5997 }
0x368d   :  { %v6007_v6 = vsel %vm876_vm4, %v10853_v2, %v5998_v16 }
0x3694   :  { %v5994_v56 = vpop.permute.xlu1 %5993 }
0x3695   :  { %v6005_v37 = vsel %vm876_vm4, %v10847_v1, %v5994_v56 }
0x3696   :  { %6729 = vmatmul.msk.f32.vlgmr.msra.gmra.mxu1 %vm915_vm5, %v6005_v37 }
0x36b4   :  { %v5996_v32 = vpop.permute.xlu0 %5995 }
0x36b5   :  { %v6006_v31 = vsel %vm876_vm4, %v10859_v38, %v5996_v32  ;;  %v7017_v32 = vld [vmem:[#allocation50] ss:$0 sm:$0xff] }
0x36b6   :  { %6730 = vmatmul.msk.f32.gmra.mxu1 %vm915_vm5, %v6006_v31 }
0x36be   :  { %6731 = vmatmul.msk.f32.gmra.mxu1 %vm915_vm5, %v6007_v6 }
0x36bf   :  { %v6000_v10 = vpop.permute.xlu1 %5999 }
0x36c0   :  { %v6008_v62 = vsel %vm876_vm4, %v10865_v42, %v6000_v10  ;;  %v7018_v10 = vld [vmem:[#allocation52] ss:$0 sm:$0xff] }
0x36c6   :  { %6732 = vmatmul.msk.f32.gmra.mxu1 %vm915_vm5, %v6008_v62 }
0x3713   :  { %v6038_v20 = vpop.f32.mrf.mxu1 }
0x3714   :  { %v6050_v23 = vmul.f32 %v6038_v20, %v6038_v20 }
0x3716   :  { %6058 = vrot.lane.b32.xlu0 %v6050_v23, %s8298_s16 }
0x3733   :  { %v6041_v13 = vpop.f32.mrf.mxu1 }
0x3734   :  { %v6051_v50 = vmul.f32 %v6041_v13, %v6041_v13 }
0x3736   :  { %6060 = vrot.lane.b32.xlu2 %v6051_v50, %s8298_s16 }
0x373b   :  { %v6044_v8 = vpop.f32.mrf.mxu1 }
0x373c   :  { %v6052_v9 = vmul.f32 %v6044_v8, %v6044_v8 }
0x373e   :  { %6076 = vperm.xlu2 %6968, %v6038_v20   ;;  %6062 = vrot.lane.b32.xlu1 %v6052_v9, %s8298_s16 }
0x3743   :  { %v6047_v22 = vpop.f32.mrf.mxu1 }
0x3744   :  { %v6053_v61 = vmul.f32 %v6047_v22, %v6047_v22 }
0x3746   :  { %6081 = vperm.xlu1 %6966, %v6041_v13   ;;  %6064 = vrot.lane.b32.xlu0 %v6053_v61, %s8298_s16  ;;  %s6237_s16 = sshll.u32 %s8591_s3, 4  ;;  %s6238_s16 = int_to_ptr.hbm [resolvable:$true] %s6237_s16 }
0x3747   :  { %6970 = vset.pattern.permute.xlu2 %v11020_v4  ;;  %s8198_s28 = sshra.s32 %s6238_s16, 4  ;;  %s8199_s28 = int_to_ptr.hbm [resolvable:$true] %s8198_s28 }
0x3748   :  { %s8200_s22 = scalar_lea.hbm %s8199_s28, 32  ;;  %p8203_p8 = scmp.lt.s32.totalorder %s8199_s28, %s8591_s3 }
0x3749   :  { %p8201_p7 = scmp.ne.s32.totalorder %s8199_s28, %s8200_s22  ;;  %p8204_p9 = scmp.lt.s32.totalorder %s8202_s15, %s8200_s22 }
0x374b   :  { %p8205_p10 = por %p8204_p9, %p8203_p8 }
0x374d   :  { %p8206_p11 = pnand %p8205_p10, %p8201_p7 }
0x374e   :  { %6086 = vperm.xlu1 %6966, %v6044_v8  }
0x3756   :  { %6972 = vset.pattern.permute.xlu1 %v11020_v4 }
0x3788   :  { %v6059_v11 = vpop.permute.xlu0 %6058 }
0x3789   :  { %v6070_v46 = vsub.f32 %v6038_v20, %v6059_v11 }
0x378b   :  { %v6098_v52 = vadd.f32 1e-05, %v6070_v46 }
0x378d   :  { %7204 = vrsqrt.f32 %v6098_v52  ;;  %vm6108_vm2 = vweird.f32 %v6098_v52 }
0x3790   :  { %v6061_v17 = vpop.permute.xlu2 %6060 }
0x3791   :  { %v6071_v26 = vsub.f32 %v6041_v13, %v6061_v17 }
0x3793   :  { %v7205_v0 = vpop.eup %7204  ;;  %v6099_v54 = vadd.f32 1e-05, %v6071_v26 }
0x3794   :  { %v6103_v27 = vmul.f32 %v7205_v0, %v6098_v52  ;;  %vm6109_vm5 = vweird.f32 %v7205_v0 }
0x3795   :  { %7206 = vrsqrt.f32 %v6099_v54  ;;  %vm6110_vm3 = vmor %vm6108_vm2, %vm6109_vm5  ;;  %vm6118_vm11 = vweird.f32 %v6099_v54 }
0x3796   :  { %v6104_v59 = vmul.f32 %v7205_v0, %v6103_v27 }
0x3798   :  { %v6105_v60 = vmul.f32 0.5, %v6104_v59  ;;  %v6077_v43 = vpop.permute.xlu2 %6076  ;;  %v7019_v59 = vld [vmem:[#allocation53] ss:$0 sm:$0xff] }
0x3799   :  { %v6094_v16 = vsub.f32 %v10847_v1, %v6077_v43 }
0x379a   :  { %v6106_v44 = vsub.f32 1.5, %v6105_v60 }
0x379b   :  { %v7207_v51 = vpop.eup %7206 }
0x379c   :  { %v6113_v48 = vmul.f32 %v7207_v51, %v6099_v54  ;;  %v6107_v41 = vmul.f32 %v7205_v0, %v6106_v44  ;;  %vm6119_vm10 = vweird.f32 %v7207_v51 }
0x379d   :  { %vm6120_vm6 = vmor %vm6118_vm11, %vm6119_vm10 }
0x379e   :  { %v6114_v4 = vmul.f32 %v7207_v51, %v6113_v48  ;;  %v6111_v19 = vsel %vm6110_vm3, %v7205_v0, %v6107_v41 }
0x379f   :  { %6144 = vperm.xlu0 %6969, %v6111_v19  }
0x37a0   :  { %v6115_v47 = vmul.f32 0.5, %v6114_v4 }
0x37a2   :  { %v6116_v7 = vsub.f32 1.5, %v6115_v47 }
0x37a4   :  { %v6117_v3 = vmul.f32 %v7207_v51, %v6116_v7 }
0x37a6   :  { %v6121_v29 = vsel %vm6120_vm6, %v7207_v51, %v6117_v3 }
0x37a7   :  { %6149 = vperm.xlu2 %6970, %v6121_v29  }
0x37af   :  { %6971 = vset.pattern.permute.xlu2 %v11016_v33 }
0x37b0   :  { %6091 = vperm.xlu2 %6971, %v6047_v22   ;;  %v6063_v5 = vpop.permute.xlu1 %6062 }
0x37b1   :  { %v6072_v30 = vsub.f32 %v6044_v8, %v6063_v5 }
0x37b3   :  { %v6100_v35 = vadd.f32 1e-05, %v6072_v30 }
0x37b5   :  { %7208 = vrsqrt.f32 %v6100_v35  ;;  %vm6128_vm8 = vweird.f32 %v6100_v35 }
0x37b8   :  { %v6065_v18 = vpop.permute.xlu0 %6064  ;;  %v6082_v21 = vpop.permute.xlu1 %6081 }
0x37b9   :  { %v6073_v12 = vsub.f32 %v6047_v22, %v6065_v18  ;;  %v6095_v37 = vsub.f32 %v10859_v38, %v6082_v21 }
0x37bb   :  { %v7209_v24 = vpop.eup %7208  ;;  %v6101_v36 = vadd.f32 1e-05, %v6073_v12 }
0x37bc   :  { %v6123_v49 = vmul.f32 %v7209_v24, %v6100_v35  ;;  %vm6129_vm7 = vweird.f32 %v7209_v24 }
0x37bd   :  { %7210 = vrsqrt.f32 %v6101_v36  ;;  %vm6130_vm9 = vmor %vm6128_vm8, %vm6129_vm7  ;;  %vm6138_vm13 = vweird.f32 %v6101_v36 }
0x37be   :  { %v6124_v28 = vmul.f32 %v7209_v24, %v6123_v49 }
0x37c0   :  { %v6125_v53 = vmul.f32 0.5, %v6124_v28  ;;  %v6087_v9 = vpop.permute.xlu1 %6086 }
0x37c1   :  { %v6096_v61 = vsub.f32 %v10853_v2, %v6087_v9 }
0x37c2   :  { %v6126_v45 = vsub.f32 1.5, %v6125_v53 }
0x37c3   :  { %v7211_v34 = vpop.eup %7210 }
0x37c4   :  { %v6133_v25 = vmul.f32 %v7211_v34, %v6101_v36  ;;  %v6127_v33 = vmul.f32 %v7209_v24, %v6126_v45  ;;  %vm6139_vm12 = vweird.f32 %v7211_v34 }
0x37c5   :  { %vm6140_vm14 = vmor %vm6138_vm13, %vm6139_vm12 }
0x37c6   :  { %v6134_v57 = vmul.f32 %v7211_v34, %v6133_v25  ;;  %v6131_v63 = vsel %vm6130_vm9, %v7209_v24, %v6127_v33 }
0x37c7   :  { %6154 = vperm.xlu1 %6972, %v6131_v63  }
0x37c8   :  { %v6135_v55 = vmul.f32 0.5, %v6134_v57 }
0x37ca   :  { %v6136_v39 = vsub.f32 1.5, %v6135_v55 }
0x37cc   :  { %v6137_v15 = vmul.f32 %v7211_v34, %v6136_v39 }
0x37ce   :  { %v6141_v40 = vsel %vm6140_vm14, %v7211_v34, %v6137_v15 }
0x37cf   :  { %6159 = vperm.xlu0 %6969, %v6141_v40  }
0x3801   :  { %v6150_v56 = vpop.permute.xlu2 %6149 }
0x3802   :  { %v6163_v31 = vmul.f32 %v6150_v56, %v6095_v37 }
0x3804   :  { %v6170_v62 = vmul.f32 %v7017_v32, %v6163_v31 }
0x3806   :  { %v6177_v13 = vadd.f32 %v7018_v10, %v6170_v62 }
0x380a   :  { %v6092_v11 = vpop.permute.xlu2 %6091 }
0x380b   :  { %v6097_v46 = vsub.f32 %v10865_v42, %v6092_v11 }
0x3811   :  { %v6145_v6 = vpop.permute.xlu0 %6144 }
0x3812   :  { %v6162_v20 = vmul.f32 %v6145_v6, %v6094_v16 }
0x3814   :  { %v6169_v23 = vmul.f32 %v7017_v32, %v6162_v20 }
0x3816   :  { %v6176_v50 = vadd.f32 %v7018_v10, %v6169_v23 }
0x3818   :  { %v6185_v8 = vpack.c.bf16 %v6177_v13, %v6176_v50 }
0x381a   :  { %6741 = vmatmul.msk.bf16.vlgmr.msra.gmra.mxu0 %vm876_vm4, %v6185_v8 }
0x3839   :  { %v6155_v22 = vpop.permute.xlu1 %6154 }
0x383a   :  { %v6164_v38 = vmul.f32 %v6155_v22, %v6096_v61 }
0x383c   :  { %v6171_v1 = vmul.f32 %v7017_v32, %v6164_v38 }
0x383e   :  { %v6178_v0 = vadd.f32 %v7018_v10, %v6171_v1 }
0x3841   :  { %v6160_v52 = vpop.permute.xlu0 %6159 }
0x3842   :  { %v6165_v17 = vmul.f32 %v6160_v52, %v6097_v46 }
0x3844   :  { %v6172_v26 = vmul.f32 %v7017_v32, %v6165_v17 }
0x3846   :  { %v6179_v54 = vadd.f32 %v7018_v10, %v6172_v26 }
0x3848   :  { %v6186_v27 = vpack.c.bf16 %v6179_v54, %v6178_v0 }
0x384a   :  { %6742 = vmatmul.msk.bf16.gmra.mxu0 %vm876_vm4, %v6186_v27 }
0x3897   :  { %v6217_v60 = vpop.f32.mrf.mxu0 }
0x3898   :  { %v6218_v44 = vadd.f32 %v7019_v59, %v6217_v60 }
0x389a   :  { %6227 = vst [vmem:[#allocation56] sm:$0xff] %v6218_v44 }
0x389f   :  { %v6219_v51 = vpop.f32.mrf.mxu0 }
0x38a0   :  { %v6220_v2 = vadd.f32 %v7019_v59, %v6219_v51 }
0x38a2   :  { %6228 = vst [vmem:[#allocation56 + $0x8] sm:$0xff] %v6220_v2 }
0x38c7   :  { %v6222_v48 = vpop.f32.mrf.mxu0 }
0x38c8   :  { %v6223_v42 = vadd.f32 %v7019_v59, %v6222_v48 }
0x38ca   :  { %6229 = vst [vmem:[#allocation56 + $0x10] sm:$0xff] %v6223_v42 }
0x38cf   :  { %v6224_v41 = vpop.f32.mrf.mxu0 }
0x38d0   :  { %v6225_v4 = vadd.f32 %v7019_v59, %v6224_v41 }
0x38d2   :  { %6230 = vst [vmem:[#allocation56 + $0x18] sm:$0xff] %v6225_v4 }
0x38d3   :  { %8209 = shalt.err (!%p8206_p11)
}
0x38d4   :  { %6243 = dma.vmem_to_hbm [thread:$0]  %s6236_s12, 512, %s6238_s16, [#allocation4], %s8318_s2, %s8318_s2, %s8319_s20  }
0x38d5   :  { %8246 = dma.done.wait [#allocation4], 512  }
0x38d6   :  { %8247 = vsyncadd [#allocation4], 4294966784 }
0x38d7   :  { %6248 = vsyncpa [#allocation3], 1 }
0x38d8   :  { %6249 = vsyncpa [#allocation6], 1 }
0x38d9   :  { %6250 = vsyncpa [#allocation9], 1 }
0x38da   :  { %6251 = vsyncpa [#allocation12], 1 }
0x38db   :  { %6252 = vsyncpa [#allocation15], 1 }
0x38dc   :  { %6253 = vsyncpa [#allocation18], 1 }
0x38dd   :  { %6254 = vsyncpa [#allocation21], 1 }
0x38de   :  { %6255 = vsyncpa [#allocation24], 1 }
0x38df   :  { %6256 = vsyncpa [#allocation27], 1 }
0x38e0   :  { %6257 = vsyncpa [#allocation30], 1 }
0x38e1   :  { %6258 = vsyncpa [#allocation33], 1 }
0x38e2   :  { %6259 = vsyncpa [#allocation36], 1 }
0x38e3   :  { %6260 = vsyncpa [#allocation39], 1 }
0x38e4   :  { %6261 = vsyncpa [#allocation42], 1 }
0x38e5   :  { %6262 = vsyncpa [#allocation45], 1 }
0x38e6   :  { %6263 = vsyncpa [#allocation48], 1 }
0x38e7   :  { %6264 = vsyncpa [#allocation51], 1 }
0x38e8   :  { %6265 = vsyncpa [#allocation54], 1 }
0x38e9   :  { %6266 = vsyncpa [#allocation4], 1 }

</bundles_post_ra>
